<compile_context>
chip_gen: v7x
topology: tpu7x:2x2x1
jax: 0.10.0
libtpu: 0.0.40
codegen_flags: <defaults>
</compile_context>

<pallas_src>
import jax
import jax.numpy as jnp
from jax.experimental import pallas as pl
from jax.experimental.pallas import tpu as pltpu

EPS = 1e-5            # nn.BatchNorm2d default eps
_PER_TAP_MIN_C = 64   # channel width at which im2col stops paying for itself


def _zero_border(ref):
    """Zero only the 1-pixel spatial border of an (N, Hp, Wp, C) padded scratch.

    Zero constants are built once and reused for both opposing edges; corners
    are covered by the row writes so the column writes span only Hp-2 rows.
    (Kept f32: 32-bit store granularity, no packed-sublane partial stores.)
    """
    N, Hp, Wp, C = ref.shape
    zrow = jnp.zeros((N, 1, Wp, C), ref.dtype)
    ref[:, 0:1, :, :] = zrow
    ref[:, Hp - 1:Hp, :, :] = zrow
    zcol = jnp.zeros((N, Hp - 2, 1, C), ref.dtype)
    ref[:, 1:Hp - 1, 0:1, :] = zcol
    ref[:, 1:Hp - 1, Wp - 1:Wp, :] = zcol


def _conv3x3_im2col(padded_ref, patch_ref, w_ref):
    """3x3 conv as ONE MXU matmul via a bf16 im2col scratch (small-C path).

    The nine shifted tap windows are cast to bf16 once at scatter time,
    tap-major / channel-minor, matching an HWIO (3,3,Ci,Co) weight flattened to
    (9*Ci, Co).  Returns the (M, Co) f32 accumulator.
    """
    N, Hp, Wp, C = padded_ref.shape
    H, W = Hp - 2, Wp - 2
    M = N * H * W
    t = 0
    for dy in range(3):
        for dx in range(3):
            win = padded_ref[:, dy:dy + H, dx:dx + W, :]
            patch_ref[:, t * C:(t + 1) * C] = win.reshape(M, C).astype(jnp.bfloat16)
            t += 1
    return jnp.dot(patch_ref[...], w_ref[...], preferred_element_type=jnp.float32)


def _conv3x3_taps(padded_ref, w_ref):
    """3x3 conv as nine accumulated per-tap matmuls (K = C per tap).

    Used when C >= _PER_TAP_MIN_C: each per-tap K already fills the MXU, so the
    9x im2col activation duplication (the dominant VMEM / store cost at scale)
    buys nothing and is dropped entirely.  Returns the (M, Co) f32 accumulator.
    """
    N, Hp, Wp, C = padded_ref.shape
    H, W = Hp - 2, Wp - 2
    M = N * H * W
    acc = None
    t = 0
    for dy in range(3):
        for dx in range(3):
            win = padded_ref[:, dy:dy + H, dx:dx + W, :].reshape(M, C)
            part = jnp.dot(win.astype(jnp.bfloat16), w_ref[t * C:(t + 1) * C, :],
                           preferred_element_type=jnp.float32)
            acc = part if acc is None else acc + part
            t += 1
    return acc


def _bn_relu(acc, g_ref, be_ref):
    """Training-mode BatchNorm + ReLU on an (M, C) f32 conv accumulator.

    Two-pass centered statistics (mean, then mean((x-mean)^2)) -- numerically
    safe vs. the one-pass E[x^2]-E[x]^2 form, and nearly free since `acc` stays
    resident.  The Conv2d bias cancels exactly under batch statistics
    ((conv + b) - mean(conv + b) == conv - mean(conv)), so it is folded out.
    """
    m = acc.shape[0]
    mean = jnp.sum(acc, axis=0, keepdims=True) * (1.0 / m)
    centered = acc - mean
    var = jnp.sum(centered * centered, axis=0, keepdims=True) * (1.0 / m)
    scale = g_ref[...] * jax.lax.rsqrt(var + EPS)          # gamma / std
    return jnp.maximum(centered * scale + be_ref[...], 0.0)


def _make_kernel(im2col1, im2col2):
    def kernel(x_ref, w1_ref, g1_ref, be1_ref, w2_ref, g2_ref, be2_ref,
               o_ref, *scratch):
        # x_ref  : (N, H, W, Cin)    f32 NHWC input
        # w1_ref : (9*Cin,  Cmid)    bf16 flattened HWIO weights, stage 1
        # w2_ref : (9*Cmid, Cout)    bf16 flattened HWIO weights, stage 2
        # g*/be* : (1, C)            f32 BN gamma / beta
        # o_ref  : (N*H*W, Cout)     f32 output, pixel-major
        # scratch: padded-input f32, padded-mid f32,
        #          [bf16 im2col stage 1], [bf16 im2col stage 2]
        N, H, W, Cin = x_ref.shape
        Cmid = w1_ref.shape[-1]
        it = iter(scratch)
        xp_ref = next(it)
        midp_ref = next(it)
        p1_ref = next(it) if im2col1 else None
        p2_ref = next(it) if im2col2 else None

        # ---------------- stage 1: Conv3x3 -> BN -> ReLU ----------------
        _zero_border(xp_ref)                          # border only
        xp_ref[:, 1:H + 1, 1:W + 1, :] = x_ref[...]   # interior written once
        acc1 = (_conv3x3_im2col(xp_ref, p1_ref, w1_ref) if im2col1
                else _conv3x3_taps(xp_ref, w1_ref))
        y = _bn_relu(acc1, g1_ref, be1_ref)           # (M, Cmid) f32

        # ---------------- stage 2: Conv3x3 -> BN -> ReLU ----------------
        _zero_border(midp_ref)
        midp_ref[:, 1:H + 1, 1:W + 1, :] = y.reshape(N, H, W, Cmid)
        acc2 = (_conv3x3_im2col(midp_ref, p2_ref, w2_ref) if im2col2
                else _conv3x3_taps(midp_ref, w2_ref))
        o_ref[...] = _bn_relu(acc2, g2_ref, be2_ref)  # (M, Cout) f32

    return kernel


def _vmem_limit_bytes(resident_bytes):
    """1.5x the accurate resident set, floored at the default scoped limit and
    clamped to the chip's physical VMEM (64 MiB v7x, 128 MiB v5e/v6e)."""
    try:
        cap = int(pltpu.get_tpu_info().vmem_capacity_bytes)
    except Exception:
        cap = 64 * 1024 * 1024          # conservative: smallest current gen
    want = max(int(1.5 * resident_bytes), 32 * 1024 * 1024)
    return int(min(want, cap))


def double_conv(x_nchw, params):
    """DoubleConv forward.  x_nchw: (N, Cin, H, W) f32 -> (N, Cout, H, W) f32."""
    w1, b1, g1, be1, w2, b2, g2, be2 = params
    # Conv biases cancel exactly under training-mode BatchNorm (see _bn_relu),
    # so they are folded out and never shipped to the device.
    del b1, b2
    N, Cin, H, W = x_nchw.shape
    Cmid = w1.shape[-1]
    Cout = w2.shape[-1]
    M = N * H * W
    im2col1 = Cin < _PER_TAP_MIN_C     # single big-K matmul only pays at tiny C
    im2col2 = Cmid < _PER_TAP_MIN_C

    # NCHW -> NHWC glue for the PyTorch interface; channels ride the lane axis.
    # TODO(synk): accept/produce NHWC end-to-end to drop these transposes.
    x = jnp.transpose(x_nchw, (0, 2, 3, 1)).astype(jnp.float32)

    # Flattened im2col weights: HWIO (3,3,Ci,Co) -> (9*Ci, Co), bf16 for the MXU.
    w1r = w1.reshape(9 * Cin, Cmid).astype(jnp.bfloat16)
    w2r = w2.reshape(9 * Cmid, Cout).astype(jnp.bfloat16)

    scratch_shapes = [
        pltpu.VMEM((N, H + 2, W + 2, Cin), jnp.float32),   # padded input
        pltpu.VMEM((N, H + 2, W + 2, Cmid), jnp.float32),  # padded stage-1 act
    ]
    if im2col1:
        scratch_shapes.append(pltpu.VMEM((M, 9 * Cin), jnp.bfloat16))
    if im2col2:
        scratch_shapes.append(pltpu.VMEM((M, 9 * Cmid), jnp.bfloat16))

    resident_bytes = (
        4 * (x.size + M * Cout)                              # input + output
        + 2 * (w1r.size + w2r.size)                          # bf16 weights
        + 4 * N * (H + 2) * (W + 2) * (Cin + Cmid)           # padded scratches
        + (2 * M * 9 * Cin if im2col1 else 0)                # bf16 im2col
        + (2 * M * 9 * Cmid if im2col2 else 0)
        + 4 * M * 2 * (Cmid + Cout)                          # f32 acc/centered/y
        + 2 * M * max(Cin, Cmid)                             # bf16 cast temps
    )

    # TODO(synk): for shapes that exceed VMEM (realistic UNet sizes), restructure
    # to an (N, H-row-tile) grid with 1-row halo and a streaming two-pass
    # BatchNorm (per-tile partial sum/sumsq outputs, finalize, apply fused into
    # the next conv), mark the tile axis "parallel" (v7x megacore), size row
    # tiles >= 256 pixels for the 256x256 MXU, and consider pl.Buffered(3) on
    # the input spec for v5e if the DMA is exposed.  Needs a multi-phase HBM
    # pass because BN statistics are global over (N,H,W) between the two convs.
    # TODO(synk): lane-dense (M//16, 16*Cout) output slab for tiny Cout (masked
    # vst fix); skipped -- needs a lane-dim-changing in-kernel reshape.
    out2d = pl.pallas_call(
        _make_kernel(im2col1, im2col2),
        out_shape=jax.ShapeDtypeStruct((M, Cout), jnp.float32),
        in_specs=[pl.BlockSpec(memory_space=pltpu.MemorySpace.VMEM)] * 7,
        out_specs=pl.BlockSpec(memory_space=pltpu.MemorySpace.VMEM),
        scratch_shapes=scratch_shapes,
        compiler_params=pltpu.CompilerParams(
            vmem_limit_bytes=_vmem_limit_bytes(resident_bytes)),
    )(x, w1r, g1.reshape(1, -1), be1.reshape(1, -1),
      w2r, g2.reshape(1, -1), be2.reshape(1, -1))

    out = out2d.reshape(N, H, W, Cout)
    return jnp.transpose(out, (0, 3, 1, 2))   # NHWC -> NCHW


def double_conv_reference(x_nchw, params):
    """Pure-JAX f32 (HIGHEST-precision conv) reference of the PyTorch module
    in train mode (batch statistics, biased variance)."""
    w1, b1, g1, be1, w2, b2, g2, be2 = params

    def stage(x, w, b, g, be):
        y = jax.lax.conv_general_dilated(
            x, w, window_strides=(1, 1), padding=((1, 1), (1, 1)),
            dimension_numbers=("NCHW", "HWIO", "NCHW"),
            precision=jax.lax.Precision.HIGHEST)
        y = y + b[None, :, None, None]
        mean = jnp.mean(y, axis=(0, 2, 3), keepdims=True)
        var = jnp.mean(jnp.square(y - mean), axis=(0, 2, 3), keepdims=True)
        y = (y - mean) * jax.lax.rsqrt(var + EPS)
        y = y * g[None, :, None, None] + be[None, :, None, None]
        return jnp.maximum(y, 0.0)

    return stage(stage(x_nchw, w1, b1, g1, be1), w2, b2, g2, be2)


def init_params(key, in_ch, out_ch):
    """Deterministic init mirroring the module's parameter shapes.
    Conv2d weights: PyTorch (out, in, 3, 3) -> stored here as HWIO (3, 3, in, out)
    (a PyTorch checkpoint maps via w.transpose(2, 3, 1, 0)).
    BatchNorm2d: weight=1, bias=0 (PyTorch defaults)."""
    k1, k2, k3, k4 = jax.random.split(key, 4)

    def conv_init(kw, kb, cin, cout):
        fan_in = cin * 9
        bound = 1.0 / jnp.sqrt(fan_in)
        w = jax.random.uniform(kw, (3, 3, cin, cout), jnp.float32, -bound, bound)
        b = jax.random.uniform(kb, (cout,), jnp.float32, -bound, bound)
        return w, b

    w1, b1 = conv_init(k1, k2, in_ch, out_ch)
    w2, b2 = conv_init(k3, k4, out_ch, out_ch)
    g1 = jnp.ones((out_ch,), jnp.float32)
    be1 = jnp.zeros((out_ch,), jnp.float32)
    g2 = jnp.ones((out_ch,), jnp.float32)
    be2 = jnp.zeros((out_ch,), jnp.float32)
    return (w1, b1, g1, be1, w2, b2, g2, be2)


if __name__ == "__main__":
    def run_case(case_key, N, Cin, Cout, H, W, tol=0.25):
        kx, kp = jax.random.split(case_key)
        x = jax.random.normal(kx, (N, Cin, H, W), jnp.float32)   # NCHW, PyTorch-style
        params = init_params(kp, Cin, Cout)
        out = jax.block_until_ready(jax.jit(double_conv)(x, params))
        ref = jax.block_until_ready(double_conv_reference(x, params))
        assert out.shape == (N, Cout, H, W)
        assert bool(jnp.all(jnp.isfinite(out)))
        err = float(jnp.max(jnp.abs(out - ref)))
        assert err < tol, f"max abs err vs reference: {err}"

    key = jax.random.PRNGKey(0)
    k1, k2 = jax.random.split(key)
    # Spec'd demo shape: exercises the bf16-im2col (small-C) path.
    run_case(k1, N=2, Cin=4, Cout=8, H=16, W=16)
    # Wider channels: exercises the per-tap (C >= 64, no-im2col) path.
    run_case(k2, N=1, Cin=64, Cout=64, H=16, W=16)
    print("KERNEL_OK")
</pallas_src>

<mosaic_0001>
module attributes {stable_mosaic.version = 11 : i64} {
  func.func @kernel(%arg0: memref<2x16x16x4xf32, #tpu.memory_space<vmem>>, %arg1: memref<36x8xbf16, #tpu.memory_space<vmem>>, %arg2: memref<1x8xf32, #tpu.memory_space<vmem>>, %arg3: memref<1x8xf32, #tpu.memory_space<vmem>>, %arg4: memref<72x8xbf16, #tpu.memory_space<vmem>>, %arg5: memref<1x8xf32, #tpu.memory_space<vmem>>, %arg6: memref<1x8xf32, #tpu.memory_space<vmem>>, %arg7: memref<512x8xf32, #tpu.memory_space<vmem>>, %arg8: memref<2x18x18x4xf32, #tpu.memory_space<vmem>>, %arg9: memref<2x18x18x8xf32, #tpu.memory_space<vmem>>, %arg10: memref<512x36xbf16, #tpu.memory_space<vmem>>, %arg11: memref<512x72xbf16, #tpu.memory_space<vmem>>) attributes {dimension_semantics = [], scalar_prefetch = 0 : i64, scratch_operands = 4 : i64, tpu.core_type = #tpu.core_type<tc>} {
    %cst = arith.constant 0.000000e+00 : f32
    %0 = vector.broadcast %cst : f32 to vector<2x1x18x4xf32>
    %c0 = arith.constant 0 : index
    %c0_0 = arith.constant 0 : index
    %c0_1 = arith.constant 0 : index
    %c0_2 = arith.constant 0 : index
    %1 = vector.load %arg8[%c0, %c0_0, %c0_1, %c0_2] : memref<2x18x18x4xf32, #tpu.memory_space<vmem>>, vector<2x1x18x4xf32>
    tpu.vector_store %arg8[%c0, %c0_0, %c0_1, %c0_2], %0 {strides = array<i32>} : memref<2x18x18x4xf32, #tpu.memory_space<vmem>>, vector<2x1x18x4xf32>,
    %c0_3 = arith.constant 0 : index
    %c17 = arith.constant 17 : index
    %c0_4 = arith.constant 0 : index
    %c0_5 = arith.constant 0 : index
    %2 = vector.load %arg8[%c0_3, %c17, %c0_4, %c0_5] : memref<2x18x18x4xf32, #tpu.memory_space<vmem>>, vector<2x1x18x4xf32>
    tpu.vector_store %arg8[%c0_3, %c17, %c0_4, %c0_5], %0 {strides = array<i32>} : memref<2x18x18x4xf32, #tpu.memory_space<vmem>>, vector<2x1x18x4xf32>,
    %cst_6 = arith.constant 0.000000e+00 : f32
    %3 = vector.broadcast %cst_6 : f32 to vector<2x16x1x4xf32>
    %c0_7 = arith.constant 0 : index
    %c1 = arith.constant 1 : index
    %c0_8 = arith.constant 0 : index
    %c0_9 = arith.constant 0 : index
    %4 = vector.load %arg8[%c0_7, %c1, %c0_8, %c0_9] : memref<2x18x18x4xf32, #tpu.memory_space<vmem>>, vector<2x16x1x4xf32>
    tpu.vector_store %arg8[%c0_7, %c1, %c0_8, %c0_9], %3 {strides = array<i32>} : memref<2x18x18x4xf32, #tpu.memory_space<vmem>>, vector<2x16x1x4xf32>,
    %c0_10 = arith.constant 0 : index
    %c1_11 = arith.constant 1 : index
    %c17_12 = arith.constant 17 : index
    %c0_13 = arith.constant 0 : index
    %5 = vector.load %arg8[%c0_10, %c1_11, %c17_12, %c0_13] : memref<2x18x18x4xf32, #tpu.memory_space<vmem>>, vector<2x16x1x4xf32>
    tpu.vector_store %arg8[%c0_10, %c1_11, %c17_12, %c0_13], %3 {strides = array<i32>} : memref<2x18x18x4xf32, #tpu.memory_space<vmem>>, vector<2x16x1x4xf32>,
    %c0_14 = arith.constant 0 : index
    %c0_15 = arith.constant 0 : index
    %c0_16 = arith.constant 0 : index
    %c0_17 = arith.constant 0 : index
    %6 = vector.load %arg0[%c0_14, %c0_15, %c0_16, %c0_17] : memref<2x16x16x4xf32, #tpu.memory_space<vmem>>, vector<2x16x16x4xf32>
    %c0_18 = arith.constant 0 : index
    %c1_19 = arith.constant 1 : index
    %c1_20 = arith.constant 1 : index
    %c0_21 = arith.constant 0 : index
    %7 = vector.load %arg8[%c0_18, %c1_19, %c1_20, %c0_21] : memref<2x18x18x4xf32, #tpu.memory_space<vmem>>, vector<2x16x16x4xf32>
    tpu.vector_store %arg8[%c0_18, %c1_19, %c1_20, %c0_21], %6 {strides = array<i32>} : memref<2x18x18x4xf32, #tpu.memory_space<vmem>>, vector<2x16x16x4xf32>,
    %c0_22 = arith.constant 0 : index
    %c0_23 = arith.constant 0 : index
    %c0_24 = arith.constant 0 : index
    %c0_25 = arith.constant 0 : index
    %8 = vector.load %arg8[%c0_22, %c0_23, %c0_24, %c0_25] : memref<2x18x18x4xf32, #tpu.memory_space<vmem>>, vector<2x16x16x4xf32>
    %9 = vector.shape_cast %8 : vector<2x16x16x4xf32> to vector<512x4xf32>
    %10 = arith.truncf %9 : vector<512x4xf32> to vector<512x4xbf16>
    %c0_26 = arith.constant 0 : index
    %c0_27 = arith.constant 0 : index
    %11 = vector.load %arg10[%c0_26, %c0_27] : memref<512x36xbf16, #tpu.memory_space<vmem>>, vector<512x4xbf16>
    tpu.vector_store %arg10[%c0_26, %c0_27], %10 {strides = array<i32>} : memref<512x36xbf16, #tpu.memory_space<vmem>>, vector<512x4xbf16>,
    %c0_28 = arith.constant 0 : index
    %c0_29 = arith.constant 0 : index
    %c1_30 = arith.constant 1 : index
    %c0_31 = arith.constant 0 : index
    %12 = vector.load %arg8[%c0_28, %c0_29, %c1_30, %c0_31] : memref<2x18x18x4xf32, #tpu.memory_space<vmem>>, vector<2x16x16x4xf32>
    %13 = vector.shape_cast %12 : vector<2x16x16x4xf32> to vector<512x4xf32>
    %14 = arith.truncf %13 : vector<512x4xf32> to vector<512x4xbf16>
    %c0_32 = arith.constant 0 : index
    %c4 = arith.constant 4 : index
    %15 = vector.load %arg10[%c0_32, %c4] : memref<512x36xbf16, #tpu.memory_space<vmem>>, vector<512x4xbf16>
    tpu.vector_store %arg10[%c0_32, %c4], %14 {strides = array<i32>} : memref<512x36xbf16, #tpu.memory_space<vmem>>, vector<512x4xbf16>,
    %c0_33 = arith.constant 0 : index
    %c0_34 = arith.constant 0 : index
    %c2 = arith.constant 2 : index
    %c0_35 = arith.constant 0 : index
    %16 = vector.load %arg8[%c0_33, %c0_34, %c2, %c0_35] : memref<2x18x18x4xf32, #tpu.memory_space<vmem>>, vector<2x16x16x4xf32>
    %17 = vector.shape_cast %16 : vector<2x16x16x4xf32> to vector<512x4xf32>
    %18 = arith.truncf %17 : vector<512x4xf32> to vector<512x4xbf16>
    %c0_36 = arith.constant 0 : index
    %c8 = arith.constant 8 : index
    %19 = vector.load %arg10[%c0_36, %c8] : memref<512x36xbf16, #tpu.memory_space<vmem>>, vector<512x4xbf16>
    tpu.vector_store %arg10[%c0_36, %c8], %18 {strides = array<i32>} : memref<512x36xbf16, #tpu.memory_space<vmem>>, vector<512x4xbf16>,
    %c0_37 = arith.constant 0 : index
    %c1_38 = arith.constant 1 : index
    %c0_39 = arith.constant 0 : index
    %c0_40 = arith.constant 0 : index
    %20 = vector.load %arg8[%c0_37, %c1_38, %c0_39, %c0_40] : memref<2x18x18x4xf32, #tpu.memory_space<vmem>>, vector<2x16x16x4xf32>
    %21 = vector.shape_cast %20 : vector<2x16x16x4xf32> to vector<512x4xf32>
    %22 = arith.truncf %21 : vector<512x4xf32> to vector<512x4xbf16>
    %c0_41 = arith.constant 0 : index
    %c12 = arith.constant 12 : index
    %23 = vector.load %arg10[%c0_41, %c12] : memref<512x36xbf16, #tpu.memory_space<vmem>>, vector<512x4xbf16>
    tpu.vector_store %arg10[%c0_41, %c12], %22 {strides = array<i32>} : memref<512x36xbf16, #tpu.memory_space<vmem>>, vector<512x4xbf16>,
    %c0_42 = arith.constant 0 : index
    %c1_43 = arith.constant 1 : index
    %c1_44 = arith.constant 1 : index
    %c0_45 = arith.constant 0 : index
    %24 = vector.load %arg8[%c0_42, %c1_43, %c1_44, %c0_45] : memref<2x18x18x4xf32, #tpu.memory_space<vmem>>, vector<2x16x16x4xf32>
    %25 = vector.shape_cast %24 : vector<2x16x16x4xf32> to vector<512x4xf32>
    %26 = arith.truncf %25 : vector<512x4xf32> to vector<512x4xbf16>
    %c0_46 = arith.constant 0 : index
    %c16 = arith.constant 16 : index
    %27 = vector.load %arg10[%c0_46, %c16] : memref<512x36xbf16, #tpu.memory_space<vmem>>, vector<512x4xbf16>
    tpu.vector_store %arg10[%c0_46, %c16], %26 {strides = array<i32>} : memref<512x36xbf16, #tpu.memory_space<vmem>>, vector<512x4xbf16>,
    %c0_47 = arith.constant 0 : index
    %c1_48 = arith.constant 1 : index
    %c2_49 = arith.constant 2 : index
    %c0_50 = arith.constant 0 : index
    %28 = vector.load %arg8[%c0_47, %c1_48, %c2_49, %c0_50] : memref<2x18x18x4xf32, #tpu.memory_space<vmem>>, vector<2x16x16x4xf32>
    %29 = vector.shape_cast %28 : vector<2x16x16x4xf32> to vector<512x4xf32>
    %30 = arith.truncf %29 : vector<512x4xf32> to vector<512x4xbf16>
    %c0_51 = arith.constant 0 : index
    %c20 = arith.constant 20 : index
    %31 = vector.load %arg10[%c0_51, %c20] : memref<512x36xbf16, #tpu.memory_space<vmem>>, vector<512x4xbf16>
    tpu.vector_store %arg10[%c0_51, %c20], %30 {strides = array<i32>} : memref<512x36xbf16, #tpu.memory_space<vmem>>, vector<512x4xbf16>,
    %c0_52 = arith.constant 0 : index
    %c2_53 = arith.constant 2 : index
    %c0_54 = arith.constant 0 : index
    %c0_55 = arith.constant 0 : index
    %32 = vector.load %arg8[%c0_52, %c2_53, %c0_54, %c0_55] : memref<2x18x18x4xf32, #tpu.memory_space<vmem>>, vector<2x16x16x4xf32>
    %33 = vector.shape_cast %32 : vector<2x16x16x4xf32> to vector<512x4xf32>
    %34 = arith.truncf %33 : vector<512x4xf32> to vector<512x4xbf16>
    %c0_56 = arith.constant 0 : index
    %c24 = arith.constant 24 : index
    %35 = vector.load %arg10[%c0_56, %c24] : memref<512x36xbf16, #tpu.memory_space<vmem>>, vector<512x4xbf16>
    tpu.vector_store %arg10[%c0_56, %c24], %34 {strides = array<i32>} : memref<512x36xbf16, #tpu.memory_space<vmem>>, vector<512x4xbf16>,
    %c0_57 = arith.constant 0 : index
    %c2_58 = arith.constant 2 : index
    %c1_59 = arith.constant 1 : index
    %c0_60 = arith.constant 0 : index
    %36 = vector.load %arg8[%c0_57, %c2_58, %c1_59, %c0_60] : memref<2x18x18x4xf32, #tpu.memory_space<vmem>>, vector<2x16x16x4xf32>
    %37 = vector.shape_cast %36 : vector<2x16x16x4xf32> to vector<512x4xf32>
    %38 = arith.truncf %37 : vector<512x4xf32> to vector<512x4xbf16>
    %c0_61 = arith.constant 0 : index
    %c28 = arith.constant 28 : index
    %39 = vector.load %arg10[%c0_61, %c28] : memref<512x36xbf16, #tpu.memory_space<vmem>>, vector<512x4xbf16>
    tpu.vector_store %arg10[%c0_61, %c28], %38 {strides = array<i32>} : memref<512x36xbf16, #tpu.memory_space<vmem>>, vector<512x4xbf16>,
    %c0_62 = arith.constant 0 : index
    %c2_63 = arith.constant 2 : index
    %c2_64 = arith.constant 2 : index
    %c0_65 = arith.constant 0 : index
    %40 = vector.load %arg8[%c0_62, %c2_63, %c2_64, %c0_65] : memref<2x18x18x4xf32, #tpu.memory_space<vmem>>, vector<2x16x16x4xf32>
    %41 = vector.shape_cast %40 : vector<2x16x16x4xf32> to vector<512x4xf32>
    %42 = arith.truncf %41 : vector<512x4xf32> to vector<512x4xbf16>
    %c0_66 = arith.constant 0 : index
    %c32 = arith.constant 32 : index
    %43 = vector.load %arg10[%c0_66, %c32] : memref<512x36xbf16, #tpu.memory_space<vmem>>, vector<512x4xbf16>
    tpu.vector_store %arg10[%c0_66, %c32], %42 {strides = array<i32>} : memref<512x36xbf16, #tpu.memory_space<vmem>>, vector<512x4xbf16>,
    %c0_67 = arith.constant 0 : index
    %c0_68 = arith.constant 0 : index
    %44 = vector.load %arg10[%c0_67, %c0_68] : memref<512x36xbf16, #tpu.memory_space<vmem>>, vector<512x36xbf16>
    %c0_69 = arith.constant 0 : index
    %c0_70 = arith.constant 0 : index
    %45 = vector.load %arg1[%c0_69, %c0_70] : memref<36x8xbf16, #tpu.memory_space<vmem>>, vector<36x8xbf16>
    %cst_71 = arith.constant dense<0.000000e+00> : vector<512x8xf32>
    %46 = tpu.matmul %44, %45, %cst_71 {dimension_numbers = #tpu.dot_dimension_numbers<[1], [0], [0], [1], [0, 0, 1, 1], [], []>} : vector<512x36xbf16>, vector<36x8xbf16>, vector<512x8xf32> -> vector<512x8xf32>
    %cst_72 = arith.constant dense<0.000000e+00> : vector<8xf32>
    %47 = vector.multi_reduction <add>, %46, %cst_72 [0] : vector<512x8xf32> to vector<8xf32>
    %48 = vector.shape_cast %47 : vector<8xf32> to vector<1x8xf32>
    %cst_73 = arith.constant 0.001953125 : f32
    %49 = vector.broadcast %cst_73 : f32 to vector<1x8xf32>
    %50 = arith.mulf %48, %49 : vector<1x8xf32>
    %51 = vector.broadcast %50 : vector<1x8xf32> to vector<512x8xf32>
    %52 = arith.subf %46, %51 : vector<512x8xf32>
    %53 = arith.mulf %52, %52 : vector<512x8xf32>
    %cst_74 = arith.constant dense<0.000000e+00> : vector<8xf32>
    %54 = vector.multi_reduction <add>, %53, %cst_74 [0] : vector<512x8xf32> to vector<8xf32>
    %55 = vector.shape_cast %54 : vector<8xf32> to vector<1x8xf32>
    %cst_75 = arith.constant 0.001953125 : f32
    %56 = vector.broadcast %cst_75 : f32 to vector<1x8xf32>
    %57 = arith.mulf %55, %56 : vector<1x8xf32>
    %c0_76 = arith.constant 0 : index
    %c0_77 = arith.constant 0 : index
    %58 = vector.load %arg2[%c0_76, %c0_77] : memref<1x8xf32, #tpu.memory_space<vmem>>, vector<1x8xf32>
    %cst_78 = arith.constant 9.99999974E-6 : f32
    %59 = vector.broadcast %cst_78 : f32 to vector<1x8xf32>
    %60 = arith.addf %57, %59 : vector<1x8xf32>
    %61 = math.rsqrt %60 : vector<1x8xf32>
    %62 = arith.mulf %58, %61 : vector<1x8xf32>
    %63 = vector.broadcast %62 : vector<1x8xf32> to vector<512x8xf32>
    %64 = arith.mulf %52, %63 : vector<512x8xf32>
    %c0_79 = arith.constant 0 : index
    %c0_80 = arith.constant 0 : index
    %65 = vector.load %arg3[%c0_79, %c0_80] : memref<1x8xf32, #tpu.memory_space<vmem>>, vector<1x8xf32>
    %66 = vector.broadcast %65 : vector<1x8xf32> to vector<512x8xf32>
    %67 = arith.addf %64, %66 : vector<512x8xf32>
    %cst_81 = arith.constant 0.000000e+00 : f32
    %68 = vector.broadcast %cst_81 : f32 to vector<512x8xf32>
    %69 = arith.maximumf %67, %68 : vector<512x8xf32>
    %cst_82 = arith.constant 0.000000e+00 : f32
    %70 = vector.broadcast %cst_82 : f32 to vector<2x1x18x8xf32>
    %c0_83 = arith.constant 0 : index
    %c0_84 = arith.constant 0 : index
    %c0_85 = arith.constant 0 : index
    %c0_86 = arith.constant 0 : index
    %71 = vector.load %arg9[%c0_83, %c0_84, %c0_85, %c0_86] : memref<2x18x18x8xf32, #tpu.memory_space<vmem>>, vector<2x1x18x8xf32>
    tpu.vector_store %arg9[%c0_83, %c0_84, %c0_85, %c0_86], %70 {strides = array<i32>} : memref<2x18x18x8xf32, #tpu.memory_space<vmem>>, vector<2x1x18x8xf32>,
    %c0_87 = arith.constant 0 : index
    %c17_88 = arith.constant 17 : index
    %c0_89 = arith.constant 0 : index
    %c0_90 = arith.constant 0 : index
    %72 = vector.load %arg9[%c0_87, %c17_88, %c0_89, %c0_90] : memref<2x18x18x8xf32, #tpu.memory_space<vmem>>, vector<2x1x18x8xf32>
    tpu.vector_store %arg9[%c0_87, %c17_88, %c0_89, %c0_90], %70 {strides = array<i32>} : memref<2x18x18x8xf32, #tpu.memory_space<vmem>>, vector<2x1x18x8xf32>,
    %cst_91 = arith.constant 0.000000e+00 : f32
    %73 = vector.broadcast %cst_91 : f32 to vector<2x16x1x8xf32>
    %c0_92 = arith.constant 0 : index
    %c1_93 = arith.constant 1 : index
    %c0_94 = arith.constant 0 : index
    %c0_95 = arith.constant 0 : index
    %74 = vector.load %arg9[%c0_92, %c1_93, %c0_94, %c0_95] : memref<2x18x18x8xf32, #tpu.memory_space<vmem>>, vector<2x16x1x8xf32>
    tpu.vector_store %arg9[%c0_92, %c1_93, %c0_94, %c0_95], %73 {strides = array<i32>} : memref<2x18x18x8xf32, #tpu.memory_space<vmem>>, vector<2x16x1x8xf32>,
    %c0_96 = arith.constant 0 : index
    %c1_97 = arith.constant 1 : index
    %c17_98 = arith.constant 17 : index
    %c0_99 = arith.constant 0 : index
    %75 = vector.load %arg9[%c0_96, %c1_97, %c17_98, %c0_99] : memref<2x18x18x8xf32, #tpu.memory_space<vmem>>, vector<2x16x1x8xf32>
    tpu.vector_store %arg9[%c0_96, %c1_97, %c17_98, %c0_99], %73 {strides = array<i32>} : memref<2x18x18x8xf32, #tpu.memory_space<vmem>>, vector<2x16x1x8xf32>,
    %76 = vector.shape_cast %69 : vector<512x8xf32> to vector<2x16x16x8xf32>
    %c0_100 = arith.constant 0 : index
    %c1_101 = arith.constant 1 : index
    %c1_102 = arith.constant 1 : index
    %c0_103 = arith.constant 0 : index
    %77 = vector.load %arg9[%c0_100, %c1_101, %c1_102, %c0_103] : memref<2x18x18x8xf32, #tpu.memory_space<vmem>>, vector<2x16x16x8xf32>
    tpu.vector_store %arg9[%c0_100, %c1_101, %c1_102, %c0_103], %76 {strides = array<i32>} : memref<2x18x18x8xf32, #tpu.memory_space<vmem>>, vector<2x16x16x8xf32>,
    %c0_104 = arith.constant 0 : index
    %c0_105 = arith.constant 0 : index
    %c0_106 = arith.constant 0 : index
    %c0_107 = arith.constant 0 : index
    %78 = vector.load %arg9[%c0_104, %c0_105, %c0_106, %c0_107] : memref<2x18x18x8xf32, #tpu.memory_space<vmem>>, vector<2x16x16x8xf32>
    %79 = vector.shape_cast %78 : vector<2x16x16x8xf32> to vector<512x8xf32>
    %80 = arith.truncf %79 : vector<512x8xf32> to vector<512x8xbf16>
    %c0_108 = arith.constant 0 : index
    %c0_109 = arith.constant 0 : index
    %81 = vector.load %arg11[%c0_108, %c0_109] : memref<512x72xbf16, #tpu.memory_space<vmem>>, vector<512x8xbf16>
    tpu.vector_store %arg11[%c0_108, %c0_109], %80 {strides = array<i32>} : memref<512x72xbf16, #tpu.memory_space<vmem>>, vector<512x8xbf16>,
    %c0_110 = arith.constant 0 : index
    %c0_111 = arith.constant 0 : index
    %c1_112 = arith.constant 1 : index
    %c0_113 = arith.constant 0 : index
    %82 = vector.load %arg9[%c0_110, %c0_111, %c1_112, %c0_113] : memref<2x18x18x8xf32, #tpu.memory_space<vmem>>, vector<2x16x16x8xf32>
    %83 = vector.shape_cast %82 : vector<2x16x16x8xf32> to vector<512x8xf32>
    %84 = arith.truncf %83 : vector<512x8xf32> to vector<512x8xbf16>
    %c0_114 = arith.constant 0 : index
    %c8_115 = arith.constant 8 : index
    %85 = vector.load %arg11[%c0_114, %c8_115] : memref<512x72xbf16, #tpu.memory_space<vmem>>, vector<512x8xbf16>
    tpu.vector_store %arg11[%c0_114, %c8_115], %84 {strides = array<i32>} : memref<512x72xbf16, #tpu.memory_space<vmem>>, vector<512x8xbf16>,
    %c0_116 = arith.constant 0 : index
    %c0_117 = arith.constant 0 : index
    %c2_118 = arith.constant 2 : index
    %c0_119 = arith.constant 0 : index
    %86 = vector.load %arg9[%c0_116, %c0_117, %c2_118, %c0_119] : memref<2x18x18x8xf32, #tpu.memory_space<vmem>>, vector<2x16x16x8xf32>
    %87 = vector.shape_cast %86 : vector<2x16x16x8xf32> to vector<512x8xf32>
    %88 = arith.truncf %87 : vector<512x8xf32> to vector<512x8xbf16>
    %c0_120 = arith.constant 0 : index
    %c16_121 = arith.constant 16 : index
    %89 = vector.load %arg11[%c0_120, %c16_121] : memref<512x72xbf16, #tpu.memory_space<vmem>>, vector<512x8xbf16>
    tpu.vector_store %arg11[%c0_120, %c16_121], %88 {strides = array<i32>} : memref<512x72xbf16, #tpu.memory_space<vmem>>, vector<512x8xbf16>,
    %c0_122 = arith.constant 0 : index
    %c1_123 = arith.constant 1 : index
    %c0_124 = arith.constant 0 : index
    %c0_125 = arith.constant 0 : index
    %90 = vector.load %arg9[%c0_122, %c1_123, %c0_124, %c0_125] : memref<2x18x18x8xf32, #tpu.memory_space<vmem>>, vector<2x16x16x8xf32>
    %91 = vector.shape_cast %90 : vector<2x16x16x8xf32> to vector<512x8xf32>
    %92 = arith.truncf %91 : vector<512x8xf32> to vector<512x8xbf16>
    %c0_126 = arith.constant 0 : index
    %c24_127 = arith.constant 24 : index
    %93 = vector.load %arg11[%c0_126, %c24_127] : memref<512x72xbf16, #tpu.memory_space<vmem>>, vector<512x8xbf16>
    tpu.vector_store %arg11[%c0_126, %c24_127], %92 {strides = array<i32>} : memref<512x72xbf16, #tpu.memory_space<vmem>>, vector<512x8xbf16>,
    %c0_128 = arith.constant 0 : index
    %c1_129 = arith.constant 1 : index
    %c1_130 = arith.constant 1 : index
    %c0_131 = arith.constant 0 : index
    %94 = vector.load %arg9[%c0_128, %c1_129, %c1_130, %c0_131] : memref<2x18x18x8xf32, #tpu.memory_space<vmem>>, vector<2x16x16x8xf32>
    %95 = vector.shape_cast %94 : vector<2x16x16x8xf32> to vector<512x8xf32>
    %96 = arith.truncf %95 : vector<512x8xf32> to vector<512x8xbf16>
    %c0_132 = arith.constant 0 : index
    %c32_133 = arith.constant 32 : index
    %97 = vector.load %arg11[%c0_132, %c32_133] : memref<512x72xbf16, #tpu.memory_space<vmem>>, vector<512x8xbf16>
    tpu.vector_store %arg11[%c0_132, %c32_133], %96 {strides = array<i32>} : memref<512x72xbf16, #tpu.memory_space<vmem>>, vector<512x8xbf16>,
    %c0_134 = arith.constant 0 : index
    %c1_135 = arith.constant 1 : index
    %c2_136 = arith.constant 2 : index
    %c0_137 = arith.constant 0 : index
    %98 = vector.load %arg9[%c0_134, %c1_135, %c2_136, %c0_137] : memref<2x18x18x8xf32, #tpu.memory_space<vmem>>, vector<2x16x16x8xf32>
    %99 = vector.shape_cast %98 : vector<2x16x16x8xf32> to vector<512x8xf32>
    %100 = arith.truncf %99 : vector<512x8xf32> to vector<512x8xbf16>
    %c0_138 = arith.constant 0 : index
    %c40 = arith.constant 40 : index
    %101 = vector.load %arg11[%c0_138, %c40] : memref<512x72xbf16, #tpu.memory_space<vmem>>, vector<512x8xbf16>
    tpu.vector_store %arg11[%c0_138, %c40], %100 {strides = array<i32>} : memref<512x72xbf16, #tpu.memory_space<vmem>>, vector<512x8xbf16>,
    %c0_139 = arith.constant 0 : index
    %c2_140 = arith.constant 2 : index
    %c0_141 = arith.constant 0 : index
    %c0_142 = arith.constant 0 : index
    %102 = vector.load %arg9[%c0_139, %c2_140, %c0_141, %c0_142] : memref<2x18x18x8xf32, #tpu.memory_space<vmem>>, vector<2x16x16x8xf32>
    %103 = vector.shape_cast %102 : vector<2x16x16x8xf32> to vector<512x8xf32>
    %104 = arith.truncf %103 : vector<512x8xf32> to vector<512x8xbf16>
    %c0_143 = arith.constant 0 : index
    %c48 = arith.constant 48 : index
    %105 = vector.load %arg11[%c0_143, %c48] : memref<512x72xbf16, #tpu.memory_space<vmem>>, vector<512x8xbf16>
    tpu.vector_store %arg11[%c0_143, %c48], %104 {strides = array<i32>} : memref<512x72xbf16, #tpu.memory_space<vmem>>, vector<512x8xbf16>,
    %c0_144 = arith.constant 0 : index
    %c2_145 = arith.constant 2 : index
    %c1_146 = arith.constant 1 : index
    %c0_147 = arith.constant 0 : index
    %106 = vector.load %arg9[%c0_144, %c2_145, %c1_146, %c0_147] : memref<2x18x18x8xf32, #tpu.memory_space<vmem>>, vector<2x16x16x8xf32>
    %107 = vector.shape_cast %106 : vector<2x16x16x8xf32> to vector<512x8xf32>
    %108 = arith.truncf %107 : vector<512x8xf32> to vector<512x8xbf16>
    %c0_148 = arith.constant 0 : index
    %c56 = arith.constant 56 : index
    %109 = vector.load %arg11[%c0_148, %c56] : memref<512x72xbf16, #tpu.memory_space<vmem>>, vector<512x8xbf16>
    tpu.vector_store %arg11[%c0_148, %c56], %108 {strides = array<i32>} : memref<512x72xbf16, #tpu.memory_space<vmem>>, vector<512x8xbf16>,
    %c0_149 = arith.constant 0 : index
    %c2_150 = arith.constant 2 : index
    %c2_151 = arith.constant 2 : index
    %c0_152 = arith.constant 0 : index
    %110 = vector.load %arg9[%c0_149, %c2_150, %c2_151, %c0_152] : memref<2x18x18x8xf32, #tpu.memory_space<vmem>>, vector<2x16x16x8xf32>
    %111 = vector.shape_cast %110 : vector<2x16x16x8xf32> to vector<512x8xf32>
    %112 = arith.truncf %111 : vector<512x8xf32> to vector<512x8xbf16>
    %c0_153 = arith.constant 0 : index
    %c64 = arith.constant 64 : index
    %113 = vector.load %arg11[%c0_153, %c64] : memref<512x72xbf16, #tpu.memory_space<vmem>>, vector<512x8xbf16>
    tpu.vector_store %arg11[%c0_153, %c64], %112 {strides = array<i32>} : memref<512x72xbf16, #tpu.memory_space<vmem>>, vector<512x8xbf16>,
    %c0_154 = arith.constant 0 : index
    %c0_155 = arith.constant 0 : index
    %114 = vector.load %arg11[%c0_154, %c0_155] : memref<512x72xbf16, #tpu.memory_space<vmem>>, vector<512x72xbf16>
    %c0_156 = arith.constant 0 : index
    %c0_157 = arith.constant 0 : index
    %115 = vector.load %arg4[%c0_156, %c0_157] : memref<72x8xbf16, #tpu.memory_space<vmem>>, vector<72x8xbf16>
    %cst_158 = arith.constant dense<0.000000e+00> : vector<512x8xf32>
    %116 = tpu.matmul %114, %115, %cst_158 {dimension_numbers = #tpu.dot_dimension_numbers<[1], [0], [0], [1], [0, 0, 1, 1], [], []>} : vector<512x72xbf16>, vector<72x8xbf16>, vector<512x8xf32> -> vector<512x8xf32>
    %cst_159 = arith.constant dense<0.000000e+00> : vector<8xf32>
    %117 = vector.multi_reduction <add>, %116, %cst_159 [0] : vector<512x8xf32> to vector<8xf32>
    %118 = vector.shape_cast %117 : vector<8xf32> to vector<1x8xf32>
    %cst_160 = arith.constant 0.001953125 : f32
    %119 = vector.broadcast %cst_160 : f32 to vector<1x8xf32>
    %120 = arith.mulf %118, %119 : vector<1x8xf32>
    %121 = vector.broadcast %120 : vector<1x8xf32> to vector<512x8xf32>
    %122 = arith.subf %116, %121 : vector<512x8xf32>
    %123 = arith.mulf %122, %122 : vector<512x8xf32>
    %cst_161 = arith.constant dense<0.000000e+00> : vector<8xf32>
    %124 = vector.multi_reduction <add>, %123, %cst_161 [0] : vector<512x8xf32> to vector<8xf32>
    %125 = vector.shape_cast %124 : vector<8xf32> to vector<1x8xf32>
    %cst_162 = arith.constant 0.001953125 : f32
    %126 = vector.broadcast %cst_162 : f32 to vector<1x8xf32>
    %127 = arith.mulf %125, %126 : vector<1x8xf32>
    %c0_163 = arith.constant 0 : index
    %c0_164 = arith.constant 0 : index
    %128 = vector.load %arg5[%c0_163, %c0_164] : memref<1x8xf32, #tpu.memory_space<vmem>>, vector<1x8xf32>
    %cst_165 = arith.constant 9.99999974E-6 : f32
    %129 = vector.broadcast %cst_165 : f32 to vector<1x8xf32>
    %130 = arith.addf %127, %129 : vector<1x8xf32>
    %131 = math.rsqrt %130 : vector<1x8xf32>
    %132 = arith.mulf %128, %131 : vector<1x8xf32>
    %133 = vector.broadcast %132 : vector<1x8xf32> to vector<512x8xf32>
    %134 = arith.mulf %122, %133 : vector<512x8xf32>
    %c0_166 = arith.constant 0 : index
    %c0_167 = arith.constant 0 : index
    %135 = vector.load %arg6[%c0_166, %c0_167] : memref<1x8xf32, #tpu.memory_space<vmem>>, vector<1x8xf32>
    %136 = vector.broadcast %135 : vector<1x8xf32> to vector<512x8xf32>
    %137 = arith.addf %134, %136 : vector<512x8xf32>
    %cst_168 = arith.constant 0.000000e+00 : f32
    %138 = vector.broadcast %cst_168 : f32 to vector<512x8xf32>
    %139 = arith.maximumf %137, %138 : vector<512x8xf32>
    %c0_169 = arith.constant 0 : index
    %c0_170 = arith.constant 0 : index
    %140 = vector.load %arg7[%c0_169, %c0_170] : memref<512x8xf32, #tpu.memory_space<vmem>>, vector<512x8xf32>
    tpu.vector_store %arg7[%c0_169, %c0_170], %139 {strides = array<i32>} : memref<512x8xf32, #tpu.memory_space<vmem>>, vector<512x8xf32>,
    return
  }
}

</mosaic_0001>

<bundles_post_ra>
// kernel: double_conv.1
= control target key start
LH: loop header
LB: loop body
LE: loop exit
PB: predicated region body
PF: predicated region fallthrough
CT: control target
= control target key end

     0   :  { %vm27_vm0 = vcmask 31744   ;;  %vm30_vm1 = vcmask 25600   ;;  %vm43_vm2 = vcmask 24576   ;;  %v12236_v0 = vmov 0.0   ;;  %s7247_s14 = smov 4   ;;  %s7248_s15 = smov 8   ;;  %s12228_s0 = inlined_call_operand.vmem [shape: f32[2,16,16,4], index: 0, kind: input, shape index: {}]   ;;  %s12229_s1 = inlined_call_operand.vmem [shape: bf16[36,8], index: 1, kind: input, shape index: {}]   ;;  %s12230_s2 = inlined_call_operand.vmem [shape: f32[1,8], index: 2, kind: input, shape index: {}]   ;;  %s12231_s3 = inlined_call_operand.vmem [shape: f32[1,8], index: 3, kind: input, shape index: {}]   ;;  %s12232_s4 = inlined_call_operand.vmem [shape: bf16[72,8], index: 4, kind: input, shape index: {}]   ;;  %s12233_s5 = inlined_call_operand.vmem [shape: f32[1,8], index: 5, kind: input, shape index: {}]   ;;  %s12234_s6 = inlined_call_operand.vmem [shape: f32[1,8], index: 6, kind: input, shape index: {}]   ;;  %s12235_s7 = inlined_call_operand.vmem [shape: f32[512,8], index: 7, kind: output, shape index: {}]  }
   0x1   :  { %28 = vst.msk [vmem:[#allocation2] sm:$0xff] %vm27_vm0, %v12236_v0  ;;  %29 = vst.msk [vmem:[#allocation2 + $0x8] sm:$0xff] %vm27_vm0, %v12236_v0  ;;  %v7322_v1 = vld [vmem:[%s12228_s0] sm:$0xff]  ;;  %v7327_v2 = vld [vmem:[%s12228_s0 + $0x8] sm:$0xff]  ;;  %s7249_s16 = smov 12   ;;  %s7250_s17 = smov 16  }
   0x2   :  { %31 = vst.msk [vmem:[#allocation2 + $0x10] sm:$0x3] %vm30_vm1, %v12236_v0  ;;  %34 = vst.msk [vmem:[#allocation2 + $0x1c0] sm:$0x3] %vm30_vm1, %v12236_v0  ;;  %v110_v3 = vld [vmem:[%s12228_s0 + $0x10] sm:$0xff]  ;;  %v111_v4 = vld [vmem:[%s12228_s0 + $0x18] sm:$0xff] }
   0x3   :  { %32 = vst.msk [vmem:[#allocation2 + $0x1b0] sm:$0xff] %vm27_vm0, %v12236_v0  ;;  %33 = vst.msk [vmem:[#allocation2 + $0x1b8] sm:$0xff] %vm27_vm0, %v12236_v0  ;;  %v112_v5 = vld [vmem:[%s12228_s0 + $0x20] sm:$0xff]  ;;  %v113_v6 = vld [vmem:[%s12228_s0 + $0x28] sm:$0xff]  ;;  %s7251_s18 = smov 20   ;;  %s7252_s29 = smov 24  }
   0x4   :  { %36 = vst.msk [vmem:[#allocation2 + $0x198] sm:$0xff] %vm27_vm0, %v12236_v0  ;;  %37 = vst.msk [vmem:[#allocation2 + $0x1a0] sm:$0xff] %vm27_vm0, %v12236_v0  ;;  %v114_v7 = vld [vmem:[%s12228_s0 + $0x30] sm:$0xff]  ;;  %v115_v8 = vld [vmem:[%s12228_s0 + $0x38] sm:$0xff]  ;;  %vm2570_vm3 = vcmask 1041408   ;;  %s7253_s11 = smov 28  }
   0x5   :  { %38 = vst.msk [vmem:[#allocation2 + $0x1a8] sm:$0x3] %vm30_vm1, %v12236_v0  ;;  %41 = vst.msk [vmem:[#allocation2 + $0x358] sm:$0x3] %vm30_vm1, %v12236_v0  ;;  %v116_v9 = vld [vmem:[%s12228_s0 + $0x40] sm:$0xff]  ;;  %v117_v10 = vld [vmem:[%s12228_s0 + $0x48] sm:$0xff] }
   0x6   :  { %39 = vst.msk [vmem:[#allocation2 + $0x348] sm:$0xff] %vm27_vm0, %v12236_v0  ;;  %40 = vst.msk [vmem:[#allocation2 + $0x350] sm:$0xff] %vm27_vm0, %v12236_v0  ;;  %v118_v11 = vld [vmem:[%s12228_s0 + $0x50] sm:$0xff]  ;;  %v119_v12 = vld [vmem:[%s12228_s0 + $0x58] sm:$0xff]  ;;  %s7254_s12 = smov 32   ;;  %vm588_vm4 = vcmask 64544  }
   0x7   :  { %76 = vst.msk [vmem:[#allocation2 + $0x29] sm:$0x1] %vm43_vm2, %v12236_v0  ;;  %44 = vst.msk [vmem:[#allocation2 + $0x18] sm:$0x1] %vm43_vm2, %v12236_v0  ;;  %v120_v13 = vld [vmem:[%s12228_s0 + $0x60] sm:$0xff]  ;;  %v121_v14 = vld [vmem:[%s12228_s0 + $0x68] sm:$0xff] }
   0x8   :  { %45 = vst.msk [vmem:[#allocation2 + $0x30] sm:$0x1] %vm43_vm2, %v12236_v0  ;;  %46 = vst.msk [vmem:[#allocation2 + $0x48] sm:$0x1] %vm43_vm2, %v12236_v0  ;;  %v122_v15 = vld [vmem:[%s12228_s0 + $0x70] sm:$0xff]  ;;  %v123_v16 = vld [vmem:[%s12228_s0 + $0x78] sm:$0xff] }
   0x9   :  { %47 = vst.msk [vmem:[#allocation2 + $0x60] sm:$0x1] %vm43_vm2, %v12236_v0  ;;  %48 = vst.msk [vmem:[#allocation2 + $0x78] sm:$0x1] %vm43_vm2, %v12236_v0  ;;  %v124_v17 = vld [vmem:[%s12228_s0 + $0x80] sm:$0xff]  ;;  %v125_v18 = vld [vmem:[%s12228_s0 + $0x88] sm:$0xff] }
   0xa   :  { %49 = vst.msk [vmem:[#allocation2 + $0x90] sm:$0x1] %vm43_vm2, %v12236_v0  ;;  %50 = vst.msk [vmem:[#allocation2 + $0xa8] sm:$0x1] %vm43_vm2, %v12236_v0  ;;  %v364_v19 = vld [vmem:[#allocation2 + $0x1] sm:$0xff]  ;;  %v365_v20 = vld [vmem:[#allocation2 + $0x9] sm:$0xff] }
   0xb   :  { %51 = vst.msk [vmem:[#allocation2 + $0xc0] sm:$0x1] %vm43_vm2, %v12236_v0  ;;  %52 = vst.msk [vmem:[#allocation2 + $0xd8] sm:$0x1] %vm43_vm2, %v12236_v0  ;;  %v621_v21 = vld [vmem:[#allocation2 + $0x2] sm:$0xff]  ;;  %v428_v22 = vpack.c.bf16 %v365_v20, %v364_v19  ;;  %v622_v23 = vld [vmem:[#allocation2 + $0xa] sm:$0xff] }
   0xc   :  { %53 = vst.msk [vmem:[#allocation2 + $0xf0] sm:$0x1] %vm43_vm2, %v12236_v0  ;;  %54 = vst.msk [vmem:[#allocation2 + $0x108] sm:$0x1] %vm43_vm2, %v12236_v0  ;;  %v685_v26 = vpack.c.bf16 %v622_v23, %v621_v21  ;;  %v237_v61 = vld [vmem:[#allocation2 + $0x8] sm:$0xff]  ;;  %v236_v62 = vld [vmem:[#allocation2] sm:$0xff] }
   0xd   :  { %55 = vst.msk [vmem:[#allocation2 + $0x120] sm:$0x1] %vm43_vm2, %v12236_v0  ;;  %56 = vst.msk [vmem:[#allocation2 + $0x138] sm:$0x1] %vm43_vm2, %v12236_v0  ;;  %492 = vrot.lane.b32.xlu0 %v428_v22, %s7247_s14  ;;  %v300_v63 = vpack.c.bf16 %v237_v61, %v236_v62  ;;  %v137_v61 = vld [vmem:[%s12228_s0 + $0xe8] sm:$0xff]  ;;  %vm845_vm5 = vcmask 97344  }
   0xe   :  { %57 = vst.msk [vmem:[#allocation2 + $0x150] sm:$0x1] %vm43_vm2, %v12236_v0  ;;  %58 = vst.msk [vmem:[#allocation2 + $0x168] sm:$0x1] %vm43_vm2, %v12236_v0  ;;  %749 = vrot.lane.b32.xlu1 %v685_v26, %s7248_s15  ;;  %vm1102_vm6 = vcmask 130144   ;;  %vm1359_vm7 = vcmask 162944  }
   0xf   :  { %59 = vst.msk [vmem:[#allocation2 + $0x180] sm:$0x1] %vm43_vm2, %v12236_v0  ;;  %60 = vst.msk [vmem:[#allocation2 + $0x1c8] sm:$0x1] %vm43_vm2, %v12236_v0  ;;  %vm1616_vm8 = vcmask 195744   ;;  %vm1874_vm9 = vcmask 228544  }
  0x10   :  { %61 = vst.msk [vmem:[#allocation2 + $0x1e0] sm:$0x1] %vm43_vm2, %v12236_v0  ;;  %62 = vst.msk [vmem:[#allocation2 + $0x1f8] sm:$0x1] %vm43_vm2, %v12236_v0  ;;  %vm2131_vm10 = vcmask 261344   ;;  %vm2388_vm11 = vcmask 294144  }
  0x11   :  { %63 = vst.msk [vmem:[#allocation2 + $0x210] sm:$0x1] %vm43_vm2, %v12236_v0  ;;  %64 = vst.msk [vmem:[#allocation2 + $0x228] sm:$0x1] %vm43_vm2, %v12236_v0  ;;  %vm2473_vm12 = vcmask 293888   ;;  %vm2863_vm13 = vcmask 64512  }
  0x12   :  { %65 = vst.msk [vmem:[#allocation2 + $0x240] sm:$0x1] %vm43_vm2, %v12236_v0  ;;  %66 = vst.msk [vmem:[#allocation2 + $0x258] sm:$0x1] %vm43_vm2, %v12236_v0  ;;  %vm3471_vm14 = vcmask 58368   ;;  %vm3484_vm15 = vcmask 57344  }
  0x13   :  { %67 = vst.msk [vmem:[#allocation2 + $0x270] sm:$0x1] %vm43_vm2, %v12236_v0  ;;  %68 = vst.msk [vmem:[#allocation2 + $0x288] sm:$0x1] %vm43_vm2, %v12236_v0  ;;  %vm4222_vm1 = vcmask 195712   ;;  %s7257_s24 = smov 56  }
  0x14   :  { %69 = vst.msk [vmem:[#allocation2 + $0x2a0] sm:$0x1] %vm43_vm2, %v12236_v0  ;;  %70 = vst.msk [vmem:[#allocation2 + $0x2b8] sm:$0x1] %vm43_vm2, %v12236_v0  ;;  %s7258_s27 = smov 64  }
  0x15   :  { %71 = vst.msk [vmem:[#allocation2 + $0x2d0] sm:$0x1] %vm43_vm2, %v12236_v0  ;;  %72 = vst.msk [vmem:[#allocation2 + $0x2e8] sm:$0x1] %vm43_vm2, %v12236_v0 }
  0x16   :  { %73 = vst.msk [vmem:[#allocation2 + $0x300] sm:$0x1] %vm43_vm2, %v12236_v0  ;;  %74 = vst.msk [vmem:[#allocation2 + $0x318] sm:$0x1] %vm43_vm2, %v12236_v0 }
  0x17   :  { %75 = vst.msk [vmem:[#allocation2 + $0x330] sm:$0x1] %vm43_vm2, %v12236_v0  ;;  %77 = vst.msk [vmem:[#allocation2 + $0x41] sm:$0x1] %vm43_vm2, %v12236_v0 }
  0x18   :  { %78 = vst.msk [vmem:[#allocation2 + $0x59] sm:$0x1] %vm43_vm2, %v12236_v0  ;;  %79 = vst.msk [vmem:[#allocation2 + $0x71] sm:$0x1] %vm43_vm2, %v12236_v0 }
  0x19   :  { %80 = vst.msk [vmem:[#allocation2 + $0x89] sm:$0x1] %vm43_vm2, %v12236_v0  ;;  %81 = vst.msk [vmem:[#allocation2 + $0xa1] sm:$0x1] %vm43_vm2, %v12236_v0 }
  0x1a   :  { %82 = vst.msk [vmem:[#allocation2 + $0xb9] sm:$0x1] %vm43_vm2, %v12236_v0  ;;  %83 = vst.msk [vmem:[#allocation2 + $0xd1] sm:$0x1] %vm43_vm2, %v12236_v0 }
  0x1b   :  { %84 = vst.msk [vmem:[#allocation2 + $0xe9] sm:$0x1] %vm43_vm2, %v12236_v0  ;;  %85 = vst.msk [vmem:[#allocation2 + $0x101] sm:$0x1] %vm43_vm2, %v12236_v0 }
  0x1c   :  { %86 = vst.msk [vmem:[#allocation2 + $0x119] sm:$0x1] %vm43_vm2, %v12236_v0  ;;  %87 = vst.msk [vmem:[#allocation2 + $0x131] sm:$0x1] %vm43_vm2, %v12236_v0 }
  0x1d   :  { %88 = vst.msk [vmem:[#allocation2 + $0x149] sm:$0x1] %vm43_vm2, %v12236_v0  ;;  %89 = vst.msk [vmem:[#allocation2 + $0x161] sm:$0x1] %vm43_vm2, %v12236_v0 }
  0x1e   :  { %90 = vst.msk [vmem:[#allocation2 + $0x179] sm:$0x1] %vm43_vm2, %v12236_v0  ;;  %91 = vst.msk [vmem:[#allocation2 + $0x191] sm:$0x1] %vm43_vm2, %v12236_v0 }
  0x1f   :  { %92 = vst.msk [vmem:[#allocation2 + $0x1d9] sm:$0x1] %vm43_vm2, %v12236_v0  ;;  %93 = vst.msk [vmem:[#allocation2 + $0x1f1] sm:$0x1] %vm43_vm2, %v12236_v0 }
  0x20   :  { %94 = vst.msk [vmem:[#allocation2 + $0x209] sm:$0x1] %vm43_vm2, %v12236_v0  ;;  %95 = vst.msk [vmem:[#allocation2 + $0x221] sm:$0x1] %vm43_vm2, %v12236_v0 }
  0x21   :  { %96 = vst.msk [vmem:[#allocation2 + $0x239] sm:$0x1] %vm43_vm2, %v12236_v0  ;;  %97 = vst.msk [vmem:[#allocation2 + $0x251] sm:$0x1] %vm43_vm2, %v12236_v0 }
  0x22   :  { %98 = vst.msk [vmem:[#allocation2 + $0x269] sm:$0x1] %vm43_vm2, %v12236_v0  ;;  %99 = vst.msk [vmem:[#allocation2 + $0x281] sm:$0x1] %vm43_vm2, %v12236_v0 }
  0x23   :  { %100 = vst.msk [vmem:[#allocation2 + $0x299] sm:$0x1] %vm43_vm2, %v12236_v0  ;;  %101 = vst.msk [vmem:[#allocation2 + $0x2b1] sm:$0x1] %vm43_vm2, %v12236_v0 }
  0x24   :  { %102 = vst.msk [vmem:[#allocation2 + $0x2c9] sm:$0x1] %vm43_vm2, %v12236_v0  ;;  %103 = vst.msk [vmem:[#allocation2 + $0x2e1] sm:$0x1] %vm43_vm2, %v12236_v0 }
  0x25   :  { %104 = vst.msk [vmem:[#allocation2 + $0x2f9] sm:$0x1] %vm43_vm2, %v12236_v0  ;;  %105 = vst.msk [vmem:[#allocation2 + $0x311] sm:$0x1] %vm43_vm2, %v12236_v0 }
  0x26   :  { %106 = vst.msk [vmem:[#allocation2 + $0x329] sm:$0x1] %vm43_vm2, %v12236_v0  ;;  %107 = vst.msk [vmem:[#allocation2 + $0x341] sm:$0x1] %vm43_vm2, %v12236_v0  ;;  %vm5963_vm2 = vcmask 1043456  }
  0x27   :  { %172 = vst.msk [vmem:[#allocation2 + $0x19] sm:$0xff] %vm27_vm0, %v7322_v1  ;;  %173 = vst.msk [vmem:[#allocation2 + $0x21] sm:$0xff] %vm27_vm0, %v7327_v2 }
  0x28   :  { %174 = vst.msk [vmem:[#allocation2 + $0x31] sm:$0xff] %vm27_vm0, %v110_v3  ;;  %175 = vst.msk [vmem:[#allocation2 + $0x39] sm:$0xff] %vm27_vm0, %v111_v4 }
  0x29   :  { %176 = vst.msk [vmem:[#allocation2 + $0x49] sm:$0xff] %vm27_vm0, %v112_v5  ;;  %177 = vst.msk [vmem:[#allocation2 + $0x51] sm:$0xff] %vm27_vm0, %v113_v6  ;;  %v126_v6 = vld [vmem:[%s12228_s0 + $0x90] sm:$0xff] }
  0x2a   :  { %178 = vst.msk [vmem:[#allocation2 + $0x61] sm:$0xff] %vm27_vm0, %v114_v7  ;;  %179 = vst.msk [vmem:[#allocation2 + $0x69] sm:$0xff] %vm27_vm0, %v115_v8  ;;  %v127_v7 = vld [vmem:[%s12228_s0 + $0x98] sm:$0xff]  ;;  %v7234_v8 = vld [vmem:[%s12229_s1] sm:$0xff]  }
  0x2b   :  { %180 = vst.msk [vmem:[#allocation2 + $0x79] sm:$0xff] %vm27_vm0, %v116_v9  ;;  %181 = vst.msk [vmem:[#allocation2 + $0x81] sm:$0xff] %vm27_vm0, %v117_v10  ;;  %v7235_v9 = vld [vmem:[%s12229_s1 + $0x8] sm:$0xff]   ;;  %v128_v10 = vld [vmem:[%s12228_s0 + $0xa0] sm:$0xff]  ;;  %7075 = vmatprep.subr.bf16.mxu0 %v7234_v8 }
  0x2c   :  { %182 = vst.msk [vmem:[#allocation2 + $0x91] sm:$0xff] %vm27_vm0, %v118_v11  ;;  %183 = vst.msk [vmem:[#allocation2 + $0x99] sm:$0xff] %vm27_vm0, %v119_v12  ;;  %v129_v11 = vld [vmem:[%s12228_s0 + $0xa8] sm:$0xff]  ;;  %7076 = vmatpush3.bf16.msra.mxu0 %v7234_v8 }
  0x2d   :  { %184 = vst.msk [vmem:[#allocation2 + $0xa9] sm:$0xff] %vm27_vm0, %v120_v13  ;;  %185 = vst.msk [vmem:[#allocation2 + $0xb1] sm:$0xff] %vm27_vm0, %v121_v14  ;;  %7077 = vmatprep.subr.bf16.mxu0 %v7235_v9  ;;  %v7236_v13 = vld [vmem:[%s12229_s1 + $0x10] ss:$0 sps:$4 sm:$0x33]  }
  0x2e   :  { %186 = vst.msk [vmem:[#allocation2 + $0xc1] sm:$0xff] %vm27_vm0, %v122_v15  ;;  %187 = vst.msk [vmem:[#allocation2 + $0xc9] sm:$0xff] %vm27_vm0, %v123_v16  ;;  %v366_v24 = vld [vmem:[#allocation2 + $0x19] sm:$0xff]  ;;  %v367_v25 = vld [vmem:[#allocation2 + $0x21] sm:$0xff]  ;;  %v2572_v19 = vsel %vm2570_vm3, %v7236_v13, 0 }
  0x2f   :  { %188 = vst.msk [vmem:[#allocation2 + $0xd9] sm:$0xff] %vm27_vm0, %v124_v17  ;;  %189 = vst.msk [vmem:[#allocation2 + $0xe1] sm:$0xff] %vm27_vm0, %v125_v18  ;;  %v623_v27 = vld [vmem:[#allocation2 + $0x1a] sm:$0xff]  ;;  %v624_v28 = vld [vmem:[#allocation2 + $0x22] sm:$0xff]  ;;  %v429_v30 = vpack.c.bf16 %v367_v25, %v366_v24 }
  0x30   :  { %v878_v29 = vld [vmem:[#allocation2 + $0x18] sm:$0xff]  ;;  %v879_v31 = vld [vmem:[#allocation2 + $0x20] sm:$0xff]  ;;  %v880_v32 = vld [vmem:[#allocation2 + $0x30] sm:$0xff]  ;;  %v686_v34 = vpack.c.bf16 %v624_v28, %v623_v27  ;;  %332 = vst.msk [vmem:[#allocation4] sm:$0xff] %vm27_vm0, %v300_v63  ;;  %7078 = vmatpush3.bf16.msra.mxu0 %v7235_v9 }
  0x31   :  { %v881_v33 = vld [vmem:[#allocation2 + $0x38] sm:$0xff]  ;;  %v942_v35 = vpack.c.bf16 %v879_v31, %v878_v29  ;;  %v1652_v37 = vld [vmem:[#allocation2 + $0x48] sm:$0xff]  ;;  %v1653_v38 = vld [vmem:[#allocation2 + $0x50] sm:$0xff]  ;;  %494 = vrot.lane.b32.xlu0 %v429_v30, %s7247_s14  ;;  %190 = vst.msk [vmem:[#allocation2 + $0xf1] sm:$0xff] %vm27_vm0, %v126_v6  ;;  %7219 = vmatprep.subr.msk.bf16.mxu0 %vm2570_vm3, %v7236_v13  ;;  %vm4479_vm3 = vcmask 261312  }
  0x32   :  { %v943_v36 = vpack.c.bf16 %v881_v33, %v880_v32  ;;  %v7527_v39 = vpack.c.bf16 %v1653_v38, %v1652_v37  ;;  %v884_v40 = vld [vmem:[#allocation2 + $0x60] sm:$0xff]  ;;  %v885_v41 = vld [vmem:[#allocation2 + $0x68] sm:$0xff]  ;;  %751 = vrot.lane.b32.xlu1 %v686_v34, %s7248_s15  ;;  %v1137_v42 = vld [vmem:[#allocation2 + $0x31] sm:$0xff]  ;;  %191 = vst.msk [vmem:[#allocation2 + $0xf9] sm:$0xff] %vm27_vm0, %v127_v7 }
  0x33   :  { %333 = vst.msk [vmem:[#allocation4 + $0x8] sm:$0xff] %vm27_vm0, %v942_v35  ;;  %v7533_v43 = vpack.c.bf16 %v885_v41, %v884_v40  ;;  %v1138_v44 = vld [vmem:[#allocation2 + $0x39] sm:$0xff]  ;;  %v888_v48 = vld [vmem:[#allocation2 + $0x90] sm:$0xff]  ;;  %192 = vst.msk [vmem:[#allocation2 + $0x109] sm:$0xff] %vm27_vm0, %v128_v10 }
  0x34   :  { %334 = vst.msk [vmem:[#allocation4 + $0x10] sm:$0xff] %vm27_vm0, %v943_v36  ;;  %335 = vst.msk [vmem:[#allocation4 + $0x18] sm:$0xff] %vm27_vm0, %v7527_v39  ;;  %v1656_v45 = vld [vmem:[#allocation2 + $0x78] sm:$0xff]  ;;  %v1657_v46 = vld [vmem:[#allocation2 + $0x80] sm:$0xff]  ;;  %v7543_v50 = vpack.c.bf16 %v1138_v44, %v1137_v42  ;;  %7080 = vmatpush3.bf16.msra.mxu0 %v2572_v19 }
  0x35   :  { %v7537_v47 = vpack.c.bf16 %v1657_v46, %v1656_v45  ;;  %336 = vst.msk [vmem:[#allocation4 + $0x20] sm:$0xff] %vm27_vm0, %v7533_v43  ;;  %1006 = vrot.lane.b32.xlu0 %v942_v35, %s7249_s16  ;;  %v889_v49 = vld [vmem:[#allocation2 + $0x98] sm:$0xff]  ;;  %v1660_v54 = vld [vmem:[#allocation2 + $0xa8] sm:$0xff]  ;;  %v1661_v55 = vld [vmem:[#allocation2 + $0xb0] sm:$0xff] }
  0x36   :  { %1008 = vrot.lane.b32.xlu1 %v943_v36, %s7249_s16  ;;  %v1394_v51 = vld [vmem:[#allocation2 + $0x32] sm:$0xff]  ;;  %v7545_v52 = vpack.c.bf16 %v889_v49, %v888_v48  ;;  %v1395_v53 = vld [vmem:[#allocation2 + $0x3a] sm:$0xff]  ;;  %v7549_v56 = vpack.c.bf16 %v1661_v55, %v1660_v54  ;;  %v893_v58 = vld [vmem:[#allocation2 + $0xc8] sm:$0xff]  ;;  %193 = vst.msk [vmem:[#allocation2 + $0x111] sm:$0xff] %vm27_vm0, %v129_v11 }
  0x37   :  { %337 = vst.msk [vmem:[#allocation4 + $0x28] sm:$0xff] %vm27_vm0, %v7537_v47  ;;  %v892_v57 = vld [vmem:[#allocation2 + $0xc0] sm:$0xff]  ;;  %v7556_v59 = vpack.c.bf16 %v1395_v53, %v1394_v51  ;;  %v1664_v1 = vld [vmem:[#allocation2 + $0xd8] sm:$0xff]  ;;  %v1909_v3 = vld [vmem:[#allocation2 + $0x49] sm:$0xff] }
  0x38   :  { %338 = vst.msk [vmem:[#allocation4 + $0x30] sm:$0xff] %vm27_vm0, %v7545_v52  ;;  %v7558_v60 = vpack.c.bf16 %v893_v58, %v892_v57  ;;  %339 = vst.msk [vmem:[#allocation4 + $0x38] sm:$0xff] %vm27_vm0, %v7549_v56  ;;  %v1665_v2 = vld [vmem:[#allocation2 + $0xe0] sm:$0xff]  ;;  %v1910_v4 = vld [vmem:[#allocation2 + $0x51] sm:$0xff] }
  0x39   :  { %1263 = vrot.lane.b32.xlu0 %v429_v30, %s7250_s17  ;;  %v7565_v5 = vpack.c.bf16 %v1665_v2, %v1664_v1  ;;  %v1972_v12 = vpack.c.bf16 %v1910_v4, %v1909_v3  ;;  %v2166_v14 = vld [vmem:[#allocation2 + $0x4a] sm:$0xff]  ;;  %v2167_v15 = vld [vmem:[#allocation2 + $0x52] sm:$0xff]  ;;  %v1141_v26 = vld [vmem:[#allocation2 + $0x61] sm:$0xff]  ;;  %201 = vst.msk [vmem:[#allocation2 + $0x171] sm:$0xff] %vm27_vm0, %v137_v61 }
  0x3a   :  { %1265 = vrot.lane.b32.xlu1 %v7543_v50, %s7250_s17  ;;  %340 = vst.msk [vmem:[#allocation4 + $0x40] sm:$0xff] %vm27_vm0, %v7558_v60  ;;  %v896_v16 = vld [vmem:[#allocation2 + $0xf0] sm:$0xff]  ;;  %v897_v17 = vld [vmem:[#allocation2 + $0xf8] sm:$0xff]  ;;  %v1668_v20 = vld [vmem:[#allocation2 + $0x108] sm:$0xff]  ;;  %v2229_v21 = vpack.c.bf16 %v2167_v15, %v2166_v14 }
  0x3b   :  { %341 = vst.msk [vmem:[#allocation4 + $0x48] sm:$0xff] %vm27_vm0, %v7565_v5  ;;  %v7603_v18 = vpack.c.bf16 %v897_v17, %v896_v16  ;;  %v130_v24 = vld [vmem:[%s12228_s0 + $0xb0] sm:$0xff]  ;;  %v131_v25 = vld [vmem:[%s12228_s0 + $0xb8] sm:$0xff]  ;;  %v1398_v32 = vld [vmem:[#allocation2 + $0x62] sm:$0xff] }
  0x3c   :  { %194 = vst.msk [vmem:[#allocation2 + $0x121] sm:$0xff] %vm27_vm0, %v130_v24  ;;  %195 = vst.msk [vmem:[#allocation2 + $0x129] sm:$0xff] %vm27_vm0, %v131_v25  ;;  %v1142_v27 = vld [vmem:[#allocation2 + $0x69] sm:$0xff]  ;;  %v1913_v37 = vld [vmem:[#allocation2 + $0x79] sm:$0xff] }
  0x3d   :  { %1520 = vrot.lane.b32.xlu0 %v686_v34, %s7251_s18  ;;  %v1669_v22 = vld [vmem:[#allocation2 + $0x110] sm:$0xff]  ;;  %342 = vst.msk [vmem:[#allocation4 + $0x50] sm:$0xff] %vm27_vm0, %v7603_v18  ;;  %v1202_v31 = vpack.c.bf16 %v1142_v27, %v1141_v26  ;;  %v132_v34 = vld [vmem:[%s12228_s0 + $0xc0] sm:$0xff]  ;;  %v133_v35 = vld [vmem:[%s12228_s0 + $0xc8] sm:$0xff] }
  0x3e   :  { %1522 = vrot.lane.b32.xlu1 %v7556_v59, %s7251_s18  ;;  %v7611_v23 = vpack.c.bf16 %v1669_v22, %v1668_v20  ;;  %v1399_v33 = vld [vmem:[#allocation2 + $0x6a] sm:$0xff]  ;;  %196 = vst.msk [vmem:[#allocation2 + $0x139] sm:$0xff] %vm27_vm0, %v132_v34  ;;  %197 = vst.msk [vmem:[#allocation2 + $0x141] sm:$0xff] %vm27_vm0, %v133_v35  ;;  %v1914_v38 = vld [vmem:[#allocation2 + $0x81] sm:$0xff] }
  0x3f   :  { %v1974_v42 = vpack.c.bf16 %v1914_v38, %v1913_v37  ;;  %v2170_v44 = vld [vmem:[#allocation2 + $0x7a] sm:$0xff]  ;;  %v2171_v45 = vld [vmem:[#allocation2 + $0x82] sm:$0xff]  ;;  %v1145_v49 = vld [vmem:[#allocation2 + $0x91] sm:$0xff]  ;;  %3469 = vst.msk [vmem:[#allocation3] sm:$0xff] %vm2863_vm13, %v12236_v0 }
  0x40   :  { %343 = vst.msk [vmem:[#allocation4 + $0x58] sm:$0xff] %vm27_vm0, %v7611_v23  ;;  %v2231_v46 = vpack.c.bf16 %v2171_v45, %v2170_v44  ;;  %v135_v48 = vld [vmem:[%s12228_s0 + $0xd8] sm:$0xff]  ;;  %v1917_v62 = vld [vmem:[#allocation2 + $0xa9] sm:$0xff]  ;;  %v1149_v10 = vld [vmem:[#allocation2 + $0xc1] sm:$0xff] }
  0x41   :  { %1778 = vrot.lane.b32.xlu0 %v943_v36, %s7252_s29  ;;  %v1459_v36 = vpack.c.bf16 %v1399_v33, %v1398_v32  ;;  %199 = vst.msk [vmem:[#allocation2 + $0x159] sm:$0xff] %vm27_vm0, %v135_v48  ;;  %v1402_v57 = vld [vmem:[#allocation2 + $0x92] sm:$0xff]  ;;  %v1403_v58 = vld [vmem:[#allocation2 + $0x9a] sm:$0xff]  ;;  %v2174_v6 = vld [vmem:[#allocation2 + $0xaa] sm:$0xff] }
  0x42   :  { %1780 = vrot.lane.b32.xlu1 %v7527_v39, %s7252_s29  ;;  %v1918_v63 = vld [vmem:[#allocation2 + $0xb1] sm:$0xff]  ;;  %v1150_v11 = vld [vmem:[#allocation2 + $0xc9] sm:$0xff]  ;;  %v1921_v17 = vld [vmem:[#allocation2 + $0xd9] sm:$0xff]  ;;  %3470 = vst.msk [vmem:[#allocation3 + $0x8] sm:$0xff] %vm2863_vm13, %v12236_v0 }
  0x43   :  { %v900_v28 = vld [vmem:[#allocation2 + $0x120] sm:$0xff]  ;;  %v901_v29 = vld [vmem:[#allocation2 + $0x128] sm:$0xff]  ;;  %v1976_v4 = vpack.c.bf16 %v1918_v63, %v1917_v62  ;;  %v2175_v7 = vld [vmem:[#allocation2 + $0xb2] sm:$0xff]  ;;  %3473 = vst.msk [vmem:[#allocation3 + $0x1b0] sm:$0xff] %vm2863_vm13, %v12236_v0 }
  0x44   :  { %v7628_v30 = vpack.c.bf16 %v901_v29, %v900_v28  ;;  %v2233_v8 = vpack.c.bf16 %v2175_v7, %v2174_v6  ;;  %v139_v9 = vld [vmem:[%s12228_s0 + $0xf8] sm:$0xff]  ;;  %v1406_v13 = vld [vmem:[#allocation2 + $0xc2] sm:$0xff]  ;;  %v1407_v14 = vld [vmem:[#allocation2 + $0xca] sm:$0xff]  ;;  %3474 = vst.msk [vmem:[#allocation3 + $0x1b8] sm:$0xff] %vm2863_vm13, %v12236_v0 }
  0x45   :  { %2035 = vrot.lane.b32.xlu0 %v7543_v50, %s7253_s11  ;;  %v1673_v40 = vld [vmem:[#allocation2 + $0x140] sm:$0xff]  ;;  %203 = vst.msk [vmem:[#allocation2 + $0x189] sm:$0xff] %vm27_vm0, %v139_v9  ;;  %v1463_v15 = vpack.c.bf16 %v1407_v14, %v1406_v13  ;;  %v141_v25 = vld [vmem:[%s12228_s0 + $0x108] sm:$0xff]  ;;  %v142_v32 = vld [vmem:[%s12228_s0 + $0x110] sm:$0xff] }
  0x46   :  { %2037 = vrot.lane.b32.xlu1 %v1972_v12, %s7253_s11  ;;  %344 = vst.msk [vmem:[#allocation4 + $0x60] sm:$0xff] %vm27_vm0, %v7628_v30  ;;  %v140_v22 = vld [vmem:[%s12228_s0 + $0x100] sm:$0xff]  ;;  %205 = vst.msk [vmem:[#allocation2 + $0x1d1] sm:$0xff] %vm27_vm0, %v141_v25  ;;  %v143_v33 = vld [vmem:[%s12228_s0 + $0x118] sm:$0xff] }
  0x47   :  { %204 = vst.msk [vmem:[#allocation2 + $0x1c9] sm:$0xff] %vm27_vm0, %v140_v22  ;;  %v2179_v26 = vld [vmem:[#allocation2 + $0xe2] sm:$0xff]  ;;  %206 = vst.msk [vmem:[#allocation2 + $0x1e1] sm:$0xff] %vm27_vm0, %v142_v32  ;;  %v1153_v37 = vld [vmem:[#allocation2 + $0xf1] sm:$0xff] }
  0x48   :  { %207 = vst.msk [vmem:[#allocation2 + $0x1e9] sm:$0xff] %vm27_vm0, %v143_v33  ;;  %v1925_v62 = vld [vmem:[#allocation2 + $0x109] sm:$0xff]  ;;  %v1926_v63 = vld [vmem:[#allocation2 + $0x111] sm:$0xff]  ;;  %v1157_v22 = vld [vmem:[#allocation2 + $0x121] sm:$0xff] }
  0x49   :  { %2292 = vrot.lane.b32.xlu0 %v7556_v59, %s7254_s12  ;;  %v1980_v7 = vpack.c.bf16 %v1926_v63, %v1925_v62  ;;  %v149_v32 = vld [vmem:[%s12228_s0 + $0x148] sm:$0xff]  ;;  %3477 = vst.msk [vmem:[#allocation3 + $0x198] sm:$0xff] %vm2863_vm13, %v12236_v0  ;;  %3478 = vst.msk [vmem:[#allocation3 + $0x1a0] sm:$0xff] %vm2863_vm13, %v12236_v0 }
  0x4a   :  { %496 = vrot.lane.b32.xlu1 %v7543_v50, %s7247_s14  ;;  %v1146_v50 = vld [vmem:[#allocation2 + $0x99] sm:$0xff]  ;;  %213 = vst.msk [vmem:[#allocation2 + $0x231] sm:$0xff] %vm27_vm0, %v149_v32  ;;  %v154_v32 = vld [vmem:[%s12228_s0 + $0x170] sm:$0xff] }
  0x4b   :  { %v1204_v55 = vpack.c.bf16 %v1146_v50, %v1145_v49  ;;  %218 = vst.msk [vmem:[#allocation2 + $0x271] sm:$0xff] %vm27_vm0, %v154_v32 }
  0x4c   :  { %3480 = vst.msk [vmem:[#allocation3 + $0x348] sm:$0xff] %vm2863_vm13, %v12236_v0  ;;  %3481 = vst.msk [vmem:[#allocation3 + $0x350] sm:$0xff] %vm2863_vm13, %v12236_v0 }
  0x4d   :  { %2294 = vrot.lane.b32.xlu0 %v2229_v21, %s7254_s12 }
  0x4e   :  { %498 = vrot.lane.b32.xlu1 %v1972_v12, %s7247_s14  ;;  %v910_v38 = vld [vmem:[#allocation2 + $0x1c8] sm:$0xff]  ;;  %v912_v45 = vld [vmem:[#allocation2 + $0x1e0] sm:$0xff] }
  0x51   :  { %753 = vrot.lane.b32.xlu0 %v7556_v59, %s7248_s15  ;;  %v136_v59 = vld [vmem:[%s12228_s0 + $0xe0] sm:$0xff] }
  0x52   :  { %755 = vrot.lane.b32.xlu1 %v2229_v21, %s7248_s15  ;;  %200 = vst.msk [vmem:[#allocation2 + $0x169] sm:$0xff] %vm27_vm0, %v136_v59 }
  0x55   :  { %1010 = vrot.lane.b32.xlu0 %v7527_v39, %s7249_s16  ;;  %v1672_v39 = vld [vmem:[#allocation2 + $0x138] sm:$0xff] }
  0x56   :  { %1012 = vrot.lane.b32.xlu1 %v7533_v43, %s7249_s16  ;;  %v7650_v41 = vpack.c.bf16 %v1673_v40, %v1672_v39  ;;  %v911_v39 = vld [vmem:[#allocation2 + $0x1d0] sm:$0xff] }
  0x57   :  { %v7766_v44 = vpack.c.bf16 %v911_v39, %v910_v38 }
  0x58   :  { %345 = vst.msk [vmem:[#allocation4 + $0x68] sm:$0xff] %vm27_vm0, %v7650_v41 }
  0x59   :  { %1267 = vrot.lane.b32.xlu0 %v1972_v12, %s7250_s17  ;;  %v1676_v1 = vld [vmem:[#allocation2 + $0x168] sm:$0xff]  ;;  %v1677_v2 = vld [vmem:[#allocation2 + $0x170] sm:$0xff]  ;;  %v1206_v12 = vpack.c.bf16 %v1150_v11, %v1149_v10  ;;  %349 = vst.msk [vmem:[#allocation4 + $0x88] sm:$0xff] %vm27_vm0, %v7766_v44 }
  0x5a   :  { %1269 = vrot.lane.b32.xlu1 %v1202_v31, %s7250_s17  ;;  %v7694_v3 = vpack.c.bf16 %v1677_v2, %v1676_v1  ;;  %v2183_v10 = vld [vmem:[#allocation2 + $0x112] sm:$0xff] }
  0x5c   :  { %347 = vst.msk [vmem:[#allocation4 + $0x78] sm:$0xff] %vm27_vm0, %v7694_v3 }
  0x5d   :  { %1524 = vrot.lane.b32.xlu0 %v2229_v21, %s7251_s18 }
  0x5e   :  { %1526 = vrot.lane.b32.xlu1 %v1459_v36, %s7251_s18 }
  0x61   :  { %1782 = vrot.lane.b32.xlu0 %v7533_v43, %s7252_s29  ;;  %v134_v43 = vld [vmem:[%s12228_s0 + $0xd0] sm:$0xff] }
  0x62   :  { %1784 = vrot.lane.b32.xlu1 %v7537_v47, %s7252_s29  ;;  %198 = vst.msk [vmem:[#allocation2 + $0x151] sm:$0xff] %vm27_vm0, %v134_v43 }
  0x65   :  { %2039 = vrot.lane.b32.xlu0 %v1202_v31, %s7253_s11 }
  0x66   :  { %2041 = vrot.lane.b32.xlu1 %v1974_v42, %s7253_s11 }
  0x69   :  { %2296 = vrot.lane.b32.xlu0 %v1459_v36, %s7254_s12  ;;  %v904_v51 = vld [vmem:[#allocation2 + $0x150] sm:$0xff]  ;;  %v905_v53 = vld [vmem:[#allocation2 + $0x158] sm:$0xff] }
  0x6a   :  { %500 = vrot.lane.b32.xlu1 %v1202_v31, %s7247_s14  ;;  %v7672_v54 = vpack.c.bf16 %v905_v53, %v904_v51  ;;  %v1410_v51 = vld [vmem:[#allocation2 + $0xf2] sm:$0xff]  ;;  %v1411_v53 = vld [vmem:[#allocation2 + $0xfa] sm:$0xff] }
  0x6c   :  { %346 = vst.msk [vmem:[#allocation4 + $0x70] sm:$0xff] %vm27_vm0, %v7672_v54 }
  0x6d   :  { %2298 = vrot.lane.b32.xlu0 %v2231_v46, %s7254_s12 }
  0x6e   :  { %502 = vrot.lane.b32.xlu1 %v1974_v42, %s7247_s14 }
  0x71   :  { %757 = vrot.lane.b32.xlu0 %v1459_v36, %s7248_s15 }
  0x72   :  { %759 = vrot.lane.b32.xlu1 %v2231_v46, %s7248_s15 }
  0x75   :  { %1014 = vrot.lane.b32.xlu0 %v7537_v47, %s7249_s16  ;;  %v1461_v47 = vpack.c.bf16 %v1403_v58, %v1402_v57  ;;  %v145_v57 = vld [vmem:[%s12228_s0 + $0x128] sm:$0xff]  ;;  %v1465_v58 = vpack.c.bf16 %v1411_v53, %v1410_v51 }
  0x76   :  { %1016 = vrot.lane.b32.xlu1 %v7545_v52, %s7249_s16  ;;  %209 = vst.msk [vmem:[#allocation2 + $0x201] sm:$0xff] %vm27_vm0, %v145_v57 }
  0x79   :  { %1271 = vrot.lane.b32.xlu0 %v1974_v42, %s7250_s17  ;;  %v1154_v42 = vld [vmem:[#allocation2 + $0xf9] sm:$0xff] }
  0x7a   :  { %1273 = vrot.lane.b32.xlu1 %v1204_v55, %s7250_s17  ;;  %v1208_v49 = vpack.c.bf16 %v1154_v42, %v1153_v37  ;;  %v1930_v37 = vld [vmem:[#allocation2 + $0x141] sm:$0xff] }
  0x7d   :  { %1528 = vrot.lane.b32.xlu0 %v2231_v46, %s7251_s18  ;;  %v913_v46 = vld [vmem:[#allocation2 + $0x1e8] sm:$0xff] }
  0x7e   :  { %1530 = vrot.lane.b32.xlu1 %v1461_v47, %s7251_s18  ;;  %v7769_v48 = vpack.c.bf16 %v913_v46, %v912_v45 }
  0x7f   :  { %v493_v16 = vpop.permute.xlu0 %492 }
  0x80   :  { %589 = vst.msk [vmem:[#allocation4] sm:$0xff] %vm588_vm4, %v493_v16  ;;  %v750_v19 = vpop.permute.xlu1 %749  ;;  %v146_v16 = vld [vmem:[%s12228_s0 + $0x130] sm:$0xff] }
  0x81   :  { %1786 = vrot.lane.b32.xlu0 %v7545_v52, %s7252_s29  ;;  %v138_v52 = vld [vmem:[%s12228_s0 + $0xf0] sm:$0xff]  ;;  %846 = vst.msk [vmem:[#allocation4] sm:$0xff] %vm845_vm5, %v750_v19 }
  0x82   :  { %1788 = vrot.lane.b32.xlu1 %v7549_v56, %s7252_s29  ;;  %202 = vst.msk [vmem:[#allocation2 + $0x181] sm:$0xff] %vm27_vm0, %v138_v52  ;;  %350 = vst.msk [vmem:[#allocation4 + $0x90] sm:$0xff] %vm27_vm0, %v7769_v48 }
  0x83   :  { %210 = vst.msk [vmem:[#allocation2 + $0x211] sm:$0xff] %vm27_vm0, %v146_v16  ;;  %v1934_v16 = vld [vmem:[#allocation2 + $0x171] sm:$0xff] }
  0x85   :  { %2043 = vrot.lane.b32.xlu0 %v1204_v55, %s7253_s11 }
  0x86   :  { %2045 = vrot.lane.b32.xlu1 %v1976_v4, %s7253_s11 }
  0x89   :  { %2300 = vrot.lane.b32.xlu0 %v1461_v47, %s7254_s12 }
  0x8a   :  { %504 = vrot.lane.b32.xlu1 %v1204_v55, %s7247_s14  ;;  %v144_v55 = vld [vmem:[%s12228_s0 + $0x120] sm:$0xff] }
  0x8b   :  { %208 = vst.msk [vmem:[#allocation2 + $0x1f9] sm:$0xff] %vm27_vm0, %v144_v55 }
  0x8d   :  { %2302 = vrot.lane.b32.xlu0 %v2233_v8, %s7254_s12 }
  0x8e   :  { %506 = vrot.lane.b32.xlu1 %v1976_v4, %s7247_s14 }
  0x91   :  { %761 = vrot.lane.b32.xlu0 %v1461_v47, %s7248_s15 }
  0x92   :  { %763 = vrot.lane.b32.xlu1 %v2233_v8, %s7248_s15  ;;  %v1684_v1 = vld [vmem:[#allocation2 + $0x1f8] sm:$0xff] }
  0x95   :  { %1018 = vrot.lane.b32.xlu0 %v7549_v56, %s7249_s16  ;;  %v1922_v56 = vld [vmem:[#allocation2 + $0xe1] sm:$0xff] }
  0x96   :  { %1020 = vrot.lane.b32.xlu1 %v7558_v60, %s7249_s16  ;;  %v7730_v20 = vpack.c.bf16 %v1922_v56, %v1921_v17  ;;  %v147_v17 = vld [vmem:[%s12228_s0 + $0x138] sm:$0xff] }
  0x97   :  { %211 = vst.msk [vmem:[#allocation2 + $0x219] sm:$0xff] %vm27_vm0, %v147_v17 }
  0x99   :  { %1275 = vrot.lane.b32.xlu0 %v1976_v4, %s7250_s17  ;;  %v1685_v4 = vld [vmem:[#allocation2 + $0x200] sm:$0xff] }
  0x9a   :  { %1277 = vrot.lane.b32.xlu1 %v1206_v12, %s7250_s17  ;;  %v7801_v6 = vpack.c.bf16 %v1685_v4, %v1684_v1  ;;  %v1161_v1 = vld [vmem:[#allocation2 + $0x151] sm:$0xff] }
  0x9c   :  { %351 = vst.msk [vmem:[#allocation4 + $0x98] sm:$0xff] %vm27_vm0, %v7801_v6 }
  0x9d   :  { %1532 = vrot.lane.b32.xlu0 %v2233_v8, %s7251_s18 }
  0x9e   :  { %1534 = vrot.lane.b32.xlu1 %v1463_v15, %s7251_s18 }
  0xa1   :  { %1790 = vrot.lane.b32.xlu0 %v7558_v60, %s7252_s29  ;;  %v2178_v60 = vld [vmem:[#allocation2 + $0xda] sm:$0xff] }
  0xa2   :  { %1792 = vrot.lane.b32.xlu1 %v7565_v5, %s7252_s29  ;;  %v2235_v29 = vpack.c.bf16 %v2179_v26, %v2178_v60 }
  0xa3   :  { %v495_v21 = vpop.permute.xlu0 %494 }
  0xa4   :  { %590 = vst.msk [vmem:[#allocation4 + $0x8] sm:$0xff] %vm588_vm4, %v495_v21  ;;  %v752_v24 = vpop.permute.xlu1 %751 }
  0xa5   :  { %847 = vst.msk [vmem:[#allocation4 + $0x8] sm:$0xff] %vm845_vm5, %v752_v24  ;;  %2047 = vrot.lane.b32.xlu0 %v1206_v12, %s7253_s11  ;;  %v1158_v24 = vld [vmem:[#allocation2 + $0x129] sm:$0xff] }
  0xa6   :  { %2049 = vrot.lane.b32.xlu1 %v7730_v20, %s7253_s11  ;;  %v1210_v60 = vpack.c.bf16 %v1158_v24, %v1157_v22 }
  0xa7   :  { %v1007_v27 = vpop.permute.xlu0 %1006 }
  0xa8   :  { %1103 = vst.msk [vmem:[#allocation4] sm:$0xff] %vm1102_vm6, %v1007_v27  ;;  %v1009_v28 = vpop.permute.xlu1 %1008  ;;  %v1414_v27 = vld [vmem:[#allocation2 + $0x122] sm:$0xff] }
  0xa9   :  { %1104 = vst.msk [vmem:[#allocation4 + $0x8] sm:$0xff] %vm1102_vm6, %v1009_v28  ;;  %2304 = vrot.lane.b32.xlu0 %v1463_v15, %s7254_s12  ;;  %v1415_v28 = vld [vmem:[#allocation2 + $0x12a] sm:$0xff] }
  0xaa   :  { %508 = vrot.lane.b32.xlu1 %v1206_v12, %s7247_s14 }
  0xab   :  { %v1264_v31 = vpop.permute.xlu0 %1263 }
  0xac   :  { %1360 = vst.msk [vmem:[#allocation4] sm:$0xff] %vm1359_vm7, %v1264_v31  ;;  %v1266_v34 = vpop.permute.xlu1 %1265 }
  0xad   :  { %1361 = vst.msk [vmem:[#allocation4 + $0x8] sm:$0xff] %vm1359_vm7, %v1266_v34  ;;  %2306 = vrot.lane.b32.xlu0 %v2235_v29, %s7254_s12 }
  0xae   :  { %510 = vrot.lane.b32.xlu1 %v7730_v20, %s7247_s14 }
  0xaf   :  { %v1521_v35 = vpop.permute.xlu0 %1520 }
  0xb0   :  { %1617 = vst.msk [vmem:[#allocation4] sm:$0xff] %vm1616_vm8, %v1521_v35  ;;  %v1523_v36 = vpop.permute.xlu1 %1522 }
  0xb1   :  { %1618 = vst.msk [vmem:[#allocation4 + $0x8] sm:$0xff] %vm1616_vm8, %v1523_v36  ;;  %765 = vrot.lane.b32.xlu0 %v1463_v15, %s7248_s15  ;;  %v1929_v36 = vld [vmem:[#allocation2 + $0x139] sm:$0xff] }
  0xb2   :  { %767 = vrot.lane.b32.xlu1 %v2235_v29, %s7248_s15  ;;  %v1982_v45 = vpack.c.bf16 %v1930_v37, %v1929_v36  ;;  %v909_v36 = vld [vmem:[#allocation2 + $0x188] sm:$0xff] }
  0xb3   :  { %v1779_v40 = vpop.permute.xlu0 %1778 }
  0xb4   :  { %1875 = vst.msk [vmem:[#allocation4] sm:$0xff] %vm1874_vm9, %v1779_v40  ;;  %v1781_v43 = vpop.permute.xlu1 %1780 }
  0xb5   :  { %1876 = vst.msk [vmem:[#allocation4 + $0x8] sm:$0xff] %vm1874_vm9, %v1781_v43  ;;  %1022 = vrot.lane.b32.xlu0 %v7565_v5, %s7249_s16 }
  0xb6   :  { %1024 = vrot.lane.b32.xlu1 %v7603_v18, %s7249_s16 }
  0xb7   :  { %v2036_v50 = vpop.permute.xlu0 %2035 }
  0xb8   :  { %2132 = vst.msk [vmem:[#allocation4] sm:$0xff] %vm2131_vm10, %v2036_v50  ;;  %v2038_v5 = vpop.permute.xlu1 %2037  ;;  %v2187_v50 = vld [vmem:[#allocation2 + $0x142] sm:$0xff] }
  0xb9   :  { %2133 = vst.msk [vmem:[#allocation4 + $0x8] sm:$0xff] %vm2131_vm10, %v2038_v5  ;;  %1279 = vrot.lane.b32.xlu0 %v7730_v20, %s7250_s17 }
  0xba   :  { %1281 = vrot.lane.b32.xlu1 %v1208_v49, %s7250_s17 }
  0xbb   :  { %v2293_v59 = vpop.permute.xlu0 %2292 }
  0xbc   :  { %2389 = vst.msk [vmem:[#allocation4] sm:$0xff] %vm2388_vm11, %v2293_v59  ;;  %v497_v61 = vpop.permute.xlu1 %496  ;;  %v151_v59 = vld [vmem:[%s12228_s0 + $0x158] sm:$0xff] }
  0xbd   :  { %591 = vst.msk [vmem:[#allocation4 + $0x10] sm:$0xff] %vm588_vm4, %v497_v61  ;;  %1536 = vrot.lane.b32.xlu0 %v2235_v29, %s7251_s18  ;;  %v148_v29 = vld [vmem:[%s12228_s0 + $0x140] sm:$0xff] }
  0xbe   :  { %1538 = vrot.lane.b32.xlu1 %v1465_v58, %s7251_s18  ;;  %212 = vst.msk [vmem:[#allocation2 + $0x229] sm:$0xff] %vm27_vm0, %v148_v29  ;;  %215 = vst.msk [vmem:[#allocation2 + $0x249] sm:$0xff] %vm27_vm0, %v151_v59 }
  0xbf   :  { %v2295_v47 = vpop.permute.xlu0 %2294 }
  0xc0   :  { %2390 = vst.msk [vmem:[#allocation4 + $0x8] sm:$0xff] %vm2388_vm11, %v2295_v47  ;;  %v499_v2 = vpop.permute.xlu1 %498 }
  0xc1   :  { %592 = vst.msk [vmem:[#allocation4 + $0x18] sm:$0xff] %vm588_vm4, %v499_v2  ;;  %1794 = vrot.lane.b32.xlu0 %v7603_v18, %s7252_s29  ;;  %v2182_v18 = vld [vmem:[#allocation2 + $0x10a] sm:$0xff]  ;;  %v1162_v2 = vld [vmem:[#allocation2 + $0x159] sm:$0xff] }
  0xc2   :  { %1796 = vrot.lane.b32.xlu1 %v7611_v23, %s7252_s29  ;;  %v2237_v14 = vpack.c.bf16 %v2183_v10, %v2182_v18  ;;  %v152_v18 = vld [vmem:[%s12228_s0 + $0x160] sm:$0xff] }
  0xc3   :  { %v754_v8 = vpop.permute.xlu0 %753  ;;  %v2421_v52 = vld [vmem:[#allocation4] sm:$0xff]  ;;  %216 = vst.msk [vmem:[#allocation2 + $0x259] sm:$0xff] %vm27_vm0, %v152_v18 }
  0xc4   :  { %848 = vst.msk [vmem:[#allocation4 + $0x10] sm:$0xff] %vm845_vm5, %v754_v8  ;;  %v756_v9 = vpop.permute.xlu1 %755  ;;  %7081 = vmatprep.mubr.msk.bf16.mxu0 %vm2473_vm12, %v2421_v52  ;;  %v1418_v52 = vld [vmem:[#allocation2 + $0x152] sm:$0xff] }
  0xc5   :  { %849 = vst.msk [vmem:[#allocation4 + $0x18] sm:$0xff] %vm845_vm5, %v756_v9  ;;  %2051 = vrot.lane.b32.xlu0 %v1208_v49, %s7253_s11  ;;  %v1688_v38 = vld [vmem:[#allocation2 + $0x228] sm:$0xff]  ;;  %v1689_v40 = vld [vmem:[#allocation2 + $0x230] sm:$0xff]  ;;  %v1419_v9 = vld [vmem:[#allocation2 + $0x15a] sm:$0xff] }
  0xc6   :  { %2053 = vrot.lane.b32.xlu1 %v1980_v7, %s7253_s11  ;;  %v7859_v42 = vpack.c.bf16 %v1689_v40, %v1688_v38  ;;  %v1165_v40 = vld [vmem:[#allocation2 + $0x181] sm:$0xff] }
  0xc7   :  { %v1011_v11 = vpop.permute.xlu0 %1010  ;;  %v2422_v12 = vld [vmem:[#allocation4 + $0x8] sm:$0xff] }
  0xc8   :  { %1105 = vst.msk [vmem:[#allocation4 + $0x10] sm:$0xff] %vm1102_vm6, %v1011_v11  ;;  %v1013_v13 = vpop.permute.xlu1 %1012  ;;  %7082 = vmatmul.mubr.msk.bf16.vlgmr.msra.gmra.mrb[0].mxu0 %vm2473_vm12, %v2422_v12  ;;  %v153_v11 = vld [vmem:[%s12228_s0 + $0x168] sm:$0xff] }
  0xc9   :  { %1106 = vst.msk [vmem:[#allocation4 + $0x18] sm:$0xff] %vm1102_vm6, %v1013_v13  ;;  %2308 = vrot.lane.b32.xlu0 %v1465_v58, %s7254_s12 }
  0xca   :  { %512 = vrot.lane.b32.xlu1 %v1208_v49, %s7247_s14  ;;  %353 = vst.msk [vmem:[#allocation4 + $0xa8] sm:$0xff] %vm27_vm0, %v7859_v42  ;;  %217 = vst.msk [vmem:[#allocation2 + $0x261] sm:$0xff] %vm27_vm0, %v153_v11  ;;  %v1692_v17 = vld [vmem:[#allocation2 + $0x258] sm:$0xff] }
  0xcb   :  { %v1268_v15 = vpop.permute.xlu0 %1267 }
  0xcc   :  { %1362 = vst.msk [vmem:[#allocation4 + $0x10] sm:$0xff] %vm1359_vm7, %v1268_v15  ;;  %v1270_v56 = vpop.permute.xlu1 %1269  ;;  %v1933_v15 = vld [vmem:[#allocation2 + $0x169] sm:$0xff] }
  0xcd   :  { %1363 = vst.msk [vmem:[#allocation4 + $0x18] sm:$0xff] %vm1359_vm7, %v1270_v56  ;;  %2310 = vrot.lane.b32.xlu0 %v2237_v14, %s7254_s12 }
  0xce   :  { %514 = vrot.lane.b32.xlu1 %v1980_v7, %s7247_s14 }
  0xcf   :  { %v1525_v19 = vpop.permute.xlu0 %1524 }
  0xd0   :  { %1619 = vst.msk [vmem:[#allocation4 + $0x10] sm:$0xff] %vm1616_vm8, %v1525_v19  ;;  %v1527_v20 = vpop.permute.xlu1 %1526 }
  0xd1   :  { %1620 = vst.msk [vmem:[#allocation4 + $0x18] sm:$0xff] %vm1616_vm8, %v1527_v20  ;;  %769 = vrot.lane.b32.xlu0 %v1465_v58, %s7248_s15  ;;  %v150_v58 = vld [vmem:[%s12228_s0 + $0x150] sm:$0xff]  ;;  %v1693_v19 = vld [vmem:[#allocation2 + $0x260] sm:$0xff] }
  0xd2   :  { %771 = vrot.lane.b32.xlu1 %v2237_v14, %s7248_s15  ;;  %214 = vst.msk [vmem:[#allocation2 + $0x241] sm:$0xff] %vm27_vm0, %v150_v58  ;;  %v7917_v20 = vpack.c.bf16 %v1693_v19, %v1692_v17  ;;  %v398_v19 = vld [vmem:[#allocation2 + $0x1c9] sm:$0xff] }
  0xd3   :  { %v1783_v21 = vpop.permute.xlu0 %1782 }
  0xd4   :  { %1877 = vst.msk [vmem:[#allocation4 + $0x10] sm:$0xff] %vm1874_vm9, %v1783_v21  ;;  %v1785_v25 = vpop.permute.xlu1 %1784  ;;  %v1984_v21 = vpack.c.bf16 %v1934_v16, %v1933_v15  ;;  %v2194_v15 = vld [vmem:[#allocation2 + $0x19a] sm:$0xff]  ;;  %v2195_v16 = vld [vmem:[#allocation2 + $0x1a2] sm:$0xff] }
  0xd5   :  { %1878 = vst.msk [vmem:[#allocation4 + $0x18] sm:$0xff] %vm1874_vm9, %v1785_v25  ;;  %1026 = vrot.lane.b32.xlu0 %v7611_v23, %s7249_s16  ;;  %v1467_v23 = vpack.c.bf16 %v1415_v28, %v1414_v27 }
  0xd6   :  { %1028 = vrot.lane.b32.xlu1 %v7628_v30, %s7249_s16  ;;  %355 = vst.msk [vmem:[#allocation4 + $0xb8] sm:$0xff] %vm27_vm0, %v7917_v20 }
  0xd7   :  { %v2040_v26 = vpop.permute.xlu0 %2039 }
  0xd8   :  { %2134 = vst.msk [vmem:[#allocation4 + $0x10] sm:$0xff] %vm2131_vm10, %v2040_v26  ;;  %v2042_v31 = vpop.permute.xlu1 %2041 }
  0xd9   :  { %2135 = vst.msk [vmem:[#allocation4 + $0x18] sm:$0xff] %vm2131_vm10, %v2042_v31  ;;  %1283 = vrot.lane.b32.xlu0 %v1980_v7, %s7250_s17  ;;  %v1212_v7 = vpack.c.bf16 %v1162_v2, %v1161_v1  ;;  %v1937_v2 = vld [vmem:[#allocation2 + $0x199] sm:$0xff] }
  0xda   :  { %1285 = vrot.lane.b32.xlu1 %v1210_v60, %s7250_s17 }
  0xdb   :  { %v2297_v33 = vpop.permute.xlu0 %2296 }
  0xdc   :  { %2391 = vst.msk [vmem:[#allocation4 + $0x10] sm:$0xff] %vm2388_vm11, %v2297_v33  ;;  %v501_v34 = vpop.permute.xlu1 %500 }
  0xdd   :  { %593 = vst.msk [vmem:[#allocation4 + $0x20] sm:$0xff] %vm588_vm4, %v501_v34  ;;  %1540 = vrot.lane.b32.xlu0 %v2237_v14, %s7251_s18 }
  0xde   :  { %1542 = vrot.lane.b32.xlu1 %v1467_v23, %s7251_s18 }
  0xdf   :  { %v2299_v35 = vpop.permute.xlu0 %2298 }
  0xe0   :  { %2392 = vst.msk [vmem:[#allocation4 + $0x18] sm:$0xff] %vm2388_vm11, %v2299_v35  ;;  %v503_v39 = vpop.permute.xlu1 %502  ;;  %v908_v35 = vld [vmem:[#allocation2 + $0x180] sm:$0xff] }
  0xe1   :  { %594 = vst.msk [vmem:[#allocation4 + $0x28] sm:$0xff] %vm588_vm4, %v503_v39  ;;  %1798 = vrot.lane.b32.xlu0 %v7628_v30, %s7252_s29  ;;  %v2186_v30 = vld [vmem:[#allocation2 + $0x13a] sm:$0xff]  ;;  %v957_v38 = vpack.c.bf16 %v909_v36, %v908_v35 }
  0xe2   :  { %1800 = vrot.lane.b32.xlu1 %v7650_v41, %s7252_s29  ;;  %v2239_v5 = vpack.c.bf16 %v2187_v50, %v2186_v30  ;;  %v1422_v30 = vld [vmem:[#allocation2 + $0x182] sm:$0xff]  ;;  %v1423_v50 = vld [vmem:[#allocation2 + $0x18a] sm:$0xff] }
  0xe3   :  { %v758_v46 = vpop.permute.xlu0 %757  ;;  %v2423_v43 = vld [vmem:[#allocation4 + $0x10] sm:$0xff]  ;;  %v1169_v36 = vld [vmem:[#allocation2 + $0x1e1] sm:$0xff] }
  0xe4   :  { %850 = vst.msk [vmem:[#allocation4 + $0x20] sm:$0xff] %vm845_vm5, %v758_v46  ;;  %v760_v49 = vpop.permute.xlu1 %759  ;;  %7085 = vmatprep.mubr.msk.bf16.mxu0 %vm2473_vm12, %v2423_v43 }
  0xe5   :  { %851 = vst.msk [vmem:[#allocation4 + $0x28] sm:$0xff] %vm845_vm5, %v760_v49  ;;  %2055 = vrot.lane.b32.xlu0 %v1210_v60, %s7253_s11 }
  0xe6   :  { %2057 = vrot.lane.b32.xlu1 %v1982_v45, %s7253_s11 }
  0xe7   :  { %v1015_v51 = vpop.permute.xlu0 %1014  ;;  %v2424_v53 = vld [vmem:[#allocation4 + $0x18] sm:$0xff] }
  0xe8   :  { %1107 = vst.msk [vmem:[#allocation4 + $0x20] sm:$0xff] %vm1102_vm6, %v1015_v51  ;;  %v1017_v55 = vpop.permute.xlu1 %1016  ;;  %7086 = vmatmul.mubr.msk.bf16.gmra.mrb[4].mxu0 %vm2473_vm12, %v2424_v53  ;;  %v156_v51 = vld [vmem:[%s12228_s0 + $0x180] sm:$0xff] }
  0xe9   :  { %1108 = vst.msk [vmem:[#allocation4 + $0x28] sm:$0xff] %vm1102_vm6, %v1017_v55  ;;  %2312 = vrot.lane.b32.xlu0 %v1467_v23, %s7254_s12  ;;  %v157_v55 = vld [vmem:[%s12228_s0 + $0x188] sm:$0xff] }
  0xea   :  { %516 = vrot.lane.b32.xlu1 %v1210_v60, %s7247_s14  ;;  %v2191_v60 = vld [vmem:[#allocation2 + $0x172] sm:$0xff]  ;;  %220 = vst.msk [vmem:[#allocation2 + $0x289] sm:$0xff] %vm27_vm0, %v156_v51  ;;  %221 = vst.msk [vmem:[#allocation2 + $0x291] sm:$0xff] %vm27_vm0, %v157_v55  ;;  %v160_v51 = vld [vmem:[%s12228_s0 + $0x1a0] sm:$0xff] }
  0xeb   :  { %v1272_v57 = vpop.permute.xlu0 %1271  ;;  %224 = vst.msk [vmem:[#allocation2 + $0x2b9] sm:$0xff] %vm27_vm0, %v160_v51 }
  0xec   :  { %1364 = vst.msk [vmem:[#allocation4 + $0x20] sm:$0xff] %vm1359_vm7, %v1272_v57  ;;  %v1274_v61 = vpop.permute.xlu1 %1273  ;;  %v1471_v57 = vpack.c.bf16 %v1423_v50, %v1422_v30  ;;  %v1426_v30 = vld [vmem:[#allocation2 + $0x1e2] sm:$0xff]  ;;  %v1427_v50 = vld [vmem:[#allocation2 + $0x1ea] sm:$0xff] }
  0xed   :  { %1365 = vst.msk [vmem:[#allocation4 + $0x28] sm:$0xff] %vm1359_vm7, %v1274_v61  ;;  %2314 = vrot.lane.b32.xlu0 %v2239_v5, %s7254_s12  ;;  %v1680_v61 = vld [vmem:[#allocation2 + $0x198] sm:$0xff]  ;;  %v1473_v55 = vpack.c.bf16 %v1427_v50, %v1426_v30 }
  0xee   :  { %518 = vrot.lane.b32.xlu1 %v1982_v45, %s7247_s14 }
  0xef   :  { %v1529_v47 = vpop.permute.xlu0 %1528 }
  0xf0   :  { %1621 = vst.msk [vmem:[#allocation4 + $0x20] sm:$0xff] %vm1616_vm8, %v1529_v47  ;;  %v1531_v62 = vpop.permute.xlu1 %1530  ;;  %v1681_v47 = vld [vmem:[#allocation2 + $0x1a0] sm:$0xff] }
  0xf1   :  { %1622 = vst.msk [vmem:[#allocation4 + $0x28] sm:$0xff] %vm1616_vm8, %v1531_v62  ;;  %773 = vrot.lane.b32.xlu0 %v1467_v23, %s7248_s15  ;;  %v155_v23 = vld [vmem:[%s12228_s0 + $0x178] sm:$0xff] }
  0xf2   :  { %775 = vrot.lane.b32.xlu1 %v2239_v5, %s7248_s15  ;;  %219 = vst.msk [vmem:[#allocation2 + $0x279] sm:$0xff] %vm27_vm0, %v155_v23 }
  0xf3   :  { %v1787_v63 = vpop.permute.xlu0 %1786 }
  0xf4   :  { %1879 = vst.msk [vmem:[#allocation4 + $0x20] sm:$0xff] %vm1874_vm9, %v1787_v63  ;;  %v1789_v4 = vpop.permute.xlu1 %1788  ;;  %v1729_v63 = vpack.c.bf16 %v1681_v47, %v1680_v61  ;;  %v1700_v61 = vld [vmem:[#allocation2 + $0x2b8] sm:$0xff] }
  0xf5   :  { %1880 = vst.msk [vmem:[#allocation4 + $0x28] sm:$0xff] %vm1874_vm9, %v1789_v4  ;;  %1030 = vrot.lane.b32.xlu0 %v7650_v41, %s7249_s16  ;;  %v1469_v41 = vpack.c.bf16 %v1419_v9, %v1418_v52  ;;  %v1938_v4 = vld [vmem:[#allocation2 + $0x1a1] sm:$0xff]  ;;  %v1697_v52 = vld [vmem:[#allocation2 + $0x290] sm:$0xff] }
  0xf6   :  { %1032 = vrot.lane.b32.xlu1 %v7672_v54, %s7249_s16  ;;  %v1986_v18 = vpack.c.bf16 %v1938_v4, %v1937_v2 }
  0xf7   :  { %v2044_v8 = vpop.permute.xlu0 %2043 }
  0xf8   :  { %2136 = vst.msk [vmem:[#allocation4 + $0x20] sm:$0xff] %vm2131_vm10, %v2044_v8  ;;  %v2046_v10 = vpop.permute.xlu1 %2045 }
  0xf9   :  { %2137 = vst.msk [vmem:[#allocation4 + $0x28] sm:$0xff] %vm2131_vm10, %v2046_v10  ;;  %1287 = vrot.lane.b32.xlu0 %v1982_v45, %s7250_s17  ;;  %v1166_v45 = vld [vmem:[#allocation2 + $0x189] sm:$0xff] }
  0xfa   :  { %1289 = vrot.lane.b32.xlu1 %v1212_v7, %s7250_s17  ;;  %v1214_v43 = vpack.c.bf16 %v1166_v45, %v1165_v40 }
  0xfb   :  { %v2301_v12 = vpop.permute.xlu0 %2300 }
  0xfc   :  { %2393 = vst.msk [vmem:[#allocation4 + $0x20] sm:$0xff] %vm2388_vm11, %v2301_v12  ;;  %v505_v13 = vpop.permute.xlu1 %504  ;;  %v397_v12 = vld [vmem:[#allocation2 + $0x1b9] sm:$0xff] }
  0xfd   :  { %595 = vst.msk [vmem:[#allocation4 + $0x30] sm:$0xff] %vm588_vm4, %v505_v13  ;;  %1544 = vrot.lane.b32.xlu0 %v2239_v5, %s7251_s18  ;;  %v269_v5 = vld [vmem:[#allocation2 + $0x1b8] sm:$0xff] }
  0xfe   :  { %1546 = vrot.lane.b32.xlu1 %v1469_v41, %s7251_s18 }
  0xff   :  { %v2303_v14 = vpop.permute.xlu0 %2302 }
 0x100   :  { %2394 = vst.msk [vmem:[#allocation4 + $0x28] sm:$0xff] %vm2388_vm11, %v2303_v14  ;;  %v507_v56 = vpop.permute.xlu1 %506 }
 0x101   :  { %596 = vst.msk [vmem:[#allocation4 + $0x38] sm:$0xff] %vm588_vm4, %v507_v56  ;;  %1802 = vrot.lane.b32.xlu0 %v7672_v54, %s7252_s29  ;;  %v2190_v54 = vld [vmem:[#allocation2 + $0x16a] sm:$0xff] }
 0x102   :  { %1804 = vrot.lane.b32.xlu1 %v7694_v3, %s7252_s29  ;;  %v2241_v29 = vpack.c.bf16 %v2191_v60, %v2190_v54  ;;  %v653_v54 = vld [vmem:[#allocation2 + $0x1b2] sm:$0xff]  ;;  %v654_v60 = vld [vmem:[#allocation2 + $0x1ba] sm:$0xff] }
 0x103   :  { %v762_v22 = vpop.permute.xlu0 %761  ;;  %v2425_v24 = vld [vmem:[#allocation4 + $0x20] sm:$0xff]  ;;  %v701_v23 = vpack.c.bf16 %v654_v60, %v653_v54 }
 0x104   :  { %852 = vst.msk [vmem:[#allocation4 + $0x30] sm:$0xff] %vm845_vm5, %v762_v22  ;;  %v764_v25 = vpop.permute.xlu1 %763  ;;  %7089 = vmatprep.mubr.msk.bf16.mxu0 %vm2473_vm12, %v2425_v24  ;;  %v2243_v24 = vpack.c.bf16 %v2195_v16, %v2194_v15  ;;  %v916_v16 = vld [vmem:[#allocation2 + $0x210] sm:$0xff] }
 0x105   :  { %853 = vst.msk [vmem:[#allocation4 + $0x38] sm:$0xff] %vm845_vm5, %v764_v25  ;;  %2059 = vrot.lane.b32.xlu0 %v1212_v7, %s7253_s11 }
 0x106   :  { %2061 = vrot.lane.b32.xlu1 %v1984_v21, %s7253_s11 }
 0x107   :  { %v1019_v26 = vpop.permute.xlu0 %1018  ;;  %v2426_v27 = vld [vmem:[#allocation4 + $0x28] sm:$0xff] }
 0x108   :  { %1109 = vst.msk [vmem:[#allocation4 + $0x30] sm:$0xff] %vm1102_vm6, %v1019_v26  ;;  %v1021_v28 = vpop.permute.xlu1 %1020  ;;  %7090 = vmatmul.mubr.msk.bf16.gmra.mrb[8].mxu0 %vm2473_vm12, %v2426_v27  ;;  %v655_v26 = vld [vmem:[#allocation2 + $0x1ca] sm:$0xff] }
 0x109   :  { %1110 = vst.msk [vmem:[#allocation4 + $0x38] sm:$0xff] %vm1102_vm6, %v1021_v28  ;;  %2316 = vrot.lane.b32.xlu0 %v1469_v41, %s7254_s12  ;;  %v656_v28 = vld [vmem:[#allocation2 + $0x1d2] sm:$0xff] }
 0x10a   :  { %520 = vrot.lane.b32.xlu1 %v1212_v7, %s7247_s14  ;;  %v1696_v7 = vld [vmem:[#allocation2 + $0x288] sm:$0xff] }
 0x10b   :  { %v1276_v31 = vpop.permute.xlu0 %1275  ;;  %v7990_v9 = vpack.c.bf16 %v1697_v52, %v1696_v7 }
 0x10c   :  { %1366 = vst.msk [vmem:[#allocation4 + $0x30] sm:$0xff] %vm1359_vm7, %v1276_v31  ;;  %v1278_v33 = vpop.permute.xlu1 %1277  ;;  %v159_v31 = vld [vmem:[%s12228_s0 + $0x198] sm:$0xff] }
 0x10d   :  { %1367 = vst.msk [vmem:[#allocation4 + $0x38] sm:$0xff] %vm1359_vm7, %v1278_v33  ;;  %2318 = vrot.lane.b32.xlu0 %v2241_v29, %s7254_s12  ;;  %v702_v33 = vpack.c.bf16 %v656_v28, %v655_v26 }
 0x10e   :  { %522 = vrot.lane.b32.xlu1 %v1984_v21, %s7247_s14  ;;  %357 = vst.msk [vmem:[#allocation4 + $0xc8] sm:$0xff] %vm27_vm0, %v7990_v9  ;;  %223 = vst.msk [vmem:[#allocation2 + $0x2a9] sm:$0xff] %vm27_vm0, %v159_v31  ;;  %v1431_v31 = vld [vmem:[#allocation2 + $0x21a] sm:$0xff] }
 0x10f   :  { %v1533_v34 = vpop.permute.xlu0 %1532 }
 0x110   :  { %1623 = vst.msk [vmem:[#allocation4 + $0x30] sm:$0xff] %vm1616_vm8, %v1533_v34  ;;  %v1535_v37 = vpop.permute.xlu1 %1534 }
 0x111   :  { %1624 = vst.msk [vmem:[#allocation4 + $0x38] sm:$0xff] %vm1616_vm8, %v1535_v37  ;;  %777 = vrot.lane.b32.xlu0 %v1469_v41, %s7248_s15  ;;  %v396_v41 = vld [vmem:[#allocation2 + $0x1b1] sm:$0xff] }
 0x112   :  { %779 = vrot.lane.b32.xlu1 %v2241_v29, %s7248_s15  ;;  %v444_v14 = vpack.c.bf16 %v397_v12, %v396_v41  ;;  %v162_v12 = vld [vmem:[%s12228_s0 + $0x1b0] sm:$0xff] }
 0x113   :  { %v1791_v39 = vpop.permute.xlu0 %1790  ;;  %226 = vst.msk [vmem:[#allocation2 + $0x2d1] sm:$0xff] %vm27_vm0, %v162_v12 }
 0x114   :  { %1881 = vst.msk [vmem:[#allocation4 + $0x30] sm:$0xff] %vm1874_vm9, %v1791_v39  ;;  %v1793_v46 = vpop.permute.xlu1 %1792 }
 0x115   :  { %1882 = vst.msk [vmem:[#allocation4 + $0x38] sm:$0xff] %vm1874_vm9, %v1793_v46  ;;  %1034 = vrot.lane.b32.xlu0 %v7694_v3, %s7249_s16  ;;  %v268_v3 = vld [vmem:[#allocation2 + $0x1b0] sm:$0xff] }
 0x116   :  { %1036 = vrot.lane.b32.xlu1 %v957_v38, %s7249_s16  ;;  %v316_v58 = vpack.c.bf16 %v269_v5, %v268_v3 }
 0x117   :  { %v2048_v49 = vpop.permute.xlu0 %2047 }
 0x118   :  { %2138 = vst.msk [vmem:[#allocation4 + $0x30] sm:$0xff] %vm2131_vm10, %v2048_v49  ;;  %v2050_v53 = vpop.permute.xlu1 %2049 }
 0x119   :  { %2139 = vst.msk [vmem:[#allocation4 + $0x38] sm:$0xff] %vm2131_vm10, %v2050_v53  ;;  %1291 = vrot.lane.b32.xlu0 %v1984_v21, %s7250_s17  ;;  %v399_v21 = vld [vmem:[#allocation2 + $0x1d1] sm:$0xff] }
 0x11a   :  { %1293 = vrot.lane.b32.xlu1 %v1214_v43, %s7250_s17  ;;  %348 = vst.msk [vmem:[#allocation4 + $0x80] sm:$0xff] %vm27_vm0, %v316_v58  ;;  %v445_v25 = vpack.c.bf16 %v399_v21, %v398_v19  ;;  %v1941_v58 = vld [vmem:[#allocation2 + $0x1f9] sm:$0xff]  ;;  %v1173_v21 = vld [vmem:[#allocation2 + $0x211] sm:$0xff] }
 0x11b   :  { %v2305_v59 = vpop.permute.xlu0 %2304 }
 0x11c   :  { %2395 = vst.msk [vmem:[#allocation4 + $0x30] sm:$0xff] %vm2388_vm11, %v2305_v59  ;;  %v509_v62 = vpop.permute.xlu1 %508  ;;  %v1942_v59 = vld [vmem:[#allocation2 + $0x201] sm:$0xff] }
 0x11d   :  { %597 = vst.msk [vmem:[#allocation4 + $0x40] sm:$0xff] %vm588_vm4, %v509_v62  ;;  %1548 = vrot.lane.b32.xlu0 %v2241_v29, %s7251_s18  ;;  %v158_v29 = vld [vmem:[%s12228_s0 + $0x190] sm:$0xff] }
 0x11e   :  { %1550 = vrot.lane.b32.xlu1 %v1471_v57, %s7251_s18  ;;  %222 = vst.msk [vmem:[#allocation2 + $0x2a1] sm:$0xff] %vm27_vm0, %v158_v29  ;;  %v1430_v29 = vld [vmem:[#allocation2 + $0x212] sm:$0xff] }
 0x11f   :  { %v2307_v1 = vpop.permute.xlu0 %2306 }
 0x120   :  { %2396 = vst.msk [vmem:[#allocation4 + $0x38] sm:$0xff] %vm2388_vm11, %v2307_v1  ;;  %v511_v8 = vpop.permute.xlu1 %510  ;;  %v1988_v1 = vpack.c.bf16 %v1942_v59, %v1941_v58 }
 0x121   :  { %598 = vst.msk [vmem:[#allocation4 + $0x48] sm:$0xff] %vm588_vm4, %v511_v8  ;;  %1806 = vrot.lane.b32.xlu0 %v957_v38, %s7252_s29  ;;  %v1170_v38 = vld [vmem:[#allocation2 + $0x1e9] sm:$0xff] }
 0x122   :  { %1808 = vrot.lane.b32.xlu1 %v1729_v63, %s7252_s29  ;;  %v2199_v8 = vld [vmem:[#allocation2 + $0x202] sm:$0xff] }
 0x123   :  { %v766_v10 = vpop.permute.xlu0 %765  ;;  %v2427_v11 = vld [vmem:[#allocation4 + $0x30] sm:$0xff] }
 0x124   :  { %854 = vst.msk [vmem:[#allocation4 + $0x40] sm:$0xff] %vm845_vm5, %v766_v10  ;;  %v768_v13 = vpop.permute.xlu1 %767  ;;  %7093 = vmatprep.mubr.msk.bf16.mxu0 %vm2473_vm12, %v2427_v11 }
 0x125   :  { %855 = vst.msk [vmem:[#allocation4 + $0x48] sm:$0xff] %vm845_vm5, %v768_v13  ;;  %2063 = vrot.lane.b32.xlu0 %v1214_v43, %s7253_s11  ;;  %v928_v39 = vld [vmem:[#allocation2 + $0x2a0] sm:$0xff]  ;;  %v929_v40 = vld [vmem:[#allocation2 + $0x2a8] sm:$0xff]  ;;  %v1216_v43 = vpack.c.bf16 %v1170_v38, %v1169_v36  ;;  %v163_v13 = vld [vmem:[%s12228_s0 + $0x1b8] sm:$0xff] }
 0x126   :  { %2065 = vrot.lane.b32.xlu1 %v1986_v18, %s7253_s11  ;;  %v8022_v46 = vpack.c.bf16 %v929_v40, %v928_v39  ;;  %227 = vst.msk [vmem:[#allocation2 + $0x2d9] sm:$0xff] %vm27_vm0, %v163_v13  ;;  %v1945_v40 = vld [vmem:[#allocation2 + $0x229] sm:$0xff] }
 0x127   :  { %v1023_v17 = vpop.permute.xlu0 %1022  ;;  %v2428_v56 = vld [vmem:[#allocation4 + $0x38] sm:$0xff] }
 0x128   :  { %1111 = vst.msk [vmem:[#allocation4 + $0x40] sm:$0xff] %vm1102_vm6, %v1023_v17  ;;  %v1025_v22 = vpop.permute.xlu1 %1024  ;;  %7094 = vmatmul.mubr.msk.bf16.gmra.mrb[12].mxu0 %vm2473_vm12, %v2428_v56  ;;  %v917_v17 = vld [vmem:[#allocation2 + $0x218] sm:$0xff] }
 0x129   :  { %1112 = vst.msk [vmem:[#allocation4 + $0x48] sm:$0xff] %vm1102_vm6, %v1025_v22  ;;  %2320 = vrot.lane.b32.xlu0 %v1471_v57, %s7254_s12  ;;  %v961_v19 = vpack.c.bf16 %v917_v17, %v916_v16  ;;  %v1434_v17 = vld [vmem:[#allocation2 + $0x242] sm:$0xff] }
 0x12a   :  { %524 = vrot.lane.b32.xlu1 %v444_v14, %s7247_s14  ;;  %358 = vst.msk [vmem:[#allocation4 + $0xd0] sm:$0xff] %vm27_vm0, %v8022_v46 }
 0x12b   :  { %v1280_v27 = vpop.permute.xlu0 %1279 }
 0x12c   :  { %1368 = vst.msk [vmem:[#allocation4 + $0x40] sm:$0xff] %vm1359_vm7, %v1280_v27  ;;  %v1282_v32 = vpop.permute.xlu1 %1281 }
 0x12d   :  { %1369 = vst.msk [vmem:[#allocation4 + $0x48] sm:$0xff] %vm1359_vm7, %v1282_v32  ;;  %2322 = vrot.lane.b32.xlu0 %v2243_v24, %s7254_s12  ;;  %v1174_v24 = vld [vmem:[#allocation2 + $0x219] sm:$0xff] }
 0x12e   :  { %526 = vrot.lane.b32.xlu1 %v445_v25, %s7247_s14  ;;  %v933_v54 = vld [vmem:[#allocation2 + $0x2d8] sm:$0xff]  ;;  %v1218_v27 = vpack.c.bf16 %v1174_v24, %v1173_v21  ;;  %v164_v32 = vld [vmem:[%s12228_s0 + $0x1c0] sm:$0xff]  ;;  %v281_v24 = vld [vmem:[#allocation2 + $0x248] sm:$0xff] }
 0x12f   :  { %v1537_v34 = vpop.permute.xlu0 %1536  ;;  %228 = vst.msk [vmem:[#allocation2 + $0x2e9] sm:$0xff] %vm27_vm0, %v164_v32 }
 0x130   :  { %1625 = vst.msk [vmem:[#allocation4 + $0x40] sm:$0xff] %vm1616_vm8, %v1537_v34  ;;  %v1539_v35 = vpop.permute.xlu1 %1538  ;;  %v277_v34 = vld [vmem:[#allocation2 + $0x218] sm:$0xff] }
 0x131   :  { %1626 = vst.msk [vmem:[#allocation4 + $0x48] sm:$0xff] %vm1616_vm8, %v1539_v35  ;;  %781 = vrot.lane.b32.xlu0 %v701_v23, %s7248_s15  ;;  %v1475_v35 = vpack.c.bf16 %v1431_v31, %v1430_v29  ;;  %v1949_v29 = vld [vmem:[#allocation2 + $0x259] sm:$0xff]  ;;  %v1950_v31 = vld [vmem:[#allocation2 + $0x261] sm:$0xff] }
 0x132   :  { %783 = vrot.lane.b32.xlu1 %v702_v33, %s7248_s15 }
 0x133   :  { %v1795_v37 = vpop.permute.xlu0 %1794 }
 0x134   :  { %1883 = vst.msk [vmem:[#allocation4 + $0x40] sm:$0xff] %vm1874_vm9, %v1795_v37  ;;  %v1797_v45 = vpop.permute.xlu1 %1796 }
 0x135   :  { %1884 = vst.msk [vmem:[#allocation4 + $0x48] sm:$0xff] %vm1874_vm9, %v1797_v45  ;;  %1038 = vrot.lane.b32.xlu0 %v7766_v44, %s7249_s16  ;;  %v161_v44 = vld [vmem:[%s12228_s0 + $0x1a8] sm:$0xff]  ;;  %v1946_v45 = vld [vmem:[#allocation2 + $0x231] sm:$0xff] }
 0x136   :  { %1040 = vrot.lane.b32.xlu1 %v7769_v48, %s7249_s16  ;;  %225 = vst.msk [vmem:[#allocation2 + $0x2c1] sm:$0xff] %vm27_vm0, %v161_v44  ;;  %v1990_v51 = vpack.c.bf16 %v1946_v45, %v1945_v40 }
 0x137   :  { %v2052_v49 = vpop.permute.xlu0 %2051 }
 0x138   :  { %2140 = vst.msk [vmem:[#allocation4 + $0x40] sm:$0xff] %vm2131_vm10, %v2052_v49  ;;  %v2054_v53 = vpop.permute.xlu1 %2053 }
 0x139   :  { %2141 = vst.msk [vmem:[#allocation4 + $0x48] sm:$0xff] %vm2131_vm10, %v2054_v53  ;;  %1295 = vrot.lane.b32.xlu0 %v445_v25, %s7250_s17  ;;  %v932_v25 = vld [vmem:[#allocation2 + $0x2d0] sm:$0xff] }
 0x13a   :  { %1297 = vrot.lane.b32.xlu1 %v1216_v43, %s7250_s17  ;;  %v8084_v26 = vpack.c.bf16 %v933_v54, %v932_v25 }
 0x13b   :  { %v2309_v3 = vpop.permute.xlu0 %2308 }
 0x13c   :  { %2397 = vst.msk [vmem:[#allocation4 + $0x40] sm:$0xff] %vm2388_vm11, %v2309_v3  ;;  %v513_v5 = vpop.permute.xlu1 %512  ;;  %v2202_v3 = vld [vmem:[#allocation2 + $0x22a] sm:$0xff] }
 0x13d   :  { %599 = vst.msk [vmem:[#allocation4 + $0x50] sm:$0xff] %vm588_vm4, %v513_v5  ;;  %1552 = vrot.lane.b32.xlu0 %v702_v33, %s7251_s18  ;;  %v1701_v62 = vld [vmem:[#allocation2 + $0x2c0] sm:$0xff]  ;;  %v276_v33 = vld [vmem:[#allocation2 + $0x210] sm:$0xff] }
 0x13e   :  { %1554 = vrot.lane.b32.xlu1 %v1473_v55, %s7251_s18  ;;  %v8051_v63 = vpack.c.bf16 %v1701_v62, %v1700_v61  ;;  %360 = vst.msk [vmem:[#allocation4 + $0xe0] sm:$0xff] %vm27_vm0, %v8084_v26  ;;  %v320_v36 = vpack.c.bf16 %v277_v34, %v276_v33  ;;  %v2203_v5 = vld [vmem:[#allocation2 + $0x232] sm:$0xff]  ;;  %v1992_v34 = vpack.c.bf16 %v1950_v31, %v1949_v29 }
 0x13f   :  { %v2311_v57 = vpop.permute.xlu0 %2310  ;;  %v2247_v61 = vpack.c.bf16 %v2203_v5, %v2202_v3  ;;  %v166_v62 = vld [vmem:[%s12228_s0 + $0x1d0] sm:$0xff]  ;;  %v925_v5 = vld [vmem:[#allocation2 + $0x278] sm:$0xff] }
 0x140   :  { %2398 = vst.msk [vmem:[#allocation4 + $0x48] sm:$0xff] %vm2388_vm11, %v2311_v57  ;;  %v515_v47 = vpop.permute.xlu1 %514  ;;  %v924_v3 = vld [vmem:[#allocation2 + $0x270] sm:$0xff] }
 0x141   :  { %600 = vst.msk [vmem:[#allocation4 + $0x58] sm:$0xff] %vm588_vm4, %v515_v47  ;;  %1810 = vrot.lane.b32.xlu0 %v7769_v48, %s7252_s29  ;;  %v2198_v48 = vld [vmem:[#allocation2 + $0x1fa] sm:$0xff] }
 0x142   :  { %1812 = vrot.lane.b32.xlu1 %v7801_v6, %s7252_s29  ;;  %359 = vst.msk [vmem:[#allocation4 + $0xd8] sm:$0xff] %vm27_vm0, %v8051_v63  ;;  %v2245_v11 = vpack.c.bf16 %v2199_v8, %v2198_v48  ;;  %352 = vst.msk [vmem:[#allocation4 + $0xa0] sm:$0xff] %vm27_vm0, %v320_v36  ;;  %v921_v48 = vld [vmem:[#allocation2 + $0x248] sm:$0xff] }
 0x143   :  { %v770_v2 = vpop.permute.xlu0 %769  ;;  %v2429_v4 = vld [vmem:[#allocation4 + $0x40] sm:$0xff]  ;;  %230 = vst.msk [vmem:[#allocation2 + $0x301] sm:$0xff] %vm27_vm0, %v166_v62 }
 0x144   :  { %856 = vst.msk [vmem:[#allocation4 + $0x50] sm:$0xff] %vm845_vm5, %v770_v2  ;;  %v772_v7 = vpop.permute.xlu1 %771  ;;  %7097 = vmatprep.mubr.msk.bf16.mxu0 %vm2473_vm12, %v2429_v4 }
 0x145   :  { %857 = vst.msk [vmem:[#allocation4 + $0x58] sm:$0xff] %vm845_vm5, %v772_v7  ;;  %2067 = vrot.lane.b32.xlu0 %v1216_v43, %s7253_s11  ;;  %v920_v7 = vld [vmem:[#allocation2 + $0x240] sm:$0xff] }
 0x146   :  { %2069 = vrot.lane.b32.xlu1 %v1988_v1, %s7253_s11 }
 0x147   :  { %v1027_v52 = vpop.permute.xlu0 %1026  ;;  %v2430_v18 = vld [vmem:[#allocation4 + $0x48] sm:$0xff] }
 0x148   :  { %1113 = vst.msk [vmem:[#allocation4 + $0x50] sm:$0xff] %vm1102_vm6, %v1027_v52  ;;  %v1029_v10 = vpop.permute.xlu1 %1028  ;;  %7098 = vmatmul.mubr.msk.bf16.gmra.mrb[16].mxu0 %vm2473_vm12, %v2430_v18  ;;  %v963_v52 = vpack.c.bf16 %v921_v48, %v920_v7  ;;  %v1177_v18 = vld [vmem:[#allocation2 + $0x241] sm:$0xff] }
 0x149   :  { %1114 = vst.msk [vmem:[#allocation4 + $0x58] sm:$0xff] %vm1102_vm6, %v1029_v10  ;;  %2324 = vrot.lane.b32.xlu0 %v1473_v55, %s7254_s12  ;;  %v1439_v7 = vld [vmem:[#allocation2 + $0x27a] sm:$0xff] }
 0x14a   :  { %528 = vrot.lane.b32.xlu1 %v1216_v43, %s7247_s14  ;;  %v1704_v43 = vld [vmem:[#allocation2 + $0x2e8] sm:$0xff] }
 0x14b   :  { %v1284_v41 = vpop.permute.xlu0 %1283 }
 0x14c   :  { %1370 = vst.msk [vmem:[#allocation4 + $0x50] sm:$0xff] %vm1359_vm7, %v1284_v41  ;;  %v1286_v14 = vpop.permute.xlu1 %1285  ;;  %v936_v41 = vld [vmem:[#allocation2 + $0x300] sm:$0xff] }
 0x14d   :  { %1371 = vst.msk [vmem:[#allocation4 + $0x58] sm:$0xff] %vm1359_vm7, %v1286_v14  ;;  %2326 = vrot.lane.b32.xlu0 %v2245_v11, %s7254_s12 }
 0x14e   :  { %530 = vrot.lane.b32.xlu1 %v1988_v1, %s7247_s14 }
 0x14f   :  { %v1541_v15 = vpop.permute.xlu0 %1540 }
 0x150   :  { %1627 = vst.msk [vmem:[#allocation4 + $0x50] sm:$0xff] %vm1616_vm8, %v1541_v15  ;;  %v1543_v56 = vpop.permute.xlu1 %1542 }
 0x151   :  { %1628 = vst.msk [vmem:[#allocation4 + $0x58] sm:$0xff] %vm1616_vm8, %v1543_v56  ;;  %785 = vrot.lane.b32.xlu0 %v1473_v55, %s7248_s15  ;;  %v1435_v56 = vld [vmem:[#allocation2 + $0x24a] sm:$0xff] }
 0x152   :  { %787 = vrot.lane.b32.xlu1 %v2245_v11, %s7248_s15  ;;  %v1477_v25 = vpack.c.bf16 %v1435_v56, %v1434_v17 }
 0x153   :  { %v1799_v22 = vpop.permute.xlu0 %1798 }
 0x154   :  { %1885 = vst.msk [vmem:[#allocation4 + $0x50] sm:$0xff] %vm1874_vm9, %v1799_v22  ;;  %v1801_v60 = vpop.permute.xlu1 %1800  ;;  %v280_v22 = vld [vmem:[#allocation2 + $0x240] sm:$0xff] }
 0x155   :  { %1886 = vst.msk [vmem:[#allocation4 + $0x58] sm:$0xff] %vm1874_vm9, %v1801_v60  ;;  %1042 = vrot.lane.b32.xlu0 %v7801_v6, %s7249_s16  ;;  %v165_v6 = vld [vmem:[%s12228_s0 + $0x1c8] sm:$0xff]  ;;  %v322_v54 = vpack.c.bf16 %v281_v24, %v280_v22 }
 0x156   :  { %1044 = vrot.lane.b32.xlu1 %v961_v19, %s7249_s16  ;;  %229 = vst.msk [vmem:[#allocation2 + $0x2f1] sm:$0xff] %vm27_vm0, %v165_v6 }
 0x157   :  { %v2056_v28 = vpop.permute.xlu0 %2055  ;;  %354 = vst.msk [vmem:[#allocation4 + $0xb0] sm:$0xff] %vm27_vm0, %v322_v54 }
 0x158   :  { %2142 = vst.msk [vmem:[#allocation4 + $0x50] sm:$0xff] %vm2131_vm10, %v2056_v28  ;;  %v2058_v23 = vpop.permute.xlu1 %2057 }
 0x159   :  { %2143 = vst.msk [vmem:[#allocation4 + $0x58] sm:$0xff] %vm2131_vm10, %v2058_v23  ;;  %1299 = vrot.lane.b32.xlu0 %v1988_v1, %s7250_s17  ;;  %v167_v1 = vld [vmem:[%s12228_s0 + $0x1d8] sm:$0xff] }
 0x15a   :  { %1301 = vrot.lane.b32.xlu1 %v1218_v27, %s7250_s17  ;;  %231 = vst.msk [vmem:[#allocation2 + $0x309] sm:$0xff] %vm27_vm0, %v167_v1 }
 0x15b   :  { %v2313_v37 = vpop.permute.xlu0 %2312 }
 0x15c   :  { %2399 = vst.msk [vmem:[#allocation4 + $0x50] sm:$0xff] %vm2388_vm11, %v2313_v37  ;;  %v517_v38 = vpop.permute.xlu1 %516 }
 0x15d   :  { %601 = vst.msk [vmem:[#allocation4 + $0x60] sm:$0xff] %vm588_vm4, %v517_v38  ;;  %1556 = vrot.lane.b32.xlu0 %v2245_v11, %s7251_s18  ;;  %v1705_v30 = vld [vmem:[#allocation2 + $0x2f0] sm:$0xff]  ;;  %v2206_v38 = vld [vmem:[#allocation2 + $0x25a] sm:$0xff] }
 0x15e   :  { %1558 = vrot.lane.b32.xlu1 %v1475_v35, %s7251_s18  ;;  %v8112_v50 = vpack.c.bf16 %v1705_v30, %v1704_v43  ;;  %v1178_v11 = vld [vmem:[#allocation2 + $0x249] sm:$0xff] }
 0x15f   :  { %v2315_v39 = vpop.permute.xlu0 %2314  ;;  %v1220_v15 = vpack.c.bf16 %v1178_v11, %v1177_v18 }
 0x160   :  { %2400 = vst.msk [vmem:[#allocation4 + $0x58] sm:$0xff] %vm2388_vm11, %v2315_v39  ;;  %v519_v49 = vpop.permute.xlu1 %518  ;;  %v2207_v39 = vld [vmem:[#allocation2 + $0x262] sm:$0xff] }
 0x161   :  { %602 = vst.msk [vmem:[#allocation4 + $0x68] sm:$0xff] %vm588_vm4, %v519_v49  ;;  %1814 = vrot.lane.b32.xlu0 %v961_v19, %s7252_s29  ;;  %v937_v12 = vld [vmem:[#allocation2 + $0x308] sm:$0xff]  ;;  %v168_v19 = vld [vmem:[%s12228_s0 + $0x1e0] sm:$0xff]  ;;  %v2249_v49 = vpack.c.bf16 %v2207_v39, %v2206_v38 }
 0x162   :  { %1816 = vrot.lane.b32.xlu1 %v7859_v42, %s7252_s29  ;;  %361 = vst.msk [vmem:[#allocation4 + $0xe8] sm:$0xff] %vm27_vm0, %v8112_v50  ;;  %v8145_v14 = vpack.c.bf16 %v937_v12, %v936_v41  ;;  %232 = vst.msk [vmem:[#allocation2 + $0x319] sm:$0xff] %vm27_vm0, %v168_v19  ;;  %v1953_v19 = vld [vmem:[#allocation2 + $0x289] sm:$0xff] }
 0x163   :  { %v774_v53 = vpop.permute.xlu0 %773  ;;  %v2431_v44 = vld [vmem:[#allocation4 + $0x50] sm:$0xff] }
 0x164   :  { %858 = vst.msk [vmem:[#allocation4 + $0x60] sm:$0xff] %vm845_vm5, %v774_v53  ;;  %v776_v55 = vpop.permute.xlu1 %775  ;;  %7101 = vmatprep.mubr.msk.bf16.mxu0 %vm2473_vm12, %v2431_v44  ;;  %v171_v53 = vld [vmem:[%s12228_s0 + $0x1f8] sm:$0xff] }
 0x165   :  { %859 = vst.msk [vmem:[#allocation4 + $0x68] sm:$0xff] %vm845_vm5, %v776_v55  ;;  %2071 = vrot.lane.b32.xlu0 %v1218_v27, %s7253_s11 }
 0x166   :  { %2073 = vrot.lane.b32.xlu1 %v1990_v51, %s7253_s11  ;;  %362 = vst.msk [vmem:[#allocation4 + $0xf0] sm:$0xff] %vm27_vm0, %v8145_v14  ;;  %235 = vst.msk [vmem:[#allocation2 + $0x339] sm:$0xff] %vm27_vm0, %v171_v53 }
 0x167   :  { %v1031_v57 = vpop.permute.xlu0 %1030  ;;  %v2432_v58 = vld [vmem:[#allocation4 + $0x58] sm:$0xff] }
 0x168   :  { %1115 = vst.msk [vmem:[#allocation4 + $0x60] sm:$0xff] %vm1102_vm6, %v1031_v57  ;;  %v1033_v59 = vpop.permute.xlu1 %1032  ;;  %7102 = vmatmul.mubr.msk.bf16.gmra.mrb[20].mxu0 %vm2473_vm12, %v2432_v58  ;;  %v965_v58 = vpack.c.bf16 %v925_v5, %v924_v3 }
 0x169   :  { %1116 = vst.msk [vmem:[#allocation4 + $0x68] sm:$0xff] %vm1102_vm6, %v1033_v59  ;;  %2328 = vrot.lane.b32.xlu0 %v1475_v35, %s7254_s12  ;;  %v1708_v32 = vld [vmem:[#allocation2 + $0x318] sm:$0xff] }
 0x16a   :  { %532 = vrot.lane.b32.xlu1 %v1218_v27, %s7247_s14 }
 0x16b   :  { %v1288_v47 = vpop.permute.xlu0 %1287 }
 0x16c   :  { %1372 = vst.msk [vmem:[#allocation4 + $0x60] sm:$0xff] %vm1359_vm7, %v1288_v47  ;;  %v1290_v2 = vpop.permute.xlu1 %1289  ;;  %v1182_v47 = vld [vmem:[#allocation2 + $0x279] sm:$0xff] }
 0x16d   :  { %1373 = vst.msk [vmem:[#allocation4 + $0x68] sm:$0xff] %vm1359_vm7, %v1290_v2  ;;  %2330 = vrot.lane.b32.xlu0 %v2247_v61, %s7254_s12 }
 0x16e   :  { %534 = vrot.lane.b32.xlu1 %v1990_v51, %s7247_s14 }
 0x16f   :  { %v1545_v4 = vpop.permute.xlu0 %1544 }
 0x170   :  { %1629 = vst.msk [vmem:[#allocation4 + $0x60] sm:$0xff] %vm1616_vm8, %v1545_v4  ;;  %v1547_v8 = vpop.permute.xlu1 %1546  ;;  %v1438_v4 = vld [vmem:[#allocation2 + $0x272] sm:$0xff] }
 0x171   :  { %1630 = vst.msk [vmem:[#allocation4 + $0x68] sm:$0xff] %vm1616_vm8, %v1547_v8  ;;  %789 = vrot.lane.b32.xlu0 %v1475_v35, %s7248_s15  ;;  %v284_v8 = vld [vmem:[#allocation2 + $0x270] sm:$0xff]  ;;  %v1479_v18 = vpack.c.bf16 %v1439_v7, %v1438_v4  ;;  %v1957_v7 = vld [vmem:[#allocation2 + $0x2b9] sm:$0xff] }
 0x172   :  { %791 = vrot.lane.b32.xlu1 %v2247_v61, %s7248_s15 }
 0x173   :  { %v1803_v10 = vpop.permute.xlu0 %1802 }
 0x174   :  { %1887 = vst.msk [vmem:[#allocation4 + $0x60] sm:$0xff] %vm1874_vm9, %v1803_v10  ;;  %v1805_v13 = vpop.permute.xlu1 %1804 }
 0x175   :  { %1888 = vst.msk [vmem:[#allocation4 + $0x68] sm:$0xff] %vm1874_vm9, %v1805_v13  ;;  %1046 = vrot.lane.b32.xlu0 %v7859_v42, %s7249_s16  ;;  %v169_v42 = vld [vmem:[%s12228_s0 + $0x1e8] sm:$0xff] }
 0x176   :  { %1048 = vrot.lane.b32.xlu1 %v963_v52, %s7249_s16  ;;  %233 = vst.msk [vmem:[#allocation2 + $0x321] sm:$0xff] %vm27_vm0, %v169_v42 }
 0x177   :  { %v2060_v16 = vpop.permute.xlu0 %2059 }
 0x178   :  { %2144 = vst.msk [vmem:[#allocation4 + $0x60] sm:$0xff] %vm2131_vm10, %v2060_v16  ;;  %v2062_v21 = vpop.permute.xlu1 %2061 }
 0x179   :  { %2145 = vst.msk [vmem:[#allocation4 + $0x68] sm:$0xff] %vm2131_vm10, %v2062_v21  ;;  %1303 = vrot.lane.b32.xlu0 %v1990_v51, %s7250_s17  ;;  %v170_v51 = vld [vmem:[%s12228_s0 + $0x1f0] sm:$0xff] }
 0x17a   :  { %1305 = vrot.lane.b32.xlu1 %v1220_v15, %s7250_s17  ;;  %234 = vst.msk [vmem:[#allocation2 + $0x331] sm:$0xff] %vm27_vm0, %v170_v51  ;;  %v1954_v21 = vld [vmem:[#allocation2 + $0x291] sm:$0xff] }
 0x17b   :  { %v2317_v60 = vpop.permute.xlu0 %2316  ;;  %v1994_v54 = vpack.c.bf16 %v1954_v21, %v1953_v19  ;;  %v2215_v21 = vld [vmem:[#allocation2 + $0x2c2] sm:$0xff] }
 0x17c   :  { %2401 = vst.msk [vmem:[#allocation4 + $0x60] sm:$0xff] %vm2388_vm11, %v2317_v60  ;;  %v521_v27 = vpop.permute.xlu1 %520 }
 0x17d   :  { %603 = vst.msk [vmem:[#allocation4 + $0x70] sm:$0xff] %vm588_vm4, %v521_v27  ;;  %1560 = vrot.lane.b32.xlu0 %v2247_v61, %s7251_s18  ;;  %v1709_v6 = vld [vmem:[#allocation2 + $0x320] sm:$0xff]  ;;  %v1181_v61 = vld [vmem:[#allocation2 + $0x271] sm:$0xff] }
 0x17e   :  { %1562 = vrot.lane.b32.xlu1 %v1477_v25, %s7251_s18  ;;  %v8173_v33 = vpack.c.bf16 %v1709_v6, %v1708_v32  ;;  %v1222_v1 = vpack.c.bf16 %v1182_v47, %v1181_v61  ;;  %v2210_v32 = vld [vmem:[#allocation2 + $0x28a] sm:$0xff] }
 0x17f   :  { %v2319_v28 = vpop.permute.xlu0 %2318 }
 0x180   :  { %2402 = vst.msk [vmem:[#allocation4 + $0x68] sm:$0xff] %vm2388_vm11, %v2319_v28  ;;  %v523_v23 = vpop.permute.xlu1 %522 }
 0x181   :  { %604 = vst.msk [vmem:[#allocation4 + $0x78] sm:$0xff] %vm588_vm4, %v523_v23  ;;  %1818 = vrot.lane.b32.xlu0 %v963_v52, %s7252_s29  ;;  %v285_v52 = vld [vmem:[#allocation2 + $0x278] sm:$0xff] }
 0x182   :  { %1820 = vrot.lane.b32.xlu1 %v7917_v20, %s7252_s29  ;;  %363 = vst.msk [vmem:[#allocation4 + $0xf8] sm:$0xff] %vm27_vm0, %v8173_v33  ;;  %v324_v10 = vpack.c.bf16 %v285_v52, %v284_v8  ;;  %v2211_v23 = vld [vmem:[#allocation2 + $0x292] sm:$0xff] }
 0x183   :  { %v778_v35 = vpop.permute.xlu0 %777  ;;  %v2433_v36 = vld [vmem:[#allocation4 + $0x60] sm:$0xff] }
 0x184   :  { %860 = vst.msk [vmem:[#allocation4 + $0x70] sm:$0xff] %vm845_vm5, %v778_v35  ;;  %v780_v37 = vpop.permute.xlu1 %779  ;;  %7105 = vmatprep.mubr.msk.bf16.mxu0 %vm2473_vm12, %v2433_v36  ;;  %v2251_v36 = vpack.c.bf16 %v2211_v23, %v2210_v32  ;;  %v1190_v32 = vld [vmem:[#allocation2 + $0x2d9] sm:$0xff] }
 0x185   :  { %861 = vst.msk [vmem:[#allocation4 + $0x78] sm:$0xff] %vm845_vm5, %v780_v37  ;;  %2075 = vrot.lane.b32.xlu0 %v1220_v15, %s7253_s11 }
 0x186   :  { %2077 = vrot.lane.b32.xlu1 %v1992_v34, %s7253_s11  ;;  %356 = vst.msk [vmem:[#allocation4 + $0xc0] sm:$0xff] %vm27_vm0, %v324_v10  ;;  %vm3965_vm0 = vcmask 130112  }
 0x187   :  { %v1035_v40 = vpop.permute.xlu0 %1034  ;;  %v2434_v45 = vld [vmem:[#allocation4 + $0x68] sm:$0xff] }
 0x188   :  { %1117 = vst.msk [vmem:[#allocation4 + $0x70] sm:$0xff] %vm1102_vm6, %v1035_v40  ;;  %v1037_v43 = vpop.permute.xlu1 %1036  ;;  %7106 = vmatmul.mubr.msk.bf16.gmra.mrb[24].mxu0 %vm2473_vm12, %v2434_v45 }
 0x189   :  { %1118 = vst.msk [vmem:[#allocation4 + $0x78] sm:$0xff] %vm1102_vm6, %v1037_v43  ;;  %2332 = vrot.lane.b32.xlu0 %v1477_v25, %s7254_s12  ;;  %v1185_v43 = vld [vmem:[#allocation2 + $0x2a1] sm:$0xff] }
 0x18a   :  { %536 = vrot.lane.b32.xlu1 %v1220_v15, %s7247_s14 }
 0x18b   :  { %v1292_v30 = vpop.permute.xlu0 %1291 }
 0x18c   :  { %1374 = vst.msk [vmem:[#allocation4 + $0x70] sm:$0xff] %vm1359_vm7, %v1292_v30  ;;  %v1294_v44 = vpop.permute.xlu1 %1293 }
 0x18d   :  { %1375 = vst.msk [vmem:[#allocation4 + $0x78] sm:$0xff] %vm1359_vm7, %v1294_v44  ;;  %2334 = vrot.lane.b32.xlu0 %v2249_v49, %s7254_s12  ;;  %v1442_v44 = vld [vmem:[#allocation2 + $0x2a2] sm:$0xff] }
 0x18e   :  { %538 = vrot.lane.b32.xlu1 %v1992_v34, %s7247_s14 }
 0x18f   :  { %v1549_v55 = vpop.permute.xlu0 %1548 }
 0x190   :  { %1631 = vst.msk [vmem:[#allocation4 + $0x70] sm:$0xff] %vm1616_vm8, %v1549_v55  ;;  %v1551_v57 = vpop.permute.xlu1 %1550  ;;  %v1443_v55 = vld [vmem:[#allocation2 + $0x2aa] sm:$0xff] }
 0x191   :  { %1632 = vst.msk [vmem:[#allocation4 + $0x78] sm:$0xff] %vm1616_vm8, %v1551_v57  ;;  %793 = vrot.lane.b32.xlu0 %v1477_v25, %s7248_s15  ;;  %v1481_v5 = vpack.c.bf16 %v1443_v55, %v1442_v44  ;;  %v1961_v55 = vld [vmem:[#allocation2 + $0x2e9] sm:$0xff] }
 0x192   :  { %795 = vrot.lane.b32.xlu1 %v2249_v49, %s7248_s15 }
 0x193   :  { %v1807_v59 = vpop.permute.xlu0 %1806 }
 0x194   :  { %1889 = vst.msk [vmem:[#allocation4 + $0x70] sm:$0xff] %vm1874_vm9, %v1807_v59  ;;  %v1809_v62 = vpop.permute.xlu1 %1808 }
 0x195   :  { %1890 = vst.msk [vmem:[#allocation4 + $0x78] sm:$0xff] %vm1874_vm9, %v1809_v62  ;;  %1050 = vrot.lane.b32.xlu0 %v7917_v20, %s7249_s16 }
 0x196   :  { %1052 = vrot.lane.b32.xlu1 %v965_v58, %s7249_s16 }
 0x197   :  { %v2064_v2 = vpop.permute.xlu0 %2063 }
 0x198   :  { %2146 = vst.msk [vmem:[#allocation4 + $0x70] sm:$0xff] %vm2131_vm10, %v2064_v2  ;;  %v2066_v48 = vpop.permute.xlu1 %2065 }
 0x199   :  { %2147 = vst.msk [vmem:[#allocation4 + $0x78] sm:$0xff] %vm2131_vm10, %v2066_v48  ;;  %1307 = vrot.lane.b32.xlu0 %v1992_v34, %s7250_s17  ;;  %v1958_v48 = vld [vmem:[#allocation2 + $0x2c1] sm:$0xff] }
 0x19a   :  { %1309 = vrot.lane.b32.xlu1 %v1222_v1, %s7250_s17 }
 0x19b   :  { %v2321_v20 = vpop.permute.xlu0 %2320  ;;  %v8214_v11 = vpop.f32.mrb[0].mxu0 }
 0x19c   :  { %2403 = vst.msk [vmem:[#allocation4 + $0x70] sm:$0xff] %vm2388_vm11, %v2321_v20  ;;  %v525_v41 = vpop.permute.xlu1 %524  ;;  %v8217_v12 = vpop.f32.mrb[1].mxu0  ;;  %v2867_v24 = vsel %vm2863_vm13, %v8214_v11, 0.0  ;;  %v1996_v20 = vpack.c.bf16 %v1958_v48, %v1957_v7 }
 0x19d   :  { %605 = vst.msk [vmem:[#allocation4 + $0x80] sm:$0xff] %vm588_vm4, %v525_v41  ;;  %1564 = vrot.lane.b32.xlu0 %v2249_v49, %s7251_s18  ;;  %v8222_v13 = vpop.f32.mrb[2].mxu0  ;;  %v2864_v16 = vsel %vm2863_vm13, %v8217_v12, 0.0  ;;  %v1186_v49 = vld [vmem:[#allocation2 + $0x2a9] sm:$0xff] }
 0x19e   :  { %1566 = vrot.lane.b32.xlu1 %v1479_v18, %s7251_s18  ;;  %v8225_v15 = vpop.f32.mrb[3].mxu0  ;;  %v2869_v60 = vsel %vm2863_vm13, %v8222_v13, 0.0  ;;  %v1224_v51 = vpack.c.bf16 %v1186_v49, %v1185_v43 }
 0x19f   :  { %v2865_v17 = vsel %vm2863_vm13, %v8225_v15, 0.0  ;;  %v2323_v56 = vpop.permute.xlu0 %2322 }
 0x1a0   :  { %v2866_v42 = vadd.f32 %v2865_v17, %v2864_v16  ;;  %2404 = vst.msk [vmem:[#allocation4 + $0x78] sm:$0xff] %vm2388_vm11, %v2323_v56  ;;  %v527_v22 = vpop.permute.xlu1 %526 }
 0x1a1   :  { %606 = vst.msk [vmem:[#allocation4 + $0x88] sm:$0xff] %vm588_vm4, %v527_v22  ;;  %1822 = vrot.lane.b32.xlu0 %v965_v58, %s7252_s29 }
 0x1a2   :  { %v2868_v25 = vadd.f32 %v2867_v24, %v2866_v42  ;;  %1824 = vrot.lane.b32.xlu1 %v7990_v9, %s7252_s29 }
 0x1a3   :  { %v782_v27 = vpop.permute.xlu0 %781  ;;  %v2435_v28 = vld [vmem:[#allocation4 + $0x70] sm:$0xff] }
 0x1a4   :  { %862 = vst.msk [vmem:[#allocation4 + $0x80] sm:$0xff] %vm845_vm5, %v782_v27  ;;  %v784_v29 = vpop.permute.xlu1 %783  ;;  %7109 = vmatprep.mubr.msk.bf16.mxu0 %vm2473_vm12, %v2435_v28  ;;  %v2870_v31 = vadd.f32 %v2869_v60, %v2868_v25 }
 0x1a5   :  { %863 = vst.msk [vmem:[#allocation4 + $0x88] sm:$0xff] %vm845_vm5, %v784_v29  ;;  %2079 = vrot.lane.b32.xlu0 %v1222_v1, %s7253_s11 }
 0x1a6   :  { %2081 = vrot.lane.b32.xlu1 %v1994_v54, %s7253_s11 }
 0x1a7   :  { %v1039_v6 = vpop.permute.xlu0 %1038  ;;  %v2436_v34 = vld [vmem:[#allocation4 + $0x78] sm:$0xff] }
 0x1a8   :  { %1119 = vst.msk [vmem:[#allocation4 + $0x80] sm:$0xff] %vm1102_vm6, %v1039_v6  ;;  %v1041_v35 = vpop.permute.xlu1 %1040  ;;  %7110 = vmatmul.mubr.msk.bf16.gmra.mrb[28].mxu0 %vm2473_vm12, %v2436_v34 }
 0x1a9   :  { %1120 = vst.msk [vmem:[#allocation4 + $0x88] sm:$0xff] %vm1102_vm6, %v1041_v35  ;;  %2336 = vrot.lane.b32.xlu0 %v1479_v18, %s7254_s12  ;;  %v1446_v35 = vld [vmem:[#allocation2 + $0x2d2] sm:$0xff] }
 0x1aa   :  { %540 = vrot.lane.b32.xlu1 %v1222_v1, %s7247_s14 }
 0x1ab   :  { %v1296_v37 = vpop.permute.xlu0 %1295 }
 0x1ac   :  { %1376 = vst.msk [vmem:[#allocation4 + $0x80] sm:$0xff] %vm1359_vm7, %v1296_v37  ;;  %v1298_v38 = vpop.permute.xlu1 %1297 }
 0x1ad   :  { %1377 = vst.msk [vmem:[#allocation4 + $0x88] sm:$0xff] %vm1359_vm7, %v1298_v38  ;;  %2338 = vrot.lane.b32.xlu0 %v2251_v36, %s7254_s12 }
 0x1ae   :  { %542 = vrot.lane.b32.xlu1 %v1994_v54, %s7247_s14 }
 0x1af   :  { %v1553_v39 = vpop.permute.xlu0 %1552 }
 0x1b0   :  { %1633 = vst.msk [vmem:[#allocation4 + $0x80] sm:$0xff] %vm1616_vm8, %v1553_v39  ;;  %v1555_v40 = vpop.permute.xlu1 %1554 }
 0x1b1   :  { %1634 = vst.msk [vmem:[#allocation4 + $0x88] sm:$0xff] %vm1616_vm8, %v1555_v40  ;;  %797 = vrot.lane.b32.xlu0 %v1479_v18, %s7248_s15 }
 0x1b2   :  { %799 = vrot.lane.b32.xlu1 %v2251_v36, %s7248_s15 }
 0x1b3   :  { %v1811_v45 = vpop.permute.xlu0 %1810 }
 0x1b4   :  { %1891 = vst.msk [vmem:[#allocation4 + $0x80] sm:$0xff] %vm1874_vm9, %v1811_v45  ;;  %v1813_v30 = vpop.permute.xlu1 %1812 }
 0x1b5   :  { %1892 = vst.msk [vmem:[#allocation4 + $0x88] sm:$0xff] %vm1874_vm9, %v1813_v30  ;;  %1054 = vrot.lane.b32.xlu0 %v7990_v9, %s7249_s16 }
 0x1b6   :  { %1056 = vrot.lane.b32.xlu1 %v8022_v46, %s7249_s16 }
 0x1b7   :  { %v2068_v53 = vpop.permute.xlu0 %2067 }
 0x1b8   :  { %2148 = vst.msk [vmem:[#allocation4 + $0x80] sm:$0xff] %vm2131_vm10, %v2068_v53  ;;  %v2070_v3 = vpop.permute.xlu1 %2069 }
 0x1b9   :  { %2149 = vst.msk [vmem:[#allocation4 + $0x88] sm:$0xff] %vm2131_vm10, %v2070_v3  ;;  %1311 = vrot.lane.b32.xlu0 %v1994_v54, %s7250_s17  ;;  %v1962_v3 = vld [vmem:[#allocation2 + $0x2f1] sm:$0xff] }
 0x1ba   :  { %1313 = vrot.lane.b32.xlu1 %v1224_v51, %s7250_s17 }
 0x1bb   :  { %v2325_v57 = vpop.permute.xlu0 %2324  ;;  %v8268_v58 = vpop.f32.mrb[4].mxu0 }
 0x1bc   :  { %2405 = vst.msk [vmem:[#allocation4 + $0x80] sm:$0xff] %vm2388_vm11, %v2325_v57  ;;  %v529_v9 = vpop.permute.xlu1 %528  ;;  %v8271_v59 = vpop.f32.mrb[5].mxu0  ;;  %v2875_v18 = vsel %vm2863_vm13, %v8268_v58, 0.0 }
 0x1bd   :  { %607 = vst.msk [vmem:[#allocation4 + $0x90] sm:$0xff] %vm588_vm4, %v529_v9  ;;  %v2871_v61 = vsel %vm2863_vm13, %v8271_v59, 0.0  ;;  %1568 = vrot.lane.b32.xlu0 %v2251_v36, %s7251_s18  ;;  %v8277_v47 = vpop.f32.mrb[6].mxu0  ;;  %v1447_v36 = vld [vmem:[#allocation2 + $0x2da] sm:$0xff] }
 0x1be   :  { %v2872_v62 = vadd.f32 %v2871_v61, %v2870_v31  ;;  %1570 = vrot.lane.b32.xlu1 %v1481_v5, %s7251_s18  ;;  %v8280_v1 = vpop.f32.mrb[7].mxu0  ;;  %v2877_v41 = vsel %vm2863_vm13, %v8277_v47, 0.0  ;;  %v1189_v31 = vld [vmem:[#allocation2 + $0x2d1] sm:$0xff]  ;;  %v1483_v38 = vpack.c.bf16 %v1447_v36, %v1446_v35 }
 0x1bf   :  { %v2873_v2 = vsel %vm2863_vm13, %v8280_v1, 0.0  ;;  %v2327_v4 = vpop.permute.xlu0 %2326  ;;  %v1226_v6 = vpack.c.bf16 %v1190_v32, %v1189_v31 }
 0x1c0   :  { %v2874_v8 = vadd.f32 %v2873_v2, %v2872_v62  ;;  %2406 = vst.msk [vmem:[#allocation4 + $0x88] sm:$0xff] %vm2388_vm11, %v2327_v4  ;;  %v531_v52 = vpop.permute.xlu1 %530  ;;  %v1998_v62 = vpack.c.bf16 %v1962_v3, %v1961_v55 }
 0x1c1   :  { %608 = vst.msk [vmem:[#allocation4 + $0x98] sm:$0xff] %vm588_vm4, %v531_v52  ;;  %1826 = vrot.lane.b32.xlu0 %v8022_v46, %s7252_s29  ;;  %v2214_v46 = vld [vmem:[#allocation2 + $0x2ba] sm:$0xff]  ;;  %v2219_v52 = vld [vmem:[#allocation2 + $0x2f2] sm:$0xff] }
 0x1c2   :  { %v2876_v10 = vadd.f32 %v2875_v18, %v2874_v8  ;;  %1828 = vrot.lane.b32.xlu1 %v8051_v63, %s7252_s29  ;;  %v2253_v25 = vpack.c.bf16 %v2215_v21, %v2214_v46  ;;  %v1193_v21 = vld [vmem:[#allocation2 + $0x301] sm:$0xff] }
 0x1c3   :  { %v786_v16 = vpop.permute.xlu0 %785  ;;  %v2437_v17 = vld [vmem:[#allocation4 + $0x80] sm:$0xff] }
 0x1c4   :  { %864 = vst.msk [vmem:[#allocation4 + $0x90] sm:$0xff] %vm845_vm5, %v786_v16  ;;  %v788_v56 = vpop.permute.xlu1 %787  ;;  %7113 = vmatprep.mubr.msk.bf16.mxu0 %vm2473_vm12, %v2437_v17  ;;  %v2878_v19 = vadd.f32 %v2877_v41, %v2876_v10 }
 0x1c5   :  { %865 = vst.msk [vmem:[#allocation4 + $0x98] sm:$0xff] %vm845_vm5, %v788_v56  ;;  %2083 = vrot.lane.b32.xlu0 %v1224_v51, %s7253_s11 }
 0x1c6   :  { %2085 = vrot.lane.b32.xlu1 %v1996_v20, %s7253_s11 }
 0x1c7   :  { %v1043_v42 = vpop.permute.xlu0 %1042  ;;  %v2438_v22 = vld [vmem:[#allocation4 + $0x88] sm:$0xff] }
 0x1c8   :  { %1121 = vst.msk [vmem:[#allocation4 + $0x90] sm:$0xff] %vm1102_vm6, %v1043_v42  ;;  %v1045_v24 = vpop.permute.xlu1 %1044  ;;  %7114 = vmatmul.mubr.msk.bf16.gmra.mrb[32].mxu0 %vm2473_vm12, %v2438_v22  ;;  %v1194_v42 = vld [vmem:[#allocation2 + $0x309] sm:$0xff] }
 0x1c9   :  { %1122 = vst.msk [vmem:[#allocation4 + $0x98] sm:$0xff] %vm1102_vm6, %v1045_v24  ;;  %2340 = vrot.lane.b32.xlu0 %v1481_v5, %s7254_s12  ;;  %v1228_v24 = vpack.c.bf16 %v1194_v42, %v1193_v21  ;;  %v1454_v21 = vld [vmem:[#allocation2 + $0x332] sm:$0xff]  ;;  %v1455_v42 = vld [vmem:[#allocation2 + $0x33a] sm:$0xff] }
 0x1ca   :  { %544 = vrot.lane.b32.xlu1 %v1224_v51, %s7247_s14 }
 0x1cb   :  { %v1300_v54 = vpop.permute.xlu0 %1299 }
 0x1cc   :  { %1378 = vst.msk [vmem:[#allocation4 + $0x90] sm:$0xff] %vm1359_vm7, %v1300_v54  ;;  %v1302_v60 = vpop.permute.xlu1 %1301  ;;  %v1450_v54 = vld [vmem:[#allocation2 + $0x302] sm:$0xff] }
 0x1cd   :  { %1379 = vst.msk [vmem:[#allocation4 + $0x98] sm:$0xff] %vm1359_vm7, %v1302_v60  ;;  %2342 = vrot.lane.b32.xlu0 %v2253_v25, %s7254_s12  ;;  %v1451_v60 = vld [vmem:[#allocation2 + $0x30a] sm:$0xff] }
 0x1ce   :  { %546 = vrot.lane.b32.xlu1 %v1996_v20, %s7247_s14 }
 0x1cf   :  { %v1557_v27 = vpop.permute.xlu0 %1556 }
 0x1d0   :  { %1635 = vst.msk [vmem:[#allocation4 + $0x90] sm:$0xff] %vm1616_vm8, %v1557_v27  ;;  %v1559_v28 = vpop.permute.xlu1 %1558 }
 0x1d1   :  { %1636 = vst.msk [vmem:[#allocation4 + $0x98] sm:$0xff] %vm1616_vm8, %v1559_v28  ;;  %801 = vrot.lane.b32.xlu0 %v1481_v5, %s7248_s15  ;;  %v1485_v28 = vpack.c.bf16 %v1451_v60, %v1450_v54  ;;  %v1713_v60 = vld [vmem:[#allocation2 + $0x350] sm:$0xff] }
 0x1d2   :  { %803 = vrot.lane.b32.xlu1 %v2253_v25, %s7248_s15 }
 0x1d3   :  { %v1815_v29 = vpop.permute.xlu0 %1814 }
 0x1d4   :  { %1893 = vst.msk [vmem:[#allocation4 + $0x90] sm:$0xff] %vm1874_vm9, %v1815_v29  ;;  %v1817_v23 = vpop.permute.xlu1 %1816 }
 0x1d5   :  { %1894 = vst.msk [vmem:[#allocation4 + $0x98] sm:$0xff] %vm1874_vm9, %v1817_v23  ;;  %1058 = vrot.lane.b32.xlu0 %v8051_v63, %s7249_s16 }
 0x1d6   :  { %1060 = vrot.lane.b32.xlu1 %v8084_v26, %s7249_s16 }
 0x1d7   :  { %v2072_v34 = vpop.permute.xlu0 %2071 }
 0x1d8   :  { %2150 = vst.msk [vmem:[#allocation4 + $0x90] sm:$0xff] %vm2131_vm10, %v2072_v34  ;;  %v2074_v37 = vpop.permute.xlu1 %2073 }
 0x1d9   :  { %2151 = vst.msk [vmem:[#allocation4 + $0x98] sm:$0xff] %vm2131_vm10, %v2074_v37  ;;  %1315 = vrot.lane.b32.xlu0 %v1996_v20, %s7250_s17 }
 0x1da   :  { %1317 = vrot.lane.b32.xlu1 %v1226_v6, %s7250_s17 }
 0x1db   :  { %v2329_v39 = vpop.permute.xlu0 %2328  ;;  %v8322_v40 = vpop.f32.mrb[8].mxu0 }
 0x1dc   :  { %2407 = vst.msk [vmem:[#allocation4 + $0x90] sm:$0xff] %vm2388_vm11, %v2329_v39  ;;  %v533_v63 = vpop.permute.xlu1 %532  ;;  %v8325_v45 = vpop.f32.mrb[9].mxu0  ;;  %v2883_v9 = vsel %vm2863_vm13, %v8322_v40, 0.0  ;;  %v1966_v39 = vld [vmem:[#allocation2 + $0x321] sm:$0xff] }
 0x1dd   :  { %609 = vst.msk [vmem:[#allocation4 + $0xa0] sm:$0xff] %vm588_vm4, %v533_v63  ;;  %v2879_v43 = vsel %vm2863_vm13, %v8325_v45, 0.0  ;;  %1572 = vrot.lane.b32.xlu0 %v2253_v25, %s7251_s18  ;;  %v8331_v49 = vpop.f32.mrb[10].mxu0 }
 0x1de   :  { %v2880_v30 = vadd.f32 %v2879_v43, %v2878_v19  ;;  %1574 = vrot.lane.b32.xlu1 %v1483_v38, %s7251_s18  ;;  %v8334_v51 = vpop.f32.mrb[11].mxu0  ;;  %v2885_v2 = vsel %vm2863_vm13, %v8331_v49, 0.0 }
 0x1df   :  { %v2881_v53 = vsel %vm2863_vm13, %v8334_v51, 0.0  ;;  %v2331_v44 = vpop.permute.xlu0 %2330 }
 0x1e0   :  { %v2882_v5 = vadd.f32 %v2881_v53, %v2880_v30  ;;  %2408 = vst.msk [vmem:[#allocation4 + $0x98] sm:$0xff] %vm2388_vm11, %v2331_v44  ;;  %v535_v57 = vpop.permute.xlu1 %534 }
 0x1e1   :  { %610 = vst.msk [vmem:[#allocation4 + $0xa8] sm:$0xff] %vm588_vm4, %v535_v57  ;;  %1830 = vrot.lane.b32.xlu0 %v8084_v26, %s7252_s29  ;;  %v2218_v26 = vld [vmem:[#allocation2 + $0x2ea] sm:$0xff] }
 0x1e2   :  { %v2884_v61 = vadd.f32 %v2883_v9, %v2882_v5  ;;  %1832 = vrot.lane.b32.xlu1 %v8112_v50, %s7252_s29  ;;  %v2255_v41 = vpack.c.bf16 %v2219_v52, %v2218_v26  ;;  %v940_v52 = vld [vmem:[#allocation2 + $0x330] sm:$0xff] }
 0x1e3   :  { %v790_v4 = vpop.permute.xlu0 %789  ;;  %v2439_v7 = vld [vmem:[#allocation4 + $0x90] sm:$0xff] }
 0x1e4   :  { %866 = vst.msk [vmem:[#allocation4 + $0xa0] sm:$0xff] %vm845_vm5, %v790_v4  ;;  %v792_v48 = vpop.permute.xlu1 %791  ;;  %7117 = vmatprep.mubr.msk.bf16.mxu0 %vm2473_vm12, %v2439_v7  ;;  %v2886_v8 = vadd.f32 %v2885_v2, %v2884_v61  ;;  %v2223_v61 = vld [vmem:[#allocation2 + $0x322] sm:$0xff] }
 0x1e5   :  { %867 = vst.msk [vmem:[#allocation4 + $0xa8] sm:$0xff] %vm845_vm5, %v792_v48  ;;  %2087 = vrot.lane.b32.xlu0 %v1226_v6, %s7253_s11 }
 0x1e6   :  { %2089 = vrot.lane.b32.xlu1 %v1998_v62, %s7253_s11 }
 0x1e7   :  { %v1047_v18 = vpop.permute.xlu0 %1046  ;;  %v2440_v10 = vld [vmem:[#allocation4 + $0x98] sm:$0xff] }
 0x1e8   :  { %1123 = vst.msk [vmem:[#allocation4 + $0xa0] sm:$0xff] %vm1102_vm6, %v1047_v18  ;;  %v1049_v20 = vpop.permute.xlu1 %1048  ;;  %7118 = vmatmul.mubr.msk.bf16.gmra.mrb[36].mxu0 %vm2473_vm12, %v2440_v10  ;;  %v941_v18 = vld [vmem:[#allocation2 + $0x338] sm:$0xff] }
 0x1e9   :  { %1124 = vst.msk [vmem:[#allocation4 + $0xa8] sm:$0xff] %vm1102_vm6, %v1049_v20  ;;  %2344 = vrot.lane.b32.xlu0 %v1483_v38, %s7254_s12  ;;  %v973_v20 = vpack.c.bf16 %v941_v18, %v940_v52 }
 0x1ea   :  { %548 = vrot.lane.b32.xlu1 %v1226_v6, %s7247_s14 }
 0x1eb   :  { %v1304_v16 = vpop.permute.xlu0 %1303 }
 0x1ec   :  { %1380 = vst.msk [vmem:[#allocation4 + $0xa0] sm:$0xff] %vm1359_vm7, %v1304_v16  ;;  %v1306_v17 = vpop.permute.xlu1 %1305  ;;  %v1197_v16 = vld [vmem:[#allocation2 + $0x331] sm:$0xff] }
 0x1ed   :  { %1381 = vst.msk [vmem:[#allocation4 + $0xa8] sm:$0xff] %vm1359_vm7, %v1306_v17  ;;  %2346 = vrot.lane.b32.xlu0 %v2255_v41, %s7254_s12  ;;  %v1198_v17 = vld [vmem:[#allocation2 + $0x339] sm:$0xff] }
 0x1ee   :  { %550 = vrot.lane.b32.xlu1 %v1998_v62, %s7247_s14 }
 0x1ef   :  { %v1561_v56 = vpop.permute.xlu0 %1560 }
 0x1f0   :  { %1637 = vst.msk [vmem:[#allocation4 + $0xa0] sm:$0xff] %vm1616_vm8, %v1561_v56  ;;  %v1563_v19 = vpop.permute.xlu1 %1562 }
 0x1f1   :  { %1638 = vst.msk [vmem:[#allocation4 + $0xa8] sm:$0xff] %vm1616_vm8, %v1563_v19  ;;  %805 = vrot.lane.b32.xlu0 %v1483_v38, %s7248_s15  ;;  %v1965_v38 = vld [vmem:[#allocation2 + $0x319] sm:$0xff]  ;;  %v1230_v19 = vpack.c.bf16 %v1198_v17, %v1197_v16 }
 0x1f2   :  { %807 = vrot.lane.b32.xlu1 %v2255_v41, %s7248_s15  ;;  %v2000_v44 = vpack.c.bf16 %v1966_v39, %v1965_v38  ;;  %v1969_v39 = vld [vmem:[#allocation2 + $0x349] sm:$0xff] }
 0x1f3   :  { %v1819_v46 = vpop.permute.xlu0 %1818 }
 0x1f4   :  { %1895 = vst.msk [vmem:[#allocation4 + $0xa0] sm:$0xff] %vm1874_vm9, %v1819_v46  ;;  %v1821_v22 = vpop.permute.xlu1 %1820 }
 0x1f5   :  { %1896 = vst.msk [vmem:[#allocation4 + $0xa8] sm:$0xff] %vm1874_vm9, %v1821_v22  ;;  %1062 = vrot.lane.b32.xlu0 %v8112_v50, %s7249_s16 }
 0x1f6   :  { %1064 = vrot.lane.b32.xlu1 %v8145_v14, %s7249_s16 }
 0x1f7   :  { %v2076_v25 = vpop.permute.xlu0 %2075 }
 0x1f8   :  { %2152 = vst.msk [vmem:[#allocation4 + $0xa0] sm:$0xff] %vm2131_vm10, %v2076_v25  ;;  %v2078_v27 = vpop.permute.xlu1 %2077 }
 0x1f9   :  { %2153 = vst.msk [vmem:[#allocation4 + $0xa8] sm:$0xff] %vm2131_vm10, %v2078_v27  ;;  %1319 = vrot.lane.b32.xlu0 %v1998_v62, %s7250_s17 }
 0x1fa   :  { %1321 = vrot.lane.b32.xlu1 %v1228_v24, %s7250_s17 }
 0x1fb   :  { %v2333_v29 = vpop.permute.xlu0 %2332  ;;  %v8376_v31 = vpop.f32.mrb[12].mxu0 }
 0x1fc   :  { %2409 = vst.msk [vmem:[#allocation4 + $0xa0] sm:$0xff] %vm2388_vm11, %v2333_v29  ;;  %v537_v50 = vpop.permute.xlu1 %536  ;;  %v8379_v32 = vpop.f32.mrb[13].mxu0  ;;  %v2891_v30 = vsel %vm2863_vm13, %v8376_v31, 0.0 }
 0x1fd   :  { %611 = vst.msk [vmem:[#allocation4 + $0xb0] sm:$0xff] %vm588_vm4, %v537_v50  ;;  %v2887_v23 = vsel %vm2863_vm13, %v8379_v32, 0.0  ;;  %1576 = vrot.lane.b32.xlu0 %v2255_v41, %s7251_s18  ;;  %v8385_v6 = vpop.f32.mrb[14].mxu0 }
 0x1fe   :  { %v2888_v34 = vadd.f32 %v2887_v23, %v2886_v8  ;;  %1578 = vrot.lane.b32.xlu1 %v1485_v28, %s7251_s18  ;;  %v8388_v35 = vpop.f32.mrb[15].mxu0  ;;  %v2893_v55 = vsel %vm2863_vm13, %v8385_v6, 0.0 }
 0x1ff   :  { %v2889_v36 = vsel %vm2863_vm13, %v8388_v35, 0.0  ;;  %v2335_v37 = vpop.permute.xlu0 %2334 }
 0x200   :  { %v2890_v63 = vadd.f32 %v2889_v36, %v2888_v34  ;;  %2410 = vst.msk [vmem:[#allocation4 + $0xa8] sm:$0xff] %vm2388_vm11, %v2335_v37  ;;  %v539_v43 = vpop.permute.xlu1 %538 }
 0x201   :  { %612 = vst.msk [vmem:[#allocation4 + $0xb8] sm:$0xff] %vm588_vm4, %v539_v43  ;;  %1834 = vrot.lane.b32.xlu0 %v8145_v14, %s7252_s29  ;;  %v2222_v14 = vld [vmem:[#allocation2 + $0x31a] sm:$0xff] }
 0x202   :  { %v2892_v53 = vadd.f32 %v2891_v30, %v2890_v63  ;;  %1836 = vrot.lane.b32.xlu1 %v8173_v33, %s7252_s29  ;;  %v2257_v7 = vpack.c.bf16 %v2223_v61, %v2222_v14  ;;  %v1970_v63 = vld [vmem:[#allocation2 + $0x351] sm:$0xff] }
 0x203   :  { %v794_v3 = vpop.permute.xlu0 %793  ;;  %v2441_v5 = vld [vmem:[#allocation4 + $0xa0] sm:$0xff]  ;;  %v2227_v14 = vld [vmem:[#allocation2 + $0x352] sm:$0xff] }
 0x204   :  { %868 = vst.msk [vmem:[#allocation4 + $0xb0] sm:$0xff] %vm845_vm5, %v794_v3  ;;  %v796_v57 = vpop.permute.xlu1 %795  ;;  %7121 = vmatprep.mubr.msk.bf16.mxu0 %vm2473_vm12, %v2441_v5  ;;  %v2894_v9 = vadd.f32 %v2893_v55, %v2892_v53  ;;  %v2002_v55 = vpack.c.bf16 %v1970_v63, %v1969_v39 }
 0x205   :  { %869 = vst.msk [vmem:[#allocation4 + $0xb8] sm:$0xff] %vm845_vm5, %v796_v57  ;;  %2091 = vrot.lane.b32.xlu0 %v1228_v24, %s7253_s11 }
 0x206   :  { %2093 = vrot.lane.b32.xlu1 %v2000_v44, %s7253_s11 }
 0x207   :  { %v1051_v62 = vpop.permute.xlu0 %1050  ;;  %v2442_v2 = vld [vmem:[#allocation4 + $0xa8] sm:$0xff] }
 0x208   :  { %1125 = vst.msk [vmem:[#allocation4 + $0xb0] sm:$0xff] %vm1102_vm6, %v1051_v62  ;;  %v1053_v4 = vpop.permute.xlu1 %1052  ;;  %7122 = vmatmul.mubr.msk.bf16.gmra.mrb[40].mxu0 %vm2473_vm12, %v2442_v2 }
 0x209   :  { %1126 = vst.msk [vmem:[#allocation4 + $0xb8] sm:$0xff] %vm1102_vm6, %v1053_v4  ;;  %2348 = vrot.lane.b32.xlu0 %v1485_v28, %s7254_s12 }
 0x20a   :  { %552 = vrot.lane.b32.xlu1 %v1228_v24, %s7247_s14  ;;  %v1487_v24 = vpack.c.bf16 %v1455_v42, %v1454_v21 }
 0x20b   :  { %v1308_v48 = vpop.permute.xlu0 %1307 }
 0x20c   :  { %1382 = vst.msk [vmem:[#allocation4 + $0xb0] sm:$0xff] %vm1359_vm7, %v1308_v48  ;;  %v1310_v8 = vpop.permute.xlu1 %1309 }
 0x20d   :  { %1383 = vst.msk [vmem:[#allocation4 + $0xb8] sm:$0xff] %vm1359_vm7, %v1310_v8  ;;  %2350 = vrot.lane.b32.xlu0 %v2257_v7, %s7254_s12 }
 0x20e   :  { %554 = vrot.lane.b32.xlu1 %v2000_v44, %s7247_s14 }
 0x20f   :  { %v1565_v26 = vpop.permute.xlu0 %1564 }
 0x210   :  { %1639 = vst.msk [vmem:[#allocation4 + $0xb0] sm:$0xff] %vm1616_vm8, %v1565_v26  ;;  %v1567_v10 = vpop.permute.xlu1 %1566 }
 0x211   :  { %1640 = vst.msk [vmem:[#allocation4 + $0xb8] sm:$0xff] %vm1616_vm8, %v1567_v10  ;;  %809 = vrot.lane.b32.xlu0 %v1485_v28, %s7248_s15 }
 0x212   :  { %811 = vrot.lane.b32.xlu1 %v2257_v7, %s7248_s15 }
 0x213   :  { %v1823_v41 = vpop.permute.xlu0 %1822 }
 0x214   :  { %1897 = vst.msk [vmem:[#allocation4 + $0xb0] sm:$0xff] %vm1874_vm9, %v1823_v41  ;;  %v1825_v56 = vpop.permute.xlu1 %1824 }
 0x215   :  { %1898 = vst.msk [vmem:[#allocation4 + $0xb8] sm:$0xff] %vm1874_vm9, %v1825_v56  ;;  %1066 = vrot.lane.b32.xlu0 %v8173_v33, %s7249_s16  ;;  %v1712_v33 = vld [vmem:[#allocation2 + $0x348] sm:$0xff] }
 0x216   :  { %1068 = vrot.lane.b32.xlu1 %v973_v20, %s7249_s16  ;;  %v1745_v36 = vpack.c.bf16 %v1713_v60, %v1712_v33 }
 0x217   :  { %v2080_v46 = vpop.permute.xlu0 %2079 }
 0x218   :  { %2154 = vst.msk [vmem:[#allocation4 + $0xb0] sm:$0xff] %vm2131_vm10, %v2080_v46  ;;  %v2082_v22 = vpop.permute.xlu1 %2081 }
 0x219   :  { %2155 = vst.msk [vmem:[#allocation4 + $0xb8] sm:$0xff] %vm2131_vm10, %v2082_v22  ;;  %1323 = vrot.lane.b32.xlu0 %v2000_v44, %s7250_s17 }
 0x21a   :  { %1325 = vrot.lane.b32.xlu1 %v1230_v19, %s7250_s17 }
 0x21b   :  { %v2337_v25 = vpop.permute.xlu0 %2336  ;;  %v8429_v54 = vpop.f32.mrb[16].mxu0 }
 0x21c   :  { %2411 = vst.msk [vmem:[#allocation4 + $0xb0] sm:$0xff] %vm2388_vm11, %v2337_v25  ;;  %v541_v27 = vpop.permute.xlu1 %540  ;;  %v8432_v28 = vpop.f32.mrb[17].mxu0  ;;  %v2899_v53 = vsel %vm2863_vm13, %v8429_v54, 0.0 }
 0x21d   :  { %613 = vst.msk [vmem:[#allocation4 + $0xc0] sm:$0xff] %vm588_vm4, %v541_v27  ;;  %v2895_v29 = vsel %vm2863_vm13, %v8432_v28, 0.0  ;;  %1580 = vrot.lane.b32.xlu0 %v2257_v7, %s7251_s18  ;;  %v8438_v50 = vpop.f32.mrb[18].mxu0 }
 0x21e   :  { %v2896_v23 = vadd.f32 %v2895_v29, %v2894_v9  ;;  %1582 = vrot.lane.b32.xlu1 %v1487_v24, %s7251_s18  ;;  %v8441_v34 = vpop.f32.mrb[19].mxu0  ;;  %v2901_v3 = vsel %vm2863_vm13, %v8438_v50, 0.0  ;;  %v2226_v9 = vld [vmem:[#allocation2 + $0x34a] sm:$0xff] }
 0x21f   :  { %v2897_v37 = vsel %vm2863_vm13, %v8441_v34, 0.0  ;;  %v2339_v38 = vpop.permute.xlu0 %2338  ;;  %v2259_v2 = vpack.c.bf16 %v2227_v14, %v2226_v9 }
 0x220   :  { %v2898_v43 = vadd.f32 %v2897_v37, %v2896_v23  ;;  %2412 = vst.msk [vmem:[#allocation4 + $0xb8] sm:$0xff] %vm2388_vm11, %v2339_v38  ;;  %v543_v30 = vpop.permute.xlu1 %542 }
 0x221   :  { %614 = vst.msk [vmem:[#allocation4 + $0xc8] sm:$0xff] %vm588_vm4, %v543_v30  ;;  %1838 = vrot.lane.b32.xlu0 %v973_v20, %s7252_s29 }
 0x222   :  { %v2900_v44 = vadd.f32 %v2899_v53, %v2898_v43  ;;  %1840 = vrot.lane.b32.xlu1 %v1745_v36, %s7252_s29 }
 0x223   :  { %v798_v5 = vpop.permute.xlu0 %797  ;;  %v2443_v57 = vld [vmem:[#allocation4 + $0xb0] sm:$0xff] }
 0x224   :  { %870 = vst.msk [vmem:[#allocation4 + $0xc0] sm:$0xff] %vm845_vm5, %v798_v5  ;;  %v800_v61 = vpop.permute.xlu1 %799  ;;  %7125 = vmatprep.mubr.msk.bf16.mxu0 %vm2473_vm12, %v2443_v57  ;;  %v2902_v62 = vadd.f32 %v2901_v3, %v2900_v44 }
 0x225   :  { %871 = vst.msk [vmem:[#allocation4 + $0xc8] sm:$0xff] %vm845_vm5, %v800_v61  ;;  %2095 = vrot.lane.b32.xlu0 %v1230_v19, %s7253_s11 }
 0x226   :  { %2097 = vrot.lane.b32.xlu1 %v2002_v55, %s7253_s11 }
 0x227   :  { %v1055_v4 = vpop.permute.xlu0 %1054  ;;  %v2444_v7 = vld [vmem:[#allocation4 + $0xb8] sm:$0xff] }
 0x228   :  { %1127 = vst.msk [vmem:[#allocation4 + $0xc0] sm:$0xff] %vm1102_vm6, %v1055_v4  ;;  %v1057_v48 = vpop.permute.xlu1 %1056  ;;  %7126 = vmatmul.mubr.msk.bf16.gmra.mrb[44].mxu0 %vm2473_vm12, %v2444_v7 }
 0x229   :  { %1128 = vst.msk [vmem:[#allocation4 + $0xc8] sm:$0xff] %vm1102_vm6, %v1057_v48  ;;  %2352 = vrot.lane.b32.xlu0 %v1487_v24, %s7254_s12 }
 0x22a   :  { %2354 = vrot.lane.b32.xlu1 %v2259_v2, %s7254_s12 }
 0x22b   :  { %v1312_v8 = vpop.permute.xlu0 %1311 }
 0x22c   :  { %1384 = vst.msk [vmem:[#allocation4 + $0xc0] sm:$0xff] %vm1359_vm7, %v1312_v8  ;;  %v1314_v26 = vpop.permute.xlu1 %1313 }
 0x22d   :  { %1385 = vst.msk [vmem:[#allocation4 + $0xc8] sm:$0xff] %vm1359_vm7, %v1314_v26 }
 0x22f   :  { %v1569_v52 = vpop.permute.xlu0 %1568 }
 0x230   :  { %1641 = vst.msk [vmem:[#allocation4 + $0xc0] sm:$0xff] %vm1616_vm8, %v1569_v52  ;;  %v1571_v18 = vpop.permute.xlu1 %1570 }
 0x231   :  { %1642 = vst.msk [vmem:[#allocation4 + $0xc8] sm:$0xff] %vm1616_vm8, %v1571_v18 }
 0x233   :  { %v1827_v10 = vpop.permute.xlu0 %1826 }
 0x234   :  { %1899 = vst.msk [vmem:[#allocation4 + $0xc0] sm:$0xff] %vm1874_vm9, %v1827_v10  ;;  %v1829_v20 = vpop.permute.xlu1 %1828 }
 0x235   :  { %1900 = vst.msk [vmem:[#allocation4 + $0xc8] sm:$0xff] %vm1874_vm9, %v1829_v20 }
 0x237   :  { %v2084_v41 = vpop.permute.xlu0 %2083 }
 0x238   :  { %2156 = vst.msk [vmem:[#allocation4 + $0xc0] sm:$0xff] %vm2131_vm10, %v2084_v41  ;;  %v2086_v16 = vpop.permute.xlu1 %2085 }
 0x239   :  { %2157 = vst.msk [vmem:[#allocation4 + $0xc8] sm:$0xff] %vm2131_vm10, %v2086_v16 }
 0x23b   :  { %v2341_v17 = vpop.permute.xlu0 %2340  ;;  %v8471_v56 = vpop.f32.mrb[20].mxu0 }
 0x23c   :  { %2413 = vst.msk [vmem:[#allocation4 + $0xc0] sm:$0xff] %vm2388_vm11, %v2341_v17  ;;  %v545_v19 = vpop.permute.xlu1 %544  ;;  %v8474_v46 = vpop.f32.mrb[21].mxu0  ;;  %v2907_v29 = vsel %vm2863_vm13, %v8471_v56, 0.0 }
 0x23d   :  { %615 = vst.msk [vmem:[#allocation4 + $0xd0] sm:$0xff] %vm588_vm4, %v545_v19  ;;  %v2903_v21 = vsel %vm2863_vm13, %v8474_v46, 0.0  ;;  %v8479_v42 = vpop.f32.mrb[22].mxu0 }
 0x23e   :  { %v2904_v22 = vadd.f32 %v2903_v21, %v2902_v62  ;;  %v8481_v24 = vpop.f32.mrb[23].mxu0  ;;  %v2909_v36 = vsel %vm2863_vm13, %v8479_v42, 0.0 }
 0x23f   :  { %v2905_v25 = vsel %vm2863_vm13, %v8481_v24, 0.0  ;;  %v2343_v33 = vpop.permute.xlu0 %2342 }
 0x240   :  { %v2906_v60 = vadd.f32 %v2905_v25, %v2904_v22  ;;  %2414 = vst.msk [vmem:[#allocation4 + $0xc8] sm:$0xff] %vm2388_vm11, %v2343_v33  ;;  %v547_v27 = vpop.permute.xlu1 %546 }
 0x241   :  { %616 = vst.msk [vmem:[#allocation4 + $0xd8] sm:$0xff] %vm588_vm4, %v547_v27 }
 0x242   :  { %v2908_v23 = vadd.f32 %v2907_v29, %v2906_v60 }
 0x243   :  { %v802_v37 = vpop.permute.xlu0 %801  ;;  %v2445_v38 = vld [vmem:[#allocation4 + $0xc0] sm:$0xff] }
 0x244   :  { %872 = vst.msk [vmem:[#allocation4 + $0xd0] sm:$0xff] %vm845_vm5, %v802_v37  ;;  %v804_v39 = vpop.permute.xlu1 %803  ;;  %7129 = vmatprep.mubr.msk.bf16.mxu0 %vm2473_vm12, %v2445_v38  ;;  %v2910_v63 = vadd.f32 %v2909_v36, %v2908_v23 }
 0x245   :  { %873 = vst.msk [vmem:[#allocation4 + $0xd8] sm:$0xff] %vm845_vm5, %v804_v39 }
 0x247   :  { %v1059_v43 = vpop.permute.xlu0 %1058  ;;  %v2446_v30 = vld [vmem:[#allocation4 + $0xc8] sm:$0xff] }
 0x248   :  { %1129 = vst.msk [vmem:[#allocation4 + $0xd0] sm:$0xff] %vm1102_vm6, %v1059_v43  ;;  %v1061_v53 = vpop.permute.xlu1 %1060  ;;  %7130 = vmatmul.mubr.msk.bf16.gmra.mrb[48].mxu0 %vm2473_vm12, %v2446_v30 }
 0x249   :  { %1130 = vst.msk [vmem:[#allocation4 + $0xd8] sm:$0xff] %vm1102_vm6, %v1061_v53 }
 0x24b   :  { %v1316_v44 = vpop.permute.xlu0 %1315 }
 0x24c   :  { %1386 = vst.msk [vmem:[#allocation4 + $0xd0] sm:$0xff] %vm1359_vm7, %v1316_v44  ;;  %v1318_v55 = vpop.permute.xlu1 %1317 }
 0x24d   :  { %1387 = vst.msk [vmem:[#allocation4 + $0xd8] sm:$0xff] %vm1359_vm7, %v1318_v55 }
 0x24f   :  { %v1573_v3 = vpop.permute.xlu0 %1572 }
 0x250   :  { %1643 = vst.msk [vmem:[#allocation4 + $0xd0] sm:$0xff] %vm1616_vm8, %v1573_v3  ;;  %v1575_v5 = vpop.permute.xlu1 %1574 }
 0x251   :  { %1644 = vst.msk [vmem:[#allocation4 + $0xd8] sm:$0xff] %vm1616_vm8, %v1575_v5 }
 0x253   :  { %v1831_v57 = vpop.permute.xlu0 %1830 }
 0x254   :  { %1901 = vst.msk [vmem:[#allocation4 + $0xd0] sm:$0xff] %vm1874_vm9, %v1831_v57  ;;  %v1833_v9 = vpop.permute.xlu1 %1832 }
 0x255   :  { %1902 = vst.msk [vmem:[#allocation4 + $0xd8] sm:$0xff] %vm1874_vm9, %v1833_v9 }
 0x257   :  { %v2088_v14 = vpop.permute.xlu0 %2087 }
 0x258   :  { %2158 = vst.msk [vmem:[#allocation4 + $0xd0] sm:$0xff] %vm2131_vm10, %v2088_v14  ;;  %v2090_v61 = vpop.permute.xlu1 %2089 }
 0x259   :  { %2159 = vst.msk [vmem:[#allocation4 + $0xd8] sm:$0xff] %vm2131_vm10, %v2090_v61 }
 0x25b   :  { %v2345_v62 = vpop.permute.xlu0 %2344  ;;  %v8505_v2 = vpop.f32.mrb[24].mxu0 }
 0x25c   :  { %2415 = vst.msk [vmem:[#allocation4 + $0xd0] sm:$0xff] %vm2388_vm11, %v2345_v62  ;;  %v549_v4 = vpop.permute.xlu1 %548  ;;  %v8508_v7 = vpop.f32.mrb[25].mxu0  ;;  %v2915_v16 = vsel %vm2863_vm13, %v8505_v2, 0.0 }
 0x25d   :  { %617 = vst.msk [vmem:[#allocation4 + $0xe0] sm:$0xff] %vm588_vm4, %v549_v4  ;;  %v2911_v48 = vsel %vm2863_vm13, %v8508_v7, 0.0  ;;  %v8513_v8 = vpop.f32.mrb[26].mxu0 }
 0x25e   :  { %v2912_v26 = vadd.f32 %v2911_v48, %v2910_v63  ;;  %v8515_v52 = vpop.f32.mrb[27].mxu0  ;;  %v2917_v19 = vsel %vm2863_vm13, %v8513_v8, 0.0 }
 0x25f   :  { %v2913_v18 = vsel %vm2863_vm13, %v8515_v52, 0.0  ;;  %v2347_v10 = vpop.permute.xlu0 %2346 }
 0x260   :  { %v2914_v20 = vadd.f32 %v2913_v18, %v2912_v26  ;;  %2416 = vst.msk [vmem:[#allocation4 + $0xd8] sm:$0xff] %vm2388_vm11, %v2347_v10  ;;  %v551_v41 = vpop.permute.xlu1 %550 }
 0x261   :  { %618 = vst.msk [vmem:[#allocation4 + $0xe8] sm:$0xff] %vm588_vm4, %v551_v41 }
 0x262   :  { %v2916_v17 = vadd.f32 %v2915_v16, %v2914_v20 }
 0x263   :  { %v806_v21 = vpop.permute.xlu0 %805  ;;  %v2447_v22 = vld [vmem:[#allocation4 + $0xd0] sm:$0xff] }
 0x264   :  { %874 = vst.msk [vmem:[#allocation4 + $0xe0] sm:$0xff] %vm845_vm5, %v806_v21  ;;  %v808_v25 = vpop.permute.xlu1 %807  ;;  %7133 = vmatprep.mubr.msk.bf16.mxu0 %vm2473_vm12, %v2447_v22  ;;  %v2918_v33 = vadd.f32 %v2917_v19, %v2916_v17 }
 0x265   :  { %875 = vst.msk [vmem:[#allocation4 + $0xe8] sm:$0xff] %vm845_vm5, %v808_v25 }
 0x267   :  { %v1063_v60 = vpop.permute.xlu0 %1062  ;;  %v2448_v27 = vld [vmem:[#allocation4 + $0xd8] sm:$0xff] }
 0x268   :  { %1131 = vst.msk [vmem:[#allocation4 + $0xe0] sm:$0xff] %vm1102_vm6, %v1063_v60  ;;  %v1065_v29 = vpop.permute.xlu1 %1064  ;;  %7134 = vmatmul.mubr.msk.bf16.gmra.mrb[52].mxu0 %vm2473_vm12, %v2448_v27 }
 0x269   :  { %1132 = vst.msk [vmem:[#allocation4 + $0xe8] sm:$0xff] %vm1102_vm6, %v1065_v29 }
 0x26b   :  { %v1320_v23 = vpop.permute.xlu0 %1319 }
 0x26c   :  { %1388 = vst.msk [vmem:[#allocation4 + $0xe0] sm:$0xff] %vm1359_vm7, %v1320_v23  ;;  %v1322_v36 = vpop.permute.xlu1 %1321 }
 0x26d   :  { %1389 = vst.msk [vmem:[#allocation4 + $0xe8] sm:$0xff] %vm1359_vm7, %v1322_v36 }
 0x26f   :  { %v1577_v37 = vpop.permute.xlu0 %1576 }
 0x270   :  { %1645 = vst.msk [vmem:[#allocation4 + $0xe0] sm:$0xff] %vm1616_vm8, %v1577_v37  ;;  %v1579_v38 = vpop.permute.xlu1 %1578 }
 0x271   :  { %1646 = vst.msk [vmem:[#allocation4 + $0xe8] sm:$0xff] %vm1616_vm8, %v1579_v38 }
 0x273   :  { %v1835_v39 = vpop.permute.xlu0 %1834 }
 0x274   :  { %1903 = vst.msk [vmem:[#allocation4 + $0xe0] sm:$0xff] %vm1874_vm9, %v1835_v39  ;;  %v1837_v63 = vpop.permute.xlu1 %1836 }
 0x275   :  { %1904 = vst.msk [vmem:[#allocation4 + $0xe8] sm:$0xff] %vm1874_vm9, %v1837_v63 }
 0x277   :  { %v2092_v43 = vpop.permute.xlu0 %2091 }
 0x278   :  { %2160 = vst.msk [vmem:[#allocation4 + $0xe0] sm:$0xff] %vm2131_vm10, %v2092_v43  ;;  %v2094_v30 = vpop.permute.xlu1 %2093 }
 0x279   :  { %2161 = vst.msk [vmem:[#allocation4 + $0xe8] sm:$0xff] %vm2131_vm10, %v2094_v30 }
 0x27b   :  { %v2349_v53 = vpop.permute.xlu0 %2348  ;;  %v8539_v44 = vpop.f32.mrb[28].mxu0 }
 0x27c   :  { %2417 = vst.msk [vmem:[#allocation4 + $0xe0] sm:$0xff] %vm2388_vm11, %v2349_v53  ;;  %v553_v55 = vpop.permute.xlu1 %552  ;;  %v8542_v3 = vpop.f32.mrb[29].mxu0  ;;  %v2923_v26 = vsel %vm2863_vm13, %v8539_v44, 0.0 }
 0x27d   :  { %619 = vst.msk [vmem:[#allocation4 + $0xf0] sm:$0xff] %vm588_vm4, %v553_v55  ;;  %v2919_v5 = vsel %vm2863_vm13, %v8542_v3, 0.0  ;;  %v8547_v57 = vpop.f32.mrb[30].mxu0 }
 0x27e   :  { %v2920_v9 = vadd.f32 %v2919_v5, %v2918_v33  ;;  %v8549_v14 = vpop.f32.mrb[31].mxu0  ;;  %v2925_v10 = vsel %vm2863_vm13, %v8547_v57, 0.0 }
 0x27f   :  { %v2921_v61 = vsel %vm2863_vm13, %v8549_v14, 0.0  ;;  %v2351_v62 = vpop.permute.xlu0 %2350 }
 0x280   :  { %v2922_v4 = vadd.f32 %v2921_v61, %v2920_v9  ;;  %2418 = vst.msk [vmem:[#allocation4 + $0xe8] sm:$0xff] %vm2388_vm11, %v2351_v62  ;;  %v555_v48 = vpop.permute.xlu1 %554 }
 0x281   :  { %620 = vst.msk [vmem:[#allocation4 + $0xf8] sm:$0xff] %vm588_vm4, %v555_v48  ;;  %vm4736_vm4 = vcmask 326912  }
 0x282   :  { %v2924_v18 = vadd.f32 %v2923_v26, %v2922_v4 }
 0x283   :  { %v810_v20 = vpop.permute.xlu0 %809  ;;  %v2449_v41 = vld [vmem:[#allocation4 + $0xe0] sm:$0xff] }
 0x284   :  { %876 = vst.msk [vmem:[#allocation4 + $0xf0] sm:$0xff] %vm845_vm5, %v810_v20  ;;  %v812_v16 = vpop.permute.xlu1 %811  ;;  %7137 = vmatprep.mubr.msk.bf16.mxu0 %vm2473_vm12, %v2449_v41  ;;  %v2926_v17 = vadd.f32 %v2925_v10, %v2924_v18 }
 0x285   :  { %877 = vst.msk [vmem:[#allocation4 + $0xf8] sm:$0xff] %vm845_vm5, %v812_v16  ;;  %vm4993_vm5 = vcmask 392512  }
 0x287   :  { %v1067_v19 = vpop.permute.xlu0 %1066  ;;  %v2450_v21 = vld [vmem:[#allocation4 + $0xe8] sm:$0xff] }
 0x288   :  { %1133 = vst.msk [vmem:[#allocation4 + $0xf0] sm:$0xff] %vm1102_vm6, %v1067_v19  ;;  %v1069_v22 = vpop.permute.xlu1 %1068  ;;  %7138 = vmatmul.mubr.msk.bf16.gmra.mrb[56].mxu0 %vm2473_vm12, %v2450_v21 }
 0x289   :  { %1134 = vst.msk [vmem:[#allocation4 + $0xf8] sm:$0xff] %vm1102_vm6, %v1069_v22  ;;  %vm5251_vm6 = vcmask 458112  }
 0x28b   :  { %v1324_v25 = vpop.permute.xlu0 %1323 }
 0x28c   :  { %1390 = vst.msk [vmem:[#allocation4 + $0xf0] sm:$0xff] %vm1359_vm7, %v1324_v25  ;;  %v1326_v33 = vpop.permute.xlu1 %1325 }
 0x28d   :  { %1391 = vst.msk [vmem:[#allocation4 + $0xf8] sm:$0xff] %vm1359_vm7, %v1326_v33  ;;  %vm5508_vm7 = vcmask 523712  }
 0x28f   :  { %v1581_v60 = vpop.permute.xlu0 %1580 }
 0x290   :  { %1647 = vst.msk [vmem:[#allocation4 + $0xf0] sm:$0xff] %vm1616_vm8, %v1581_v60  ;;  %v1583_v27 = vpop.permute.xlu1 %1582 }
 0x291   :  { %1648 = vst.msk [vmem:[#allocation4 + $0xf8] sm:$0xff] %vm1616_vm8, %v1583_v27  ;;  %vm5765_vm8 = vcmask 589312  }
 0x293   :  { %v1839_v29 = vpop.permute.xlu0 %1838 }
 0x294   :  { %1905 = vst.msk [vmem:[#allocation4 + $0xf0] sm:$0xff] %vm1874_vm9, %v1839_v29  ;;  %v1841_v23 = vpop.permute.xlu1 %1840 }
 0x295   :  { %1906 = vst.msk [vmem:[#allocation4 + $0xf8] sm:$0xff] %vm1874_vm9, %v1841_v23  ;;  %vm5866_vm9 = vcmask 588800  }
 0x297   :  { %v2096_v36 = vpop.permute.xlu0 %2095 }
 0x298   :  { %2162 = vst.msk [vmem:[#allocation4 + $0xf0] sm:$0xff] %vm2131_vm10, %v2096_v36  ;;  %v2098_v37 = vpop.permute.xlu1 %2097 }
 0x299   :  { %2163 = vst.msk [vmem:[#allocation4 + $0xf8] sm:$0xff] %vm2131_vm10, %v2098_v37 }
 0x29b   :  { %v2353_v38 = vpop.permute.xlu0 %2352  ;;  %v8573_v39 = vpop.f32.mrb[32].mxu0 }
 0x29c   :  { %2419 = vst.msk [vmem:[#allocation4 + $0xf0] sm:$0xff] %vm2388_vm11, %v2353_v38  ;;  %v2355_v63 = vpop.permute.xlu1 %2354  ;;  %v8576_v43 = vpop.f32.mrb[33].mxu0  ;;  %v2931_v62 = vsel %vm2863_vm13, %v8573_v39, 0.0 }
 0x29d   :  { %2420 = vst.msk [vmem:[#allocation4 + $0xf8] sm:$0xff] %vm2388_vm11, %v2355_v63  ;;  %v2927_v30 = vsel %vm2863_vm13, %v8576_v43, 0.0  ;;  %v8581_v53 = vpop.f32.mrb[34].mxu0 }
 0x29e   :  { %v2928_v55 = vadd.f32 %v2927_v30, %v2926_v17  ;;  %v8583_v5 = vpop.f32.mrb[35].mxu0  ;;  %v2933_v48 = vsel %vm2863_vm13, %v8581_v53, 0.0 }
 0x29f   :  { %v2929_v9 = vsel %vm2863_vm13, %v8583_v5, 0.0 }
 0x2a0   :  { %v2930_v61 = vadd.f32 %v2929_v9, %v2928_v55 }
 0x2a2   :  { %v2932_v4 = vadd.f32 %v2931_v62, %v2930_v61 }
 0x2a3   :  { %v2451_v26 = vld [vmem:[#allocation4 + $0xf0] sm:$0xff] }
 0x2a4   :  { %7141 = vmatprep.mubr.msk.bf16.mxu0 %vm2473_vm12, %v2451_v26  ;;  %v2452_v18 = vld [vmem:[#allocation4 + $0xf8] sm:$0xff]  ;;  %v2934_v10 = vadd.f32 %v2933_v48, %v2932_v4 }
 0x2a5   :  { %7142 = vmatmul.mubr.msk.bf16.gmra.mrb[60].mxu0 %vm2473_vm12, %v2452_v18 }
 0x2bb   :  { %v8593_v20 = vpop.f32.mrb[36].mxu0 }
 0x2bc   :  { %v8595_v41 = vpop.f32.mrb[37].mxu0  ;;  %v2939_v33 = vsel %vm2863_vm13, %v8593_v20, 0.0 }
 0x2bd   :  { %v2935_v16 = vsel %vm2863_vm13, %v8595_v41, 0.0  ;;  %v8599_v17 = vpop.f32.mrb[38].mxu0 }
 0x2be   :  { %v2936_v19 = vadd.f32 %v2935_v16, %v2934_v10  ;;  %v8601_v21 = vpop.f32.mrb[39].mxu0  ;;  %v2941_v27 = vsel %vm2863_vm13, %v8599_v17, 0.0 }
 0x2bf   :  { %v2937_v22 = vsel %vm2863_vm13, %v8601_v21, 0.0 }
 0x2c0   :  { %v2938_v25 = vadd.f32 %v2937_v22, %v2936_v19 }
 0x2c2   :  { %v2940_v60 = vadd.f32 %v2939_v33, %v2938_v25 }
 0x2c4   :  { %v2942_v29 = vadd.f32 %v2941_v27, %v2940_v60 }
 0x2db   :  { %v8609_v23 = vpop.f32.mrb[40].mxu0 }
 0x2dc   :  { %v8611_v36 = vpop.f32.mrb[41].mxu0  ;;  %v2947_v61 = vsel %vm2863_vm13, %v8609_v23, 0.0 }
 0x2dd   :  { %v2943_v37 = vsel %vm2863_vm13, %v8611_v36, 0.0  ;;  %v8615_v38 = vpop.f32.mrb[42].mxu0 }
 0x2de   :  { %v2944_v63 = vadd.f32 %v2943_v37, %v2942_v29  ;;  %v8617_v30 = vpop.f32.mrb[43].mxu0  ;;  %v2949_v4 = vsel %vm2863_vm13, %v8615_v38, 0.0 }
 0x2df   :  { %v2945_v55 = vsel %vm2863_vm13, %v8617_v30, 0.0 }
 0x2e0   :  { %v2946_v9 = vadd.f32 %v2945_v55, %v2944_v63 }
 0x2e2   :  { %v2948_v62 = vadd.f32 %v2947_v61, %v2946_v9 }
 0x2e4   :  { %v2950_v48 = vadd.f32 %v2949_v4, %v2948_v62 }
 0x2fb   :  { %v8625_v26 = vpop.f32.mrb[44].mxu0 }
 0x2fc   :  { %v8627_v18 = vpop.f32.mrb[45].mxu0  ;;  %v2955_v60 = vsel %vm2863_vm13, %v8625_v26, 0.0 }
 0x2fd   :  { %v2951_v10 = vsel %vm2863_vm13, %v8627_v18, 0.0  ;;  %v8631_v16 = vpop.f32.mrb[46].mxu0 }
 0x2fe   :  { %12312 = vst [vmem:[#allocation6_spill] sm:$0xff] %v8631_v16  ;;  %v2952_v19 = vadd.f32 %v2951_v10, %v2950_v48  ;;  %v8633_v22 = vpop.f32.mrb[47].mxu0  ;;  %v2957_v29 = vsel %vm2863_vm13, %v8631_v16, 0.0 }
 0x2ff   :  { %v2953_v25 = vsel %vm2863_vm13, %v8633_v22, 0.0 }
 0x300   :  { %v2954_v33 = vadd.f32 %v2953_v25, %v2952_v19 }
 0x302   :  { %v2956_v27 = vadd.f32 %v2955_v60, %v2954_v33 }
 0x304   :  { %v2958_v37 = vadd.f32 %v2957_v29, %v2956_v27 }
 0x31b   :  { %v8641_v63 = vpop.f32.mrb[48].mxu0 }
 0x31c   :  { %12313 = vst [vmem:[#allocation7_spill] sm:$0xff] %v8641_v63  ;;  %v8643_v55 = vpop.f32.mrb[49].mxu0  ;;  %v2963_v19 = vsel %vm2863_vm13, %v8641_v63, 0.0 }
 0x31d   :  { %12314 = vst [vmem:[#allocation8_spill] sm:$0xff] %v8643_v55  ;;  %v2959_v9 = vsel %vm2863_vm13, %v8643_v55, 0.0  ;;  %v8647_v61 = vpop.f32.mrb[50].mxu0 }
 0x31e   :  { %12315 = vst [vmem:[#allocation9_spill] sm:$0xff] %v8647_v61  ;;  %v2960_v62 = vadd.f32 %v2959_v9, %v2958_v37  ;;  %v8649_v4 = vpop.f32.mrb[51].mxu0  ;;  %v2965_v33 = vsel %vm2863_vm13, %v8647_v61, 0.0 }
 0x31f   :  { %12316 = vst [vmem:[#allocation10_spill] sm:$0xff] %v8649_v4  ;;  %v2961_v48 = vsel %vm2863_vm13, %v8649_v4, 0.0 }
 0x320   :  { %v2962_v10 = vadd.f32 %v2961_v48, %v2960_v62 }
 0x322   :  { %v2964_v25 = vadd.f32 %v2963_v19, %v2962_v10 }
 0x324   :  { %v2966_v60 = vadd.f32 %v2965_v33, %v2964_v25 }
 0x33b   :  { %v8657_v27 = vpop.f32.mrb[52].mxu0 }
 0x33c   :  { %12317 = vst [vmem:[#allocation11_spill] sm:$0xff] %v8657_v27  ;;  %v8659_v29 = vpop.f32.mrb[53].mxu0  ;;  %v2971_v10 = vsel %vm2863_vm13, %v8657_v27, 0.0 }
 0x33d   :  { %12318 = vst [vmem:[#allocation12_spill] sm:$0xff] %v8659_v29  ;;  %v2967_v37 = vsel %vm2863_vm13, %v8659_v29, 0.0  ;;  %v8663_v9 = vpop.f32.mrb[54].mxu0 }
 0x33e   :  { %12319 = vst [vmem:[#allocation13_spill] sm:$0xff] %v8663_v9  ;;  %v2968_v0 = vadd.f32 %v2967_v37, %v2966_v60  ;;  %v8665_v4 = vpop.f32.mrb[55].mxu0  ;;  %v2973_v25 = vsel %vm2863_vm13, %v8663_v9, 0.0 }
 0x33f   :  { %12320 = vst [vmem:[#allocation14_spill] sm:$0xff] %v8665_v4  ;;  %v2969_v62 = vsel %vm2863_vm13, %v8665_v4, 0.0 }
 0x340   :  { %v2970_v48 = vadd.f32 %v2969_v62, %v2968_v0 }
 0x342   :  { %v2972_v19 = vadd.f32 %v2971_v10, %v2970_v48 }
 0x344   :  { %v2974_v33 = vadd.f32 %v2973_v25, %v2972_v19 }
 0x35b   :  { %v8673_v61 = vpop.f32.mrb[56].mxu0 }
 0x35c   :  { %12321 = vst [vmem:[#allocation15_spill] sm:$0xff] %v8673_v61  ;;  %v8675_v29 = vpop.f32.mrb[57].mxu0  ;;  %v2979_v48 = vsel %vm2863_vm13, %v8673_v61, 0.0 }
 0x35d   :  { %12322 = vst [vmem:[#allocation16_spill] sm:$0xff] %v8675_v29  ;;  %v2975_v60 = vsel %vm2863_vm13, %v8675_v29, 0.0  ;;  %v8679_v37 = vpop.f32.mrb[58].mxu0 }
 0x35e   :  { %12323 = vst [vmem:[#allocation17_spill] sm:$0xff] %v8679_v37  ;;  %v2976_v63 = vadd.f32 %v2975_v60, %v2974_v33  ;;  %v8681_v4 = vpop.f32.mrb[59].mxu0  ;;  %v2981_v19 = vsel %vm2863_vm13, %v8679_v37, 0.0 }
 0x35f   :  { %12324 = vst [vmem:[#allocation18_spill] sm:$0xff] %v8681_v4  ;;  %v2977_v0 = vsel %vm2863_vm13, %v8681_v4, 0.0 }
 0x360   :  { %v2978_v62 = vadd.f32 %v2977_v0, %v2976_v63 }
 0x362   :  { %v2980_v10 = vadd.f32 %v2979_v48, %v2978_v62 }
 0x364   :  { %v2982_v25 = vadd.f32 %v2981_v19, %v2980_v10 }
 0x378   :  { %v8689_v9 = vpop.f32.mrb[60].mxu0 }
 0x379   :  { %v8691_v29 = vpop.f32.mrb[61].mxu0  ;;  %v2987_v62 = vsel %vm2863_vm13, %v8689_v9, 0.0 }
 0x37a   :  { %12325 = vst [vmem:[#allocation19_spill] sm:$0xff] %v8691_v29  ;;  %v2983_v33 = vsel %vm2863_vm13, %v8691_v29, 0.0  ;;  %v8695_v60 = vpop.f32.mrb[62].mxu0 }
 0x37b   :  { %v2984_v27 = vadd.f32 %v2983_v33, %v2982_v25  ;;  %v8697_v4 = vpop.f32.mrb[63].mxu0  ;;  %v2989_v10 = vsel %vm2863_vm13, %v8695_v60, 0.0 }
 0x37c   :  { %12326 = vst [vmem:[#allocation20_spill] sm:$0xff] %v8697_v4  ;;  %v2985_v63 = vsel %vm2863_vm13, %v8697_v4, 0.0 }
 0x37d   :  { %v2986_v0 = vadd.f32 %v2985_v63, %v2984_v27 }
 0x37f   :  { %v2988_v48 = vadd.f32 %v2987_v62, %v2986_v0  ;;  %v12337_v0 = vld [vmem:[#allocation7_spill] sm:$0xff]  ;;  %v12339_v62 = vld [vmem:[#allocation9_spill] sm:$0xff] }
 0x381   :  { %v2990_v19 = vadd.f32 %v2989_v10, %v2988_v48  ;;  %v12341_v48 = vld [vmem:[#allocation12_spill] sm:$0xff] }
 0x383   :  { %v2991_v37 = vrot.slane %v2990_v19, 4 }
 0x385   :  { %v2992_v61 = vadd.f32 %v2991_v37, %v2990_v19  ;;  %v12343_v19 = vld [vmem:[#allocation14_spill] sm:$0xff] }
 0x387   :  { %v2993_v29 = vrot.slane %v2992_v61, 2 }
 0x389   :  { %v2994_v55 = vadd.f32 %v2993_v29, %v2992_v61  ;;  %v12334_v61 = vld [vmem:[#allocation8_spill] sm:$0xff]  ;;  %v12335_v29 = vld [vmem:[#allocation10_spill] sm:$0xff] }
 0x38b   :  { %v2995_v16 = vrot.slane %v2994_v55, 1 }
 0x38d   :  { %v2996_v25 = vadd.f32 %v2995_v16, %v2994_v55  ;;  %v12333_v55 = vld [vmem:[#allocation6_spill] sm:$0xff] }
 0x38f   :  { %v8705_v33 = vmul.f32 0.001953125, %v2996_v25 }
 0x391   :  { %v8709_v4 = vsub.f32 %v8217_v12, %v8705_v33  ;;  %v8713_v27 = vsub.f32 %v8225_v15, %v8705_v33  ;;  %v8717_v63 = vsub.f32 %v8214_v11, %v8705_v33  ;;  %v8721_v37 = vsub.f32 %v8222_v13, %v8705_v33 }
 0x392   :  { %v8725_v16 = vsub.f32 %v8271_v59, %v8705_v33  ;;  %v8729_v12 = vsub.f32 %v8280_v1, %v8705_v33  ;;  %v8733_v15 = vsub.f32 %v8268_v58, %v8705_v33  ;;  %v8737_v11 = vsub.f32 %v8277_v47, %v8705_v33 }
 0x393   :  { %12327 = vst [vmem:[#allocation21_spill] sm:$0xff] %v8709_v4  ;;  %12328 = vst [vmem:[#allocation22_spill] sm:$0xff] %v8713_v27  ;;  %v8741_v13 = vsub.f32 %v8325_v45, %v8705_v33  ;;  %v8745_v59 = vsub.f32 %v8334_v51, %v8705_v33  ;;  %v8749_v1 = vsub.f32 %v8322_v40, %v8705_v33 }
 0x394   :  { %12329 = vst [vmem:[#allocation23_spill] sm:$0xff] %v8717_v63  ;;  %12330 = vst [vmem:[#allocation24_spill] sm:$0xff] %v8721_v37  ;;  %v8753_v58 = vsub.f32 %v8331_v49, %v8705_v33  ;;  %v8757_v47 = vsub.f32 %v8379_v32, %v8705_v33  ;;  %v8761_v45 = vsub.f32 %v8388_v35, %v8705_v33 }
 0x395   :  { %v8765_v51 = vsub.f32 %v8376_v31, %v8705_v33  ;;  %v8769_v40 = vsub.f32 %v8385_v6, %v8705_v33  ;;  %v8773_v49 = vsub.f32 %v8432_v28, %v8705_v33  ;;  %v8777_v32 = vsub.f32 %v8441_v34, %v8705_v33 }
 0x396   :  { %v8781_v35 = vsub.f32 %v8429_v54, %v8705_v33  ;;  %v8785_v31 = vsub.f32 %v8438_v50, %v8705_v33  ;;  %v8789_v6 = vsub.f32 %v8474_v46, %v8705_v33  ;;  %v8793_v28 = vsub.f32 %v8481_v24, %v8705_v33 }
 0x397   :  { %v8797_v34 = vsub.f32 %v8471_v56, %v8705_v33  ;;  %v8801_v54 = vsub.f32 %v8479_v42, %v8705_v33  ;;  %v8805_v50 = vsub.f32 %v8508_v7, %v8705_v33  ;;  %v8809_v46 = vsub.f32 %v8515_v52, %v8705_v33 }
 0x398   :  { %v8813_v24 = vsub.f32 %v8505_v2, %v8705_v33  ;;  %v8817_v56 = vsub.f32 %v8513_v8, %v8705_v33  ;;  %v8821_v42 = vsub.f32 %v8542_v3, %v8705_v33  ;;  %v8825_v7 = vsub.f32 %v8549_v14, %v8705_v33 }
 0x399   :  { %v8829_v52 = vsub.f32 %v8539_v44, %v8705_v33  ;;  %v8833_v2 = vsub.f32 %v8547_v57, %v8705_v33  ;;  %v8837_v8 = vsub.f32 %v8576_v43, %v8705_v33  ;;  %v8841_v3 = vsub.f32 %v8583_v5, %v8705_v33 }
 0x39a   :  { %12331 = vst [vmem:[#allocation25_spill] sm:$0xff] %v8813_v24  ;;  %12332 = vst [vmem:[#allocation26_spill] sm:$0xff] %v8821_v42  ;;  %v8845_v14 = vsub.f32 %v8573_v39, %v8705_v33  ;;  %v8849_v44 = vsub.f32 %v8581_v53, %v8705_v33  ;;  %v8853_v57 = vsub.f32 %v8595_v41, %v8705_v33 }
 0x39b   :  { %v8857_v43 = vsub.f32 %v8601_v21, %v8705_v33  ;;  %v8861_v5 = vsub.f32 %v8593_v20, %v8705_v33  ;;  %v8865_v39 = vsub.f32 %v8599_v17, %v8705_v33  ;;  %v8869_v53 = vsub.f32 %v8611_v36, %v8705_v33 }
 0x39c   :  { %v8873_v41 = vsub.f32 %v8617_v30, %v8705_v33  ;;  %v8877_v21 = vsub.f32 %v8609_v23, %v8705_v33  ;;  %v8881_v20 = vsub.f32 %v8615_v38, %v8705_v33  ;;  %v8885_v17 = vsub.f32 %v8627_v18, %v8705_v33 }
 0x39d   :  { %v8889_v36 = vsub.f32 %v8633_v22, %v8705_v33  ;;  %v8893_v30 = vsub.f32 %v8625_v26, %v8705_v33  ;;  %v8897_v23 = vsub.f32 %v12333_v55, %v8705_v33  ;;  %v8901_v38 = vsub.f32 %v12334_v61, %v8705_v33  ;;  %v12345_v55 = vld [vmem:[#allocation11_spill] sm:$0xff] }
 0x39e   :  { %v8905_v18 = vsub.f32 %v12335_v29, %v8705_v33  ;;  %v8909_v22 = vsub.f32 %v12337_v0, %v8705_v33  ;;  %v8913_v26 = vsub.f32 %v12339_v62, %v8705_v33  ;;  %v8917_v10 = vsub.f32 %v12341_v48, %v8705_v33  ;;  %v12347_v29 = vld [vmem:[#allocation13_spill] sm:$0xff] }
 0x39f   :  { %v8921_v25 = vsub.f32 %v12343_v19, %v8705_v33  ;;  %v8925_v61 = vsub.f32 %v12345_v55, %v8705_v33  ;;  %v8929_v0 = vsub.f32 %v12347_v29, %v8705_v33 }
 0x3a0   :  { %12336 = vst [vmem:[#allocation6_spill] sm:$0xff] %v8905_v18  ;;  %12338 = vst [vmem:[#allocation8_spill] sm:$0xff] %v8909_v22  ;;  %v12349_v22 = vld [vmem:[#allocation16_spill] sm:$0xff] }
 0x3a1   :  { %12340 = vst [vmem:[#allocation10_spill] sm:$0xff] %v8913_v26  ;;  %12342 = vst [vmem:[#allocation7_spill] sm:$0xff] %v8917_v10  ;;  %v8933_v62 = vsub.f32 %v12349_v22, %v8705_v33  ;;  %v12351_v26 = vld [vmem:[#allocation18_spill] sm:$0xff]  ;;  %v12353_v10 = vld [vmem:[#allocation15_spill] sm:$0xff] }
 0x3a2   :  { %12344 = vst [vmem:[#allocation9_spill] sm:$0xff] %v8921_v25  ;;  %12346 = vst [vmem:[#allocation12_spill] sm:$0xff] %v8925_v61  ;;  %v8937_v48 = vsub.f32 %v12351_v26, %v8705_v33  ;;  %v8941_v19 = vsub.f32 %v12353_v10, %v8705_v33  ;;  %v12355_v25 = vld [vmem:[#allocation17_spill] sm:$0xff]  ;;  %v12357_v61 = vld [vmem:[#allocation19_spill] sm:$0xff]  ;;  %v8957_v26 = vsub.f32 %v8689_v9, %v8705_v33 }
 0x3a3   :  { %12348 = vst [vmem:[#allocation14_spill] sm:$0xff] %v8929_v0  ;;  %12350 = vst [vmem:[#allocation11_spill] sm:$0xff] %v8933_v62  ;;  %v8945_v55 = vsub.f32 %v12355_v25, %v8705_v33  ;;  %v8949_v29 = vsub.f32 %v12357_v61, %v8705_v33  ;;  %v12359_v0 = vld [vmem:[#allocation20_spill] sm:$0xff]  ;;  %v8961_v10 = vsub.f32 %v8695_v60, %v8705_v33 }
 0x3a4   :  { %12352 = vst [vmem:[#allocation13_spill] sm:$0xff] %v8937_v48  ;;  %12354 = vst [vmem:[#allocation16_spill] sm:$0xff] %v8941_v19  ;;  %v8953_v22 = vsub.f32 %v12359_v0, %v8705_v33  ;;  %v3062_v25 = vmul.f32 %v8709_v4, %v8709_v4  ;;  %v3064_v61 = vmul.f32 %v8717_v63, %v8717_v63 }
 0x3a5   :  { %12356 = vst [vmem:[#allocation18_spill] sm:$0xff] %v8945_v55  ;;  %12358 = vst [vmem:[#allocation15_spill] sm:$0xff] %v8949_v29  ;;  %v3063_v55 = vmul.f32 %v8713_v27, %v8713_v27  ;;  %v3065_v0 = vmul.f32 %v8721_v37, %v8721_v37  ;;  %v3066_v60 = vmul.f32 %v8725_v16, %v8725_v16 }
 0x3a6   :  { %12360 = vst [vmem:[#allocation17_spill] sm:$0xff] %v8953_v22  ;;  %12361 = vst [vmem:[#allocation19_spill] sm:$0xff] %v8957_v26  ;;  %v3126_v22 = vsel %vm2863_vm13, %v3062_v25, 0.0  ;;  %v3129_v33 = vsel %vm2863_vm13, %v3064_v61, 0.0  ;;  %v3067_v27 = vmul.f32 %v8729_v12, %v8729_v12  ;;  %v3068_v37 = vmul.f32 %v8733_v15, %v8733_v15 }
 0x3a7   :  { %12362 = vst [vmem:[#allocation20_spill] sm:$0xff] %v8961_v10  ;;  %v3127_v9 = vsel %vm2863_vm13, %v3063_v55, 0.0  ;;  %v3131_v10 = vsel %vm2863_vm13, %v3065_v0, 0.0  ;;  %v3133_v25 = vsel %vm2863_vm13, %v3066_v60, 0.0  ;;  %v3069_v55 = vmul.f32 %v8737_v11, %v8737_v11 }
 0x3a8   :  { %v3128_v26 = vadd.f32 %v3127_v9, %v3126_v22  ;;  %v3135_v22 = vsel %vm2863_vm13, %v3067_v27, 0.0  ;;  %v3137_v61 = vsel %vm2863_vm13, %v3068_v37, 0.0  ;;  %v3073_v27 = vmul.f32 %v8753_v58, %v8753_v58 }
 0x3a9   :  { %v3074_v37 = vmul.f32 %v8757_v47, %v8757_v47 }
 0x3aa   :  { %v3130_v4 = vadd.f32 %v3129_v33, %v3128_v26  ;;  %v3070_v26 = vmul.f32 %v8741_v13, %v8741_v13 }
 0x3ac   :  { %v3132_v63 = vadd.f32 %v3131_v10, %v3130_v4  ;;  %v3071_v4 = vmul.f32 %v8745_v59, %v8745_v59  ;;  %v3139_v10 = vsel %vm2863_vm13, %v3069_v55, 0.0  ;;  %v3141_v60 = vsel %vm2863_vm13, %v3070_v26, 0.0 }
 0x3ad   :  { %v3075_v55 = vmul.f32 %v8761_v45, %v8761_v45  ;;  %v3076_v26 = vmul.f32 %v8765_v51, %v8765_v51 }
 0x3ae   :  { %v3134_v29 = vadd.f32 %v3133_v25, %v3132_v63  ;;  %v3072_v63 = vmul.f32 %v8749_v1, %v8749_v1 }
 0x3b0   :  { %v3136_v9 = vadd.f32 %v3135_v22, %v3134_v29  ;;  %v3143_v29 = vsel %vm2863_vm13, %v3071_v4, 0.0  ;;  %v3077_v4 = vmul.f32 %v8769_v40, %v8769_v40 }
 0x3b2   :  { %v3138_v33 = vadd.f32 %v3137_v61, %v3136_v9  ;;  %v3145_v9 = vsel %vm2863_vm13, %v3072_v63, 0.0  ;;  %v3078_v63 = vmul.f32 %v8773_v49, %v8773_v49 }
 0x3b4   :  { %v3140_v0 = vadd.f32 %v3139_v10, %v3138_v33  ;;  %v3147_v33 = vsel %vm2863_vm13, %v3073_v27, 0.0  ;;  %v3079_v27 = vmul.f32 %v8777_v32, %v8777_v32 }
 0x3b6   :  { %v3142_v25 = vadd.f32 %v3141_v60, %v3140_v0  ;;  %v3149_v0 = vsel %vm2863_vm13, %v3074_v37, 0.0  ;;  %v3080_v37 = vmul.f32 %v8781_v35, %v8781_v35 }
 0x3b8   :  { %v3144_v22 = vadd.f32 %v3143_v29, %v3142_v25  ;;  %v3151_v25 = vsel %vm2863_vm13, %v3075_v55, 0.0  ;;  %v3081_v55 = vmul.f32 %v8785_v31, %v8785_v31 }
 0x3ba   :  { %v3146_v61 = vadd.f32 %v3145_v9, %v3144_v22  ;;  %v3153_v22 = vsel %vm2863_vm13, %v3076_v26, 0.0  ;;  %v3082_v26 = vmul.f32 %v8789_v6, %v8789_v6 }
 0x3bc   :  { %v3148_v10 = vadd.f32 %v3147_v33, %v3146_v61  ;;  %v3155_v61 = vsel %vm2863_vm13, %v3077_v4, 0.0  ;;  %v3083_v4 = vmul.f32 %v8793_v28, %v8793_v28 }
 0x3be   :  { %v3150_v60 = vadd.f32 %v3149_v0, %v3148_v10  ;;  %v3157_v10 = vsel %vm2863_vm13, %v3078_v63, 0.0  ;;  %v3084_v63 = vmul.f32 %v8797_v34, %v8797_v34 }
 0x3c0   :  { %v3152_v29 = vadd.f32 %v3151_v25, %v3150_v60  ;;  %v3159_v60 = vsel %vm2863_vm13, %v3079_v27, 0.0  ;;  %v3085_v27 = vmul.f32 %v8801_v54, %v8801_v54 }
 0x3c2   :  { %v3154_v9 = vadd.f32 %v3153_v22, %v3152_v29  ;;  %v3161_v29 = vsel %vm2863_vm13, %v3080_v37, 0.0  ;;  %v3086_v37 = vmul.f32 %v8805_v50, %v8805_v50 }
 0x3c4   :  { %v3156_v33 = vadd.f32 %v3155_v61, %v3154_v9  ;;  %v3163_v9 = vsel %vm2863_vm13, %v3081_v55, 0.0  ;;  %v3087_v55 = vmul.f32 %v8809_v46, %v8809_v46 }
 0x3c6   :  { %v3158_v0 = vadd.f32 %v3157_v10, %v3156_v33  ;;  %v3165_v33 = vsel %vm2863_vm13, %v3082_v26, 0.0  ;;  %v3088_v26 = vmul.f32 %v8813_v24, %v8813_v24 }
 0x3c8   :  { %v3160_v25 = vadd.f32 %v3159_v60, %v3158_v0  ;;  %v3167_v0 = vsel %vm2863_vm13, %v3083_v4, 0.0  ;;  %v12363_v4 = vmov 0.0  }
 0x3c9   :  { %3472 = vst.msk [vmem:[#allocation3 + $0x10] sm:$0x3] %vm3471_vm14, %v12363_v4  ;;  %3475 = vst.msk [vmem:[#allocation3 + $0x1c0] sm:$0x3] %vm3471_vm14, %v12363_v4 }
 0x3ca   :  { %v3162_v22 = vadd.f32 %v3161_v29, %v3160_v25  ;;  %v3169_v25 = vsel %vm2863_vm13, %v3084_v63, 0.0  ;;  %3479 = vst.msk [vmem:[#allocation3 + $0x1a8] sm:$0x3] %vm3471_vm14, %v12363_v4  ;;  %3482 = vst.msk [vmem:[#allocation3 + $0x358] sm:$0x3] %vm3471_vm14, %v12363_v4 }
 0x3cb   :  { %3485 = vst.msk [vmem:[#allocation3 + $0x18] sm:$0x1] %vm3484_vm15, %v12363_v4  ;;  %3486 = vst.msk [vmem:[#allocation3 + $0x30] sm:$0x1] %vm3484_vm15, %v12363_v4 }
 0x3cc   :  { %v3164_v61 = vadd.f32 %v3163_v9, %v3162_v22  ;;  %v3171_v22 = vsel %vm2863_vm13, %v3085_v27, 0.0  ;;  %3487 = vst.msk [vmem:[#allocation3 + $0x48] sm:$0x1] %vm3484_vm15, %v12363_v4  ;;  %3488 = vst.msk [vmem:[#allocation3 + $0x60] sm:$0x1] %vm3484_vm15, %v12363_v4 }
 0x3cd   :  { %3489 = vst.msk [vmem:[#allocation3 + $0x78] sm:$0x1] %vm3484_vm15, %v12363_v4  ;;  %3490 = vst.msk [vmem:[#allocation3 + $0x90] sm:$0x1] %vm3484_vm15, %v12363_v4 }
 0x3ce   :  { %v3166_v10 = vadd.f32 %v3165_v33, %v3164_v61  ;;  %v3173_v61 = vsel %vm2863_vm13, %v3086_v37, 0.0  ;;  %v3089_v33 = vmul.f32 %v8817_v56, %v8817_v56  ;;  %3491 = vst.msk [vmem:[#allocation3 + $0xa8] sm:$0x1] %vm3484_vm15, %v12363_v4  ;;  %3492 = vst.msk [vmem:[#allocation3 + $0xc0] sm:$0x1] %vm3484_vm15, %v12363_v4 }
 0x3cf   :  { %3493 = vst.msk [vmem:[#allocation3 + $0xd8] sm:$0x1] %vm3484_vm15, %v12363_v4  ;;  %3494 = vst.msk [vmem:[#allocation3 + $0xf0] sm:$0x1] %vm3484_vm15, %v12363_v4 }
 0x3d0   :  { %v3168_v60 = vadd.f32 %v3167_v0, %v3166_v10  ;;  %v3175_v10 = vsel %vm2863_vm13, %v3087_v55, 0.0  ;;  %v3090_v0 = vmul.f32 %v8821_v42, %v8821_v42  ;;  %v3093_v42 = vmul.f32 %v8833_v2, %v8833_v2  ;;  %3495 = vst.msk [vmem:[#allocation3 + $0x108] sm:$0x1] %vm3484_vm15, %v12363_v4  ;;  %3496 = vst.msk [vmem:[#allocation3 + $0x120] sm:$0x1] %vm3484_vm15, %v12363_v4 }
 0x3d1   :  { %3497 = vst.msk [vmem:[#allocation3 + $0x138] sm:$0x1] %vm3484_vm15, %v12363_v4  ;;  %3498 = vst.msk [vmem:[#allocation3 + $0x150] sm:$0x1] %vm3484_vm15, %v12363_v4 }
 0x3d2   :  { %v3170_v29 = vadd.f32 %v3169_v25, %v3168_v60  ;;  %v3177_v60 = vsel %vm2863_vm13, %v3088_v26, 0.0  ;;  %v3741_v25 = vld [vmem:[#allocation3 + $0x1] sm:$0xff]  ;;  %v3181_v55 = vsel %vm2863_vm13, %v3090_v0, 0.0  ;;  %v3187_v0 = vsel %vm2863_vm13, %v3093_v42, 0.0  ;;  %3499 = vst.msk [vmem:[#allocation3 + $0x168] sm:$0x1] %vm3484_vm15, %v12363_v4 }
 0x3d3   :  { %v3098_v42 = vmul.f32 %v8853_v57, %v8853_v57  ;;  %3500 = vst.msk [vmem:[#allocation3 + $0x180] sm:$0x1] %vm3484_vm15, %v12363_v4  ;;  %3501 = vst.msk [vmem:[#allocation3 + $0x1c8] sm:$0x1] %vm3484_vm15, %v12363_v4 }
 0x3d4   :  { %v3172_v9 = vadd.f32 %v3171_v22, %v3170_v29  ;;  %v3091_v29 = vmul.f32 %v8825_v7, %v8825_v7  ;;  %v3179_v22 = vsel %vm2863_vm13, %v3089_v33, 0.0  ;;  %v3094_v33 = vmul.f32 %v8837_v8, %v8837_v8  ;;  %3502 = vst.msk [vmem:[#allocation3 + $0x1e0] sm:$0x1] %vm3484_vm15, %v12363_v4  ;;  %3503 = vst.msk [vmem:[#allocation3 + $0x1f8] sm:$0x1] %vm3484_vm15, %v12363_v4 }
 0x3d5   :  { %3504 = vst.msk [vmem:[#allocation3 + $0x210] sm:$0x1] %vm3484_vm15, %v12363_v4  ;;  %3505 = vst.msk [vmem:[#allocation3 + $0x228] sm:$0x1] %vm3484_vm15, %v12363_v4 }
 0x3d6   :  { %v3174_v63 = vadd.f32 %v3173_v61, %v3172_v9  ;;  %v3742_v9 = vld [vmem:[#allocation3 + $0x9] sm:$0xff]  ;;  %v3092_v61 = vmul.f32 %v8829_v52, %v8829_v52  ;;  %v3183_v26 = vsel %vm2863_vm13, %v3091_v29, 0.0  ;;  %v3189_v29 = vsel %vm2863_vm13, %v3094_v33, 0.0  ;;  %3506 = vst.msk [vmem:[#allocation3 + $0x240] sm:$0x1] %vm3484_vm15, %v12363_v4 }
 0x3d7   :  { %v3099_v33 = vmul.f32 %v8857_v43, %v8857_v43  ;;  %3507 = vst.msk [vmem:[#allocation3 + $0x258] sm:$0x1] %vm3484_vm15, %v12363_v4  ;;  %3508 = vst.msk [vmem:[#allocation3 + $0x270] sm:$0x1] %vm3484_vm15, %v12363_v4 }
 0x3d8   :  { %v3176_v27 = vadd.f32 %v3175_v10, %v3174_v63  ;;  %v3805_v63 = vpack.c.bf16 %v3742_v9, %v3741_v25  ;;  %v3096_v25 = vmul.f32 %v8845_v14, %v8845_v14  ;;  %v3998_v9 = vld [vmem:[#allocation3 + $0x2] sm:$0xff]  ;;  %3509 = vst.msk [vmem:[#allocation3 + $0x288] sm:$0x1] %vm3484_vm15, %v12363_v4  ;;  %3510 = vst.msk [vmem:[#allocation3 + $0x2a0] sm:$0x1] %vm3484_vm15, %v12363_v4 }
 0x3d9   :  { %3511 = vst.msk [vmem:[#allocation3 + $0x2b8] sm:$0x1] %vm3484_vm15, %v12363_v4  ;;  %3512 = vst.msk [vmem:[#allocation3 + $0x2d0] sm:$0x1] %vm3484_vm15, %v12363_v4 }
 0x3da   :  { %v3178_v37 = vadd.f32 %v3177_v60, %v3176_v27  ;;  %3869 = vrot.lane.b32.xlu0 %v3805_v63, %s7248_s15  ;;  %v3185_v60 = vsel %vm2863_vm13, %v3092_v61, 0.0  ;;  %3513 = vst.msk [vmem:[#allocation3 + $0x2e8] sm:$0x1] %vm3484_vm15, %v12363_v4  ;;  %3514 = vst.msk [vmem:[#allocation3 + $0x300] sm:$0x1] %vm3484_vm15, %v12363_v4 }
 0x3db   :  { %3515 = vst.msk [vmem:[#allocation3 + $0x318] sm:$0x1] %vm3484_vm15, %v12363_v4  ;;  %3516 = vst.msk [vmem:[#allocation3 + $0x330] sm:$0x1] %vm3484_vm15, %v12363_v4 }
 0x3dc   :  { %v3180_v24 = vadd.f32 %v3179_v22, %v3178_v37  ;;  %v3095_v22 = vmul.f32 %v8841_v3, %v8841_v3  ;;  %3517 = vst.msk [vmem:[#allocation3 + $0x29] sm:$0x1] %vm3484_vm15, %v12363_v4  ;;  %3518 = vst.msk [vmem:[#allocation3 + $0x41] sm:$0x1] %vm3484_vm15, %v12363_v4 }
 0x3dd   :  { %3519 = vst.msk [vmem:[#allocation3 + $0x59] sm:$0x1] %vm3484_vm15, %v12363_v4  ;;  %3520 = vst.msk [vmem:[#allocation3 + $0x71] sm:$0x1] %vm3484_vm15, %v12363_v4 }
 0x3de   :  { %v3182_v10 = vadd.f32 %v3181_v55, %v3180_v24  ;;  %v3999_v55 = vld [vmem:[#allocation3 + $0xa] sm:$0xff]  ;;  %v3191_v61 = vsel %vm2863_vm13, %v3095_v22, 0.0  ;;  %v3197_v22 = vsel %vm2863_vm13, %v3098_v42, 0.0  ;;  %3521 = vst.msk [vmem:[#allocation3 + $0x89] sm:$0x1] %vm3484_vm15, %v12363_v4 }
 0x3df   :  { %3522 = vst.msk [vmem:[#allocation3 + $0xa1] sm:$0x1] %vm3484_vm15, %v12363_v4  ;;  %3523 = vst.msk [vmem:[#allocation3 + $0xb9] sm:$0x1] %vm3484_vm15, %v12363_v4 }
 0x3e0   :  { %v3184_v27 = vadd.f32 %v3183_v26, %v3182_v10  ;;  %v4062_v10 = vpack.c.bf16 %v3999_v55, %v3998_v9  ;;  %v3097_v26 = vmul.f32 %v8849_v44, %v8849_v44  ;;  %v3101_v55 = vmul.f32 %v8865_v39, %v8865_v39  ;;  %3524 = vst.msk [vmem:[#allocation3 + $0xd1] sm:$0x1] %vm3484_vm15, %v12363_v4 }
 0x3e1   :  { %3525 = vst.msk [vmem:[#allocation3 + $0xe9] sm:$0x1] %vm3484_vm15, %v12363_v4  ;;  %3526 = vst.msk [vmem:[#allocation3 + $0x101] sm:$0x1] %vm3484_vm15, %v12363_v4 }
 0x3e2   :  { %v3186_v37 = vadd.f32 %v3185_v60, %v3184_v27  ;;  %4126 = vrot.lane.b32.xlu0 %v4062_v10, %s7250_s17  ;;  %v3193_v60 = vsel %vm2863_vm13, %v3096_v25, 0.0  ;;  %v3102_v25 = vmul.f32 %v8869_v53, %v8869_v53  ;;  %3527 = vst.msk [vmem:[#allocation3 + $0x119] sm:$0x1] %vm3484_vm15, %v12363_v4  ;;  %3528 = vst.msk [vmem:[#allocation3 + $0x131] sm:$0x1] %vm3484_vm15, %v12363_v4 }
 0x3e3   :  { %3529 = vst.msk [vmem:[#allocation3 + $0x149] sm:$0x1] %vm3484_vm15, %v12363_v4  ;;  %3530 = vst.msk [vmem:[#allocation3 + $0x161] sm:$0x1] %vm3484_vm15, %v12363_v4 }
 0x3e4   :  { %v3188_v24 = vadd.f32 %v3187_v0, %v3186_v37  ;;  %v3195_v0 = vsel %vm2863_vm13, %v3097_v26, 0.0  ;;  %v9092_v26 = vmul.f32 %v8873_v41, %v8873_v41  ;;  %3531 = vst.msk [vmem:[#allocation3 + $0x179] sm:$0x1] %vm3484_vm15, %v12363_v4  ;;  %3532 = vst.msk [vmem:[#allocation3 + $0x191] sm:$0x1] %vm3484_vm15, %v12363_v4 }
 0x3e5   :  { %3533 = vst.msk [vmem:[#allocation3 + $0x1d9] sm:$0x1] %vm3484_vm15, %v12363_v4  ;;  %3534 = vst.msk [vmem:[#allocation3 + $0x1f1] sm:$0x1] %vm3484_vm15, %v12363_v4 }
 0x3e6   :  { %v3190_v63 = vadd.f32 %v3189_v29, %v3188_v24  ;;  %v3100_v29 = vmul.f32 %v8861_v5, %v8861_v5  ;;  %3535 = vst.msk [vmem:[#allocation3 + $0x209] sm:$0x1] %vm3484_vm15, %v12363_v4  ;;  %3536 = vst.msk [vmem:[#allocation3 + $0x221] sm:$0x1] %vm3484_vm15, %v12363_v4 }
 0x3e7   :  { %3537 = vst.msk [vmem:[#allocation3 + $0x239] sm:$0x1] %vm3484_vm15, %v12363_v4  ;;  %3538 = vst.msk [vmem:[#allocation3 + $0x251] sm:$0x1] %vm3484_vm15, %v12363_v4 }
 0x3e8   :  { %v3192_v27 = vadd.f32 %v3191_v61, %v3190_v63  ;;  %v3199_v63 = vsel %vm2863_vm13, %v3099_v33, 0.0  ;;  %v3201_v61 = vsel %vm2863_vm13, %v3100_v29, 0.0  ;;  %v9102_v33 = vsel %vm2863_vm13, %v3102_v25, 0.0  ;;  %3539 = vst.msk [vmem:[#allocation3 + $0x269] sm:$0x1] %vm3484_vm15, %v12363_v4 }
 0x3e9   :  { %3540 = vst.msk [vmem:[#allocation3 + $0x281] sm:$0x1] %vm3484_vm15, %v12363_v4  ;;  %3541 = vst.msk [vmem:[#allocation3 + $0x299] sm:$0x1] %vm3484_vm15, %v12363_v4  ;;  %v3207_v29 = vsel %vm2863_vm13, %v9092_v26, 0.0 }
 0x3ea   :  { %v3194_v37 = vadd.f32 %v3193_v60, %v3192_v27  ;;  %v3203_v60 = vsel %vm2863_vm13, %v3101_v55, 0.0  ;;  %3542 = vst.msk [vmem:[#allocation3 + $0x2b1] sm:$0x1] %vm3484_vm15, %v12363_v4  ;;  %3543 = vst.msk [vmem:[#allocation3 + $0x2c9] sm:$0x1] %vm3484_vm15, %v12363_v4 }
 0x3eb   :  { %3544 = vst.msk [vmem:[#allocation3 + $0x2e1] sm:$0x1] %vm3484_vm15, %v12363_v4  ;;  %3545 = vst.msk [vmem:[#allocation3 + $0x2f9] sm:$0x1] %vm3484_vm15, %v12363_v4 }
 0x3ec   :  { %v3196_v24 = vadd.f32 %v3195_v0, %v3194_v37  ;;  %v9099_v37 = vmul.f32 %v8877_v21, %v8877_v21  ;;  %3546 = vst.msk [vmem:[#allocation3 + $0x311] sm:$0x1] %vm3484_vm15, %v12363_v4  ;;  %3547 = vst.msk [vmem:[#allocation3 + $0x329] sm:$0x1] %vm3484_vm15, %v12363_v4 }
 0x3ed   :  { %3548 = vst.msk [vmem:[#allocation3 + $0x341] sm:$0x1] %vm3484_vm15, %v12363_v4  ;;  %v3107_v4 = vmul.f32 %v8889_v36, %v8889_v36 }
 0x3ee   :  { %v3198_v9 = vadd.f32 %v3197_v22, %v3196_v24  ;;  %v3105_v24 = vmul.f32 %v8881_v20, %v8881_v20  ;;  %v3209_v55 = vsel %vm2863_vm13, %v9099_v37, 0.0  ;;  %v3110_v37 = vmul.f32 %v8901_v38, %v8901_v38 }
 0x3f0   :  { %v3200_v10 = vadd.f32 %v3199_v63, %v3198_v9  ;;  %v3106_v9 = vmul.f32 %v8885_v17, %v8885_v17 }
 0x3f2   :  { %v3202_v27 = vadd.f32 %v3201_v61, %v3200_v10  ;;  %v3211_v10 = vsel %vm2863_vm13, %v3105_v24, 0.0  ;;  %v3108_v61 = vmul.f32 %v8893_v30, %v8893_v30  ;;  %v3111_v24 = vmul.f32 %v8905_v18, %v8905_v18 }
 0x3f4   :  { %v9095_v42 = vadd.f32 %v3203_v60, %v3202_v27  ;;  %v3213_v27 = vsel %vm2863_vm13, %v3106_v9, 0.0  ;;  %v3109_v60 = vmul.f32 %v8897_v23, %v8897_v23  ;;  %v12364_v9 = vld [vmem:[#allocation8_spill] sm:$0xff] }
 0x3f6   :  { %v3206_v0 = vadd.f32 %v9102_v33, %v9095_v42  ;;  %v3215_v42 = vsel %vm2863_vm13, %v3107_v4, 0.0  ;;  %v12365_v4 = vld [vmem:[#allocation10_spill] sm:$0xff] }
 0x3f8   :  { %v3208_v22 = vadd.f32 %v3207_v29, %v3206_v0  ;;  %v3217_v0 = vsel %vm2863_vm13, %v3108_v61, 0.0  ;;  %v12366_v61 = vld [vmem:[#allocation7_spill] sm:$0xff] }
 0x3fa   :  { %v3210_v63 = vadd.f32 %v3209_v55, %v3208_v22  ;;  %v3219_v22 = vsel %vm2863_vm13, %v3109_v60, 0.0  ;;  %v12367_v60 = vld [vmem:[#allocation9_spill] sm:$0xff] }
 0x3fc   :  { %v3212_v25 = vadd.f32 %v3211_v10, %v3210_v63  ;;  %v3112_v63 = vmul.f32 %v12364_v9, %v12364_v9  ;;  %v3221_v10 = vsel %vm2863_vm13, %v3110_v37, 0.0  ;;  %v12368_v37 = vld [vmem:[#allocation12_spill] sm:$0xff] }
 0x3fe   :  { %v3214_v26 = vadd.f32 %v3213_v27, %v3212_v25  ;;  %v3113_v27 = vmul.f32 %v12365_v4, %v12365_v4 }
 0x400   :  { %v3216_v33 = vadd.f32 %v3215_v42, %v3214_v26  ;;  %v3223_v26 = vsel %vm2863_vm13, %v3111_v24, 0.0  ;;  %v12369_v24 = vld [vmem:[#allocation14_spill] sm:$0xff] }
 0x402   :  { %v3218_v29 = vadd.f32 %v3217_v0, %v3216_v33  ;;  %v3114_v33 = vmul.f32 %v12366_v61, %v12366_v61  ;;  %v3225_v0 = vsel %vm2863_vm13, %v3112_v63, 0.0  ;;  %v3118_v63 = vmul.f32 %v8933_v62, %v8933_v62 }
 0x404   :  { %v3220_v55 = vadd.f32 %v3219_v22, %v3218_v29  ;;  %v3115_v29 = vmul.f32 %v12367_v60, %v12367_v60  ;;  %v3227_v22 = vsel %vm2863_vm13, %v3113_v27, 0.0 }
 0x406   :  { %v3222_v25 = vadd.f32 %v3221_v10, %v3220_v55  ;;  %v3116_v55 = vmul.f32 %v12368_v37, %v12368_v37  ;;  %v3229_v10 = vsel %vm2863_vm13, %v3114_v33, 0.0  ;;  %v3237_v33 = vsel %vm2863_vm13, %v3118_v63, 0.0  ;;  %v12373_v63 = vld [vmem:[#allocation19_spill] sm:$0xff] }
 0x408   :  { %v3224_v42 = vadd.f32 %v3223_v26, %v3222_v25  ;;  %v3117_v25 = vmul.f32 %v12369_v24, %v12369_v24  ;;  %v3231_v26 = vsel %vm2863_vm13, %v3115_v29, 0.0  ;;  %v12370_v29 = vld [vmem:[#allocation18_spill] sm:$0xff] }
 0x40a   :  { %v3226_v18 = vadd.f32 %v3225_v0, %v3224_v42  ;;  %v3233_v42 = vsel %vm2863_vm13, %v3116_v55, 0.0  ;;  %v3235_v27 = vsel %vm2863_vm13, %v3117_v25, 0.0  ;;  %v12371_v55 = vld [vmem:[#allocation15_spill] sm:$0xff]  ;;  %v12372_v25 = vld [vmem:[#allocation17_spill] sm:$0xff] }
 0x40c   :  { %v3228_v9 = vadd.f32 %v3227_v22, %v3226_v18  ;;  %v3119_v18 = vmul.f32 %v8937_v48, %v8937_v48 }
 0x40e   :  { %v3230_v4 = vadd.f32 %v3229_v10, %v3228_v9  ;;  %v3120_v9 = vmul.f32 %v8941_v19, %v8941_v19 }
 0x410   :  { %v3232_v61 = vadd.f32 %v3231_v26, %v3230_v4  ;;  %v3121_v4 = vmul.f32 %v12370_v29, %v12370_v29  ;;  %v3239_v26 = vsel %vm2863_vm13, %v3119_v18, 0.0  ;;  %v12374_v18 = vld [vmem:[#allocation20_spill] sm:$0xff] }
 0x412   :  { %v3234_v0 = vadd.f32 %v3233_v42, %v3232_v61  ;;  %v3122_v61 = vmul.f32 %v12371_v55, %v12371_v55  ;;  %v3241_v42 = vsel %vm2863_vm13, %v3120_v9, 0.0 }
 0x414   :  { %v3236_v22 = vadd.f32 %v3235_v27, %v3234_v0  ;;  %v3123_v0 = vmul.f32 %v12372_v25, %v12372_v25  ;;  %v3243_v27 = vsel %vm2863_vm13, %v3121_v4, 0.0 }
 0x416   :  { %v3238_v10 = vadd.f32 %v3237_v33, %v3236_v22  ;;  %v3124_v22 = vmul.f32 %v12373_v63, %v12373_v63  ;;  %v3245_v33 = vsel %vm2863_vm13, %v3122_v61, 0.0 }
 0x418   :  { %v3240_v62 = vadd.f32 %v3239_v26, %v3238_v10  ;;  %v3125_v10 = vmul.f32 %v12374_v18, %v12374_v18  ;;  %v3247_v26 = vsel %vm2863_vm13, %v3123_v0, 0.0 }
 0x41a   :  { %v3242_v48 = vadd.f32 %v3241_v42, %v3240_v62  ;;  %v3249_v62 = vsel %vm2863_vm13, %v3124_v22, 0.0  ;;  %v3251_v42 = vsel %vm2863_vm13, %v3125_v10, 0.0 }
 0x41c   :  { %v3244_v19 = vadd.f32 %v3243_v27, %v3242_v48 }
 0x41e   :  { %v3246_v29 = vadd.f32 %v3245_v33, %v3244_v19  ;;  %v3265_v33 = vlaneseq }
 0x420   :  { %v3248_v55 = vadd.f32 %v3247_v26, %v3246_v29  ;;  %v9301_v18 = vshrl.u32 %v3265_v33, 7  ;;  %v3260_v29 = vld [vmem:[%s12230_s2] sm:$0x1]  ;;  %s7255_s2 = smov 40  }
 0x421   :  { %v12377_v26 = vld [vmem:[#allocation22_spill] sm:$0xff] }
 0x422   :  { %v3250_v9 = vadd.f32 %v3249_v62, %v3248_v55  ;;  %12375 = vst [vmem:[#allocation17_spill] sm:$0xff] %v9301_v18  ;;  %v12274_v55 = vsub.s32 0, %v9301_v18  ;;  %v12394_v18 = vld [vmem:[#allocation11_spill] sm:$0xff] }
 0x424   :  { %v3252_v24 = vadd.f32 %v3251_v42, %v3250_v9  ;;  %v12378_v9 = vld [vmem:[#allocation23_spill] sm:$0xff] }
 0x426   :  { %v3253_v4 = vrot.slane %v3252_v24, 4 }
 0x428   :  { %v3254_v48 = vadd.f32 %v3253_v4, %v3252_v24  ;;  %v12379_v4 = vld [vmem:[#allocation24_spill] sm:$0xff] }
 0x42a   :  { %v3255_v27 = vrot.slane %v3254_v48, 2 }
 0x42c   :  { %v3256_v37 = vadd.f32 %v3255_v27, %v3254_v48 }
 0x42e   :  { %v3257_v63 = vrot.slane %v3256_v37, 1 }
 0x430   :  { %v3258_v60 = vadd.f32 %v3257_v63, %v3256_v37  ;;  %v12376_v63 = vld [vmem:[#allocation21_spill] sm:$0xff] }
 0x432   :  { %v3259_v61 = vmul.f32 0.001953125, %v3258_v60  ;;  %v9314_v60 = vld [vmem:[%s12231_s3] ss:$0 sm:$0xff]  ;;  %s7256_s3 = smov 48  }
 0x434   :  { %v3261_v19 = vadd.f32 1e-05, %v3259_v61 }
 0x436   :  { %7242 = vrsqrt.f32 %v3261_v19 }
 0x440   :  { %v7243_v0 = vpop.eup %7242 }
 0x441   :  { %v3263_v22 = vmul.f32 %v7243_v0, %v3260_v29 }
 0x443   :  { %v9309_v24 = vrot.slane %v3263_v22, %v12274_v55  ;;  %v12380_v22 = vld [vmem:[#allocation25_spill] sm:$0xff]  ;;  %v12392_v55 = vld [vmem:[#allocation14_spill] sm:$0xff] }
 0x445   :  { %v3331_v37 = vmul.f32 %v9309_v24, %v12372_v25  ;;  %v9320_v10 = vmul.f32 %v9309_v24, %v12376_v63  ;;  %v9324_v62 = vmul.f32 %v9309_v24, %v12377_v26  ;;  %v9328_v42 = vmul.f32 %v9309_v24, %v12378_v9  ;;  %v12382_v9 = vld [vmem:[#allocation6_spill] sm:$0xff] }
 0x446   :  { %v9332_v48 = vmul.f32 %v9309_v24, %v12379_v4  ;;  %v9336_v27 = vmul.f32 %v9309_v24, %v8725_v16  ;;  %v9340_v25 = vmul.f32 %v9309_v24, %v8729_v12  ;;  %v9344_v61 = vmul.f32 %v9309_v24, %v8733_v15  ;;  %v12383_v4 = vld [vmem:[#allocation8_spill] sm:$0xff] }
 0x447   :  { %v3402_v19 = vadd.f32 %v9314_v60, %v3331_v37  ;;  %v9349_v33 = vmul.f32 %v9309_v24, %v8737_v11  ;;  %v9353_v29 = vmul.f32 %v9309_v24, %v8741_v13  ;;  %v9357_v16 = vmul.f32 %v9309_v24, %v8745_v59  ;;  %v12381_v37 = vld [vmem:[#allocation26_spill] sm:$0xff] }
 0x448   :  { %v9361_v12 = vmul.f32 %v9309_v24, %v8749_v1  ;;  %v9365_v15 = vmul.f32 %v9309_v24, %v8753_v58  ;;  %v9369_v11 = vmul.f32 %v9309_v24, %v8757_v47  ;;  %v9373_v13 = vmul.f32 %v9309_v24, %v8761_v45 }
 0x449   :  { %v3466_v0 = vmax.f32 %v3402_v19, 0.0  ;;  %v9377_v59 = vmul.f32 %v9309_v24, %v8765_v51  ;;  %v9381_v1 = vmul.f32 %v9309_v24, %v8769_v40  ;;  %v9385_v58 = vmul.f32 %v9309_v24, %v8773_v49  ;;  %v12384_v19 = vld [vmem:[#allocation10_spill] sm:$0xff] }
 0x44a   :  { %v9389_v47 = vmul.f32 %v9309_v24, %v8777_v32  ;;  %v9393_v45 = vmul.f32 %v9309_v24, %v8781_v35  ;;  %v9397_v51 = vmul.f32 %v9309_v24, %v8785_v31  ;;  %v9401_v40 = vmul.f32 %v9309_v24, %v8789_v6 }
 0x44b   :  { %3610 = vst.msk [vmem:[#allocation3 + $0x321] sm:$0xff] %vm2863_vm13, %v3466_v0  ;;  %v9406_v49 = vmul.f32 %v9309_v24, %v8793_v28  ;;  %v9410_v32 = vmul.f32 %v9309_v24, %v8797_v34  ;;  %v9414_v35 = vmul.f32 %v9309_v24, %v8801_v54  ;;  %v9418_v31 = vmul.f32 %v9309_v24, %v8805_v50  ;;  %v12386_v0 = vld [vmem:[#allocation7_spill] sm:$0xff] }
 0x44c   :  { %v9422_v6 = vmul.f32 %v9309_v24, %v8809_v46  ;;  %v9426_v28 = vmul.f32 %v9309_v24, %v12380_v22  ;;  %v9430_v34 = vmul.f32 %v9309_v24, %v8817_v56  ;;  %v9434_v54 = vmul.f32 %v9309_v24, %v12381_v37  ;;  %v12388_v22 = vld [vmem:[#allocation9_spill] sm:$0xff]  ;;  %v12390_v37 = vld [vmem:[#allocation12_spill] sm:$0xff] }
 0x44d   :  { %v9438_v50 = vmul.f32 %v9309_v24, %v8825_v7  ;;  %v9442_v46 = vmul.f32 %v9309_v24, %v8829_v52  ;;  %v9446_v63 = vmul.f32 %v9309_v24, %v8833_v2  ;;  %v9450_v56 = vmul.f32 %v9309_v24, %v8837_v8 }
 0x44e   :  { %v9454_v26 = vmul.f32 %v9309_v24, %v8841_v3  ;;  %v9458_v7 = vmul.f32 %v9309_v24, %v8845_v14  ;;  %v9462_v52 = vmul.f32 %v9309_v24, %v8849_v44  ;;  %v9466_v2 = vmul.f32 %v9309_v24, %v8853_v57 }
 0x44f   :  { %v9470_v8 = vmul.f32 %v9309_v24, %v8857_v43  ;;  %v9474_v3 = vmul.f32 %v9309_v24, %v8861_v5  ;;  %v9478_v14 = vmul.f32 %v9309_v24, %v8865_v39  ;;  %v9482_v44 = vmul.f32 %v9309_v24, %v8869_v53 }
 0x450   :  { %v9486_v57 = vmul.f32 %v9309_v24, %v8873_v41  ;;  %v9490_v43 = vmul.f32 %v9309_v24, %v8877_v21  ;;  %v9494_v5 = vmul.f32 %v9309_v24, %v8881_v20  ;;  %v9498_v39 = vmul.f32 %v9309_v24, %v8885_v17 }
 0x451   :  { %v9502_v53 = vmul.f32 %v9309_v24, %v8889_v36  ;;  %v9506_v41 = vmul.f32 %v9309_v24, %v8893_v30  ;;  %v9510_v21 = vmul.f32 %v9309_v24, %v8897_v23  ;;  %v9514_v20 = vmul.f32 %v9309_v24, %v8901_v38 }
 0x452   :  { %v9518_v17 = vmul.f32 %v9309_v24, %v12382_v9  ;;  %v9522_v36 = vmul.f32 %v9309_v24, %v12383_v4  ;;  %v9526_v30 = vmul.f32 %v9309_v24, %v12384_v19  ;;  %v9530_v23 = vmul.f32 %v9309_v24, %v12386_v0 }
 0x453   :  { %v9534_v38 = vmul.f32 %v9309_v24, %v12388_v22  ;;  %v9538_v9 = vmul.f32 %v9309_v24, %v12390_v37  ;;  %v9542_v4 = vmul.f32 %v9309_v24, %v12392_v55  ;;  %v9546_v19 = vmul.f32 %v9309_v24, %v12394_v18 }
 0x454   :  { %12385 = vst [vmem:[#allocation21_spill] sm:$0xff] %v9526_v30  ;;  %12387 = vst [vmem:[#allocation22_spill] sm:$0xff] %v9530_v23  ;;  %v12396_v30 = vld [vmem:[#allocation13_spill] sm:$0xff]  ;;  %v12397_v23 = vld [vmem:[#allocation16_spill] sm:$0xff] }
 0x455   :  { %12389 = vst [vmem:[#allocation23_spill] sm:$0xff] %v9534_v38  ;;  %12391 = vst [vmem:[#allocation24_spill] sm:$0xff] %v9538_v9  ;;  %v9550_v0 = vmul.f32 %v9309_v24, %v12396_v30  ;;  %v9554_v22 = vmul.f32 %v9309_v24, %v12397_v23  ;;  %v12398_v38 = vld [vmem:[#allocation18_spill] sm:$0xff]  ;;  %v12399_v9 = vld [vmem:[#allocation15_spill] sm:$0xff]  ;;  %v9574_v23 = vadd.f32 %v9314_v60, %v9320_v10 }
 0x456   :  { %12393 = vst [vmem:[#allocation25_spill] sm:$0xff] %v9542_v4  ;;  %12395 = vst [vmem:[#allocation26_spill] sm:$0xff] %v9546_v19  ;;  %v9558_v37 = vmul.f32 %v9309_v24, %v12398_v38  ;;  %v9562_v55 = vmul.f32 %v9309_v24, %v12399_v9  ;;  %v12400_v4 = vld [vmem:[#allocation19_spill] sm:$0xff]  ;;  %v12401_v19 = vld [vmem:[#allocation20_spill] sm:$0xff]  ;;  %v9578_v38 = vadd.f32 %v9314_v60, %v9324_v62 }
 0x457   :  { %v9566_v18 = vmul.f32 %v9309_v24, %v12400_v4  ;;  %v9570_v30 = vmul.f32 %v9309_v24, %v12401_v19  ;;  %v9582_v9 = vadd.f32 %v9314_v60, %v9328_v42  ;;  %v9586_v4 = vadd.f32 %v9314_v60, %v9332_v48 }
 0x458   :  { %v9590_v24 = vadd.f32 %v9314_v60, %v9336_v27  ;;  %v9594_v10 = vadd.f32 %v9314_v60, %v9340_v25  ;;  %v9598_v62 = vadd.f32 %v9314_v60, %v9344_v61  ;;  %v9602_v42 = vadd.f32 %v9314_v60, %v9349_v33 }
 0x459   :  { %v9606_v48 = vadd.f32 %v9314_v60, %v9353_v29  ;;  %v9610_v27 = vadd.f32 %v9314_v60, %v9357_v16  ;;  %v9614_v25 = vadd.f32 %v9314_v60, %v9361_v12  ;;  %v9618_v61 = vadd.f32 %v9314_v60, %v9365_v15 }
 0x45a   :  { %v9622_v33 = vadd.f32 %v9314_v60, %v9369_v11  ;;  %v9626_v29 = vadd.f32 %v9314_v60, %v9373_v13  ;;  %v9630_v16 = vadd.f32 %v9314_v60, %v9377_v59  ;;  %v9634_v12 = vadd.f32 %v9314_v60, %v9381_v1 }
 0x45b   :  { %v9638_v15 = vadd.f32 %v9314_v60, %v9385_v58  ;;  %v9642_v11 = vadd.f32 %v9314_v60, %v9389_v47  ;;  %v9646_v13 = vadd.f32 %v9314_v60, %v9393_v45  ;;  %v9650_v59 = vadd.f32 %v9314_v60, %v9397_v51  ;;  %v12407_v19 = vld [vmem:[#allocation21_spill] sm:$0xff] }
 0x45c   :  { %v9654_v1 = vadd.f32 %v9314_v60, %v9401_v40  ;;  %v9658_v58 = vadd.f32 %v9314_v60, %v9406_v49  ;;  %v9662_v47 = vadd.f32 %v9314_v60, %v9410_v32  ;;  %v9666_v45 = vadd.f32 %v9314_v60, %v9414_v35 }
 0x45d   :  { %v9670_v51 = vadd.f32 %v9314_v60, %v9418_v31  ;;  %v9674_v40 = vadd.f32 %v9314_v60, %v9422_v6  ;;  %v9678_v49 = vadd.f32 %v9314_v60, %v9426_v28  ;;  %v9682_v32 = vadd.f32 %v9314_v60, %v9430_v34 }
 0x45e   :  { %v9686_v35 = vadd.f32 %v9314_v60, %v9434_v54  ;;  %v9690_v31 = vadd.f32 %v9314_v60, %v9438_v50  ;;  %v9694_v6 = vadd.f32 %v9314_v60, %v9442_v46  ;;  %v9698_v28 = vadd.f32 %v9314_v60, %v9446_v63 }
 0x45f   :  { %v9702_v34 = vadd.f32 %v9314_v60, %v9450_v56  ;;  %v9706_v54 = vadd.f32 %v9314_v60, %v9454_v26  ;;  %v9710_v50 = vadd.f32 %v9314_v60, %v9458_v7  ;;  %v9714_v46 = vadd.f32 %v9314_v60, %v9462_v52 }
 0x460   :  { %v9718_v63 = vadd.f32 %v9314_v60, %v9466_v2  ;;  %v9722_v56 = vadd.f32 %v9314_v60, %v9470_v8  ;;  %v9726_v26 = vadd.f32 %v9314_v60, %v9474_v3  ;;  %v9730_v7 = vadd.f32 %v9314_v60, %v9478_v14 }
 0x461   :  { %v9734_v52 = vadd.f32 %v9314_v60, %v9482_v44  ;;  %v9738_v2 = vadd.f32 %v9314_v60, %v9486_v57  ;;  %v9742_v8 = vadd.f32 %v9314_v60, %v9490_v43  ;;  %v9746_v3 = vadd.f32 %v9314_v60, %v9494_v5 }
 0x462   :  { %v9750_v14 = vadd.f32 %v9314_v60, %v9498_v39  ;;  %v9754_v44 = vadd.f32 %v9314_v60, %v9502_v53  ;;  %v9758_v57 = vadd.f32 %v9314_v60, %v9506_v41  ;;  %v9762_v43 = vadd.f32 %v9314_v60, %v9510_v21 }
 0x463   :  { %v9766_v5 = vadd.f32 %v9314_v60, %v9514_v20  ;;  %v9770_v39 = vadd.f32 %v9314_v60, %v9518_v17  ;;  %v9774_v53 = vadd.f32 %v9314_v60, %v9522_v36  ;;  %v9778_v41 = vadd.f32 %v9314_v60, %v12407_v19 }
 0x464   :  { %12402 = vst [vmem:[#allocation6_spill] sm:$0xff] %v9758_v57  ;;  %12403 = vst [vmem:[#allocation8_spill] sm:$0xff] %v9762_v43  ;;  %v12408_v57 = vld [vmem:[#allocation22_spill] sm:$0xff]  ;;  %v12409_v43 = vld [vmem:[#allocation23_spill] sm:$0xff] }
 0x465   :  { %12404 = vst [vmem:[#allocation10_spill] sm:$0xff] %v9766_v5  ;;  %12405 = vst [vmem:[#allocation7_spill] sm:$0xff] %v9770_v39  ;;  %v9782_v21 = vadd.f32 %v9314_v60, %v12408_v57  ;;  %v9786_v20 = vadd.f32 %v9314_v60, %v12409_v43  ;;  %v12410_v5 = vld [vmem:[#allocation24_spill] sm:$0xff]  ;;  %v12411_v39 = vld [vmem:[#allocation25_spill] sm:$0xff]  ;;  %v9802_v57 = vadd.f32 %v9314_v60, %v9550_v0 }
 0x466   :  { %12406 = vst [vmem:[#allocation9_spill] sm:$0xff] %v9774_v53  ;;  %v9790_v17 = vadd.f32 %v9314_v60, %v12410_v5  ;;  %v9794_v36 = vadd.f32 %v9314_v60, %v12411_v39  ;;  %v12412_v53 = vld [vmem:[#allocation26_spill] sm:$0xff]  ;;  %v9806_v43 = vadd.f32 %v9314_v60, %v9554_v22  ;;  %v9810_v5 = vadd.f32 %v9314_v60, %v9558_v37 }
 0x467   :  { %v9798_v19 = vadd.f32 %v9314_v60, %v12412_v53  ;;  %12413 = vst [vmem:[#allocation12_spill] sm:$0xff] %v9802_v57  ;;  %v9814_v39 = vadd.f32 %v9314_v60, %v9562_v55  ;;  %v9818_v53 = vadd.f32 %v9314_v60, %v9566_v18  ;;  %v9822_v0 = vadd.f32 %v9314_v60, %v9570_v30 }
 0x468   :  { %12414 = vst [vmem:[#allocation14_spill] sm:$0xff] %v9806_v43  ;;  %12415 = vst [vmem:[#allocation11_spill] sm:$0xff] %v9810_v5  ;;  %v3405_v57 = vmax.f32 %v9574_v23, 0.0  ;;  %v3406_v22 = vmax.f32 %v9578_v38, 0.0  ;;  %v3407_v43 = vmax.f32 %v9582_v9, 0.0  ;;  %v3408_v37 = vmax.f32 %v9586_v4, 0.0 }
 0x469   :  { %12416 = vst [vmem:[#allocation13_spill] sm:$0xff] %v9814_v39  ;;  %12417 = vst [vmem:[#allocation16_spill] sm:$0xff] %v9818_v53  ;;  %v3409_v5 = vmax.f32 %v9590_v24, 0.0  ;;  %v3410_v55 = vmax.f32 %v9594_v10, 0.0  ;;  %v3411_v39 = vmax.f32 %v9598_v62, 0.0  ;;  %v3412_v18 = vmax.f32 %v9602_v42, 0.0 }
 0x46a   :  { %v3413_v53 = vmax.f32 %v9606_v48, 0.0  ;;  %v3414_v60 = vmax.f32 %v9610_v27, 0.0  ;;  %v3415_v30 = vmax.f32 %v9614_v25, 0.0  ;;  %3549 = vst.msk [vmem:[#allocation3 + $0x19] sm:$0xff] %vm2863_vm13, %v3405_v57  ;;  %3550 = vst.msk [vmem:[#allocation3 + $0x21] sm:$0xff] %vm2863_vm13, %v3406_v22  ;;  %v3416_v23 = vmax.f32 %v9618_v61, 0.0 }
 0x46b   :  { %3551 = vst.msk [vmem:[#allocation3 + $0x31] sm:$0xff] %vm2863_vm13, %v3407_v43  ;;  %v3417_v38 = vmax.f32 %v9622_v33, 0.0  ;;  %v3418_v9 = vmax.f32 %v9626_v29, 0.0  ;;  %v3419_v4 = vmax.f32 %v9630_v16, 0.0  ;;  %3552 = vst.msk [vmem:[#allocation3 + $0x39] sm:$0xff] %vm2863_vm13, %v3408_v37  ;;  %v3420_v24 = vmax.f32 %v9634_v12, 0.0 }
 0x46c   :  { %3553 = vst.msk [vmem:[#allocation3 + $0x49] sm:$0xff] %vm2863_vm13, %v3409_v5  ;;  %3554 = vst.msk [vmem:[#allocation3 + $0x51] sm:$0xff] %vm2863_vm13, %v3410_v55  ;;  %v3421_v10 = vmax.f32 %v9638_v15, 0.0  ;;  %v3422_v62 = vmax.f32 %v9642_v11, 0.0  ;;  %v3423_v42 = vmax.f32 %v9646_v13, 0.0  ;;  %v3424_v48 = vmax.f32 %v9650_v59, 0.0 }
 0x46d   :  { %3555 = vst.msk [vmem:[#allocation3 + $0x61] sm:$0xff] %vm2863_vm13, %v3411_v39  ;;  %3556 = vst.msk [vmem:[#allocation3 + $0x69] sm:$0xff] %vm2863_vm13, %v3412_v18  ;;  %v3425_v27 = vmax.f32 %v9654_v1, 0.0  ;;  %v3426_v25 = vmax.f32 %v9658_v58, 0.0  ;;  %v3427_v61 = vmax.f32 %v9662_v47, 0.0  ;;  %v3428_v33 = vmax.f32 %v9666_v45, 0.0 }
 0x46e   :  { %3557 = vst.msk [vmem:[#allocation3 + $0x79] sm:$0xff] %vm2863_vm13, %v3413_v53  ;;  %3558 = vst.msk [vmem:[#allocation3 + $0x81] sm:$0xff] %vm2863_vm13, %v3414_v60  ;;  %v3429_v29 = vmax.f32 %v9670_v51, 0.0  ;;  %v3430_v16 = vmax.f32 %v9674_v40, 0.0  ;;  %v3431_v12 = vmax.f32 %v9678_v49, 0.0  ;;  %v3432_v15 = vmax.f32 %v9682_v32, 0.0 }
 0x46f   :  { %3559 = vst.msk [vmem:[#allocation3 + $0x91] sm:$0xff] %vm2863_vm13, %v3415_v30  ;;  %3560 = vst.msk [vmem:[#allocation3 + $0x99] sm:$0xff] %vm2863_vm13, %v3416_v23  ;;  %v3433_v11 = vmax.f32 %v9686_v35, 0.0  ;;  %v3434_v13 = vmax.f32 %v9690_v31, 0.0  ;;  %v3435_v59 = vmax.f32 %v9694_v6, 0.0  ;;  %v3436_v1 = vmax.f32 %v9698_v28, 0.0 }
 0x470   :  { %3561 = vst.msk [vmem:[#allocation3 + $0xa9] sm:$0xff] %vm2863_vm13, %v3417_v38  ;;  %3562 = vst.msk [vmem:[#allocation3 + $0xb1] sm:$0xff] %vm2863_vm13, %v3418_v9  ;;  %v3437_v58 = vmax.f32 %v9702_v34, 0.0  ;;  %v3438_v47 = vmax.f32 %v9706_v54, 0.0  ;;  %v3439_v45 = vmax.f32 %v9710_v50, 0.0  ;;  %v3440_v51 = vmax.f32 %v9714_v46, 0.0 }
 0x471   :  { %3563 = vst.msk [vmem:[#allocation3 + $0xc1] sm:$0xff] %vm2863_vm13, %v3419_v4  ;;  %3564 = vst.msk [vmem:[#allocation3 + $0xc9] sm:$0xff] %vm2863_vm13, %v3420_v24  ;;  %v3441_v40 = vmax.f32 %v9718_v63, 0.0  ;;  %v3442_v49 = vmax.f32 %v9722_v56, 0.0  ;;  %v3443_v32 = vmax.f32 %v9726_v26, 0.0  ;;  %v3444_v35 = vmax.f32 %v9730_v7, 0.0 }
 0x472   :  { %3565 = vst.msk [vmem:[#allocation3 + $0xd9] sm:$0xff] %vm2863_vm13, %v3421_v10  ;;  %3566 = vst.msk [vmem:[#allocation3 + $0xe1] sm:$0xff] %vm2863_vm13, %v3422_v62  ;;  %v3445_v31 = vmax.f32 %v9734_v52, 0.0  ;;  %v3446_v6 = vmax.f32 %v9738_v2, 0.0  ;;  %v3447_v28 = vmax.f32 %v9742_v8, 0.0  ;;  %v3448_v34 = vmax.f32 %v9746_v3, 0.0 }
 0x473   :  { %3567 = vst.msk [vmem:[#allocation3 + $0xf1] sm:$0xff] %vm2863_vm13, %v3423_v42  ;;  %3568 = vst.msk [vmem:[#allocation3 + $0xf9] sm:$0xff] %vm2863_vm13, %v3424_v48  ;;  %v3449_v54 = vmax.f32 %v9750_v14, 0.0  ;;  %v3450_v50 = vmax.f32 %v9754_v44, 0.0  ;;  %v12418_v46 = vld [vmem:[#allocation6_spill] sm:$0xff]  ;;  %v4255_v56 = vld [vmem:[#allocation3 + $0x18] sm:$0xff] }
 0x474   :  { %3569 = vst.msk [vmem:[#allocation3 + $0x109] sm:$0xff] %vm2863_vm13, %v3425_v27  ;;  %3570 = vst.msk [vmem:[#allocation3 + $0x111] sm:$0xff] %vm2863_vm13, %v3426_v25  ;;  %v3451_v63 = vmax.f32 %v12418_v46, 0.0  ;;  %v4256_v26 = vld [vmem:[#allocation3 + $0x20] sm:$0xff]  ;;  %v12419_v7 = vld [vmem:[#allocation8_spill] sm:$0xff]  ;;  %v3456_v39 = vmax.f32 %v9778_v41, 0.0  ;;  %v3870_v27 = vpop.permute.xlu0 %3869 }
 0x475   :  { %3571 = vst.msk [vmem:[#allocation3 + $0x121] sm:$0xff] %vm2863_vm13, %v3427_v61  ;;  %3572 = vst.msk [vmem:[#allocation3 + $0x129] sm:$0xff] %vm2863_vm13, %v3428_v33  ;;  %v3452_v52 = vmax.f32 %v12419_v7, 0.0  ;;  %v12420_v2 = vld [vmem:[#allocation10_spill] sm:$0xff]  ;;  %v12421_v3 = vld [vmem:[#allocation7_spill] sm:$0xff]  ;;  %v3457_v53 = vmax.f32 %v9782_v21, 0.0  ;;  %v4319_v25 = vpack.c.bf16 %v4256_v26, %v4255_v56 }
 0x476   :  { %3573 = vst.msk [vmem:[#allocation3 + $0x139] sm:$0xff] %vm2863_vm13, %v3429_v29  ;;  %3574 = vst.msk [vmem:[#allocation3 + $0x141] sm:$0xff] %vm2863_vm13, %v3430_v16  ;;  %v3453_v8 = vmax.f32 %v12420_v2, 0.0  ;;  %v3454_v14 = vmax.f32 %v12421_v3, 0.0  ;;  %v12422_v57 = vld [vmem:[#allocation9_spill] sm:$0xff]  ;;  %v3744_v5 = vld [vmem:[#allocation3 + $0x21] sm:$0xff] }
 0x477   :  { %3575 = vst.msk [vmem:[#allocation3 + $0x151] sm:$0xff] %vm2863_vm13, %v3431_v12  ;;  %3576 = vst.msk [vmem:[#allocation3 + $0x159] sm:$0xff] %vm2863_vm13, %v3432_v15  ;;  %v3455_v44 = vmax.f32 %v12422_v57, 0.0  ;;  %v3743_v43 = vld [vmem:[#allocation3 + $0x19] sm:$0xff]  ;;  %v3458_v22 = vmax.f32 %v9786_v20, 0.0  ;;  %v3459_v37 = vmax.f32 %v9790_v17, 0.0  ;;  %4383 = vrot.lane.b32.xlu0 %v4319_v25, %s7252_s29 }
 0x478   :  { %3577 = vst.msk [vmem:[#allocation3 + $0x169] sm:$0xff] %vm2863_vm13, %v3433_v11  ;;  %3578 = vst.msk [vmem:[#allocation3 + $0x171] sm:$0xff] %vm2863_vm13, %v3434_v13  ;;  %v4257_v55 = vld [vmem:[#allocation3 + $0x30] sm:$0xff]  ;;  %v4258_v18 = vld [vmem:[#allocation3 + $0x38] sm:$0xff]  ;;  %v3460_v60 = vmax.f32 %v9794_v36, 0.0  ;;  %v3461_v41 = vmax.f32 %v9798_v19, 0.0 }
 0x479   :  { %3579 = vst.msk [vmem:[#allocation3 + $0x181] sm:$0xff] %vm2863_vm13, %v3435_v59  ;;  %3580 = vst.msk [vmem:[#allocation3 + $0x189] sm:$0xff] %vm2863_vm13, %v3436_v1  ;;  %v12423_v30 = vld [vmem:[#allocation12_spill] sm:$0xff]  ;;  %v12424_v23 = vld [vmem:[#allocation14_spill] sm:$0xff]  ;;  %v3468_v62 = vmax.f32 %v9822_v0, 0.0  ;;  %v3806_v0 = vpack.c.bf16 %v3744_v5, %v3743_v43  ;;  %v4320_v33 = vpack.c.bf16 %v4258_v18, %v4257_v55 }
 0x47a   :  { %3581 = vst.msk [vmem:[#allocation3 + $0x1c9] sm:$0xff] %vm2863_vm13, %v3437_v58  ;;  %3582 = vst.msk [vmem:[#allocation3 + $0x1d1] sm:$0xff] %vm2863_vm13, %v3438_v47  ;;  %v3462_v21 = vmax.f32 %v12423_v30, 0.0  ;;  %v3463_v20 = vmax.f32 %v12424_v23, 0.0  ;;  %v3613_v17 = vld [vmem:[#allocation3] sm:$0xff]  ;;  %v3614_v38 = vld [vmem:[#allocation3 + $0x8] sm:$0xff] }
 0x47b   :  { %3583 = vst.msk [vmem:[#allocation3 + $0x1e1] sm:$0xff] %vm2863_vm13, %v3439_v45  ;;  %3584 = vst.msk [vmem:[#allocation3 + $0x1e9] sm:$0xff] %vm2863_vm13, %v3440_v51  ;;  %v12425_v9 = vld [vmem:[#allocation11_spill] sm:$0xff]  ;;  %v12426_v24 = vld [vmem:[#allocation13_spill] sm:$0xff]  ;;  %3871 = vrot.lane.b32.xlu1 %v3806_v0, %s7248_s15  ;;  %v3677_v13 = vpack.c.bf16 %v3614_v38, %v3613_v17  ;;  %4640 = vrot.lane.b32.xlu0 %v3806_v0, %s7254_s12 }
 0x47c   :  { %3585 = vst.msk [vmem:[#allocation3 + $0x1f9] sm:$0xff] %vm2863_vm13, %v3441_v40  ;;  %3586 = vst.msk [vmem:[#allocation3 + $0x201] sm:$0xff] %vm2863_vm13, %v3442_v49  ;;  %v3464_v4 = vmax.f32 %v12425_v9, 0.0  ;;  %v3465_v36 = vmax.f32 %v12426_v24, 0.0  ;;  %v12427_v10 = vld [vmem:[#allocation16_spill] sm:$0xff]  ;;  %v5029_v42 = vld [vmem:[#allocation3 + $0x48] sm:$0xff]  ;;  %v4127_v40 = vpop.permute.xlu0 %4126 }
 0x47d   :  { %3587 = vst.msk [vmem:[#allocation3 + $0x211] sm:$0xff] %vm2863_vm13, %v3443_v32  ;;  %3588 = vst.msk [vmem:[#allocation3 + $0x219] sm:$0xff] %vm2863_vm13, %v3444_v35  ;;  %v3467_v19 = vmax.f32 %v12427_v10, 0.0  ;;  %v5030_v48 = vld [vmem:[#allocation3 + $0x50] sm:$0xff]  ;;  %v4000_v61 = vld [vmem:[#allocation3 + $0x1a] sm:$0xff] }
 0x47e   :  { %3589 = vst.msk [vmem:[#allocation3 + $0x229] sm:$0xff] %vm2863_vm13, %v3445_v31  ;;  %3590 = vst.msk [vmem:[#allocation3 + $0x231] sm:$0xff] %vm2863_vm13, %v3446_v6  ;;  %v4001_v29 = vld [vmem:[#allocation3 + $0x22] sm:$0xff]  ;;  %v9950_v16 = vpack.c.bf16 %v5030_v48, %v5029_v42  ;;  %v5033_v59 = vld [vmem:[#allocation3 + $0x78] sm:$0xff] }
 0x47f   :  { %3591 = vst.msk [vmem:[#allocation3 + $0x241] sm:$0xff] %vm2863_vm13, %v3447_v28  ;;  %3592 = vst.msk [vmem:[#allocation3 + $0x249] sm:$0xff] %vm2863_vm13, %v3448_v34  ;;  %v4261_v12 = vld [vmem:[#allocation3 + $0x60] sm:$0xff]  ;;  %v4262_v15 = vld [vmem:[#allocation3 + $0x68] sm:$0xff]  ;;  %v4063_v58 = vpack.c.bf16 %v4001_v29, %v4000_v61 }
 0x480   :  { %3593 = vst.msk [vmem:[#allocation3 + $0x259] sm:$0xff] %vm2863_vm13, %v3449_v54  ;;  %3594 = vst.msk [vmem:[#allocation3 + $0x261] sm:$0xff] %vm2863_vm13, %v3450_v50  ;;  %v9954_v11 = vpack.c.bf16 %v4262_v15, %v4261_v12  ;;  %v5034_v1 = vld [vmem:[#allocation3 + $0x80] sm:$0xff]  ;;  %v4265_v45 = vld [vmem:[#allocation3 + $0x90] sm:$0xff] }
 0x481   :  { %3595 = vst.msk [vmem:[#allocation3 + $0x271] sm:$0xff] %vm2863_vm13, %v3451_v63  ;;  %3596 = vst.msk [vmem:[#allocation3 + $0x279] sm:$0xff] %vm2863_vm13, %v3452_v52  ;;  %v9960_v47 = vpack.c.bf16 %v5034_v1, %v5033_v59  ;;  %v4266_v51 = vld [vmem:[#allocation3 + $0x98] sm:$0xff]  ;;  %4128 = vrot.lane.b32.xlu1 %v4063_v58, %s7250_s17  ;;  %v5037_v32 = vld [vmem:[#allocation3 + $0xa8] sm:$0xff]  ;;  %4897 = vrot.lane.b32.xlu0 %v4063_v58, %s7255_s2 }
 0x482   :  { %3597 = vst.msk [vmem:[#allocation3 + $0x289] sm:$0xff] %vm2863_vm13, %v3453_v8  ;;  %3598 = vst.msk [vmem:[#allocation3 + $0x291] sm:$0xff] %vm2863_vm13, %v3454_v14  ;;  %v9968_v49 = vpack.c.bf16 %v4266_v51, %v4265_v45  ;;  %v5038_v35 = vld [vmem:[#allocation3 + $0xb0] sm:$0xff]  ;;  %v4515_v28 = vld [vmem:[#allocation3 + $0x39] sm:$0xff] }
 0x483   :  { %3599 = vst.msk [vmem:[#allocation3 + $0x2a1] sm:$0xff] %vm2863_vm13, %v3455_v44  ;;  %3600 = vst.msk [vmem:[#allocation3 + $0x2a9] sm:$0xff] %vm2863_vm13, %v3456_v39  ;;  %v4514_v31 = vld [vmem:[#allocation3 + $0x31] sm:$0xff]  ;;  %v9973_v6 = vpack.c.bf16 %v5038_v35, %v5037_v32  ;;  %v4269_v34 = vld [vmem:[#allocation3 + $0xc0] sm:$0xff] }
 0x484   :  { %3601 = vst.msk [vmem:[#allocation3 + $0x2b9] sm:$0xff] %vm2863_vm13, %v3457_v53  ;;  %3602 = vst.msk [vmem:[#allocation3 + $0x2c1] sm:$0xff] %vm2863_vm13, %v3458_v22  ;;  %v4270_v54 = vld [vmem:[#allocation3 + $0xc8] sm:$0xff]  ;;  %v5041_v46 = vld [vmem:[#allocation3 + $0xd8] sm:$0xff]  ;;  %v4577_v56 = vpack.c.bf16 %v4515_v28, %v4514_v31 }
 0x485   :  { %3603 = vst.msk [vmem:[#allocation3 + $0x2d1] sm:$0xff] %vm2863_vm13, %v3459_v37  ;;  %3604 = vst.msk [vmem:[#allocation3 + $0x2d9] sm:$0xff] %vm2863_vm13, %v3460_v60  ;;  %4385 = vrot.lane.b32.xlu1 %v4320_v33, %s7252_s29  ;;  %v9979_v50 = vpack.c.bf16 %v4270_v54, %v4269_v34  ;;  %v5042_v63 = vld [vmem:[#allocation3 + $0xe0] sm:$0xff]  ;;  %v4771_v26 = vld [vmem:[#allocation3 + $0x32] sm:$0xff]  ;;  %5155 = vrot.lane.b32.xlu0 %v4320_v33, %s7256_s3 }
 0x486   :  { %3605 = vst.msk [vmem:[#allocation3 + $0x2e9] sm:$0xff] %vm2863_vm13, %v3461_v41  ;;  %3606 = vst.msk [vmem:[#allocation3 + $0x2f1] sm:$0xff] %vm2863_vm13, %v3462_v21  ;;  %v9983_v7 = vpack.c.bf16 %v5042_v63, %v5041_v46  ;;  %v4772_v52 = vld [vmem:[#allocation3 + $0x3a] sm:$0xff]  ;;  %v4273_v8 = vld [vmem:[#allocation3 + $0xf0] sm:$0xff] }
 0x487   :  { %3607 = vst.msk [vmem:[#allocation3 + $0x301] sm:$0xff] %vm2863_vm13, %v3463_v20  ;;  %3608 = vst.msk [vmem:[#allocation3 + $0x309] sm:$0xff] %vm2863_vm13, %v3464_v4  ;;  %v7237_v2 = vld [vmem:[%s12232_s4] sm:$0xff]   ;;  %v7238_v3 = vld [vmem:[%s12232_s4 + $0x8] sm:$0xff]   ;;  %v4834_v14 = vpack.c.bf16 %v4772_v52, %v4771_v26 }
 0x488   :  { %3609 = vst.msk [vmem:[#allocation3 + $0x319] sm:$0xff] %vm2863_vm13, %v3465_v36  ;;  %3611 = vst.msk [vmem:[#allocation3 + $0x331] sm:$0xff] %vm2863_vm13, %v3467_v19  ;;  %7145 = vmatprep.subr.bf16.mxu1 %v7237_v2  ;;  %v4274_v57 = vld [vmem:[#allocation3 + $0xf8] sm:$0xff]  ;;  %v7239_v43 = vld [vmem:[%s12232_s4 + $0x10] sm:$0xff]  }
 0x489   :  { %3612 = vst.msk [vmem:[#allocation3 + $0x339] sm:$0xff] %vm2863_vm13, %v3468_v62  ;;  %3710 = vst.msk [vmem:[#allocation5 + $0x8] sm:$0xff] %vm2863_vm13, %v4319_v25  ;;  %4642 = vrot.lane.b32.xlu1 %v4577_v56, %s7254_s12  ;;  %7146 = vmatpush3.bf16.msra.mxu1 %v7237_v2  ;;  %v9997_v44 = vpack.c.bf16 %v4274_v57, %v4273_v8  ;;  %v5543_v5 = vld [vmem:[#allocation3 + $0x4a] sm:$0xff]  ;;  %v5544_v22 = vld [vmem:[#allocation3 + $0x52] sm:$0xff] }
 0x48a   :  { %3711 = vst.msk [vmem:[#allocation5 + $0x10] sm:$0xff] %vm2863_vm13, %v4320_v33  ;;  %3712 = vst.msk [vmem:[#allocation5 + $0x18] sm:$0xff] %vm2863_vm13, %v9950_v16  ;;  %5412 = vrot.lane.b32.xlu0 %v4577_v56, %s7257_s24  ;;  %7147 = vmatprep.subr.bf16.mxu1 %v7238_v3  ;;  %v5045_v39 = vld [vmem:[#allocation3 + $0x108] sm:$0xff]  ;;  %v5046_v53 = vld [vmem:[#allocation3 + $0x110] sm:$0xff]  ;;  %v5606_v23 = vpack.c.bf16 %v5544_v22, %v5543_v5 }
 0x48b   :  { %3709 = vst.msk [vmem:[#allocation5] sm:$0xff] %vm2863_vm13, %v3677_v13  ;;  %3713 = vst.msk [vmem:[#allocation5 + $0x20] sm:$0xff] %vm2863_vm13, %v9954_v11  ;;  %v5286_v37 = vld [vmem:[#allocation3 + $0x49] sm:$0xff]  ;;  %v5287_v55 = vld [vmem:[#allocation3 + $0x51] sm:$0xff]  ;;  %v10006_v18 = vpack.c.bf16 %v5046_v53, %v5045_v39 }
 0x48c   :  { %3966 = vst.msk [vmem:[#allocation5] sm:$0xff] %vm3965_vm0, %v3870_v27  ;;  %v4277_v60 = vld [vmem:[#allocation3 + $0x120] sm:$0xff]  ;;  %v4278_v41 = vld [vmem:[#allocation3 + $0x128] sm:$0xff]  ;;  %v7240_v30 = vld [vmem:[%s12232_s4 + $0x18] sm:$0xff]   ;;  %v5349_v20 = vpack.c.bf16 %v5287_v55, %v5286_v37 }
 0x48d   :  { %4223 = vst.msk [vmem:[#allocation5] sm:$0xff] %vm4222_vm1, %v4127_v40  ;;  %4899 = vrot.lane.b32.xlu1 %v4834_v14, %s7255_s2  ;;  %7148 = vmatpush3.bf16.msra.mxu1 %v7238_v3  ;;  %v10014_v21 = vpack.c.bf16 %v4278_v41, %v4277_v60  ;;  %v5049_v17 = vld [vmem:[#allocation3 + $0x138] sm:$0xff]  ;;  %v5050_v38 = vld [vmem:[#allocation3 + $0x140] sm:$0xff]  ;;  %v4281_v24 = vld [vmem:[#allocation3 + $0x150] sm:$0xff] }
 0x48e   :  { %3714 = vst.msk [vmem:[#allocation5 + $0x28] sm:$0xff] %vm2863_vm13, %v9960_v47  ;;  %3715 = vst.msk [vmem:[#allocation5 + $0x30] sm:$0xff] %vm2863_vm13, %v9968_v49  ;;  %5669 = vrot.lane.b32.xlu0 %v4834_v14, %s7258_s27  ;;  %7149 = vmatprep.subr.bf16.mxu1 %v7239_v43  ;;  %v10018_v9 = vpack.c.bf16 %v5050_v38, %v5049_v17  ;;  %v7241_v4 = vld [vmem:[%s12232_s4 + $0x20] ss:$0 sps:$4 sm:$0xff]   ;;  %v4282_v36 = vld [vmem:[#allocation3 + $0x158] sm:$0xff] }
 0x48f   :  { %3716 = vst.msk [vmem:[#allocation5 + $0x38] sm:$0xff] %vm2863_vm13, %v9973_v6  ;;  %3717 = vst.msk [vmem:[#allocation5 + $0x40] sm:$0xff] %vm2863_vm13, %v9979_v50  ;;  %v10027_v10 = vpack.c.bf16 %v4282_v36, %v4281_v24  ;;  %v5053_v19 = vld [vmem:[#allocation3 + $0x168] sm:$0xff]  ;;  %v5054_v62 = vld [vmem:[#allocation3 + $0x170] sm:$0xff]  ;;  %v5965_v48 = vsel %vm5963_vm2, %v7241_v4, 0 }
 0x490   :  { %3718 = vst.msk [vmem:[#allocation5 + $0x48] sm:$0xff] %vm2863_vm13, %v9983_v7  ;;  %3719 = vst.msk [vmem:[#allocation5 + $0x50] sm:$0xff] %vm2863_vm13, %v9997_v44  ;;  %v10031_v42 = vpack.c.bf16 %v5054_v62, %v5053_v19  ;;  %v4287_v27 = vld [vmem:[#allocation3 + $0x1c8] sm:$0xff]  ;;  %v4288_v25 = vld [vmem:[#allocation3 + $0x1d0] sm:$0xff] }
 0x491   :  { %5157 = vrot.lane.b32.xlu1 %v9950_v16, %s7256_s3  ;;  %3720 = vst.msk [vmem:[#allocation5 + $0x58] sm:$0xff] %vm2863_vm13, %v10006_v18  ;;  %7150 = vmatpush3.bf16.msra.mxu1 %v7239_v43  ;;  %3721 = vst.msk [vmem:[#allocation5 + $0x60] sm:$0xff] %vm2863_vm13, %v10014_v21  ;;  %v10039_v0 = vpack.c.bf16 %v4288_v25, %v4287_v27  ;;  %v4289_v61 = vld [vmem:[#allocation3 + $0x1e0] sm:$0xff]  ;;  %v4290_v33 = vld [vmem:[#allocation3 + $0x1e8] sm:$0xff] }
 0x492   :  { %5671 = vrot.lane.b32.xlu0 %v5606_v23, %s7258_s27  ;;  %7151 = vmatprep.subr.bf16.mxu1 %v7240_v30  ;;  %3722 = vst.msk [vmem:[#allocation5 + $0x68] sm:$0xff] %vm2863_vm13, %v10018_v9  ;;  %3723 = vst.msk [vmem:[#allocation5 + $0x70] sm:$0xff] %vm2863_vm13, %v10027_v10  ;;  %v10044_v29 = vpack.c.bf16 %v4290_v33, %v4289_v61  ;;  %v5061_v12 = vld [vmem:[#allocation3 + $0x1f8] sm:$0xff]  ;;  %v5062_v15 = vld [vmem:[#allocation3 + $0x200] sm:$0xff] }
 0x493   :  { %3724 = vst.msk [vmem:[#allocation5 + $0x78] sm:$0xff] %vm2863_vm13, %v10031_v42  ;;  %3726 = vst.msk [vmem:[#allocation5 + $0x88] sm:$0xff] %vm2863_vm13, %v10039_v0  ;;  %v10048_v13 = vpack.c.bf16 %v5062_v15, %v5061_v12  ;;  %v4294_v59 = vld [vmem:[#allocation3 + $0x218] sm:$0xff]  ;;  %v5065_v58 = vld [vmem:[#allocation3 + $0x228] sm:$0xff] }
 0x494   :  { %3727 = vst.msk [vmem:[#allocation5 + $0x90] sm:$0xff] %vm2863_vm13, %v10044_v29  ;;  %v5066_v45 = vld [vmem:[#allocation3 + $0x230] sm:$0xff]  ;;  %v4518_v51 = vld [vmem:[#allocation3 + $0x61] sm:$0xff]  ;;  %v5069_v54 = vld [vmem:[#allocation3 + $0x258] sm:$0xff] }
 0x495   :  { %5414 = vrot.lane.b32.xlu1 %v5349_v20, %s7257_s24  ;;  %7152 = vmatpush3.bf16.msra.mxu1 %v7240_v30  ;;  %3728 = vst.msk [vmem:[#allocation5 + $0x98] sm:$0xff] %vm2863_vm13, %v10048_v13  ;;  %v4519_v40 = vld [vmem:[#allocation3 + $0x69] sm:$0xff]  ;;  %v10058_v32 = vpack.c.bf16 %v5066_v45, %v5065_v58  ;;  %v4297_v35 = vld [vmem:[#allocation3 + $0x240] sm:$0xff]  ;;  %v4302_v2 = vld [vmem:[#allocation3 + $0x278] sm:$0xff] }
 0x496   :  { %4130 = vrot.lane.b32.xlu0 %v4834_v14, %s7250_s17  ;;  %7220 = vmatprep.subr.msk.bf16.mxu1 %vm5963_vm2, %v7241_v4  ;;  %v4298_v31 = vld [vmem:[#allocation3 + $0x248] sm:$0xff]  ;;  %v4579_v34 = vpack.c.bf16 %v4519_v40, %v4518_v51  ;;  %v5070_v46 = vld [vmem:[#allocation3 + $0x260] sm:$0xff]  ;;  %v4301_v52 = vld [vmem:[#allocation3 + $0x270] sm:$0xff] }
 0x497   :  { %v10065_v28 = vpack.c.bf16 %v4298_v31, %v4297_v35  ;;  %3730 = vst.msk [vmem:[#allocation5 + $0xa8] sm:$0xff] %vm2863_vm13, %v10058_v32  ;;  %v4775_v63 = vld [vmem:[#allocation3 + $0x62] sm:$0xff]  ;;  %v10069_v26 = vpack.c.bf16 %v5070_v46, %v5069_v54  ;;  %v10076_v8 = vpack.c.bf16 %v4302_v2, %v4301_v52  ;;  %v5074_v57 = vld [vmem:[#allocation3 + $0x290] sm:$0xff]  ;;  %v5547_v53 = vld [vmem:[#allocation3 + $0x7a] sm:$0xff] }
 0x498   :  { %v5073_v14 = vld [vmem:[#allocation3 + $0x288] sm:$0xff]  ;;  %v5077_v22 = vld [vmem:[#allocation3 + $0x2b8] sm:$0xff]  ;;  %v5078_v37 = vld [vmem:[#allocation3 + $0x2c0] sm:$0xff] }
 0x499   :  { %3873 = vrot.lane.b32.xlu1 %v4577_v56, %s7248_s15  ;;  %7154 = vmatpush3.bf16.msra.mxu1 %v5965_v48  ;;  %v4776_v56 = vld [vmem:[#allocation3 + $0x6a] sm:$0xff]  ;;  %3731 = vst.msk [vmem:[#allocation5 + $0xb0] sm:$0xff] %vm2863_vm13, %v10065_v28  ;;  %3732 = vst.msk [vmem:[#allocation5 + $0xb8] sm:$0xff] %vm2863_vm13, %v10069_v26  ;;  %v10080_v43 = vpack.c.bf16 %v5074_v57, %v5073_v14  ;;  %v5548_v55 = vld [vmem:[#allocation3 + $0x82] sm:$0xff]  ;;  %v10090_v30 = vpack.c.bf16 %v5078_v37, %v5077_v22 }
 0x49a   :  { %4387 = vrot.lane.b32.xlu0 %v9950_v16, %s7252_s29  ;;  %v4293_v16 = vld [vmem:[#allocation3 + $0x210] sm:$0xff]  ;;  %v4836_v3 = vpack.c.bf16 %v4776_v56, %v4775_v63  ;;  %3733 = vst.msk [vmem:[#allocation5 + $0xc0] sm:$0xff] %vm2863_vm13, %v10076_v8  ;;  %v4306_v5 = vld [vmem:[#allocation3 + $0x2a8] sm:$0xff]  ;;  %v5290_v60 = vld [vmem:[#allocation3 + $0x79] sm:$0xff]  ;;  %v5608_v38 = vpack.c.bf16 %v5548_v55, %v5547_v53 }
 0x49b   :  { %v10054_v1 = vpack.c.bf16 %v4294_v59, %v4293_v16  ;;  %3734 = vst.msk [vmem:[#allocation5 + $0xc8] sm:$0xff] %vm2863_vm13, %v10080_v43  ;;  %v5291_v41 = vld [vmem:[#allocation3 + $0x81] sm:$0xff]  ;;  %3736 = vst.msk [vmem:[#allocation5 + $0xd8] sm:$0xff] %vm2863_vm13, %v10090_v30  ;;  %v5082_v36 = vld [vmem:[#allocation3 + $0x2f0] sm:$0xff] }
 0x49c   :  { %v5351_v4 = vpack.c.bf16 %v5291_v41, %v5290_v60  ;;  %v5081_v24 = vld [vmem:[#allocation3 + $0x2e8] sm:$0xff]  ;;  %v4313_v62 = vld [vmem:[#allocation3 + $0x300] sm:$0xff]  ;;  %v5085_v25 = vld [vmem:[#allocation3 + $0x318] sm:$0xff] }
 0x49d   :  { %3875 = vrot.lane.b32.xlu1 %v5349_v20, %s7248_s15  ;;  %3729 = vst.msk [vmem:[#allocation5 + $0xa0] sm:$0xff] %vm2863_vm13, %v10054_v1  ;;  %v10101_v19 = vpack.c.bf16 %v5082_v36, %v5081_v24  ;;  %v4314_v48 = vld [vmem:[#allocation3 + $0x308] sm:$0xff]  ;;  %v5086_v61 = vld [vmem:[#allocation3 + $0x320] sm:$0xff]  ;;  %v4522_v12 = vld [vmem:[#allocation3 + $0x91] sm:$0xff] }
 0x49e   :  { %4644 = vrot.lane.b32.xlu0 %v5349_v20, %s7254_s12  ;;  %v4310_v20 = vld [vmem:[#allocation3 + $0x2d8] sm:$0xff]  ;;  %v10107_v27 = vpack.c.bf16 %v4314_v48, %v4313_v62  ;;  %v10111_v33 = vpack.c.bf16 %v5086_v61, %v5085_v25  ;;  %v5551_v45 = vld [vmem:[#allocation3 + $0xaa] sm:$0xff]  ;;  %v4783_v63 = vld [vmem:[#allocation3 + $0xc2] sm:$0xff] }
 0x49f   :  { %3738 = vst.msk [vmem:[#allocation5 + $0xe8] sm:$0xff] %vm2863_vm13, %v10101_v19  ;;  %v4523_v15 = vld [vmem:[#allocation3 + $0x99] sm:$0xff]  ;;  %v5294_v40 = vld [vmem:[#allocation3 + $0xa9] sm:$0xff]  ;;  %v5295_v35 = vld [vmem:[#allocation3 + $0xb1] sm:$0xff] }
 0x4a0   :  { %3739 = vst.msk [vmem:[#allocation5 + $0xf0] sm:$0xff] %vm2863_vm13, %v10107_v27  ;;  %3740 = vst.msk [vmem:[#allocation5 + $0xf8] sm:$0xff] %vm2863_vm13, %v10111_v33  ;;  %v4581_v16 = vpack.c.bf16 %v4523_v15, %v4522_v12  ;;  %v4779_v59 = vld [vmem:[#allocation3 + $0x92] sm:$0xff]  ;;  %v4780_v58 = vld [vmem:[#allocation3 + $0x9a] sm:$0xff] }
 0x4a1   :  { %4132 = vrot.lane.b32.xlu1 %v5606_v23, %s7250_s17  ;;  %v5552_v51 = vld [vmem:[#allocation3 + $0xb2] sm:$0xff]  ;;  %v4527_v54 = vld [vmem:[#allocation3 + $0xc9] sm:$0xff]  ;;  %v4788_v61 = vld [vmem:[#allocation3 + $0xfa] sm:$0xff] }
 0x4a2   :  { %4901 = vrot.lane.b32.xlu0 %v5606_v23, %s7255_s2  ;;  %v4309_v23 = vld [vmem:[#allocation3 + $0x2d0] sm:$0xff]  ;;  %v5610_v31 = vpack.c.bf16 %v5552_v51, %v5551_v45  ;;  %v5556_v14 = vld [vmem:[#allocation3 + $0xe2] sm:$0xff]  ;;  %v5298_v57 = vld [vmem:[#allocation3 + $0xd9] sm:$0xff] }
 0x4a3   :  { %v10097_v17 = vpack.c.bf16 %v4310_v20, %v4309_v23  ;;  %v4784_v56 = vld [vmem:[#allocation3 + $0xca] sm:$0xff]  ;;  %v4531_v24 = vld [vmem:[#allocation3 + $0xf9] sm:$0xff] }
 0x4a4   :  { %v4787_v25 = vld [vmem:[#allocation3 + $0xf2] sm:$0xff] }
 0x4a5   :  { %4389 = vrot.lane.b32.xlu1 %v9954_v11, %s7252_s29  ;;  %3737 = vst.msk [vmem:[#allocation5 + $0xe0] sm:$0xff] %vm2863_vm13, %v10097_v17  ;;  %v5560_v45 = vld [vmem:[#allocation3 + $0x112] sm:$0xff] }
 0x4a6   :  { %5159 = vrot.lane.b32.xlu0 %v9954_v11, %s7256_s3  ;;  %v4305_v11 = vld [vmem:[#allocation3 + $0x2a0] sm:$0xff] }
 0x4a7   :  { %v10086_v39 = vpack.c.bf16 %v4306_v5, %v4305_v11  ;;  %v5299_v11 = vld [vmem:[#allocation3 + $0xe1] sm:$0xff] }
 0x4a8   :  { %v5355_v22 = vpack.c.bf16 %v5299_v11, %v5298_v57  ;;  %v4534_v57 = vld [vmem:[#allocation3 + $0x121] sm:$0xff] }
 0x4a9   :  { %4646 = vrot.lane.b32.xlu1 %v4579_v34, %s7254_s12  ;;  %3735 = vst.msk [vmem:[#allocation5 + $0xd0] sm:$0xff] %vm2863_vm13, %v10086_v39 }
 0x4aa   :  { %5416 = vrot.lane.b32.xlu0 %v4579_v34, %s7257_s24 }
 0x4ad   :  { %4903 = vrot.lane.b32.xlu1 %v4836_v3, %s7255_s2 }
 0x4ae   :  { %5673 = vrot.lane.b32.xlu0 %v4836_v3, %s7258_s27 }
 0x4b1   :  { %5161 = vrot.lane.b32.xlu1 %v9960_v47, %s7256_s3 }
 0x4b2   :  { %5675 = vrot.lane.b32.xlu0 %v5608_v38, %s7258_s27 }
 0x4b5   :  { %5418 = vrot.lane.b32.xlu1 %v5351_v4, %s7257_s24 }
 0x4b6   :  { %4134 = vrot.lane.b32.xlu0 %v4836_v3, %s7250_s17  ;;  %v5555_v3 = vld [vmem:[#allocation3 + $0xda] sm:$0xff] }
 0x4b7   :  { %v5612_v53 = vpack.c.bf16 %v5556_v14, %v5555_v3 }
 0x4b9   :  { %3877 = vrot.lane.b32.xlu1 %v4579_v34, %s7248_s15  ;;  %v5353_v34 = vpack.c.bf16 %v5295_v35, %v5294_v40  ;;  %v5302_v40 = vld [vmem:[#allocation3 + $0x109] sm:$0xff]  ;;  %v5303_v35 = vld [vmem:[#allocation3 + $0x111] sm:$0xff] }
 0x4ba   :  { %4391 = vrot.lane.b32.xlu0 %v9960_v47, %s7252_s29  ;;  %v4838_v47 = vpack.c.bf16 %v4780_v58, %v4779_v59  ;;  %v4842_v59 = vpack.c.bf16 %v4788_v61, %v4787_v25 }
 0x4bd   :  { %3879 = vrot.lane.b32.xlu1 %v5351_v4, %s7248_s15 }
 0x4be   :  { %4648 = vrot.lane.b32.xlu0 %v5351_v4, %s7254_s12 }
 0x4c1   :  { %4136 = vrot.lane.b32.xlu1 %v5608_v38, %s7250_s17 }
 0x4c2   :  { %4905 = vrot.lane.b32.xlu0 %v5608_v38, %s7255_s2 }
 0x4c5   :  { %4393 = vrot.lane.b32.xlu1 %v9968_v49, %s7252_s29 }
 0x4c6   :  { %5163 = vrot.lane.b32.xlu0 %v9968_v49, %s7256_s3  ;;  %v4526_v49 = vld [vmem:[#allocation3 + $0xc1] sm:$0xff] }
 0x4c7   :  { %v4583_v46 = vpack.c.bf16 %v4527_v54, %v4526_v49  ;;  %v5357_v54 = vpack.c.bf16 %v5303_v35, %v5302_v40 }
 0x4c9   :  { %4650 = vrot.lane.b32.xlu1 %v4581_v16, %s7254_s12 }
 0x4ca   :  { %5420 = vrot.lane.b32.xlu0 %v4581_v16, %s7257_s24 }
 0x4cd   :  { %4907 = vrot.lane.b32.xlu1 %v4838_v47, %s7255_s2 }
 0x4ce   :  { %5677 = vrot.lane.b32.xlu0 %v4838_v47, %s7258_s27 }
 0x4d1   :  { %5165 = vrot.lane.b32.xlu1 %v9973_v6, %s7256_s3 }
 0x4d2   :  { %5679 = vrot.lane.b32.xlu0 %v5610_v31, %s7258_s27 }
 0x4d5   :  { %5422 = vrot.lane.b32.xlu1 %v5353_v34, %s7257_s24 }
 0x4d6   :  { %4138 = vrot.lane.b32.xlu0 %v4838_v47, %s7250_s17 }
 0x4d9   :  { %3881 = vrot.lane.b32.xlu1 %v4581_v16, %s7248_s15 }
 0x4da   :  { %4395 = vrot.lane.b32.xlu0 %v9973_v6, %s7252_s29  ;;  %v4840_v6 = vpack.c.bf16 %v4784_v56, %v4783_v63 }
 0x4dd   :  { %3883 = vrot.lane.b32.xlu1 %v5353_v34, %s7248_s15 }
 0x4de   :  { %4652 = vrot.lane.b32.xlu0 %v5353_v34, %s7254_s12 }
 0x4e1   :  { %4140 = vrot.lane.b32.xlu1 %v5610_v31, %s7250_s17 }
 0x4e2   :  { %4909 = vrot.lane.b32.xlu0 %v5610_v31, %s7255_s2 }
 0x4e5   :  { %4397 = vrot.lane.b32.xlu1 %v9979_v50, %s7252_s29 }
 0x4e6   :  { %5167 = vrot.lane.b32.xlu0 %v9979_v50, %s7256_s3 }
 0x4e9   :  { %4654 = vrot.lane.b32.xlu1 %v4583_v46, %s7254_s12  ;;  %v4384_v52 = vpop.permute.xlu0 %4383 }
 0x4ea   :  { %5424 = vrot.lane.b32.xlu0 %v4583_v46, %s7257_s24  ;;  %4480 = vst.msk [vmem:[#allocation5] sm:$0xff] %vm4479_vm3, %v4384_v52 }
 0x4ed   :  { %4911 = vrot.lane.b32.xlu1 %v4840_v6, %s7255_s2  ;;  %v3872_v2 = vpop.permute.xlu1 %3871  ;;  %v4641_v50 = vpop.permute.xlu0 %4640 }
 0x4ee   :  { %3967 = vst.msk [vmem:[#allocation5 + $0x8] sm:$0xff] %vm3965_vm0, %v3872_v2  ;;  %5681 = vrot.lane.b32.xlu0 %v4840_v6, %s7258_s27 }
 0x4ef   :  { %4737 = vst.msk [vmem:[#allocation5] sm:$0xff] %vm4736_vm4, %v4641_v50 }
 0x4f1   :  { %5169 = vrot.lane.b32.xlu1 %v9983_v7, %s7256_s3 }
 0x4f2   :  { %5683 = vrot.lane.b32.xlu0 %v5612_v53, %s7258_s27 }
 0x4f3   :  { %v4129_v5 = vpop.permute.xlu1 %4128  ;;  %v4898_v37 = vpop.permute.xlu0 %4897 }
 0x4f4   :  { %4224 = vst.msk [vmem:[#allocation5 + $0x8] sm:$0xff] %vm4222_vm1, %v4129_v5 }
 0x4f5   :  { %5426 = vrot.lane.b32.xlu1 %v5355_v22, %s7257_s24  ;;  %4994 = vst.msk [vmem:[#allocation5] sm:$0xff] %vm4993_vm5, %v4898_v37 }
 0x4f6   :  { %4142 = vrot.lane.b32.xlu0 %v4840_v6, %s7250_s17 }
 0x4f7   :  { %v4386_v55 = vpop.permute.xlu1 %4385  ;;  %v5156_v60 = vpop.permute.xlu0 %5155 }
 0x4f8   :  { %4481 = vst.msk [vmem:[#allocation5 + $0x8] sm:$0xff] %vm4479_vm3, %v4386_v55 }
 0x4f9   :  { %3885 = vrot.lane.b32.xlu1 %v4583_v46, %s7248_s15  ;;  %5252 = vst.msk [vmem:[#allocation5] sm:$0xff] %vm5251_vm6, %v5156_v60 }
 0x4fa   :  { %4399 = vrot.lane.b32.xlu0 %v9983_v7, %s7252_s29  ;;  %v4530_v7 = vld [vmem:[#allocation3 + $0xf1] sm:$0xff] }
 0x4fb   :  { %v4643_v41 = vpop.permute.xlu1 %4642  ;;  %v4585_v48 = vpack.c.bf16 %v4531_v24, %v4530_v7  ;;  %v5306_v7 = vld [vmem:[#allocation3 + $0x139] sm:$0xff]  ;;  %v5307_v24 = vld [vmem:[#allocation3 + $0x141] sm:$0xff] }
 0x4fc   :  { %4738 = vst.msk [vmem:[#allocation5 + $0x8] sm:$0xff] %vm4736_vm4, %v4643_v41  ;;  %v5413_v23 = vpop.permute.xlu0 %5412  ;;  %v5359_v25 = vpack.c.bf16 %v5307_v24, %v5306_v7 }
 0x4fd   :  { %3887 = vrot.lane.b32.xlu1 %v5355_v22, %s7248_s15  ;;  %5509 = vst.msk [vmem:[#allocation5] sm:$0xff] %vm5508_vm7, %v5413_v23 }
 0x4fe   :  { %4656 = vrot.lane.b32.xlu0 %v5355_v22, %s7254_s12  ;;  %v4792_v22 = vld [vmem:[#allocation3 + $0x12a] sm:$0xff] }
 0x4ff   :  { %v4900_v20 = vpop.permute.xlu1 %4899 }
 0x500   :  { %4995 = vst.msk [vmem:[#allocation5 + $0x8] sm:$0xff] %vm4993_vm5, %v4900_v20  ;;  %v5670_v38 = vpop.permute.xlu0 %5669 }
 0x501   :  { %4144 = vrot.lane.b32.xlu1 %v5612_v53, %s7250_s17  ;;  %5766 = vst.msk [vmem:[#allocation5] sm:$0xff] %vm5765_vm8, %v5670_v38  ;;  %v5563_v38 = vld [vmem:[#allocation3 + $0x13a] sm:$0xff] }
 0x502   :  { %4913 = vrot.lane.b32.xlu0 %v5612_v53, %s7255_s2  ;;  %v4791_v53 = vld [vmem:[#allocation3 + $0x122] sm:$0xff] }
 0x503   :  { %v5158_v4 = vpop.permute.xlu1 %5157  ;;  %v4844_v41 = vpack.c.bf16 %v4792_v22, %v4791_v53 }
 0x504   :  { %5253 = vst.msk [vmem:[#allocation5 + $0x8] sm:$0xff] %vm5251_vm6, %v5158_v4  ;;  %v5672_v36 = vpop.permute.xlu0 %5671 }
 0x505   :  { %4401 = vrot.lane.b32.xlu1 %v9997_v44, %s7252_s29 }
 0x506   :  { %5171 = vrot.lane.b32.xlu0 %v9997_v44, %s7256_s3  ;;  %v5559_v44 = vld [vmem:[#allocation3 + $0x10a] sm:$0xff] }
 0x507   :  { %v5415_v62 = vpop.permute.xlu1 %5414  ;;  %v5614_v49 = vpack.c.bf16 %v5560_v45, %v5559_v44  ;;  %v4538_v45 = vld [vmem:[#allocation3 + $0x151] sm:$0xff] }
 0x508   :  { %5510 = vst.msk [vmem:[#allocation5 + $0x8] sm:$0xff] %vm5508_vm7, %v5415_v62  ;;  %v4131_v12 = vpop.permute.xlu0 %4130  ;;  %v5798_v16 = vld [vmem:[#allocation5] sm:$0xff] }
 0x509   :  { %5767 = vst.msk [vmem:[#allocation5 + $0x8] sm:$0xff] %vm5765_vm8, %v5672_v36  ;;  %4658 = vrot.lane.b32.xlu1 %v4585_v48, %s7254_s12  ;;  %7155 = vmatprep.mubr.msk.bf16.mxu1 %vm5866_vm9, %v5798_v16 }
 0x50a   :  { %5428 = vrot.lane.b32.xlu0 %v4585_v48, %s7257_s24 }
 0x50b   :  { %v3874_v15 = vpop.permute.xlu1 %3873 }
 0x50c   :  { %3968 = vst.msk [vmem:[#allocation5 + $0x10] sm:$0xff] %vm3965_vm0, %v3874_v15  ;;  %v4388_v58 = vpop.permute.xlu0 %4387 }
 0x50d   :  { %4225 = vst.msk [vmem:[#allocation5 + $0x10] sm:$0xff] %vm4222_vm1, %v4131_v12  ;;  %4915 = vrot.lane.b32.xlu1 %v4842_v59, %s7255_s2 }
 0x50e   :  { %4482 = vst.msk [vmem:[#allocation5 + $0x10] sm:$0xff] %vm4479_vm3, %v4388_v58  ;;  %5685 = vrot.lane.b32.xlu0 %v4842_v59, %s7258_s27 }
 0x50f   :  { %v3876_v47 = vpop.permute.xlu1 %3875 }
 0x510   :  { %3969 = vst.msk [vmem:[#allocation5 + $0x18] sm:$0xff] %vm3965_vm0, %v3876_v47  ;;  %v5799_v51 = vld [vmem:[#allocation5 + $0x8] sm:$0xff]  ;;  %v4645_v31 = vpop.permute.xlu0 %4644 }
 0x511   :  { %5173 = vrot.lane.b32.xlu1 %v10006_v18, %s7256_s3  ;;  %7156 = vmatmul.mubr.msk.bf16.vlgmr.msra.gmra.mrb[0].mxu1 %vm5866_vm9, %v5799_v51  ;;  %4739 = vst.msk [vmem:[#allocation5 + $0x10] sm:$0xff] %vm4736_vm4, %v4645_v31  ;;  %v4795_v31 = vld [vmem:[#allocation3 + $0x152] sm:$0xff] }
 0x512   :  { %5687 = vrot.lane.b32.xlu0 %v5614_v49, %s7258_s27 }
 0x513   :  { %v4133_v34 = vpop.permute.xlu1 %4132 }
 0x514   :  { %4226 = vst.msk [vmem:[#allocation5 + $0x18] sm:$0xff] %vm4222_vm1, %v4133_v34  ;;  %v4902_v46 = vpop.permute.xlu0 %4901  ;;  %v4796_v34 = vld [vmem:[#allocation3 + $0x15a] sm:$0xff] }
 0x515   :  { %5430 = vrot.lane.b32.xlu1 %v5357_v54, %s7257_s24  ;;  %4996 = vst.msk [vmem:[#allocation5 + $0x10] sm:$0xff] %vm4993_vm5, %v4902_v46 }
 0x516   :  { %4146 = vrot.lane.b32.xlu0 %v4842_v59, %s7250_s17 }
 0x517   :  { %v4390_v63 = vpop.permute.xlu1 %4389 }
 0x518   :  { %4483 = vst.msk [vmem:[#allocation5 + $0x18] sm:$0xff] %vm4479_vm3, %v4390_v63  ;;  %v5160_v56 = vpop.permute.xlu0 %5159  ;;  %v4846_v63 = vpack.c.bf16 %v4796_v34, %v4795_v31 }
 0x519   :  { %3889 = vrot.lane.b32.xlu1 %v4585_v48, %s7248_s15  ;;  %5254 = vst.msk [vmem:[#allocation5 + $0x10] sm:$0xff] %vm5251_vm6, %v5160_v56 }
 0x51a   :  { %4403 = vrot.lane.b32.xlu0 %v10006_v18, %s7252_s29  ;;  %v4535_v18 = vld [vmem:[#allocation3 + $0x129] sm:$0xff] }
 0x51b   :  { %v4647_v6 = vpop.permute.xlu1 %4646  ;;  %v4587_v5 = vpack.c.bf16 %v4535_v18, %v4534_v57 }
 0x51c   :  { %4740 = vst.msk [vmem:[#allocation5 + $0x18] sm:$0xff] %vm4736_vm4, %v4647_v6  ;;  %v5417_v52 = vpop.permute.xlu0 %5416 }
 0x51d   :  { %3891 = vrot.lane.b32.xlu1 %v5357_v54, %s7248_s15  ;;  %5511 = vst.msk [vmem:[#allocation5 + $0x10] sm:$0xff] %vm5508_vm7, %v5417_v52  ;;  %v5567_v52 = vld [vmem:[#allocation3 + $0x16a] sm:$0xff] }
 0x51e   :  { %4660 = vrot.lane.b32.xlu0 %v5357_v54, %s7254_s12 }
 0x51f   :  { %v4904_v2 = vpop.permute.xlu1 %4903 }
 0x520   :  { %4997 = vst.msk [vmem:[#allocation5 + $0x18] sm:$0xff] %vm4993_vm5, %v4904_v2  ;;  %v5674_v3 = vpop.permute.xlu0 %5673 }
 0x521   :  { %4148 = vrot.lane.b32.xlu1 %v5614_v49, %s7250_s17  ;;  %5768 = vst.msk [vmem:[#allocation5 + $0x10] sm:$0xff] %vm5765_vm8, %v5674_v3  ;;  %v5310_v3 = vld [vmem:[#allocation3 + $0x169] sm:$0xff] }
 0x522   :  { %4917 = vrot.lane.b32.xlu0 %v5614_v49, %s7255_s2 }
 0x523   :  { %v5162_v14 = vpop.permute.xlu1 %5161 }
 0x524   :  { %5255 = vst.msk [vmem:[#allocation5 + $0x18] sm:$0xff] %vm5251_vm6, %v5162_v14  ;;  %v5676_v11 = vpop.permute.xlu0 %5675  ;;  %v5311_v14 = vld [vmem:[#allocation3 + $0x171] sm:$0xff] }
 0x525   :  { %4405 = vrot.lane.b32.xlu1 %v10014_v21, %s7252_s29 }
 0x526   :  { %5175 = vrot.lane.b32.xlu0 %v10014_v21, %s7256_s3  ;;  %v5564_v21 = vld [vmem:[#allocation3 + $0x142] sm:$0xff] }
 0x527   :  { %v5419_v50 = vpop.permute.xlu1 %5418  ;;  %v5616_v48 = vpack.c.bf16 %v5564_v21, %v5563_v38 }
 0x528   :  { %5512 = vst.msk [vmem:[#allocation5 + $0x18] sm:$0xff] %vm5508_vm7, %v5419_v50  ;;  %v4135_v37 = vpop.permute.xlu0 %4134  ;;  %v5800_v60 = vld [vmem:[#allocation5 + $0x10] sm:$0xff]  ;;  %v5361_v50 = vpack.c.bf16 %v5311_v14, %v5310_v3 }
 0x529   :  { %5769 = vst.msk [vmem:[#allocation5 + $0x18] sm:$0xff] %vm5765_vm8, %v5676_v11  ;;  %4662 = vrot.lane.b32.xlu1 %v4587_v5, %s7254_s12  ;;  %7159 = vmatprep.mubr.msk.bf16.mxu1 %vm5866_vm9, %v5800_v60 }
 0x52a   :  { %5432 = vrot.lane.b32.xlu0 %v4587_v5, %s7257_s24 }
 0x52b   :  { %v3878_v55 = vpop.permute.xlu1 %3877 }
 0x52c   :  { %3970 = vst.msk [vmem:[#allocation5 + $0x20] sm:$0xff] %vm3965_vm0, %v3878_v55  ;;  %v4392_v23 = vpop.permute.xlu0 %4391 }
 0x52d   :  { %4227 = vst.msk [vmem:[#allocation5 + $0x20] sm:$0xff] %vm4222_vm1, %v4135_v37  ;;  %4919 = vrot.lane.b32.xlu1 %v4844_v41, %s7255_s2 }
 0x52e   :  { %4484 = vst.msk [vmem:[#allocation5 + $0x20] sm:$0xff] %vm4479_vm3, %v4392_v23  ;;  %5689 = vrot.lane.b32.xlu0 %v4844_v41, %s7258_s27  ;;  %v4286_v23 = vld [vmem:[#allocation3 + $0x188] sm:$0xff] }
 0x52f   :  { %v3880_v20 = vpop.permute.xlu1 %3879 }
 0x530   :  { %3971 = vst.msk [vmem:[#allocation5 + $0x28] sm:$0xff] %vm3965_vm0, %v3880_v20  ;;  %v5801_v4 = vld [vmem:[#allocation5 + $0x18] sm:$0xff]  ;;  %v4649_v36 = vpop.permute.xlu0 %4648 }
 0x531   :  { %5177 = vrot.lane.b32.xlu1 %v10018_v9, %s7256_s3  ;;  %7160 = vmatmul.mubr.msk.bf16.gmra.mrb[4].mxu1 %vm5866_vm9, %v5801_v4  ;;  %4741 = vst.msk [vmem:[#allocation5 + $0x20] sm:$0xff] %vm4736_vm4, %v4649_v36  ;;  %v4543_v4 = vld [vmem:[#allocation3 + $0x189] sm:$0xff] }
 0x532   :  { %5691 = vrot.lane.b32.xlu0 %v5616_v48, %s7258_s27 }
 0x533   :  { %v4137_v62 = vpop.permute.xlu1 %4136 }
 0x534   :  { %4228 = vst.msk [vmem:[#allocation5 + $0x28] sm:$0xff] %vm4222_vm1, %v4137_v62  ;;  %v4906_v61 = vpop.permute.xlu0 %4905  ;;  %v4799_v62 = vld [vmem:[#allocation3 + $0x182] sm:$0xff] }
 0x535   :  { %5434 = vrot.lane.b32.xlu1 %v5359_v25, %s7257_s24  ;;  %4998 = vst.msk [vmem:[#allocation5 + $0x20] sm:$0xff] %vm4993_vm5, %v4906_v61  ;;  %v5058_v61 = vld [vmem:[#allocation3 + $0x1a0] sm:$0xff] }
 0x536   :  { %4150 = vrot.lane.b32.xlu0 %v4844_v41, %s7250_s17  ;;  %v4285_v41 = vld [vmem:[#allocation3 + $0x180] sm:$0xff] }
 0x537   :  { %v4394_v12 = vpop.permute.xlu1 %4393  ;;  %v4334_v21 = vpack.c.bf16 %v4286_v23, %v4285_v41 }
 0x538   :  { %4485 = vst.msk [vmem:[#allocation5 + $0x28] sm:$0xff] %vm4479_vm3, %v4394_v12  ;;  %v5164_v15 = vpop.permute.xlu0 %5163 }
 0x539   :  { %3893 = vrot.lane.b32.xlu1 %v4587_v5, %s7248_s15  ;;  %5256 = vst.msk [vmem:[#allocation5 + $0x20] sm:$0xff] %vm5251_vm6, %v5164_v15 }
 0x53a   :  { %4407 = vrot.lane.b32.xlu0 %v10018_v9, %s7252_s29  ;;  %v4539_v9 = vld [vmem:[#allocation3 + $0x159] sm:$0xff] }
 0x53b   :  { %v4651_v16 = vpop.permute.xlu1 %4650  ;;  %v4589_v35 = vpack.c.bf16 %v4539_v9, %v4538_v45  ;;  %v5571_v45 = vld [vmem:[#allocation3 + $0x19a] sm:$0xff] }
 0x53c   :  { %4742 = vst.msk [vmem:[#allocation5 + $0x28] sm:$0xff] %vm4736_vm4, %v4651_v16  ;;  %v5421_v59 = vpop.permute.xlu0 %5420 }
 0x53d   :  { %3895 = vrot.lane.b32.xlu1 %v5359_v25, %s7248_s15  ;;  %5513 = vst.msk [vmem:[#allocation5 + $0x20] sm:$0xff] %vm5508_vm7, %v5421_v59 }
 0x53e   :  { %4664 = vrot.lane.b32.xlu0 %v5359_v25, %s7254_s12  ;;  %v5057_v25 = vld [vmem:[#allocation3 + $0x198] sm:$0xff] }
 0x53f   :  { %v4908_v58 = vpop.permute.xlu1 %4907 }
 0x540   :  { %4999 = vst.msk [vmem:[#allocation5 + $0x28] sm:$0xff] %vm4993_vm5, %v4908_v58  ;;  %v5678_v47 = vpop.permute.xlu0 %5677  ;;  %v3645_v58 = vld [vmem:[#allocation3 + $0x1b0] sm:$0xff] }
 0x541   :  { %4152 = vrot.lane.b32.xlu1 %v5616_v48, %s7250_s17  ;;  %5770 = vst.msk [vmem:[#allocation5 + $0x20] sm:$0xff] %vm5765_vm8, %v5678_v47  ;;  %v3646_v47 = vld [vmem:[#allocation3 + $0x1b8] sm:$0xff] }
 0x542   :  { %4921 = vrot.lane.b32.xlu0 %v5616_v48, %s7255_s2  ;;  %v4800_v48 = vld [vmem:[#allocation3 + $0x18a] sm:$0xff]  ;;  %v3693_v9 = vpack.c.bf16 %v3646_v47, %v3645_v58  ;;  %v5318_v58 = vld [vmem:[#allocation3 + $0x1f9] sm:$0xff]  ;;  %v5319_v47 = vld [vmem:[#allocation3 + $0x201] sm:$0xff] }
 0x543   :  { %v5166_v44 = vpop.permute.xlu1 %5165  ;;  %v4848_v59 = vpack.c.bf16 %v4800_v48, %v4799_v62 }
 0x544   :  { %5257 = vst.msk [vmem:[#allocation5 + $0x28] sm:$0xff] %vm5251_vm6, %v5166_v44  ;;  %v5680_v51 = vpop.permute.xlu0 %5679  ;;  %v5106_v44 = vpack.c.bf16 %v5058_v61, %v5057_v25 }
 0x545   :  { %4409 = vrot.lane.b32.xlu1 %v10027_v10, %s7252_s29  ;;  %3725 = vst.msk [vmem:[#allocation5 + $0x80] sm:$0xff] %vm2863_vm13, %v3693_v9 }
 0x546   :  { %5179 = vrot.lane.b32.xlu0 %v10027_v10, %s7256_s3  ;;  %v5568_v10 = vld [vmem:[#allocation3 + $0x172] sm:$0xff] }
 0x547   :  { %v5423_v40 = vpop.permute.xlu1 %5422  ;;  %v5618_v11 = vpack.c.bf16 %v5568_v10, %v5567_v52  ;;  %v3774_v52 = vld [vmem:[#allocation3 + $0x1b9] sm:$0xff] }
 0x548   :  { %5514 = vst.msk [vmem:[#allocation5 + $0x28] sm:$0xff] %vm5508_vm7, %v5423_v40  ;;  %v4139_v49 = vpop.permute.xlu0 %4138  ;;  %v5802_v46 = vld [vmem:[#allocation5 + $0x20] sm:$0xff] }
 0x549   :  { %5771 = vst.msk [vmem:[#allocation5 + $0x28] sm:$0xff] %vm5765_vm8, %v5680_v51  ;;  %4666 = vrot.lane.b32.xlu1 %v4589_v35, %s7254_s12  ;;  %7163 = vmatprep.mubr.msk.bf16.mxu1 %vm5866_vm9, %v5802_v46  ;;  %v5572_v51 = vld [vmem:[#allocation3 + $0x1a2] sm:$0xff]  ;;  %v5314_v40 = vld [vmem:[#allocation3 + $0x199] sm:$0xff] }
 0x54a   :  { %5436 = vrot.lane.b32.xlu0 %v4589_v35, %s7257_s24 }
 0x54b   :  { %v3882_v54 = vpop.permute.xlu1 %3881 }
 0x54c   :  { %3972 = vst.msk [vmem:[#allocation5 + $0x30] sm:$0xff] %vm3965_vm0, %v3882_v54  ;;  %v4396_v56 = vpop.permute.xlu0 %4395  ;;  %v5620_v54 = vpack.c.bf16 %v5572_v51, %v5571_v45  ;;  %v5365_v51 = vpack.c.bf16 %v5319_v47, %v5318_v58 }
 0x54d   :  { %4229 = vst.msk [vmem:[#allocation5 + $0x30] sm:$0xff] %vm4222_vm1, %v4139_v49  ;;  %4923 = vrot.lane.b32.xlu1 %v4846_v63, %s7255_s2 }
 0x54e   :  { %4486 = vst.msk [vmem:[#allocation5 + $0x30] sm:$0xff] %vm4479_vm3, %v4396_v56  ;;  %5693 = vrot.lane.b32.xlu0 %v4846_v63, %s7258_s27  ;;  %v4031_v56 = vld [vmem:[#allocation3 + $0x1ba] sm:$0xff] }
 0x54f   :  { %v3884_v6 = vpop.permute.xlu1 %3883 }
 0x550   :  { %3973 = vst.msk [vmem:[#allocation5 + $0x38] sm:$0xff] %vm3965_vm0, %v3884_v6  ;;  %v5803_v2 = vld [vmem:[#allocation5 + $0x28] sm:$0xff]  ;;  %v4653_v57 = vpop.permute.xlu0 %4652  ;;  %v3773_v6 = vld [vmem:[#allocation3 + $0x1b1] sm:$0xff] }
 0x551   :  { %5181 = vrot.lane.b32.xlu1 %v10031_v42, %s7256_s3  ;;  %7164 = vmatmul.mubr.msk.bf16.gmra.mrb[8].mxu1 %vm5866_vm9, %v5803_v2  ;;  %4743 = vst.msk [vmem:[#allocation5 + $0x30] sm:$0xff] %vm4736_vm4, %v4653_v57  ;;  %v3821_v14 = vpack.c.bf16 %v3774_v52, %v3773_v6 }
 0x552   :  { %5695 = vrot.lane.b32.xlu0 %v5618_v11, %s7258_s27 }
 0x553   :  { %v4141_v18 = vpop.permute.xlu1 %4140 }
 0x554   :  { %4230 = vst.msk [vmem:[#allocation5 + $0x38] sm:$0xff] %vm4222_vm1, %v4141_v18  ;;  %v4910_v5 = vpop.permute.xlu0 %4909 }
 0x555   :  { %5438 = vrot.lane.b32.xlu1 %v5361_v50, %s7257_s24  ;;  %5000 = vst.msk [vmem:[#allocation5 + $0x30] sm:$0xff] %vm4993_vm5, %v4910_v5 }
 0x556   :  { %4154 = vrot.lane.b32.xlu0 %v4846_v63, %s7250_s17  ;;  %v4030_v63 = vld [vmem:[#allocation3 + $0x1b2] sm:$0xff] }
 0x557   :  { %v4398_v53 = vpop.permute.xlu1 %4397  ;;  %v4078_v3 = vpack.c.bf16 %v4031_v56, %v4030_v63  ;;  %v4550_v56 = vld [vmem:[#allocation3 + $0x211] sm:$0xff] }
 0x558   :  { %4487 = vst.msk [vmem:[#allocation5 + $0x38] sm:$0xff] %vm4479_vm3, %v4398_v53  ;;  %v5168_v22 = vpop.permute.xlu0 %5167 }
 0x559   :  { %3897 = vrot.lane.b32.xlu1 %v4589_v35, %s7248_s15  ;;  %5258 = vst.msk [vmem:[#allocation5 + $0x30] sm:$0xff] %vm5251_vm6, %v5168_v22  ;;  %v5315_v35 = vld [vmem:[#allocation3 + $0x1a1] sm:$0xff] }
 0x55a   :  { %4411 = vrot.lane.b32.xlu0 %v10031_v42, %s7252_s29  ;;  %v4542_v42 = vld [vmem:[#allocation3 + $0x181] sm:$0xff]  ;;  %v5363_v46 = vpack.c.bf16 %v5315_v35, %v5314_v40 }
 0x55b   :  { %v4655_v37 = vpop.permute.xlu1 %4654  ;;  %v4591_v36 = vpack.c.bf16 %v4543_v4, %v4542_v42 }
 0x55c   :  { %4744 = vst.msk [vmem:[#allocation5 + $0x38] sm:$0xff] %vm4736_vm4, %v4655_v37  ;;  %v5425_v55 = vpop.permute.xlu0 %5424  ;;  %v4032_v37 = vld [vmem:[#allocation3 + $0x1ca] sm:$0xff] }
 0x55d   :  { %3899 = vrot.lane.b32.xlu1 %v5361_v50, %s7248_s15  ;;  %5515 = vst.msk [vmem:[#allocation5 + $0x30] sm:$0xff] %vm5508_vm7, %v5425_v55  ;;  %v4033_v55 = vld [vmem:[#allocation3 + $0x1d2] sm:$0xff] }
 0x55e   :  { %4668 = vrot.lane.b32.xlu0 %v5361_v50, %s7254_s12  ;;  %v3776_v50 = vld [vmem:[#allocation3 + $0x1d1] sm:$0xff]  ;;  %v4079_v23 = vpack.c.bf16 %v4033_v55, %v4032_v37  ;;  %v5322_v37 = vld [vmem:[#allocation3 + $0x229] sm:$0xff] }
 0x55f   :  { %v4912_v60 = vpop.permute.xlu1 %4911  ;;  %v5323_v55 = vld [vmem:[#allocation3 + $0x231] sm:$0xff] }
 0x560   :  { %5001 = vst.msk [vmem:[#allocation5 + $0x38] sm:$0xff] %vm4993_vm5, %v4912_v60  ;;  %v5682_v20 = vpop.permute.xlu0 %5681 }
 0x561   :  { %4156 = vrot.lane.b32.xlu1 %v5618_v11, %s7250_s17  ;;  %5772 = vst.msk [vmem:[#allocation5 + $0x30] sm:$0xff] %vm5765_vm8, %v5682_v20 }
 0x562   :  { %4925 = vrot.lane.b32.xlu0 %v5618_v11, %s7255_s2  ;;  %v3775_v11 = vld [vmem:[#allocation3 + $0x1c9] sm:$0xff] }
 0x563   :  { %v5170_v38 = vpop.permute.xlu1 %5169  ;;  %v3822_v22 = vpack.c.bf16 %v3776_v50, %v3775_v11 }
 0x564   :  { %5259 = vst.msk [vmem:[#allocation5 + $0x38] sm:$0xff] %vm5251_vm6, %v5170_v38  ;;  %v5684_v7 = vpop.permute.xlu0 %5683 }
 0x565   :  { %4413 = vrot.lane.b32.xlu1 %v4334_v21, %s7252_s29 }
 0x566   :  { %5183 = vrot.lane.b32.xlu0 %v4334_v21, %s7256_s3  ;;  %v4547_v21 = vld [vmem:[#allocation3 + $0x1e9] sm:$0xff] }
 0x567   :  { %v5427_v24 = vpop.permute.xlu1 %5426 }
 0x568   :  { %5516 = vst.msk [vmem:[#allocation5 + $0x38] sm:$0xff] %vm5508_vm7, %v5427_v24  ;;  %v4143_v12 = vpop.permute.xlu0 %4142  ;;  %v5804_v16 = vld [vmem:[#allocation5 + $0x30] sm:$0xff]  ;;  %v4803_v24 = vld [vmem:[#allocation3 + $0x1e2] sm:$0xff] }
 0x569   :  { %5773 = vst.msk [vmem:[#allocation5 + $0x38] sm:$0xff] %vm5765_vm8, %v5684_v7  ;;  %4670 = vrot.lane.b32.xlu1 %v4591_v36, %s7254_s12  ;;  %7167 = vmatprep.mubr.msk.bf16.mxu1 %vm5866_vm9, %v5804_v16  ;;  %v5575_v16 = vld [vmem:[#allocation3 + $0x1fa] sm:$0xff] }
 0x56a   :  { %5440 = vrot.lane.b32.xlu0 %v4591_v36, %s7257_s24  ;;  %v4804_v36 = vld [vmem:[#allocation3 + $0x1ea] sm:$0xff] }
 0x56b   :  { %v3886_v15 = vpop.permute.xlu1 %3885  ;;  %v4850_v61 = vpack.c.bf16 %v4804_v36, %v4803_v24 }
 0x56c   :  { %3974 = vst.msk [vmem:[#allocation5 + $0x40] sm:$0xff] %vm3965_vm0, %v3886_v15  ;;  %v4400_v31 = vpop.permute.xlu0 %4399 }
 0x56d   :  { %4231 = vst.msk [vmem:[#allocation5 + $0x40] sm:$0xff] %vm4222_vm1, %v4143_v12  ;;  %4927 = vrot.lane.b32.xlu1 %v4848_v59, %s7255_s2 }
 0x56e   :  { %4488 = vst.msk [vmem:[#allocation5 + $0x40] sm:$0xff] %vm4479_vm3, %v4400_v31  ;;  %5697 = vrot.lane.b32.xlu0 %v4848_v59, %s7258_s27 }
 0x56f   :  { %v3888_v34 = vpop.permute.xlu1 %3887 }
 0x570   :  { %3975 = vst.msk [vmem:[#allocation5 + $0x48] sm:$0xff] %vm3965_vm0, %v3888_v34  ;;  %v5805_v49 = vld [vmem:[#allocation5 + $0x38] sm:$0xff]  ;;  %v4657_v10 = vpop.permute.xlu0 %4656 }
 0x571   :  { %5185 = vrot.lane.b32.xlu1 %v5106_v44, %s7256_s3  ;;  %7168 = vmatmul.mubr.msk.bf16.gmra.mrb[12].mxu1 %vm5866_vm9, %v5805_v49  ;;  %4745 = vst.msk [vmem:[#allocation5 + $0x40] sm:$0xff] %vm4736_vm4, %v4657_v10 }
 0x572   :  { %5699 = vrot.lane.b32.xlu0 %v5620_v54, %s7258_s27 }
 0x573   :  { %v4145_v2 = vpop.permute.xlu1 %4144 }
 0x574   :  { %4232 = vst.msk [vmem:[#allocation5 + $0x48] sm:$0xff] %vm4222_vm1, %v4145_v2  ;;  %v4914_v57 = vpop.permute.xlu0 %4913  ;;  %v4807_v2 = vld [vmem:[#allocation3 + $0x212] sm:$0xff] }
 0x575   :  { %5442 = vrot.lane.b32.xlu1 %v5363_v46, %s7257_s24  ;;  %5002 = vst.msk [vmem:[#allocation5 + $0x40] sm:$0xff] %vm4993_vm5, %v4914_v57 }
 0x576   :  { %4158 = vrot.lane.b32.xlu0 %v4078_v3, %s7250_s17  ;;  %v4808_v3 = vld [vmem:[#allocation3 + $0x21a] sm:$0xff] }
 0x577   :  { %v4402_v18 = vpop.permute.xlu1 %4401  ;;  %v4852_v11 = vpack.c.bf16 %v4808_v3, %v4807_v2  ;;  %v4558_v2 = vld [vmem:[#allocation3 + $0x271] sm:$0xff] }
 0x578   :  { %4489 = vst.msk [vmem:[#allocation5 + $0x48] sm:$0xff] %vm4479_vm3, %v4402_v18  ;;  %v5172_v5 = vpop.permute.xlu0 %5171 }
 0x579   :  { %3901 = vrot.lane.b32.xlu1 %v3821_v14, %s7248_s15  ;;  %5260 = vst.msk [vmem:[#allocation5 + $0x40] sm:$0xff] %vm5251_vm6, %v5172_v5 }
 0x57a   :  { %4415 = vrot.lane.b32.xlu0 %v10039_v0, %s7252_s29  ;;  %v4546_v0 = vld [vmem:[#allocation3 + $0x1e1] sm:$0xff] }
 0x57b   :  { %v4659_v53 = vpop.permute.xlu1 %4658  ;;  %v4593_v7 = vpack.c.bf16 %v4547_v21, %v4546_v0 }
 0x57c   :  { %4746 = vst.msk [vmem:[#allocation5 + $0x48] sm:$0xff] %vm4736_vm4, %v4659_v53  ;;  %v5429_v60 = vpop.permute.xlu0 %5428  ;;  %v5579_v53 = vld [vmem:[#allocation3 + $0x22a] sm:$0xff] }
 0x57d   :  { %3903 = vrot.lane.b32.xlu1 %v3822_v22, %s7248_s15  ;;  %5517 = vst.msk [vmem:[#allocation5 + $0x40] sm:$0xff] %vm5508_vm7, %v5429_v60 }
 0x57e   :  { %4672 = vrot.lane.b32.xlu0 %v3822_v22, %s7254_s12 }
 0x57f   :  { %v4916_v41 = vpop.permute.xlu1 %4915 }
 0x580   :  { %5003 = vst.msk [vmem:[#allocation5 + $0x48] sm:$0xff] %vm4993_vm5, %v4916_v41  ;;  %v5686_v20 = vpop.permute.xlu0 %5685 }
 0x581   :  { %4160 = vrot.lane.b32.xlu1 %v4079_v23, %s7250_s17  ;;  %5774 = vst.msk [vmem:[#allocation5 + $0x40] sm:$0xff] %vm5765_vm8, %v5686_v20  ;;  %v5367_v20 = vpack.c.bf16 %v5323_v55, %v5322_v37 }
 0x582   :  { %4929 = vrot.lane.b32.xlu0 %v4079_v23, %s7255_s2 }
 0x583   :  { %v5174_v38 = vpop.permute.xlu1 %5173 }
 0x584   :  { %5261 = vst.msk [vmem:[#allocation5 + $0x48] sm:$0xff] %vm5251_vm6, %v5174_v38  ;;  %v5688_v42 = vpop.permute.xlu0 %5687 }
 0x585   :  { %4417 = vrot.lane.b32.xlu1 %v10044_v29, %s7252_s29 }
 0x586   :  { %5187 = vrot.lane.b32.xlu0 %v10044_v29, %s7256_s3  ;;  %v5576_v29 = vld [vmem:[#allocation3 + $0x202] sm:$0xff] }
 0x587   :  { %v5431_v4 = vpop.permute.xlu1 %5430  ;;  %v5622_v9 = vpack.c.bf16 %v5576_v29, %v5575_v16 }
 0x588   :  { %5518 = vst.msk [vmem:[#allocation5 + $0x48] sm:$0xff] %vm5508_vm7, %v5431_v4  ;;  %v4147_v62 = vpop.permute.xlu0 %4146  ;;  %v5806_v25 = vld [vmem:[#allocation5 + $0x40] sm:$0xff] }
 0x589   :  { %5775 = vst.msk [vmem:[#allocation5 + $0x48] sm:$0xff] %vm5765_vm8, %v5688_v42  ;;  %4674 = vrot.lane.b32.xlu1 %v4593_v7, %s7254_s12  ;;  %7171 = vmatprep.mubr.msk.bf16.mxu1 %vm5866_vm9, %v5806_v25 }
 0x58a   :  { %5444 = vrot.lane.b32.xlu0 %v4593_v7, %s7257_s24 }
 0x58b   :  { %v3890_v48 = vpop.permute.xlu1 %3889 }
 0x58c   :  { %3976 = vst.msk [vmem:[#allocation5 + $0x50] sm:$0xff] %vm3965_vm0, %v3890_v48  ;;  %v4404_v12 = vpop.permute.xlu0 %4403 }
 0x58d   :  { %4233 = vst.msk [vmem:[#allocation5 + $0x50] sm:$0xff] %vm4222_vm1, %v4147_v62  ;;  %4931 = vrot.lane.b32.xlu1 %v4850_v61, %s7255_s2  ;;  %v4554_v62 = vld [vmem:[#allocation3 + $0x241] sm:$0xff] }
 0x58e   :  { %4490 = vst.msk [vmem:[#allocation5 + $0x50] sm:$0xff] %vm4479_vm3, %v4404_v12  ;;  %5701 = vrot.lane.b32.xlu0 %v4850_v61, %s7258_s27  ;;  %v4811_v12 = vld [vmem:[#allocation3 + $0x242] sm:$0xff] }
 0x58f   :  { %v3892_v15 = vpop.permute.xlu1 %3891 }
 0x590   :  { %3977 = vst.msk [vmem:[#allocation5 + $0x58] sm:$0xff] %vm3965_vm0, %v3892_v15  ;;  %v5807_v59 = vld [vmem:[#allocation5 + $0x48] sm:$0xff]  ;;  %v4661_v44 = vpop.permute.xlu0 %4660 }
 0x591   :  { %5189 = vrot.lane.b32.xlu1 %v10048_v13, %s7256_s3  ;;  %7172 = vmatmul.mubr.msk.bf16.gmra.mrb[16].mxu1 %vm5866_vm9, %v5807_v59  ;;  %4747 = vst.msk [vmem:[#allocation5 + $0x50] sm:$0xff] %vm4736_vm4, %v4661_v44  ;;  %v4812_v15 = vld [vmem:[#allocation3 + $0x24a] sm:$0xff] }
 0x592   :  { %5703 = vrot.lane.b32.xlu0 %v5622_v9, %s7258_s27  ;;  %v4854_v58 = vpack.c.bf16 %v4812_v15, %v4811_v12 }
 0x593   :  { %v4149_v45 = vpop.permute.xlu1 %4148 }
 0x594   :  { %4234 = vst.msk [vmem:[#allocation5 + $0x58] sm:$0xff] %vm4222_vm1, %v4149_v45  ;;  %v4918_v40 = vpop.permute.xlu0 %4917  ;;  %v5583_v45 = vld [vmem:[#allocation3 + $0x25a] sm:$0xff] }
 0x595   :  { %5446 = vrot.lane.b32.xlu1 %v5365_v51, %s7257_s24  ;;  %5004 = vst.msk [vmem:[#allocation5 + $0x50] sm:$0xff] %vm4993_vm5, %v4918_v40  ;;  %v5327_v40 = vld [vmem:[#allocation3 + $0x261] sm:$0xff] }
 0x596   :  { %4162 = vrot.lane.b32.xlu0 %v4850_v61, %s7250_s17 }
 0x597   :  { %v4406_v35 = vpop.permute.xlu1 %4405 }
 0x598   :  { %4491 = vst.msk [vmem:[#allocation5 + $0x58] sm:$0xff] %vm4479_vm3, %v4406_v35  ;;  %v5176_v31 = vpop.permute.xlu0 %5175 }
 0x599   :  { %3905 = vrot.lane.b32.xlu1 %v4593_v7, %s7248_s15  ;;  %5262 = vst.msk [vmem:[#allocation5 + $0x50] sm:$0xff] %vm5251_vm6, %v5176_v31 }
 0x59a   :  { %4419 = vrot.lane.b32.xlu0 %v10048_v13, %s7252_s29  ;;  %v4551_v13 = vld [vmem:[#allocation3 + $0x219] sm:$0xff] }
 0x59b   :  { %v4663_v34 = vpop.permute.xlu1 %4662  ;;  %v4595_v10 = vpack.c.bf16 %v4551_v13, %v4550_v56 }
 0x59c   :  { %4748 = vst.msk [vmem:[#allocation5 + $0x58] sm:$0xff] %vm4736_vm4, %v4663_v34  ;;  %v5433_v49 = vpop.permute.xlu0 %5432 }
 0x59d   :  { %3907 = vrot.lane.b32.xlu1 %v5365_v51, %s7248_s15  ;;  %5519 = vst.msk [vmem:[#allocation5 + $0x50] sm:$0xff] %vm5508_vm7, %v5433_v49 }
 0x59e   :  { %4676 = vrot.lane.b32.xlu0 %v5365_v51, %s7254_s12  ;;  %v5326_v51 = vld [vmem:[#allocation3 + $0x259] sm:$0xff] }
 0x59f   :  { %v4920_v54 = vpop.permute.xlu1 %4919  ;;  %v5369_v49 = vpack.c.bf16 %v5327_v40, %v5326_v51 }
 0x5a0   :  { %5005 = vst.msk [vmem:[#allocation5 + $0x58] sm:$0xff] %vm4993_vm5, %v4920_v54  ;;  %v5690_v46 = vpop.permute.xlu0 %5689 }
 0x5a1   :  { %4164 = vrot.lane.b32.xlu1 %v5622_v9, %s7250_s17  ;;  %5776 = vst.msk [vmem:[#allocation5 + $0x50] sm:$0xff] %vm5765_vm8, %v5690_v46 }
 0x5a2   :  { %4933 = vrot.lane.b32.xlu0 %v5622_v9, %s7255_s2 }
 0x5a3   :  { %v5178_v63 = vpop.permute.xlu1 %5177 }
 0x5a4   :  { %5263 = vst.msk [vmem:[#allocation5 + $0x58] sm:$0xff] %vm5251_vm6, %v5178_v63  ;;  %v5692_v6 = vpop.permute.xlu0 %5691 }
 0x5a5   :  { %4421 = vrot.lane.b32.xlu1 %v10054_v1, %s7252_s29 }
 0x5a6   :  { %5191 = vrot.lane.b32.xlu0 %v10054_v1, %s7256_s3  ;;  %v5580_v1 = vld [vmem:[#allocation3 + $0x232] sm:$0xff] }
 0x5a7   :  { %v5435_v52 = vpop.permute.xlu1 %5434  ;;  %v5624_v23 = vpack.c.bf16 %v5580_v1, %v5579_v53  ;;  %v4815_v53 = vld [vmem:[#allocation3 + $0x272] sm:$0xff]  ;;  %v4816_v1 = vld [vmem:[#allocation3 + $0x27a] sm:$0xff] }
 0x5a8   :  { %5520 = vst.msk [vmem:[#allocation5 + $0x58] sm:$0xff] %vm5508_vm7, %v5435_v52  ;;  %v4151_v14 = vpop.permute.xlu0 %4150  ;;  %v5808_v18 = vld [vmem:[#allocation5 + $0x50] sm:$0xff] }
 0x5a9   :  { %5777 = vst.msk [vmem:[#allocation5 + $0x58] sm:$0xff] %vm5765_vm8, %v5692_v6  ;;  %4678 = vrot.lane.b32.xlu1 %v4595_v10, %s7254_s12  ;;  %7175 = vmatprep.mubr.msk.bf16.mxu1 %vm5866_vm9, %v5808_v18 }
 0x5aa   :  { %5448 = vrot.lane.b32.xlu0 %v4595_v10, %s7257_s24 }
 0x5ab   :  { %v3894_v57 = vpop.permute.xlu1 %3893 }
 0x5ac   :  { %3978 = vst.msk [vmem:[#allocation5 + $0x60] sm:$0xff] %vm3965_vm0, %v3894_v57  ;;  %v4408_v50 = vpop.permute.xlu0 %4407 }
 0x5ad   :  { %4235 = vst.msk [vmem:[#allocation5 + $0x60] sm:$0xff] %vm4222_vm1, %v4151_v14  ;;  %4935 = vrot.lane.b32.xlu1 %v4852_v11, %s7255_s2 }
 0x5ae   :  { %4492 = vst.msk [vmem:[#allocation5 + $0x60] sm:$0xff] %vm4479_vm3, %v4408_v50  ;;  %5705 = vrot.lane.b32.xlu0 %v4852_v11, %s7258_s27 }
 0x5af   :  { %v3896_v5 = vpop.permute.xlu1 %3895 }
 0x5b0   :  { %3979 = vst.msk [vmem:[#allocation5 + $0x68] sm:$0xff] %vm3965_vm0, %v3896_v5  ;;  %v5809_v22 = vld [vmem:[#allocation5 + $0x58] sm:$0xff]  ;;  %v4665_v60 = vpop.permute.xlu0 %4664 }
 0x5b1   :  { %5193 = vrot.lane.b32.xlu1 %v10058_v32, %s7256_s3  ;;  %7176 = vmatmul.mubr.msk.bf16.gmra.mrb[20].mxu1 %vm5866_vm9, %v5809_v22  ;;  %4749 = vst.msk [vmem:[#allocation5 + $0x60] sm:$0xff] %vm4736_vm4, %v4665_v60 }
 0x5b2   :  { %5707 = vrot.lane.b32.xlu0 %v5624_v23, %s7258_s27 }
 0x5b3   :  { %v4153_v41 = vpop.permute.xlu1 %4152 }
 0x5b4   :  { %4236 = vst.msk [vmem:[#allocation5 + $0x68] sm:$0xff] %vm4222_vm1, %v4153_v41  ;;  %v4922_v38 = vpop.permute.xlu0 %4921 }
 0x5b5   :  { %5450 = vrot.lane.b32.xlu1 %v5367_v20, %s7257_s24  ;;  %5006 = vst.msk [vmem:[#allocation5 + $0x60] sm:$0xff] %vm4993_vm5, %v4922_v38 }
 0x5b6   :  { %4166 = vrot.lane.b32.xlu0 %v4852_v11, %s7250_s17 }
 0x5b7   :  { %v4410_v0 = vpop.permute.xlu1 %4409 }
 0x5b8   :  { %4493 = vst.msk [vmem:[#allocation5 + $0x68] sm:$0xff] %vm4479_vm3, %v4410_v0  ;;  %v5180_v21 = vpop.permute.xlu0 %5179 }
 0x5b9   :  { %3909 = vrot.lane.b32.xlu1 %v4595_v10, %s7248_s15  ;;  %5264 = vst.msk [vmem:[#allocation5 + $0x60] sm:$0xff] %vm5251_vm6, %v5180_v21 }
 0x5ba   :  { %4423 = vrot.lane.b32.xlu0 %v10058_v32, %s7252_s29  ;;  %v4555_v32 = vld [vmem:[#allocation3 + $0x249] sm:$0xff] }
 0x5bb   :  { %v4667_v42 = vpop.permute.xlu1 %4666  ;;  %v4597_v61 = vpack.c.bf16 %v4555_v32, %v4554_v62  ;;  %v5331_v62 = vld [vmem:[#allocation3 + $0x291] sm:$0xff] }
 0x5bc   :  { %4750 = vst.msk [vmem:[#allocation5 + $0x68] sm:$0xff] %vm4736_vm4, %v4667_v42  ;;  %v5437_v4 = vpop.permute.xlu0 %5436 }
 0x5bd   :  { %3911 = vrot.lane.b32.xlu1 %v5367_v20, %s7248_s15  ;;  %5521 = vst.msk [vmem:[#allocation5 + $0x60] sm:$0xff] %vm5508_vm7, %v5437_v4  ;;  %v5587_v4 = vld [vmem:[#allocation3 + $0x28a] sm:$0xff] }
 0x5be   :  { %4680 = vrot.lane.b32.xlu0 %v5367_v20, %s7254_s12  ;;  %v4856_v20 = vpack.c.bf16 %v4816_v1, %v4815_v53  ;;  %v5591_v1 = vld [vmem:[#allocation3 + $0x2ba] sm:$0xff] }
 0x5bf   :  { %v4924_v7 = vpop.permute.xlu1 %4923 }
 0x5c0   :  { %5007 = vst.msk [vmem:[#allocation5 + $0x68] sm:$0xff] %vm4993_vm5, %v4924_v7  ;;  %v5694_v24 = vpop.permute.xlu0 %5693 }
 0x5c1   :  { %4168 = vrot.lane.b32.xlu1 %v5624_v23, %s7250_s17  ;;  %5778 = vst.msk [vmem:[#allocation5 + $0x60] sm:$0xff] %vm5765_vm8, %v5694_v24  ;;  %v5588_v24 = vld [vmem:[#allocation3 + $0x292] sm:$0xff] }
 0x5c2   :  { %4937 = vrot.lane.b32.xlu0 %v5624_v23, %s7255_s2 }
 0x5c3   :  { %v5182_v36 = vpop.permute.xlu1 %5181 }
 0x5c4   :  { %5265 = vst.msk [vmem:[#allocation5 + $0x68] sm:$0xff] %vm5251_vm6, %v5182_v36  ;;  %v5696_v48 = vpop.permute.xlu0 %5695  ;;  %v5330_v36 = vld [vmem:[#allocation3 + $0x289] sm:$0xff] }
 0x5c5   :  { %4425 = vrot.lane.b32.xlu1 %v10065_v28, %s7252_s29 }
 0x5c6   :  { %5195 = vrot.lane.b32.xlu0 %v10065_v28, %s7256_s3  ;;  %v5584_v28 = vld [vmem:[#allocation3 + $0x262] sm:$0xff] }
 0x5c7   :  { %v5439_v25 = vpop.permute.xlu1 %5438  ;;  %v5626_v34 = vpack.c.bf16 %v5584_v28, %v5583_v45  ;;  %v4562_v28 = vld [vmem:[#allocation3 + $0x2a1] sm:$0xff] }
 0x5c8   :  { %5522 = vst.msk [vmem:[#allocation5 + $0x68] sm:$0xff] %vm5508_vm7, %v5439_v25  ;;  %v4155_v16 = vpop.permute.xlu0 %4154  ;;  %v5810_v59 = vld [vmem:[#allocation5 + $0x60] sm:$0xff]  ;;  %v5628_v25 = vpack.c.bf16 %v5588_v24, %v5587_v4 }
 0x5c9   :  { %5779 = vst.msk [vmem:[#allocation5 + $0x68] sm:$0xff] %vm5765_vm8, %v5696_v48  ;;  %4682 = vrot.lane.b32.xlu1 %v4597_v61, %s7254_s12  ;;  %7179 = vmatprep.mubr.msk.bf16.mxu1 %vm5866_vm9, %v5810_v59 }
 0x5ca   :  { %5452 = vrot.lane.b32.xlu0 %v4597_v61, %s7257_s24 }
 0x5cb   :  { %v3898_v29 = vpop.permute.xlu1 %3897 }
 0x5cc   :  { %3980 = vst.msk [vmem:[#allocation5 + $0x70] sm:$0xff] %vm3965_vm0, %v3898_v29  ;;  %v4412_v47 = vpop.permute.xlu0 %4411 }
 0x5cd   :  { %4237 = vst.msk [vmem:[#allocation5 + $0x70] sm:$0xff] %vm4222_vm1, %v4155_v16  ;;  %4939 = vrot.lane.b32.xlu1 %v4854_v58, %s7255_s2 }
 0x5ce   :  { %4494 = vst.msk [vmem:[#allocation5 + $0x70] sm:$0xff] %vm4479_vm3, %v4412_v47  ;;  %5709 = vrot.lane.b32.xlu0 %v4854_v58, %s7258_s27 }
 0x5cf   :  { %v3900_v44 = vpop.permute.xlu1 %3899 }
 0x5d0   :  { %3981 = vst.msk [vmem:[#allocation5 + $0x78] sm:$0xff] %vm3965_vm0, %v3900_v44  ;;  %v5811_v9 = vld [vmem:[#allocation5 + $0x68] sm:$0xff]  ;;  %v4669_v35 = vpop.permute.xlu0 %4668 }
 0x5d1   :  { %5197 = vrot.lane.b32.xlu1 %v10069_v26, %s7256_s3  ;;  %7180 = vmatmul.mubr.msk.bf16.gmra.mrb[24].mxu1 %vm5866_vm9, %v5811_v9  ;;  %4751 = vst.msk [vmem:[#allocation5 + $0x70] sm:$0xff] %vm4736_vm4, %v4669_v35  ;;  %v4563_v9 = vld [vmem:[#allocation3 + $0x2a9] sm:$0xff] }
 0x5d2   :  { %5711 = vrot.lane.b32.xlu0 %v5626_v34, %s7258_s27 }
 0x5d3   :  { %v4157_v31 = vpop.permute.xlu1 %4156 }
 0x5d4   :  { %4238 = vst.msk [vmem:[#allocation5 + $0x78] sm:$0xff] %vm4222_vm1, %v4157_v31  ;;  %v4926_v54 = vpop.permute.xlu0 %4925 }
 0x5d5   :  { %5454 = vrot.lane.b32.xlu1 %v5369_v49, %s7257_s24  ;;  %5008 = vst.msk [vmem:[#allocation5 + $0x70] sm:$0xff] %vm4993_vm5, %v4926_v54 }
 0x5d6   :  { %4170 = vrot.lane.b32.xlu0 %v4854_v58, %s7250_s17 }
 0x5d7   :  { %v4414_v46 = vpop.permute.xlu1 %4413 }
 0x5d8   :  { %4495 = vst.msk [vmem:[#allocation5 + $0x78] sm:$0xff] %vm4479_vm3, %v4414_v46  ;;  %v5184_v63 = vpop.permute.xlu0 %5183 }
 0x5d9   :  { %3913 = vrot.lane.b32.xlu1 %v4597_v61, %s7248_s15  ;;  %5266 = vst.msk [vmem:[#allocation5 + $0x70] sm:$0xff] %vm5251_vm6, %v5184_v63  ;;  %v5371_v61 = vpack.c.bf16 %v5331_v62, %v5330_v36  ;;  %v4819_v63 = vld [vmem:[#allocation3 + $0x2a2] sm:$0xff] }
 0x5da   :  { %4427 = vrot.lane.b32.xlu0 %v10069_v26, %s7252_s29  ;;  %v4559_v26 = vld [vmem:[#allocation3 + $0x279] sm:$0xff] }
 0x5db   :  { %v4671_v56 = vpop.permute.xlu1 %4670  ;;  %v4599_v11 = vpack.c.bf16 %v4559_v26, %v4558_v2 }
 0x5dc   :  { %4752 = vst.msk [vmem:[#allocation5 + $0x78] sm:$0xff] %vm4736_vm4, %v4671_v56  ;;  %v5441_v13 = vpop.permute.xlu0 %5440  ;;  %v4820_v56 = vld [vmem:[#allocation3 + $0x2aa] sm:$0xff] }
 0x5dd   :  { %3915 = vrot.lane.b32.xlu1 %v5369_v49, %s7248_s15  ;;  %5523 = vst.msk [vmem:[#allocation5 + $0x70] sm:$0xff] %vm5508_vm7, %v5441_v13  ;;  %v4858_v26 = vpack.c.bf16 %v4820_v56, %v4819_v63 }
 0x5de   :  { %4684 = vrot.lane.b32.xlu0 %v5369_v49, %s7254_s12 }
 0x5df   :  { %v4928_v6 = vpop.permute.xlu1 %4927 }
 0x5e0   :  { %5009 = vst.msk [vmem:[#allocation5 + $0x78] sm:$0xff] %vm4993_vm5, %v4928_v6  ;;  %v5698_v52 = vpop.permute.xlu0 %5697 }
 0x5e1   :  { %4172 = vrot.lane.b32.xlu1 %v5626_v34, %s7250_s17  ;;  %5780 = vst.msk [vmem:[#allocation5 + $0x70] sm:$0xff] %vm5765_vm8, %v5698_v52 }
 0x5e2   :  { %4941 = vrot.lane.b32.xlu0 %v5626_v34, %s7255_s2  ;;  %v4601_v34 = vpack.c.bf16 %v4563_v9, %v4562_v28 }
 0x5e3   :  { %v5186_v10 = vpop.permute.xlu1 %5185 }
 0x5e4   :  { %5267 = vst.msk [vmem:[#allocation5 + $0x78] sm:$0xff] %vm5251_vm6, %v5186_v10  ;;  %v10440_v3 = vpop.f32.mrb[0].mxu1  ;;  %v5700_v18 = vpop.permute.xlu0 %5699 }
 0x5e5   :  { %4429 = vrot.lane.b32.xlu1 %v10076_v8, %s7252_s29  ;;  %v10445_v14 = vpop.f32.mrb[1].mxu1  ;;  %v6259_v60 = vsel %vm2863_vm13, %v10440_v3, 0.0 }
 0x5e6   :  { %v10447_v57 = vpop.f32.mrb[2].mxu1  ;;  %v6256_v22 = vsel %vm2863_vm13, %v10445_v14, 0.0  ;;  %5199 = vrot.lane.b32.xlu0 %v10076_v8, %s7256_s3 }
 0x5e7   :  { %v5443_v50 = vpop.permute.xlu1 %5442  ;;  %v10449_v5 = vpop.f32.mrb[3].mxu1  ;;  %v6261_v21 = vsel %vm2863_vm13, %v10447_v57, 0.0 }
 0x5e8   :  { %5524 = vst.msk [vmem:[#allocation5 + $0x78] sm:$0xff] %vm5508_vm7, %v5443_v50  ;;  %v6257_v37 = vsel %vm2863_vm13, %v10449_v5, 0.0  ;;  %v4159_v41 = vpop.permute.xlu0 %4158  ;;  %v5812_v23 = vld [vmem:[#allocation5 + $0x70] sm:$0xff] }
 0x5e9   :  { %4686 = vrot.lane.b32.xlu1 %v4599_v11, %s7254_s12  ;;  %5781 = vst.msk [vmem:[#allocation5 + $0x78] sm:$0xff] %vm5765_vm8, %v5700_v18  ;;  %v6258_v55 = vadd.f32 %v6257_v37, %v6256_v22  ;;  %7183 = vmatprep.mubr.msk.bf16.mxu1 %vm5866_vm9, %v5812_v23  ;;  %v5592_v37 = vld [vmem:[#allocation3 + $0x2c2] sm:$0xff] }
 0x5ea   :  { %5456 = vrot.lane.b32.xlu0 %v4599_v11, %s7257_s24 }
 0x5eb   :  { %v6260_v38 = vadd.f32 %v6259_v60, %v6258_v55  ;;  %v3902_v0 = vpop.permute.xlu1 %3901  ;;  %v5334_v55 = vld [vmem:[#allocation3 + $0x2b9] sm:$0xff]  ;;  %v5335_v60 = vld [vmem:[#allocation3 + $0x2c1] sm:$0xff] }
 0x5ec   :  { %3982 = vst.msk [vmem:[#allocation5 + $0x80] sm:$0xff] %vm3965_vm0, %v3902_v0  ;;  %v4416_v42 = vpop.permute.xlu0 %4415 }
 0x5ed   :  { %4943 = vrot.lane.b32.xlu1 %v4856_v20, %s7255_s2  ;;  %4239 = vst.msk [vmem:[#allocation5 + $0x80] sm:$0xff] %vm4222_vm1, %v4159_v41  ;;  %v6262_v8 = vadd.f32 %v6261_v21, %v6260_v38  ;;  %v5373_v38 = vpack.c.bf16 %v5335_v60, %v5334_v55 }
 0x5ee   :  { %4496 = vst.msk [vmem:[#allocation5 + $0x80] sm:$0xff] %vm4479_vm3, %v4416_v42  ;;  %5713 = vrot.lane.b32.xlu0 %v4856_v20, %s7258_s27 }
 0x5ef   :  { %v3904_v7 = vpop.permute.xlu1 %3903 }
 0x5f0   :  { %3983 = vst.msk [vmem:[#allocation5 + $0x88] sm:$0xff] %vm3965_vm0, %v3904_v7  ;;  %v5813_v32 = vld [vmem:[#allocation5 + $0x78] sm:$0xff]  ;;  %v4673_v48 = vpop.permute.xlu0 %4672 }
 0x5f1   :  { %5201 = vrot.lane.b32.xlu1 %v10080_v43, %s7256_s3  ;;  %7184 = vmatmul.mubr.msk.bf16.gmra.mrb[28].mxu1 %vm5866_vm9, %v5813_v32  ;;  %4753 = vst.msk [vmem:[#allocation5 + $0x80] sm:$0xff] %vm4736_vm4, %v4673_v48  ;;  %v4566_v32 = vld [vmem:[#allocation3 + $0x2d1] sm:$0xff]  ;;  %v4567_v48 = vld [vmem:[#allocation3 + $0x2d9] sm:$0xff] }
 0x5f2   :  { %5715 = vrot.lane.b32.xlu0 %v5628_v25, %s7258_s27 }
 0x5f3   :  { %v4161_v12 = vpop.permute.xlu1 %4160 }
 0x5f4   :  { %4240 = vst.msk [vmem:[#allocation5 + $0x88] sm:$0xff] %vm4222_vm1, %v4161_v12  ;;  %v4930_v15 = vpop.permute.xlu0 %4929 }
 0x5f5   :  { %5458 = vrot.lane.b32.xlu1 %v5371_v61, %s7257_s24  ;;  %5010 = vst.msk [vmem:[#allocation5 + $0x80] sm:$0xff] %vm4993_vm5, %v4930_v15 }
 0x5f6   :  { %4174 = vrot.lane.b32.xlu0 %v4856_v20, %s7250_s17  ;;  %v5630_v20 = vpack.c.bf16 %v5592_v37, %v5591_v1 }
 0x5f7   :  { %v4418_v16 = vpop.permute.xlu1 %4417 }
 0x5f8   :  { %4497 = vst.msk [vmem:[#allocation5 + $0x88] sm:$0xff] %vm4479_vm3, %v4418_v16  ;;  %v5188_v29 = vpop.permute.xlu0 %5187  ;;  %v4603_v16 = vpack.c.bf16 %v4567_v48, %v4566_v32  ;;  %v4828_v32 = vld [vmem:[#allocation3 + $0x30a] sm:$0xff] }
 0x5f9   :  { %3917 = vrot.lane.b32.xlu1 %v4599_v11, %s7248_s15  ;;  %5268 = vst.msk [vmem:[#allocation5 + $0x80] sm:$0xff] %vm5251_vm6, %v5188_v29 }
 0x5fa   :  { %4431 = vrot.lane.b32.xlu0 %v10080_v43, %s7252_s29 }
 0x5fb   :  { %v4675_v59 = vpop.permute.xlu1 %4674 }
 0x5fc   :  { %4754 = vst.msk [vmem:[#allocation5 + $0x88] sm:$0xff] %vm4736_vm4, %v4675_v59  ;;  %v5445_v58 = vpop.permute.xlu0 %5444 }
 0x5fd   :  { %3919 = vrot.lane.b32.xlu1 %v5371_v61, %s7248_s15  ;;  %5525 = vst.msk [vmem:[#allocation5 + $0x80] sm:$0xff] %vm5508_vm7, %v5445_v58 }
 0x5fe   :  { %4688 = vrot.lane.b32.xlu0 %v5371_v61, %s7254_s12 }
 0x5ff   :  { %v4932_v47 = vpop.permute.xlu1 %4931 }
 0x600   :  { %5011 = vst.msk [vmem:[#allocation5 + $0x88] sm:$0xff] %vm4993_vm5, %v4932_v47  ;;  %v5702_v44 = vpop.permute.xlu0 %5701  ;;  %v4823_v47 = vld [vmem:[#allocation3 + $0x2d2] sm:$0xff] }
 0x601   :  { %4176 = vrot.lane.b32.xlu1 %v5628_v25, %s7250_s17  ;;  %5782 = vst.msk [vmem:[#allocation5 + $0x80] sm:$0xff] %vm5765_vm8, %v5702_v44  ;;  %v4824_v44 = vld [vmem:[#allocation3 + $0x2da] sm:$0xff] }
 0x602   :  { %4945 = vrot.lane.b32.xlu0 %v5628_v25, %s7255_s2 }
 0x603   :  { %v5190_v45 = vpop.permute.xlu1 %5189 }
 0x604   :  { %5269 = vst.msk [vmem:[#allocation5 + $0x88] sm:$0xff] %vm5251_vm6, %v5190_v45  ;;  %v10494_v43 = vpop.f32.mrb[4].mxu1  ;;  %v5704_v31 = vpop.permute.xlu0 %5703 }
 0x605   :  { %4433 = vrot.lane.b32.xlu1 %v10086_v39, %s7252_s29  ;;  %v10499_v51 = vpop.f32.mrb[5].mxu1  ;;  %v6267_v52 = vsel %vm2863_vm13, %v10494_v43, 0.0 }
 0x606   :  { %v6263_v40 = vsel %vm2863_vm13, %v10499_v51, 0.0  ;;  %v10503_v35 = vpop.f32.mrb[6].mxu1  ;;  %5203 = vrot.lane.b32.xlu0 %v10086_v39, %s7256_s3 }
 0x607   :  { %v6264_v49 = vadd.f32 %v6263_v40, %v6262_v8  ;;  %v5447_v54 = vpop.permute.xlu1 %5446  ;;  %v10505_v46 = vpop.f32.mrb[7].mxu1  ;;  %v6269_v50 = vsel %vm2863_vm13, %v10503_v35, 0.0 }
 0x608   :  { %5526 = vst.msk [vmem:[#allocation5 + $0x88] sm:$0xff] %vm5508_vm7, %v5447_v54  ;;  %v6265_v13 = vsel %vm2863_vm13, %v10505_v46, 0.0  ;;  %v4163_v10 = vpop.permute.xlu0 %4162  ;;  %v5814_v2 = vld [vmem:[#allocation5 + $0x80] sm:$0xff] }
 0x609   :  { %4690 = vrot.lane.b32.xlu1 %v4601_v34, %s7254_s12  ;;  %5783 = vst.msk [vmem:[#allocation5 + $0x88] sm:$0xff] %vm5765_vm8, %v5704_v31  ;;  %v6266_v6 = vadd.f32 %v6265_v13, %v6264_v49  ;;  %7187 = vmatprep.mubr.msk.bf16.mxu1 %vm5866_vm9, %v5814_v2  ;;  %v5595_v13 = vld [vmem:[#allocation3 + $0x2ea] sm:$0xff] }
 0x60a   :  { %5460 = vrot.lane.b32.xlu0 %v4601_v34, %s7257_s24  ;;  %v5339_v2 = vld [vmem:[#allocation3 + $0x2f1] sm:$0xff] }
 0x60b   :  { %v6268_v18 = vadd.f32 %v6267_v52, %v6266_v6  ;;  %v3906_v11 = vpop.permute.xlu1 %3905  ;;  %v5596_v52 = vld [vmem:[#allocation3 + $0x2f2] sm:$0xff] }
 0x60c   :  { %3984 = vst.msk [vmem:[#allocation5 + $0x90] sm:$0xff] %vm3965_vm0, %v3906_v11  ;;  %v4420_v53 = vpop.permute.xlu0 %4419  ;;  %v5632_v11 = vpack.c.bf16 %v5596_v52, %v5595_v13 }
 0x60d   :  { %4947 = vrot.lane.b32.xlu1 %v4858_v26, %s7255_s2  ;;  %4241 = vst.msk [vmem:[#allocation5 + $0x90] sm:$0xff] %vm4222_vm1, %v4163_v10  ;;  %v6270_v39 = vadd.f32 %v6269_v50, %v6268_v18  ;;  %v5338_v10 = vld [vmem:[#allocation3 + $0x2e9] sm:$0xff] }
 0x60e   :  { %4498 = vst.msk [vmem:[#allocation5 + $0x90] sm:$0xff] %vm4479_vm3, %v4420_v53  ;;  %5717 = vrot.lane.b32.xlu0 %v4858_v26, %s7258_s27  ;;  %v5375_v50 = vpack.c.bf16 %v5339_v2, %v5338_v10 }
 0x60f   :  { %v3908_v22 = vpop.permute.xlu1 %3907 }
 0x610   :  { %3985 = vst.msk [vmem:[#allocation5 + $0x98] sm:$0xff] %vm3965_vm0, %v3908_v22  ;;  %v5815_v41 = vld [vmem:[#allocation5 + $0x88] sm:$0xff]  ;;  %v4677_v23 = vpop.permute.xlu0 %4676 }
 0x611   :  { %5205 = vrot.lane.b32.xlu1 %v10090_v30, %s7256_s3  ;;  %7188 = vmatmul.mubr.msk.bf16.gmra.mrb[32].mxu1 %vm5866_vm9, %v5815_v41  ;;  %4755 = vst.msk [vmem:[#allocation5 + $0x90] sm:$0xff] %vm4736_vm4, %v4677_v23 }
 0x612   :  { %5719 = vrot.lane.b32.xlu0 %v5630_v20, %s7258_s27 }
 0x613   :  { %v4165_v0 = vpop.permute.xlu1 %4164 }
 0x614   :  { %4242 = vst.msk [vmem:[#allocation5 + $0x98] sm:$0xff] %vm4222_vm1, %v4165_v0  ;;  %v4934_v21 = vpop.permute.xlu0 %4933 }
 0x615   :  { %5462 = vrot.lane.b32.xlu1 %v5373_v38, %s7257_s24  ;;  %5012 = vst.msk [vmem:[#allocation5 + $0x90] sm:$0xff] %vm4993_vm5, %v4934_v21 }
 0x616   :  { %4178 = vrot.lane.b32.xlu0 %v4858_v26, %s7250_s17 }
 0x617   :  { %v4422_v8 = vpop.permute.xlu1 %4421 }
 0x618   :  { %4499 = vst.msk [vmem:[#allocation5 + $0x98] sm:$0xff] %vm4479_vm3, %v4422_v8  ;;  %v5192_v42 = vpop.permute.xlu0 %5191 }
 0x619   :  { %3921 = vrot.lane.b32.xlu1 %v4601_v34, %s7248_s15  ;;  %5270 = vst.msk [vmem:[#allocation5 + $0x90] sm:$0xff] %vm5251_vm6, %v5192_v42  ;;  %v4860_v34 = vpack.c.bf16 %v4824_v44, %v4823_v47 }
 0x61a   :  { %4435 = vrot.lane.b32.xlu0 %v10090_v30, %s7252_s29 }
 0x61b   :  { %v4679_v4 = vpop.permute.xlu1 %4678 }
 0x61c   :  { %4756 = vst.msk [vmem:[#allocation5 + $0x98] sm:$0xff] %vm4736_vm4, %v4679_v4  ;;  %v5449_v7 = vpop.permute.xlu0 %5448 }
 0x61d   :  { %3923 = vrot.lane.b32.xlu1 %v5373_v38, %s7248_s15  ;;  %5527 = vst.msk [vmem:[#allocation5 + $0x90] sm:$0xff] %vm5508_vm7, %v5449_v7 }
 0x61e   :  { %4692 = vrot.lane.b32.xlu0 %v5373_v38, %s7254_s12  ;;  %v4571_v38 = vld [vmem:[#allocation3 + $0x309] sm:$0xff] }
 0x61f   :  { %v4936_v24 = vpop.permute.xlu1 %4935 }
 0x620   :  { %5013 = vst.msk [vmem:[#allocation5 + $0x98] sm:$0xff] %vm4993_vm5, %v4936_v24  ;;  %v5706_v36 = vpop.permute.xlu0 %5705 }
 0x621   :  { %4180 = vrot.lane.b32.xlu1 %v5630_v20, %s7250_s17  ;;  %5784 = vst.msk [vmem:[#allocation5 + $0x90] sm:$0xff] %vm5765_vm8, %v5706_v36 }
 0x622   :  { %4949 = vrot.lane.b32.xlu0 %v5630_v20, %s7255_s2  ;;  %v4570_v20 = vld [vmem:[#allocation3 + $0x301] sm:$0xff] }
 0x623   :  { %v5194_v62 = vpop.permute.xlu1 %5193  ;;  %v4605_v4 = vpack.c.bf16 %v4571_v38, %v4570_v20 }
 0x624   :  { %5271 = vst.msk [vmem:[#allocation5 + $0x98] sm:$0xff] %vm5251_vm6, %v5194_v62  ;;  %v10548_v30 = vpop.f32.mrb[8].mxu1  ;;  %v5708_v15 = vpop.permute.xlu0 %5707  ;;  %v4827_v62 = vld [vmem:[#allocation3 + $0x302] sm:$0xff] }
 0x625   :  { %4437 = vrot.lane.b32.xlu1 %v10097_v17, %s7252_s29  ;;  %v10553_v25 = vpop.f32.mrb[9].mxu1  ;;  %v6275_v9 = vsel %vm2863_vm13, %v10548_v30, 0.0 }
 0x626   :  { %v6271_v61 = vsel %vm2863_vm13, %v10553_v25, 0.0  ;;  %v10557_v12 = vpop.f32.mrb[10].mxu1  ;;  %5207 = vrot.lane.b32.xlu0 %v10097_v17, %s7256_s3 }
 0x627   :  { %v6272_v29 = vadd.f32 %v6271_v61, %v6270_v39  ;;  %v5451_v59 = vpop.permute.xlu1 %5450  ;;  %v10559_v58 = vpop.f32.mrb[11].mxu1  ;;  %v6277_v63 = vsel %vm2863_vm13, %v10557_v12, 0.0 }
 0x628   :  { %5528 = vst.msk [vmem:[#allocation5 + $0x98] sm:$0xff] %vm5508_vm7, %v5451_v59  ;;  %v6273_v45 = vsel %vm2863_vm13, %v10559_v58, 0.0  ;;  %v4167_v40 = vpop.permute.xlu0 %4166  ;;  %v5816_v31 = vld [vmem:[#allocation5 + $0x90] sm:$0xff]  ;;  %v4862_v59 = vpack.c.bf16 %v4828_v32, %v4827_v62  ;;  %v5089_v32 = vld [vmem:[#allocation3 + $0x348] sm:$0xff] }
 0x629   :  { %4694 = vrot.lane.b32.xlu1 %v4603_v16, %s7254_s12  ;;  %5785 = vst.msk [vmem:[#allocation5 + $0x98] sm:$0xff] %vm5765_vm8, %v5708_v15  ;;  %v6274_v28 = vadd.f32 %v6273_v45, %v6272_v29  ;;  %7191 = vmatprep.mubr.msk.bf16.mxu1 %vm5866_vm9, %v5816_v31  ;;  %v5599_v31 = vld [vmem:[#allocation3 + $0x31a] sm:$0xff] }
 0x62a   :  { %5464 = vrot.lane.b32.xlu0 %v4603_v16, %s7257_s24 }
 0x62b   :  { %v6276_v49 = vadd.f32 %v6275_v9, %v6274_v28  ;;  %v3910_v54 = vpop.permute.xlu1 %3909  ;;  %v5600_v9 = vld [vmem:[#allocation3 + $0x322] sm:$0xff] }
 0x62c   :  { %3986 = vst.msk [vmem:[#allocation5 + $0xa0] sm:$0xff] %vm3965_vm0, %v3910_v54  ;;  %v4424_v56 = vpop.permute.xlu0 %4423 }
 0x62d   :  { %4951 = vrot.lane.b32.xlu1 %v4860_v34, %s7255_s2  ;;  %4243 = vst.msk [vmem:[#allocation5 + $0xa0] sm:$0xff] %vm4222_vm1, %v4167_v40  ;;  %v6278_v17 = vadd.f32 %v6277_v63, %v6276_v49  ;;  %v5343_v49 = vld [vmem:[#allocation3 + $0x321] sm:$0xff] }
 0x62e   :  { %4500 = vst.msk [vmem:[#allocation5 + $0xa0] sm:$0xff] %vm4479_vm3, %v4424_v56  ;;  %5721 = vrot.lane.b32.xlu0 %v4860_v34, %s7258_s27 }
 0x62f   :  { %v3912_v6 = vpop.permute.xlu1 %3911 }
 0x630   :  { %3987 = vst.msk [vmem:[#allocation5 + $0xa8] sm:$0xff] %vm3965_vm0, %v3912_v6  ;;  %v5817_v26 = vld [vmem:[#allocation5 + $0x98] sm:$0xff]  ;;  %v4681_v18 = vpop.permute.xlu0 %4680 }
 0x631   :  { %5209 = vrot.lane.b32.xlu1 %v10101_v19, %s7256_s3  ;;  %7192 = vmatmul.mubr.msk.bf16.gmra.mrb[36].mxu1 %vm5866_vm9, %v5817_v26  ;;  %4757 = vst.msk [vmem:[#allocation5 + $0xa0] sm:$0xff] %vm4736_vm4, %v4681_v18 }
 0x632   :  { %5723 = vrot.lane.b32.xlu0 %v5632_v11, %s7258_s27 }
 0x633   :  { %v4169_v39 = vpop.permute.xlu1 %4168 }
 0x634   :  { %4244 = vst.msk [vmem:[#allocation5 + $0xa8] sm:$0xff] %vm4222_vm1, %v4169_v39  ;;  %v4938_v53 = vpop.permute.xlu0 %4937 }
 0x635   :  { %5466 = vrot.lane.b32.xlu1 %v5375_v50, %s7257_s24  ;;  %5014 = vst.msk [vmem:[#allocation5 + $0xa0] sm:$0xff] %vm4993_vm5, %v4938_v53 }
 0x636   :  { %4182 = vrot.lane.b32.xlu0 %v4860_v34, %s7250_s17  ;;  %v5342_v34 = vld [vmem:[#allocation3 + $0x319] sm:$0xff] }
 0x637   :  { %v4426_v1 = vpop.permute.xlu1 %4425  ;;  %v5377_v56 = vpack.c.bf16 %v5343_v49, %v5342_v34 }
 0x638   :  { %4501 = vst.msk [vmem:[#allocation5 + $0xa8] sm:$0xff] %vm4479_vm3, %v4426_v1  ;;  %v5196_v22 = vpop.permute.xlu0 %5195 }
 0x639   :  { %3925 = vrot.lane.b32.xlu1 %v4603_v16, %s7248_s15  ;;  %5272 = vst.msk [vmem:[#allocation5 + $0xa0] sm:$0xff] %vm5251_vm6, %v5196_v22  ;;  %v4575_v22 = vld [vmem:[#allocation3 + $0x339] sm:$0xff] }
 0x63a   :  { %4439 = vrot.lane.b32.xlu0 %v10101_v19, %s7252_s29 }
 0x63b   :  { %v4683_v37 = vpop.permute.xlu1 %4682 }
 0x63c   :  { %4758 = vst.msk [vmem:[#allocation5 + $0xa8] sm:$0xff] %vm4736_vm4, %v4683_v37  ;;  %v5453_v55 = vpop.permute.xlu0 %5452 }
 0x63d   :  { %3927 = vrot.lane.b32.xlu1 %v5375_v50, %s7248_s15  ;;  %5529 = vst.msk [vmem:[#allocation5 + $0xa0] sm:$0xff] %vm5508_vm7, %v5453_v55 }
 0x63e   :  { %4696 = vrot.lane.b32.xlu0 %v5375_v50, %s7254_s12  ;;  %v4318_v50 = vld [vmem:[#allocation3 + $0x338] sm:$0xff] }
 0x63f   :  { %v4940_v60 = vpop.permute.xlu1 %4939 }
 0x640   :  { %5015 = vst.msk [vmem:[#allocation5 + $0xa8] sm:$0xff] %vm4993_vm5, %v4940_v60  ;;  %v5710_v41 = vpop.permute.xlu0 %5709 }
 0x641   :  { %4184 = vrot.lane.b32.xlu1 %v5632_v11, %s7250_s17  ;;  %5786 = vst.msk [vmem:[#allocation5 + $0xa0] sm:$0xff] %vm5765_vm8, %v5710_v41 }
 0x642   :  { %4953 = vrot.lane.b32.xlu0 %v5632_v11, %s7255_s2  ;;  %v4317_v11 = vld [vmem:[#allocation3 + $0x330] sm:$0xff] }
 0x643   :  { %v5198_v23 = vpop.permute.xlu1 %5197  ;;  %v4350_v53 = vpack.c.bf16 %v4318_v50, %v4317_v11 }
 0x644   :  { %5273 = vst.msk [vmem:[#allocation5 + $0xa8] sm:$0xff] %vm5251_vm6, %v5198_v23  ;;  %v10602_v19 = vpop.f32.mrb[12].mxu1  ;;  %v5712_v42 = vpop.permute.xlu0 %5711 }
 0x645   :  { %4441 = vrot.lane.b32.xlu1 %v10107_v27, %s7252_s29  ;;  %v10607_v0 = vpop.f32.mrb[13].mxu1  ;;  %v6283_v15 = vsel %vm2863_vm13, %v10602_v19, 0.0 }
 0x646   :  { %v6279_v21 = vsel %vm2863_vm13, %v10607_v0, 0.0  ;;  %v10611_v8 = vpop.f32.mrb[14].mxu1  ;;  %5211 = vrot.lane.b32.xlu0 %v10107_v27, %s7256_s3 }
 0x647   :  { %v6280_v7 = vadd.f32 %v6279_v21, %v6278_v17  ;;  %v5455_v24 = vpop.permute.xlu1 %5454  ;;  %v10613_v36 = vpop.f32.mrb[15].mxu1  ;;  %v6285_v45 = vsel %vm2863_vm13, %v10611_v8, 0.0  ;;  %v5634_v17 = vpack.c.bf16 %v5600_v9, %v5599_v31 }
 0x648   :  { %5530 = vst.msk [vmem:[#allocation5 + $0xa8] sm:$0xff] %vm5508_vm7, %v5455_v24  ;;  %v6281_v48 = vsel %vm2863_vm13, %v10613_v36, 0.0  ;;  %v4171_v16 = vpop.permute.xlu0 %4170  ;;  %v5818_v29 = vld [vmem:[#allocation5 + $0xa0] sm:$0xff] }
 0x649   :  { %4698 = vrot.lane.b32.xlu1 %v4605_v4, %s7254_s12  ;;  %5787 = vst.msk [vmem:[#allocation5 + $0xa8] sm:$0xff] %vm5765_vm8, %v5712_v42  ;;  %v6282_v61 = vadd.f32 %v6281_v48, %v6280_v7  ;;  %7195 = vmatprep.mubr.msk.bf16.mxu1 %vm5866_vm9, %v5818_v29  ;;  %v4832_v7 = vld [vmem:[#allocation3 + $0x33a] sm:$0xff]  ;;  %v5090_v48 = vld [vmem:[#allocation3 + $0x350] sm:$0xff] }
 0x64a   :  { %5468 = vrot.lane.b32.xlu0 %v4605_v4, %s7257_s24 }
 0x64b   :  { %v6284_v47 = vadd.f32 %v6283_v15, %v6282_v61  ;;  %v3914_v44 = vpop.permute.xlu1 %3913 }
 0x64c   :  { %3988 = vst.msk [vmem:[#allocation5 + $0xb0] sm:$0xff] %vm3965_vm0, %v3914_v44  ;;  %v4428_v28 = vpop.permute.xlu0 %4427 }
 0x64d   :  { %4955 = vrot.lane.b32.xlu1 %v4862_v59, %s7255_s2  ;;  %4245 = vst.msk [vmem:[#allocation5 + $0xb0] sm:$0xff] %vm4222_vm1, %v4171_v16  ;;  %v6286_v27 = vadd.f32 %v6285_v45, %v6284_v47  ;;  %v5122_v45 = vpack.c.bf16 %v5090_v48, %v5089_v32 }
 0x64e   :  { %4502 = vst.msk [vmem:[#allocation5 + $0xb0] sm:$0xff] %vm4479_vm3, %v4428_v28  ;;  %5725 = vrot.lane.b32.xlu0 %v4862_v59, %s7258_s27  ;;  %v5347_v28 = vld [vmem:[#allocation3 + $0x351] sm:$0xff] }
 0x64f   :  { %v3916_v40 = vpop.permute.xlu1 %3915 }
 0x650   :  { %3989 = vst.msk [vmem:[#allocation5 + $0xb8] sm:$0xff] %vm3965_vm0, %v3916_v40  ;;  %v5819_v54 = vld [vmem:[#allocation5 + $0xa8] sm:$0xff]  ;;  %v4685_v63 = vpop.permute.xlu0 %4684 }
 0x651   :  { %5213 = vrot.lane.b32.xlu1 %v10111_v33, %s7256_s3  ;;  %7196 = vmatmul.mubr.msk.bf16.gmra.mrb[40].mxu1 %vm5866_vm9, %v5819_v54  ;;  %4759 = vst.msk [vmem:[#allocation5 + $0xb0] sm:$0xff] %vm4736_vm4, %v4685_v63  ;;  %v5603_v54 = vld [vmem:[#allocation3 + $0x34a] sm:$0xff]  ;;  %v5604_v63 = vld [vmem:[#allocation3 + $0x352] sm:$0xff] }
 0x652   :  { %5727 = vrot.lane.b32.xlu0 %v5634_v17, %s7258_s27 }
 0x653   :  { %v4173_v13 = vpop.permute.xlu1 %4172 }
 0x654   :  { %4246 = vst.msk [vmem:[#allocation5 + $0xb8] sm:$0xff] %vm4222_vm1, %v4173_v13  ;;  %v4942_v6 = vpop.permute.xlu0 %4941  ;;  %v5636_v13 = vpack.c.bf16 %v5604_v63, %v5603_v54 }
 0x655   :  { %5470 = vrot.lane.b32.xlu1 %v5377_v56, %s7257_s24  ;;  %5016 = vst.msk [vmem:[#allocation5 + $0xb0] sm:$0xff] %vm4993_vm5, %v4942_v6 }
 0x656   :  { %4186 = vrot.lane.b32.xlu0 %v4862_v59, %s7250_s17 }
 0x657   :  { %v4430_v52 = vpop.permute.xlu1 %4429 }
 0x658   :  { %4503 = vst.msk [vmem:[#allocation5 + $0xb8] sm:$0xff] %vm4479_vm3, %v4430_v52  ;;  %v5200_v10 = vpop.permute.xlu0 %5199 }
 0x659   :  { %3929 = vrot.lane.b32.xlu1 %v4605_v4, %s7248_s15  ;;  %5274 = vst.msk [vmem:[#allocation5 + $0xb0] sm:$0xff] %vm5251_vm6, %v5200_v10  ;;  %v4831_v4 = vld [vmem:[#allocation3 + $0x332] sm:$0xff] }
 0x65a   :  { %4443 = vrot.lane.b32.xlu0 %v10111_v33, %s7252_s29  ;;  %v4574_v33 = vld [vmem:[#allocation3 + $0x331] sm:$0xff]  ;;  %v4864_v29 = vpack.c.bf16 %v4832_v7, %v4831_v4 }
 0x65b   :  { %v4687_v2 = vpop.permute.xlu1 %4686  ;;  %v4607_v20 = vpack.c.bf16 %v4575_v22, %v4574_v33 }
 0x65c   :  { %4760 = vst.msk [vmem:[#allocation5 + $0xb8] sm:$0xff] %vm4736_vm4, %v4687_v2  ;;  %v5457_v26 = vpop.permute.xlu0 %5456 }
 0x65d   :  { %3931 = vrot.lane.b32.xlu1 %v5377_v56, %s7248_s15  ;;  %5531 = vst.msk [vmem:[#allocation5 + $0xb0] sm:$0xff] %vm5508_vm7, %v5457_v26 }
 0x65e   :  { %4700 = vrot.lane.b32.xlu0 %v5377_v56, %s7254_s12 }
 0x65f   :  { %v4944_v18 = vpop.permute.xlu1 %4943 }
 0x660   :  { %5017 = vst.msk [vmem:[#allocation5 + $0xb8] sm:$0xff] %vm4993_vm5, %v4944_v18  ;;  %v5714_v39 = vpop.permute.xlu0 %5713 }
 0x661   :  { %4188 = vrot.lane.b32.xlu1 %v5634_v17, %s7250_s17  ;;  %5788 = vst.msk [vmem:[#allocation5 + $0xb0] sm:$0xff] %vm5765_vm8, %v5714_v39 }
 0x662   :  { %4957 = vrot.lane.b32.xlu0 %v5634_v17, %s7255_s2 }
 0x663   :  { %v5202_v1 = vpop.permute.xlu1 %5201 }
 0x664   :  { %5275 = vst.msk [vmem:[#allocation5 + $0xb8] sm:$0xff] %vm5251_vm6, %v5202_v1  ;;  %v10656_v37 = vpop.f32.mrb[16].mxu1  ;;  %v5716_v23 = vpop.permute.xlu0 %5715 }
 0x665   :  { %4445 = vrot.lane.b32.xlu1 %v4350_v53, %s7252_s29  ;;  %v10660_v55 = vpop.f32.mrb[17].mxu1  ;;  %v6291_v61 = vsel %vm2863_vm13, %v10656_v37, 0.0 }
 0x666   :  { %v6287_v60 = vsel %vm2863_vm13, %v10660_v55, 0.0  ;;  %v10664_v41 = vpop.f32.mrb[18].mxu1  ;;  %5215 = vrot.lane.b32.xlu0 %v4350_v53, %s7256_s3 }
 0x667   :  { %v6288_v38 = vadd.f32 %v6287_v60, %v6286_v27  ;;  %v5459_v21 = vpop.permute.xlu1 %5458  ;;  %v10666_v42 = vpop.f32.mrb[19].mxu1  ;;  %v6293_v44 = vsel %vm2863_vm13, %v10664_v41, 0.0  ;;  %v5346_v27 = vld [vmem:[#allocation3 + $0x349] sm:$0xff] }
 0x668   :  { %5532 = vst.msk [vmem:[#allocation5 + $0xb8] sm:$0xff] %vm5508_vm7, %v5459_v21  ;;  %v6289_v24 = vsel %vm2863_vm13, %v10666_v42, 0.0  ;;  %v4175_v15 = vpop.permute.xlu0 %4174  ;;  %v5820_v16 = vld [vmem:[#allocation5 + $0xb0] sm:$0xff]  ;;  %v5379_v49 = vpack.c.bf16 %v5347_v28, %v5346_v27 }
 0x669   :  { %4702 = vrot.lane.b32.xlu1 %v4607_v20, %s7254_s12  ;;  %5789 = vst.msk [vmem:[#allocation5 + $0xb8] sm:$0xff] %vm5765_vm8, %v5716_v23  ;;  %v6290_v62 = vadd.f32 %v6289_v24, %v6288_v38  ;;  %7199 = vmatprep.mubr.msk.bf16.mxu1 %vm5866_vm9, %v5820_v16 }
 0x66a   :  { %5472 = vrot.lane.b32.xlu0 %v4607_v20, %s7257_s24 }
 0x66b   :  { %v6292_v59 = vadd.f32 %v6291_v61, %v6290_v62  ;;  %v3918_v47 = vpop.permute.xlu1 %3917 }
 0x66c   :  { %3990 = vst.msk [vmem:[#allocation5 + $0xc0] sm:$0xff] %vm3965_vm0, %v3918_v47  ;;  %v4432_v40 = vpop.permute.xlu0 %4431 }
 0x66d   :  { %4959 = vrot.lane.b32.xlu1 %v4864_v29, %s7255_s2  ;;  %4247 = vst.msk [vmem:[#allocation5 + $0xc0] sm:$0xff] %vm4222_vm1, %v4175_v15  ;;  %v6294_v9 = vadd.f32 %v6293_v44, %v6292_v59 }
 0x66e   :  { %4504 = vst.msk [vmem:[#allocation5 + $0xc0] sm:$0xff] %vm4479_vm3, %v4432_v40  ;;  %5729 = vrot.lane.b32.xlu0 %v4864_v29, %s7258_s27 }
 0x66f   :  { %v3920_v31 = vpop.permute.xlu1 %3919 }
 0x670   :  { %3991 = vst.msk [vmem:[#allocation5 + $0xc8] sm:$0xff] %vm3965_vm0, %v3920_v31  ;;  %v5821_v34 = vld [vmem:[#allocation5 + $0xb8] sm:$0xff]  ;;  %v4689_v17 = vpop.permute.xlu0 %4688 }
 0x671   :  { %5217 = vrot.lane.b32.xlu1 %v5122_v45, %s7256_s3  ;;  %7200 = vmatmul.mubr.msk.bf16.gmra.mrb[44].mxu1 %vm5866_vm9, %v5821_v34  ;;  %4761 = vst.msk [vmem:[#allocation5 + $0xc0] sm:$0xff] %vm4736_vm4, %v4689_v17 }
 0x673   :  { %v4177_v56 = vpop.permute.xlu1 %4176 }
 0x674   :  { %4248 = vst.msk [vmem:[#allocation5 + $0xc8] sm:$0xff] %vm4222_vm1, %v4177_v56  ;;  %v4946_v6 = vpop.permute.xlu0 %4945 }
 0x675   :  { %5474 = vrot.lane.b32.xlu1 %v5379_v49, %s7257_s24  ;;  %5018 = vst.msk [vmem:[#allocation5 + $0xc0] sm:$0xff] %vm4993_vm5, %v4946_v6 }
 0x677   :  { %v4434_v52 = vpop.permute.xlu1 %4433 }
 0x678   :  { %4505 = vst.msk [vmem:[#allocation5 + $0xc8] sm:$0xff] %vm4479_vm3, %v4434_v52  ;;  %v5204_v10 = vpop.permute.xlu0 %5203 }
 0x679   :  { %5731 = vrot.lane.b32.xlu1 %v5636_v13, %s7258_s27  ;;  %5276 = vst.msk [vmem:[#allocation5 + $0xc0] sm:$0xff] %vm5251_vm6, %v5204_v10 }
 0x67b   :  { %v4691_v2 = vpop.permute.xlu1 %4690 }
 0x67c   :  { %4762 = vst.msk [vmem:[#allocation5 + $0xc8] sm:$0xff] %vm4736_vm4, %v4691_v2  ;;  %v5461_v26 = vpop.permute.xlu0 %5460 }
 0x67d   :  { %5533 = vst.msk [vmem:[#allocation5 + $0xc0] sm:$0xff] %vm5508_vm7, %v5461_v26 }
 0x67f   :  { %v4948_v18 = vpop.permute.xlu1 %4947 }
 0x680   :  { %5019 = vst.msk [vmem:[#allocation5 + $0xc8] sm:$0xff] %vm4993_vm5, %v4948_v18  ;;  %v5718_v11 = vpop.permute.xlu0 %5717 }
 0x681   :  { %5790 = vst.msk [vmem:[#allocation5 + $0xc0] sm:$0xff] %vm5765_vm8, %v5718_v11 }
 0x683   :  { %v5206_v50 = vpop.permute.xlu1 %5205 }
 0x684   :  { %5277 = vst.msk [vmem:[#allocation5 + $0xc8] sm:$0xff] %vm5251_vm6, %v5206_v50  ;;  %v10700_v39 = vpop.f32.mrb[20].mxu1  ;;  %v5720_v22 = vpop.permute.xlu0 %5719 }
 0x685   :  { %v10702_v53 = vpop.f32.mrb[21].mxu1  ;;  %v6299_v4 = vsel %vm2863_vm13, %v10700_v39, 0.0 }
 0x686   :  { %v6295_v1 = vsel %vm2863_vm13, %v10702_v53, 0.0  ;;  %v10706_v33 = vpop.f32.mrb[22].mxu1 }
 0x687   :  { %v6296_v60 = vadd.f32 %v6295_v1, %v6294_v9  ;;  %v5463_v23 = vpop.permute.xlu1 %5462  ;;  %v10708_v20 = vpop.f32.mrb[23].mxu1  ;;  %v6301_v48 = vsel %vm2863_vm13, %v10706_v33, 0.0 }
 0x688   :  { %5534 = vst.msk [vmem:[#allocation5 + $0xc8] sm:$0xff] %vm5508_vm7, %v5463_v23  ;;  %v6297_v38 = vsel %vm2863_vm13, %v10708_v20, 0.0  ;;  %v4179_v7 = vpop.permute.xlu0 %4178  ;;  %v5822_v24 = vld [vmem:[#allocation5 + $0xc0] sm:$0xff] }
 0x689   :  { %5791 = vst.msk [vmem:[#allocation5 + $0xc8] sm:$0xff] %vm5765_vm8, %v5720_v22  ;;  %v6298_v21 = vadd.f32 %v6297_v38, %v6296_v60  ;;  %7203 = vmatprep.mubr.msk.bf16.mxu1 %vm5866_vm9, %v5822_v24 }
 0x68b   :  { %v6300_v62 = vadd.f32 %v6299_v4, %v6298_v21  ;;  %v3922_v32 = vpop.permute.xlu1 %3921 }
 0x68c   :  { %3992 = vst.msk [vmem:[#allocation5 + $0xd0] sm:$0xff] %vm3965_vm0, %v3922_v32  ;;  %v4436_v15 = vpop.permute.xlu0 %4435 }
 0x68d   :  { %4249 = vst.msk [vmem:[#allocation5 + $0xd0] sm:$0xff] %vm4222_vm1, %v4179_v7  ;;  %v6302_v61 = vadd.f32 %v6301_v48, %v6300_v62 }
 0x68e   :  { %4506 = vst.msk [vmem:[#allocation5 + $0xd0] sm:$0xff] %vm4479_vm3, %v4436_v15 }
 0x68f   :  { %v3924_v16 = vpop.permute.xlu1 %3923 }
 0x690   :  { %3993 = vst.msk [vmem:[#allocation5 + $0xd8] sm:$0xff] %vm3965_vm0, %v3924_v16  ;;  %v5823_v29 = vld [vmem:[#allocation5 + $0xc8] sm:$0xff]  ;;  %v4693_v59 = vpop.permute.xlu0 %4692 }
 0x691   :  { %7204 = vmatmul.mubr.msk.bf16.gmra.mrb[48].mxu1 %vm5866_vm9, %v5823_v29  ;;  %4763 = vst.msk [vmem:[#allocation5 + $0xd0] sm:$0xff] %vm4736_vm4, %v4693_v59 }
 0x693   :  { %v4181_v47 = vpop.permute.xlu1 %4180 }
 0x694   :  { %4250 = vst.msk [vmem:[#allocation5 + $0xd8] sm:$0xff] %vm4222_vm1, %v4181_v47  ;;  %v4950_v44 = vpop.permute.xlu0 %4949 }
 0x695   :  { %5020 = vst.msk [vmem:[#allocation5 + $0xd0] sm:$0xff] %vm4993_vm5, %v4950_v44 }
 0x697   :  { %v4438_v45 = vpop.permute.xlu1 %4437 }
 0x698   :  { %4507 = vst.msk [vmem:[#allocation5 + $0xd8] sm:$0xff] %vm4479_vm3, %v4438_v45  ;;  %v5208_v27 = vpop.permute.xlu0 %5207 }
 0x699   :  { %5278 = vst.msk [vmem:[#allocation5 + $0xd0] sm:$0xff] %vm5251_vm6, %v5208_v27 }
 0x69b   :  { %v4695_v28 = vpop.permute.xlu1 %4694 }
 0x69c   :  { %4764 = vst.msk [vmem:[#allocation5 + $0xd8] sm:$0xff] %vm4736_vm4, %v4695_v28  ;;  %v5465_v9 = vpop.permute.xlu0 %5464 }
 0x69d   :  { %5535 = vst.msk [vmem:[#allocation5 + $0xd0] sm:$0xff] %vm5508_vm7, %v5465_v9 }
 0x69f   :  { %v4952_v40 = vpop.permute.xlu1 %4951 }
 0x6a0   :  { %5021 = vst.msk [vmem:[#allocation5 + $0xd8] sm:$0xff] %vm4993_vm5, %v4952_v40  ;;  %v5722_v31 = vpop.permute.xlu0 %5721 }
 0x6a1   :  { %5792 = vst.msk [vmem:[#allocation5 + $0xd0] sm:$0xff] %vm5765_vm8, %v5722_v31 }
 0x6a3   :  { %v5210_v34 = vpop.permute.xlu1 %5209 }
 0x6a4   :  { %5279 = vst.msk [vmem:[#allocation5 + $0xd8] sm:$0xff] %vm5251_vm6, %v5210_v34  ;;  %v10734_v49 = vpop.f32.mrb[24].mxu1  ;;  %v5724_v56 = vpop.permute.xlu0 %5723 }
 0x6a5   :  { %v10736_v54 = vpop.f32.mrb[25].mxu1  ;;  %v6307_v26 = vsel %vm2863_vm13, %v10734_v49, 0.0 }
 0x6a6   :  { %v6303_v63 = vsel %vm2863_vm13, %v10736_v54, 0.0  ;;  %v10740_v17 = vpop.f32.mrb[26].mxu1 }
 0x6a7   :  { %v6304_v13 = vadd.f32 %v6303_v63, %v6302_v61  ;;  %v5467_v6 = vpop.permute.xlu1 %5466  ;;  %v10742_v52 = vpop.f32.mrb[27].mxu1  ;;  %v6309_v22 = vsel %vm2863_vm13, %v10740_v17, 0.0 }
 0x6a8   :  { %5536 = vst.msk [vmem:[#allocation5 + $0xd8] sm:$0xff] %vm5508_vm7, %v5467_v6  ;;  %v6305_v10 = vsel %vm2863_vm13, %v10742_v52, 0.0  ;;  %v4183_v18 = vpop.permute.xlu0 %4182  ;;  %v5824_v11 = vld [vmem:[#allocation5 + $0xd0] sm:$0xff] }
 0x6a9   :  { %5793 = vst.msk [vmem:[#allocation5 + $0xd8] sm:$0xff] %vm5765_vm8, %v5724_v56  ;;  %v6306_v2 = vadd.f32 %v6305_v10, %v6304_v13  ;;  %7207 = vmatprep.mubr.msk.bf16.mxu1 %vm5866_vm9, %v5824_v11 }
 0x6ab   :  { %v6308_v50 = vadd.f32 %v6307_v26, %v6306_v2  ;;  %v3926_v1 = vpop.permute.xlu1 %3925 }
 0x6ac   :  { %3994 = vst.msk [vmem:[#allocation5 + $0xe0] sm:$0xff] %vm3965_vm0, %v3926_v1  ;;  %v4440_v23 = vpop.permute.xlu0 %4439 }
 0x6ad   :  { %4251 = vst.msk [vmem:[#allocation5 + $0xe0] sm:$0xff] %vm4222_vm1, %v4183_v18  ;;  %v6310_v60 = vadd.f32 %v6309_v22, %v6308_v50 }
 0x6ae   :  { %4508 = vst.msk [vmem:[#allocation5 + $0xe0] sm:$0xff] %vm4479_vm3, %v4440_v23 }
 0x6af   :  { %v3928_v38 = vpop.permute.xlu1 %3927 }
 0x6b0   :  { %3995 = vst.msk [vmem:[#allocation5 + $0xe8] sm:$0xff] %vm3965_vm0, %v3928_v38  ;;  %v5825_v21 = vld [vmem:[#allocation5 + $0xd8] sm:$0xff]  ;;  %v4697_v4 = vpop.permute.xlu0 %4696 }
 0x6b1   :  { %7208 = vmatmul.mubr.msk.bf16.gmra.mrb[52].mxu1 %vm5866_vm9, %v5825_v21  ;;  %4765 = vst.msk [vmem:[#allocation5 + $0xe0] sm:$0xff] %vm4736_vm4, %v4697_v4 }
 0x6b3   :  { %v4185_v7 = vpop.permute.xlu1 %4184 }
 0x6b4   :  { %4252 = vst.msk [vmem:[#allocation5 + $0xe8] sm:$0xff] %vm4222_vm1, %v4185_v7  ;;  %v4954_v24 = vpop.permute.xlu0 %4953 }
 0x6b5   :  { %5022 = vst.msk [vmem:[#allocation5 + $0xe0] sm:$0xff] %vm4993_vm5, %v4954_v24 }
 0x6b7   :  { %v4442_v62 = vpop.permute.xlu1 %4441 }
 0x6b8   :  { %4509 = vst.msk [vmem:[#allocation5 + $0xe8] sm:$0xff] %vm4479_vm3, %v4442_v62  ;;  %v5212_v32 = vpop.permute.xlu0 %5211 }
 0x6b9   :  { %5280 = vst.msk [vmem:[#allocation5 + $0xe0] sm:$0xff] %vm5251_vm6, %v5212_v32 }
 0x6bb   :  { %v4699_v48 = vpop.permute.xlu1 %4698 }
 0x6bc   :  { %4766 = vst.msk [vmem:[#allocation5 + $0xe8] sm:$0xff] %vm4736_vm4, %v4699_v48  ;;  %v5469_v61 = vpop.permute.xlu0 %5468 }
 0x6bd   :  { %5537 = vst.msk [vmem:[#allocation5 + $0xe0] sm:$0xff] %vm5508_vm7, %v5469_v61 }
 0x6bf   :  { %v4956_v15 = vpop.permute.xlu1 %4955 }
 0x6c0   :  { %5023 = vst.msk [vmem:[#allocation5 + $0xe8] sm:$0xff] %vm4993_vm5, %v4956_v15  ;;  %v5726_v16 = vpop.permute.xlu0 %5725 }
 0x6c1   :  { %5794 = vst.msk [vmem:[#allocation5 + $0xe0] sm:$0xff] %vm5765_vm8, %v5726_v16 }
 0x6c3   :  { %v5214_v29 = vpop.permute.xlu1 %5213 }
 0x6c4   :  { %5281 = vst.msk [vmem:[#allocation5 + $0xe8] sm:$0xff] %vm5251_vm6, %v5214_v29  ;;  %v10768_v59 = vpop.f32.mrb[28].mxu1  ;;  %v5728_v27 = vpop.permute.xlu0 %5727 }
 0x6c5   :  { %v10770_v47 = vpop.f32.mrb[29].mxu1  ;;  %v6315_v31 = vsel %vm2863_vm13, %v10768_v59, 0.0 }
 0x6c6   :  { %v6311_v44 = vsel %vm2863_vm13, %v10770_v47, 0.0  ;;  %v10774_v45 = vpop.f32.mrb[30].mxu1 }
 0x6c7   :  { %v6312_v28 = vadd.f32 %v6311_v44, %v6310_v60  ;;  %v5471_v9 = vpop.permute.xlu1 %5470  ;;  %v10776_v40 = vpop.f32.mrb[31].mxu1  ;;  %v6317_v56 = vsel %vm2863_vm13, %v10774_v45, 0.0 }
 0x6c8   :  { %5538 = vst.msk [vmem:[#allocation5 + $0xe8] sm:$0xff] %vm5508_vm7, %v5471_v9  ;;  %v6313_v34 = vsel %vm2863_vm13, %v10776_v40, 0.0  ;;  %v4187_v13 = vpop.permute.xlu0 %4186  ;;  %v5826_v6 = vld [vmem:[#allocation5 + $0xe0] sm:$0xff] }
 0x6c9   :  { %5795 = vst.msk [vmem:[#allocation5 + $0xe8] sm:$0xff] %vm5765_vm8, %v5728_v27  ;;  %v6314_v63 = vadd.f32 %v6313_v34, %v6312_v28  ;;  %7211 = vmatprep.mubr.msk.bf16.mxu1 %vm5866_vm9, %v5826_v6 }
 0x6cb   :  { %v6316_v10 = vadd.f32 %v6315_v31, %v6314_v63  ;;  %v3930_v2 = vpop.permute.xlu1 %3929 }
 0x6cc   :  { %3996 = vst.msk [vmem:[#allocation5 + $0xf0] sm:$0xff] %vm3965_vm0, %v3930_v2  ;;  %v4444_v18 = vpop.permute.xlu0 %4443 }
 0x6cd   :  { %4253 = vst.msk [vmem:[#allocation5 + $0xf0] sm:$0xff] %vm4222_vm1, %v4187_v13  ;;  %v6318_v26 = vadd.f32 %v6317_v56, %v6316_v10 }
 0x6ce   :  { %4510 = vst.msk [vmem:[#allocation5 + $0xf0] sm:$0xff] %vm4479_vm3, %v4444_v18 }
 0x6cf   :  { %v3932_v11 = vpop.permute.xlu1 %3931 }
 0x6d0   :  { %3997 = vst.msk [vmem:[#allocation5 + $0xf8] sm:$0xff] %vm3965_vm0, %v3932_v11  ;;  %v5827_v50 = vld [vmem:[#allocation5 + $0xe8] sm:$0xff]  ;;  %v4701_v1 = vpop.permute.xlu0 %4700 }
 0x6d1   :  { %7212 = vmatmul.mubr.msk.bf16.gmra.mrb[56].mxu1 %vm5866_vm9, %v5827_v50  ;;  %4767 = vst.msk [vmem:[#allocation5 + $0xf0] sm:$0xff] %vm4736_vm4, %v4701_v1 }
 0x6d3   :  { %v4189_v22 = vpop.permute.xlu1 %4188 }
 0x6d4   :  { %4254 = vst.msk [vmem:[#allocation5 + $0xf8] sm:$0xff] %vm4222_vm1, %v4189_v22  ;;  %v4958_v60 = vpop.permute.xlu0 %4957 }
 0x6d5   :  { %5024 = vst.msk [vmem:[#allocation5 + $0xf0] sm:$0xff] %vm4993_vm5, %v4958_v60 }
 0x6d7   :  { %v4446_v23 = vpop.permute.xlu1 %4445 }
 0x6d8   :  { %4511 = vst.msk [vmem:[#allocation5 + $0xf8] sm:$0xff] %vm4479_vm3, %v4446_v23  ;;  %v5216_v38 = vpop.permute.xlu0 %5215 }
 0x6d9   :  { %5282 = vst.msk [vmem:[#allocation5 + $0xf0] sm:$0xff] %vm5251_vm6, %v5216_v38 }
 0x6db   :  { %v4703_v21 = vpop.permute.xlu1 %4702 }
 0x6dc   :  { %4768 = vst.msk [vmem:[#allocation5 + $0xf8] sm:$0xff] %vm4736_vm4, %v4703_v21  ;;  %v5473_v4 = vpop.permute.xlu0 %5472 }
 0x6dd   :  { %5539 = vst.msk [vmem:[#allocation5 + $0xf0] sm:$0xff] %vm5508_vm7, %v5473_v4 }
 0x6df   :  { %v4960_v7 = vpop.permute.xlu1 %4959 }
 0x6e0   :  { %5025 = vst.msk [vmem:[#allocation5 + $0xf8] sm:$0xff] %vm4993_vm5, %v4960_v7  ;;  %v5730_v24 = vpop.permute.xlu0 %5729 }
 0x6e1   :  { %5796 = vst.msk [vmem:[#allocation5 + $0xf0] sm:$0xff] %vm5765_vm8, %v5730_v24 }
 0x6e3   :  { %v5218_v62 = vpop.permute.xlu1 %5217 }
 0x6e4   :  { %5283 = vst.msk [vmem:[#allocation5 + $0xf8] sm:$0xff] %vm5251_vm6, %v5218_v62  ;;  %v10802_v32 = vpop.f32.mrb[32].mxu1 }
 0x6e5   :  { %v10804_v48 = vpop.f32.mrb[33].mxu1  ;;  %v6323_v9 = vsel %vm2863_vm13, %v10802_v32, 0.0 }
 0x6e6   :  { %v6319_v61 = vsel %vm2863_vm13, %v10804_v48, 0.0  ;;  %v10808_v15 = vpop.f32.mrb[34].mxu1 }
 0x6e7   :  { %v6320_v16 = vadd.f32 %v6319_v61, %v6318_v26  ;;  %v5475_v29 = vpop.permute.xlu1 %5474  ;;  %v10810_v44 = vpop.f32.mrb[35].mxu1  ;;  %v6325_v56 = vsel %vm2863_vm13, %v10808_v15, 0.0 }
 0x6e8   :  { %5540 = vst.msk [vmem:[#allocation5 + $0xf8] sm:$0xff] %vm5508_vm7, %v5475_v29  ;;  %v6321_v27 = vsel %vm2863_vm13, %v10810_v44, 0.0  ;;  %v5828_v31 = vld [vmem:[#allocation5 + $0xf0] sm:$0xff] }
 0x6e9   :  { %v6322_v28 = vadd.f32 %v6321_v27, %v6320_v16  ;;  %7215 = vmatprep.mubr.msk.bf16.mxu1 %vm5866_vm9, %v5828_v31 }
 0x6eb   :  { %v6324_v34 = vadd.f32 %v6323_v9, %v6322_v28  ;;  %v5732_v63 = vpop.permute.xlu1 %5731 }
 0x6ec   :  { %5797 = vst.msk [vmem:[#allocation5 + $0xf8] sm:$0xff] %vm5765_vm8, %v5732_v63 }
 0x6ed   :  { %v6326_v13 = vadd.f32 %v6325_v56, %v6324_v34 }
 0x6f3   :  { %v5829_v6 = vld [vmem:[#allocation5 + $0xf8] sm:$0xff] }
 0x6f4   :  { %7216 = vmatmul.mubr.msk.bf16.gmra.mrb[60].mxu1 %vm5866_vm9, %v5829_v6 }
 0x704   :  { %v10822_v10 = vpop.f32.mrb[36].mxu1 }
 0x705   :  { %v10824_v2 = vpop.f32.mrb[37].mxu1  ;;  %v6331_v60 = vsel %vm2863_vm13, %v10822_v10, 0.0 }
 0x706   :  { %v6327_v26 = vsel %vm2863_vm13, %v10824_v2, 0.0  ;;  %v10828_v18 = vpop.f32.mrb[38].mxu1 }
 0x707   :  { %v6328_v11 = vadd.f32 %v6327_v26, %v6326_v13  ;;  %v10830_v50 = vpop.f32.mrb[39].mxu1  ;;  %v6333_v38 = vsel %vm2863_vm13, %v10828_v18, 0.0 }
 0x708   :  { %v6329_v1 = vsel %vm2863_vm13, %v10830_v50, 0.0 }
 0x709   :  { %v6330_v22 = vadd.f32 %v6329_v1, %v6328_v11 }
 0x70b   :  { %v6332_v23 = vadd.f32 %v6331_v60, %v6330_v22 }
 0x70d   :  { %v6334_v21 = vadd.f32 %v6333_v38, %v6332_v23 }
 0x724   :  { %v10838_v4 = vpop.f32.mrb[40].mxu1 }
 0x725   :  { %v10840_v7 = vpop.f32.mrb[41].mxu1  ;;  %v6339_v28 = vsel %vm2863_vm13, %v10838_v4, 0.0 }
 0x726   :  { %v6335_v24 = vsel %vm2863_vm13, %v10840_v7, 0.0  ;;  %v10844_v62 = vpop.f32.mrb[42].mxu1 }
 0x727   :  { %v6336_v61 = vadd.f32 %v6335_v24, %v6334_v21  ;;  %v10846_v16 = vpop.f32.mrb[43].mxu1  ;;  %v6341_v31 = vsel %vm2863_vm13, %v10844_v62, 0.0 }
 0x728   :  { %v6337_v29 = vsel %vm2863_vm13, %v10846_v16, 0.0 }
 0x729   :  { %v6338_v27 = vadd.f32 %v6337_v29, %v6336_v61 }
 0x72b   :  { %v6340_v9 = vadd.f32 %v6339_v28, %v6338_v27 }
 0x72d   :  { %v6342_v34 = vadd.f32 %v6341_v31, %v6340_v9 }
 0x744   :  { %v10854_v63 = vpop.f32.mrb[44].mxu1 }
 0x745   :  { %v10856_v56 = vpop.f32.mrb[45].mxu1  ;;  %v6347_v60 = vsel %vm2863_vm13, %v10854_v63, 0.0 }
 0x746   :  { %v6343_v13 = vsel %vm2863_vm13, %v10856_v56, 0.0  ;;  %v10860_v6 = vpop.f32.mrb[46].mxu1 }
 0x747   :  { %12428 = vst [vmem:[#allocation18_spill] sm:$0xff] %v10860_v6  ;;  %v6344_v26 = vadd.f32 %v6343_v13, %v6342_v34  ;;  %v10862_v11 = vpop.f32.mrb[47].mxu1  ;;  %v6349_v38 = vsel %vm2863_vm13, %v10860_v6, 0.0 }
 0x748   :  { %v6345_v1 = vsel %vm2863_vm13, %v10862_v11, 0.0 }
 0x749   :  { %v6346_v22 = vadd.f32 %v6345_v1, %v6344_v26 }
 0x74b   :  { %v6348_v23 = vadd.f32 %v6347_v60, %v6346_v22 }
 0x74d   :  { %v6350_v21 = vadd.f32 %v6349_v38, %v6348_v23 }
 0x764   :  { %v10870_v24 = vpop.f32.mrb[48].mxu1 }
 0x765   :  { %12429 = vst [vmem:[#allocation15_spill] sm:$0xff] %v10870_v24  ;;  %v10872_v61 = vpop.f32.mrb[49].mxu1  ;;  %v6355_v13 = vsel %vm2863_vm13, %v10870_v24, 0.0 }
 0x766   :  { %12430 = vst [vmem:[#allocation19_spill] sm:$0xff] %v10872_v61  ;;  %v6351_v29 = vsel %vm2863_vm13, %v10872_v61, 0.0  ;;  %v10876_v27 = vpop.f32.mrb[50].mxu1 }
 0x767   :  { %12431 = vst [vmem:[#allocation20_spill] sm:$0xff] %v10876_v27  ;;  %v6352_v28 = vadd.f32 %v6351_v29, %v6350_v21  ;;  %v10878_v9 = vpop.f32.mrb[51].mxu1  ;;  %v6357_v1 = vsel %vm2863_vm13, %v10876_v27, 0.0 }
 0x768   :  { %12432 = vst [vmem:[#allocation21_spill] sm:$0xff] %v10878_v9  ;;  %v6353_v31 = vsel %vm2863_vm13, %v10878_v9, 0.0 }
 0x769   :  { %v6354_v34 = vadd.f32 %v6353_v31, %v6352_v28 }
 0x76b   :  { %v6356_v26 = vadd.f32 %v6355_v13, %v6354_v34 }
 0x76d   :  { %v6358_v22 = vadd.f32 %v6357_v1, %v6356_v26 }
 0x784   :  { %v10886_v60 = vpop.f32.mrb[52].mxu1 }
 0x785   :  { %12433 = vst [vmem:[#allocation22_spill] sm:$0xff] %v10886_v60  ;;  %v10888_v23 = vpop.f32.mrb[53].mxu1  ;;  %v6363_v34 = vsel %vm2863_vm13, %v10886_v60, 0.0 }
 0x786   :  { %12434 = vst [vmem:[#allocation23_spill] sm:$0xff] %v10888_v23  ;;  %v6359_v38 = vsel %vm2863_vm13, %v10888_v23, 0.0  ;;  %v10892_v21 = vpop.f32.mrb[54].mxu1 }
 0x787   :  { %12435 = vst [vmem:[#allocation24_spill] sm:$0xff] %v10892_v21  ;;  %v6360_v29 = vadd.f32 %v6359_v38, %v6358_v22  ;;  %v10894_v9 = vpop.f32.mrb[55].mxu1  ;;  %v6365_v26 = vsel %vm2863_vm13, %v10892_v21, 0.0 }
 0x788   :  { %12436 = vst [vmem:[#allocation25_spill] sm:$0xff] %v10894_v9  ;;  %v6361_v28 = vsel %vm2863_vm13, %v10894_v9, 0.0 }
 0x789   :  { %v6362_v31 = vadd.f32 %v6361_v28, %v6360_v29 }
 0x78b   :  { %v6364_v13 = vadd.f32 %v6363_v34, %v6362_v31 }
 0x78d   :  { %v6366_v1 = vadd.f32 %v6365_v26, %v6364_v13 }
 0x7a4   :  { %v10902_v27 = vpop.f32.mrb[56].mxu1 }
 0x7a5   :  { %12437 = vst [vmem:[#allocation26_spill] sm:$0xff] %v10902_v27  ;;  %v10904_v23 = vpop.f32.mrb[57].mxu1  ;;  %v6371_v31 = vsel %vm2863_vm13, %v10902_v27, 0.0 }
 0x7a6   :  { %12438 = vst [vmem:[#allocation6_spill] sm:$0xff] %v10904_v23  ;;  %v6367_v22 = vsel %vm2863_vm13, %v10904_v23, 0.0  ;;  %v10908_v38 = vpop.f32.mrb[58].mxu1 }
 0x7a7   :  { %12439 = vst [vmem:[#allocation8_spill] sm:$0xff] %v10908_v38  ;;  %v6368_v24 = vadd.f32 %v6367_v22, %v6366_v1  ;;  %v10910_v9 = vpop.f32.mrb[59].mxu1  ;;  %v6373_v13 = vsel %vm2863_vm13, %v10908_v38, 0.0 }
 0x7a8   :  { %12440 = vst [vmem:[#allocation10_spill] sm:$0xff] %v10910_v9  ;;  %v6369_v29 = vsel %vm2863_vm13, %v10910_v9, 0.0 }
 0x7a9   :  { %v6370_v28 = vadd.f32 %v6369_v29, %v6368_v24 }
 0x7ab   :  { %v6372_v34 = vadd.f32 %v6371_v31, %v6370_v28 }
 0x7ad   :  { %v6374_v26 = vadd.f32 %v6373_v13, %v6372_v34 }
 0x7c7   :  { %v10918_v21 = vpop.f32.mrb[60].mxu1 }
 0x7c8   :  { %v10920_v23 = vpop.f32.mrb[61].mxu1  ;;  %v6379_v28 = vsel %vm2863_vm13, %v10918_v21, 0.0 }
 0x7c9   :  { %12441 = vst [vmem:[#allocation7_spill] sm:$0xff] %v10920_v23  ;;  %v6375_v1 = vsel %vm2863_vm13, %v10920_v23, 0.0  ;;  %v10924_v22 = vpop.f32.mrb[62].mxu1 }
 0x7ca   :  { %v6376_v60 = vadd.f32 %v6375_v1, %v6374_v26  ;;  %v10926_v9 = vpop.f32.mrb[63].mxu1  ;;  %v6381_v34 = vsel %vm2863_vm13, %v10924_v22, 0.0 }
 0x7cb   :  { %12442 = vst [vmem:[#allocation9_spill] sm:$0xff] %v10926_v9  ;;  %v6377_v24 = vsel %vm2863_vm13, %v10926_v9, 0.0 }
 0x7cc   :  { %v6378_v29 = vadd.f32 %v6377_v24, %v6376_v60 }
 0x7ce   :  { %v6380_v31 = vadd.f32 %v6379_v28, %v6378_v29  ;;  %v12453_v29 = vld [vmem:[#allocation15_spill] sm:$0xff]  ;;  %v12455_v28 = vld [vmem:[#allocation20_spill] sm:$0xff] }
 0x7d0   :  { %v6382_v13 = vadd.f32 %v6381_v34, %v6380_v31  ;;  %v12457_v31 = vld [vmem:[#allocation23_spill] sm:$0xff] }
 0x7d2   :  { %v6383_v38 = vrot.slane %v6382_v13, 4 }
 0x7d4   :  { %v6384_v27 = vadd.f32 %v6383_v38, %v6382_v13  ;;  %v12459_v13 = vld [vmem:[#allocation25_spill] sm:$0xff] }
 0x7d6   :  { %v6385_v23 = vrot.slane %v6384_v27, 2 }
 0x7d8   :  { %v6386_v61 = vadd.f32 %v6385_v23, %v6384_v27  ;;  %v12449_v27 = vld [vmem:[#allocation19_spill] sm:$0xff]  ;;  %v12451_v23 = vld [vmem:[#allocation21_spill] sm:$0xff] }
 0x7da   :  { %v6387_v6 = vrot.slane %v6386_v61, 1 }
 0x7dc   :  { %v6388_v26 = vadd.f32 %v6387_v6, %v6386_v61  ;;  %v12447_v61 = vld [vmem:[#allocation18_spill] sm:$0xff] }
 0x7de   :  { %v10934_v1 = vmul.f32 0.001953125, %v6388_v26 }
 0x7e0   :  { %v10938_v9 = vsub.f32 %v10445_v14, %v10934_v1  ;;  %v10942_v60 = vsub.f32 %v10449_v5, %v10934_v1  ;;  %v10946_v24 = vsub.f32 %v10440_v3, %v10934_v1  ;;  %v10950_v38 = vsub.f32 %v10447_v57, %v10934_v1 }
 0x7e1   :  { %v10954_v6 = vsub.f32 %v10499_v51, %v10934_v1  ;;  %v10958_v14 = vsub.f32 %v10505_v46, %v10934_v1  ;;  %v10962_v5 = vsub.f32 %v10494_v43, %v10934_v1  ;;  %v10966_v3 = vsub.f32 %v10503_v35, %v10934_v1 }
 0x7e2   :  { %12443 = vst [vmem:[#allocation12_spill] sm:$0xff] %v10938_v9  ;;  %12444 = vst [vmem:[#allocation14_spill] sm:$0xff] %v10942_v60  ;;  %v10970_v57 = vsub.f32 %v10553_v25, %v10934_v1  ;;  %v10974_v51 = vsub.f32 %v10559_v58, %v10934_v1  ;;  %v10978_v46 = vsub.f32 %v10548_v30, %v10934_v1 }
 0x7e3   :  { %12445 = vst [vmem:[#allocation11_spill] sm:$0xff] %v10946_v24  ;;  %12446 = vst [vmem:[#allocation13_spill] sm:$0xff] %v10950_v38  ;;  %v10982_v43 = vsub.f32 %v10557_v12, %v10934_v1  ;;  %v10986_v35 = vsub.f32 %v10607_v0, %v10934_v1  ;;  %v10990_v25 = vsub.f32 %v10613_v36, %v10934_v1 }
 0x7e4   :  { %v10994_v58 = vsub.f32 %v10602_v19, %v10934_v1  ;;  %v10998_v30 = vsub.f32 %v10611_v8, %v10934_v1  ;;  %v11002_v12 = vsub.f32 %v10660_v55, %v10934_v1  ;;  %v11006_v0 = vsub.f32 %v10666_v42, %v10934_v1 }
 0x7e5   :  { %v11010_v36 = vsub.f32 %v10656_v37, %v10934_v1  ;;  %v11014_v19 = vsub.f32 %v10664_v41, %v10934_v1  ;;  %v11018_v8 = vsub.f32 %v10702_v53, %v10934_v1  ;;  %v11022_v55 = vsub.f32 %v10708_v20, %v10934_v1 }
 0x7e6   :  { %v11026_v42 = vsub.f32 %v10700_v39, %v10934_v1  ;;  %v11030_v37 = vsub.f32 %v10706_v33, %v10934_v1  ;;  %v11034_v41 = vsub.f32 %v10736_v54, %v10934_v1  ;;  %v11038_v53 = vsub.f32 %v10742_v52, %v10934_v1 }
 0x7e7   :  { %v11042_v20 = vsub.f32 %v10734_v49, %v10934_v1  ;;  %v11046_v39 = vsub.f32 %v10740_v17, %v10934_v1  ;;  %v11050_v33 = vsub.f32 %v10770_v47, %v10934_v1  ;;  %v11054_v54 = vsub.f32 %v10776_v40, %v10934_v1 }
 0x7e8   :  { %v11058_v52 = vsub.f32 %v10768_v59, %v10934_v1  ;;  %v11062_v49 = vsub.f32 %v10774_v45, %v10934_v1  ;;  %v11066_v17 = vsub.f32 %v10804_v48, %v10934_v1  ;;  %v11070_v47 = vsub.f32 %v10810_v44, %v10934_v1 }
 0x7e9   :  { %v11074_v40 = vsub.f32 %v10802_v32, %v10934_v1  ;;  %v11078_v59 = vsub.f32 %v10808_v15, %v10934_v1  ;;  %v11082_v45 = vsub.f32 %v10824_v2, %v10934_v1  ;;  %v11086_v48 = vsub.f32 %v10830_v50, %v10934_v1 }
 0x7ea   :  { %v11090_v44 = vsub.f32 %v10822_v10, %v10934_v1  ;;  %v11094_v32 = vsub.f32 %v10828_v18, %v10934_v1  ;;  %v11098_v15 = vsub.f32 %v10840_v7, %v10934_v1  ;;  %v11102_v2 = vsub.f32 %v10846_v16, %v10934_v1 }
 0x7eb   :  { %v11106_v50 = vsub.f32 %v10838_v4, %v10934_v1  ;;  %v11110_v10 = vsub.f32 %v10844_v62, %v10934_v1  ;;  %v11114_v18 = vsub.f32 %v10856_v56, %v10934_v1  ;;  %v11118_v7 = vsub.f32 %v10862_v11, %v10934_v1 }
 0x7ec   :  { %v11122_v16 = vsub.f32 %v10854_v63, %v10934_v1  ;;  %v11126_v4 = vsub.f32 %v12447_v61, %v10934_v1  ;;  %v11130_v62 = vsub.f32 %v12449_v27, %v10934_v1  ;;  %v11134_v56 = vsub.f32 %v12451_v23, %v10934_v1  ;;  %v12461_v61 = vld [vmem:[#allocation22_spill] sm:$0xff]  ;;  %v12463_v23 = vld [vmem:[#allocation24_spill] sm:$0xff] }
 0x7ed   :  { %v11138_v11 = vsub.f32 %v12453_v29, %v10934_v1  ;;  %v11142_v63 = vsub.f32 %v12455_v28, %v10934_v1  ;;  %v11146_v34 = vsub.f32 %v12457_v31, %v10934_v1  ;;  %v11150_v26 = vsub.f32 %v12459_v13, %v10934_v1 }
 0x7ee   :  { %12448 = vst [vmem:[#allocation16_spill] sm:$0xff] %v11126_v4  ;;  %12450 = vst [vmem:[#allocation18_spill] sm:$0xff] %v11130_v62  ;;  %v11154_v27 = vsub.f32 %v12461_v61, %v10934_v1  ;;  %v11158_v29 = vsub.f32 %v12463_v23, %v10934_v1 }
 0x7ef   :  { %12452 = vst [vmem:[#allocation19_spill] sm:$0xff] %v11134_v56  ;;  %12454 = vst [vmem:[#allocation21_spill] sm:$0xff] %v11138_v11  ;;  %v12465_v11 = vld [vmem:[#allocation6_spill] sm:$0xff] }
 0x7f0   :  { %12456 = vst [vmem:[#allocation15_spill] sm:$0xff] %v11142_v63  ;;  %12458 = vst [vmem:[#allocation20_spill] sm:$0xff] %v11146_v34  ;;  %v11162_v28 = vsub.f32 %v12465_v11, %v10934_v1  ;;  %v12467_v63 = vld [vmem:[#allocation10_spill] sm:$0xff] }
 0x7f1   :  { %12460 = vst [vmem:[#allocation23_spill] sm:$0xff] %v11150_v26  ;;  %12462 = vst [vmem:[#allocation25_spill] sm:$0xff] %v11154_v27  ;;  %v11166_v31 = vsub.f32 %v12467_v63, %v10934_v1  ;;  %v12469_v34 = vld [vmem:[#allocation26_spill] sm:$0xff]  ;;  %v12471_v26 = vld [vmem:[#allocation8_spill] sm:$0xff]  ;;  %v11186_v63 = vsub.f32 %v10918_v21, %v10934_v1 }
 0x7f2   :  { %12464 = vst [vmem:[#allocation22_spill] sm:$0xff] %v11158_v29  ;;  %12466 = vst [vmem:[#allocation24_spill] sm:$0xff] %v11162_v28  ;;  %v11170_v13 = vsub.f32 %v12469_v34, %v10934_v1  ;;  %v11174_v61 = vsub.f32 %v12471_v26, %v10934_v1  ;;  %v12473_v27 = vld [vmem:[#allocation7_spill] sm:$0xff]  ;;  %v12475_v29 = vld [vmem:[#allocation9_spill] sm:$0xff]  ;;  %v11190_v34 = vsub.f32 %v10924_v22, %v10934_v1 }
 0x7f3   :  { %12468 = vst [vmem:[#allocation6_spill] sm:$0xff] %v11166_v31  ;;  %v11178_v23 = vsub.f32 %v12473_v27, %v10934_v1  ;;  %v11182_v11 = vsub.f32 %v12475_v29, %v10934_v1  ;;  %12477 = vst [vmem:[#allocation9_spill] sm:$0xff] %v11186_v63  ;;  %v6454_v26 = vmul.f32 %v10938_v9, %v10938_v9 }
 0x7f4   :  { %12470 = vst [vmem:[#allocation10_spill] sm:$0xff] %v11170_v13  ;;  %12472 = vst [vmem:[#allocation26_spill] sm:$0xff] %v11174_v61  ;;  %v6455_v61 = vmul.f32 %v10942_v60, %v10942_v60  ;;  %v6456_v27 = vmul.f32 %v10946_v24, %v10946_v24  ;;  %v6457_v29 = vmul.f32 %v10950_v38, %v10950_v38 }
 0x7f5   :  { %12474 = vst [vmem:[#allocation8_spill] sm:$0xff] %v11178_v23  ;;  %12476 = vst [vmem:[#allocation7_spill] sm:$0xff] %v11182_v11  ;;  %v6518_v11 = vsel %vm2863_vm13, %v6454_v26, 0.0  ;;  %v6458_v22 = vmul.f32 %v10954_v6, %v10954_v6  ;;  %v6459_v60 = vmul.f32 %v10958_v14, %v10958_v14  ;;  %v6460_v38 = vmul.f32 %v10962_v5, %v10962_v5 }
 0x7f6   :  { %12478 = vst [vmem:[#allocation27_spill] sm:$0xff] %v11190_v34  ;;  %v6519_v21 = vsel %vm2863_vm13, %v6455_v61, 0.0  ;;  %v6521_v1 = vsel %vm2863_vm13, %v6456_v27, 0.0  ;;  %v6523_v34 = vsel %vm2863_vm13, %v6457_v29, 0.0  ;;  %v6461_v61 = vmul.f32 %v10966_v3, %v10966_v3 }
 0x7f7   :  { %v6520_v63 = vadd.f32 %v6519_v21, %v6518_v11  ;;  %v6525_v26 = vsel %vm2863_vm13, %v6458_v22, 0.0  ;;  %v6527_v11 = vsel %vm2863_vm13, %v6459_v60, 0.0  ;;  %v6529_v27 = vsel %vm2863_vm13, %v6460_v38, 0.0 }
 0x7f8   :  { %v6465_v60 = vmul.f32 %v10982_v43, %v10982_v43  ;;  %v6466_v38 = vmul.f32 %v10986_v35, %v10986_v35 }
 0x7f9   :  { %v6522_v9 = vadd.f32 %v6521_v1, %v6520_v63  ;;  %v6462_v63 = vmul.f32 %v10970_v57, %v10970_v57 }
 0x7fb   :  { %v6524_v24 = vadd.f32 %v6523_v34, %v6522_v9  ;;  %v6463_v9 = vmul.f32 %v10974_v51, %v10974_v51  ;;  %v6531_v34 = vsel %vm2863_vm13, %v6461_v61, 0.0  ;;  %v6533_v22 = vsel %vm2863_vm13, %v6462_v63, 0.0 }
 0x7fc   :  { %v6467_v61 = vmul.f32 %v10990_v25, %v10990_v25  ;;  %v6468_v63 = vmul.f32 %v10994_v58, %v10994_v58 }
 0x7fd   :  { %v6526_v23 = vadd.f32 %v6525_v26, %v6524_v24  ;;  %v6464_v24 = vmul.f32 %v10978_v46, %v10978_v46 }
 0x7ff   :  { %v6528_v21 = vadd.f32 %v6527_v11, %v6526_v23  ;;  %v6535_v23 = vsel %vm2863_vm13, %v6463_v9, 0.0  ;;  %v6469_v9 = vmul.f32 %v10998_v30, %v10998_v30 }
 0x801   :  { %v6530_v1 = vadd.f32 %v6529_v27, %v6528_v21  ;;  %v6537_v21 = vsel %vm2863_vm13, %v6464_v24, 0.0  ;;  %v6470_v24 = vmul.f32 %v11002_v12, %v11002_v12 }
 0x803   :  { %v6532_v29 = vadd.f32 %v6531_v34, %v6530_v1  ;;  %v6539_v1 = vsel %vm2863_vm13, %v6465_v60, 0.0  ;;  %v6471_v60 = vmul.f32 %v11006_v0, %v11006_v0 }
 0x805   :  { %v6534_v26 = vadd.f32 %v6533_v22, %v6532_v29  ;;  %v6541_v29 = vsel %vm2863_vm13, %v6466_v38, 0.0  ;;  %v6472_v38 = vmul.f32 %v11010_v36, %v11010_v36 }
 0x807   :  { %v6536_v11 = vadd.f32 %v6535_v23, %v6534_v26  ;;  %v6543_v26 = vsel %vm2863_vm13, %v6467_v61, 0.0  ;;  %v6473_v61 = vmul.f32 %v11014_v19, %v11014_v19 }
 0x809   :  { %v6538_v27 = vadd.f32 %v6537_v21, %v6536_v11  ;;  %v6545_v11 = vsel %vm2863_vm13, %v6468_v63, 0.0  ;;  %v6474_v63 = vmul.f32 %v11018_v8, %v11018_v8 }
 0x80b   :  { %v6540_v34 = vadd.f32 %v6539_v1, %v6538_v27  ;;  %v6547_v27 = vsel %vm2863_vm13, %v6469_v9, 0.0  ;;  %v6475_v9 = vmul.f32 %v11022_v55, %v11022_v55 }
 0x80d   :  { %v6542_v22 = vadd.f32 %v6541_v29, %v6540_v34  ;;  %v6549_v34 = vsel %vm2863_vm13, %v6470_v24, 0.0  ;;  %v6476_v24 = vmul.f32 %v11026_v42, %v11026_v42 }
 0x80f   :  { %v6544_v23 = vadd.f32 %v6543_v26, %v6542_v22  ;;  %v6551_v22 = vsel %vm2863_vm13, %v6471_v60, 0.0  ;;  %v6477_v60 = vmul.f32 %v11030_v37, %v11030_v37 }
 0x811   :  { %v6546_v21 = vadd.f32 %v6545_v11, %v6544_v23  ;;  %v6553_v23 = vsel %vm2863_vm13, %v6472_v38, 0.0  ;;  %v6478_v38 = vmul.f32 %v11034_v41, %v11034_v41 }
 0x813   :  { %v6548_v1 = vadd.f32 %v6547_v27, %v6546_v21  ;;  %v6555_v21 = vsel %vm2863_vm13, %v6473_v61, 0.0  ;;  %v6479_v61 = vmul.f32 %v11038_v53, %v11038_v53 }
 0x815   :  { %v6550_v29 = vadd.f32 %v6549_v34, %v6548_v1  ;;  %v6557_v1 = vsel %vm2863_vm13, %v6474_v63, 0.0  ;;  %v6480_v63 = vmul.f32 %v11042_v20, %v11042_v20 }
 0x817   :  { %v6552_v26 = vadd.f32 %v6551_v22, %v6550_v29  ;;  %v6559_v29 = vsel %vm2863_vm13, %v6475_v9, 0.0  ;;  %v6481_v9 = vmul.f32 %v11046_v39, %v11046_v39 }
 0x819   :  { %v6554_v11 = vadd.f32 %v6553_v23, %v6552_v26  ;;  %v6561_v26 = vsel %vm2863_vm13, %v6476_v24, 0.0  ;;  %v6482_v24 = vmul.f32 %v11050_v33, %v11050_v33 }
 0x81b   :  { %v6556_v27 = vadd.f32 %v6555_v21, %v6554_v11  ;;  %v6563_v11 = vsel %vm2863_vm13, %v6477_v60, 0.0  ;;  %v6483_v60 = vmul.f32 %v11054_v54, %v11054_v54 }
 0x81d   :  { %v6558_v34 = vadd.f32 %v6557_v1, %v6556_v27  ;;  %v6565_v27 = vsel %vm2863_vm13, %v6478_v38, 0.0  ;;  %v6484_v38 = vmul.f32 %v11058_v52, %v11058_v52 }
 0x81f   :  { %v6560_v22 = vadd.f32 %v6559_v29, %v6558_v34  ;;  %v6567_v34 = vsel %vm2863_vm13, %v6479_v61, 0.0  ;;  %v6485_v61 = vmul.f32 %v11062_v49, %v11062_v49 }
 0x821   :  { %v6562_v23 = vadd.f32 %v6561_v26, %v6560_v22  ;;  %v6569_v22 = vsel %vm2863_vm13, %v6480_v63, 0.0  ;;  %v6486_v63 = vmul.f32 %v11066_v17, %v11066_v17 }
 0x823   :  { %v6564_v21 = vadd.f32 %v6563_v11, %v6562_v23  ;;  %v6571_v23 = vsel %vm2863_vm13, %v6481_v9, 0.0  ;;  %v6487_v9 = vmul.f32 %v11070_v47, %v11070_v47 }
 0x825   :  { %v6566_v1 = vadd.f32 %v6565_v27, %v6564_v21  ;;  %v6573_v21 = vsel %vm2863_vm13, %v6482_v24, 0.0  ;;  %v6488_v24 = vmul.f32 %v11074_v40, %v11074_v40 }
 0x827   :  { %v6568_v29 = vadd.f32 %v6567_v34, %v6566_v1  ;;  %v6575_v1 = vsel %vm2863_vm13, %v6483_v60, 0.0  ;;  %v6489_v60 = vmul.f32 %v11078_v59, %v11078_v59 }
 0x829   :  { %v6570_v26 = vadd.f32 %v6569_v22, %v6568_v29  ;;  %v6577_v29 = vsel %vm2863_vm13, %v6484_v38, 0.0  ;;  %v6490_v38 = vmul.f32 %v11082_v45, %v11082_v45 }
 0x82b   :  { %v6572_v11 = vadd.f32 %v6571_v23, %v6570_v26  ;;  %v6579_v26 = vsel %vm2863_vm13, %v6485_v61, 0.0  ;;  %v6491_v61 = vmul.f32 %v11086_v48, %v11086_v48 }
 0x82d   :  { %v6574_v27 = vadd.f32 %v6573_v21, %v6572_v11  ;;  %v6581_v11 = vsel %vm2863_vm13, %v6486_v63, 0.0  ;;  %v6492_v63 = vmul.f32 %v11090_v44, %v11090_v44 }
 0x82f   :  { %v6576_v34 = vadd.f32 %v6575_v1, %v6574_v27  ;;  %v6583_v27 = vsel %vm2863_vm13, %v6487_v9, 0.0  ;;  %v6493_v9 = vmul.f32 %v11094_v32, %v11094_v32 }
 0x831   :  { %v6578_v22 = vadd.f32 %v6577_v29, %v6576_v34  ;;  %v6585_v34 = vsel %vm2863_vm13, %v6488_v24, 0.0  ;;  %v6494_v24 = vmul.f32 %v11098_v15, %v11098_v15 }
 0x833   :  { %v6580_v23 = vadd.f32 %v6579_v26, %v6578_v22  ;;  %v6587_v22 = vsel %vm2863_vm13, %v6489_v60, 0.0  ;;  %v6495_v60 = vmul.f32 %v11102_v2, %v11102_v2 }
 0x835   :  { %v6582_v21 = vadd.f32 %v6581_v11, %v6580_v23  ;;  %v6589_v23 = vsel %vm2863_vm13, %v6490_v38, 0.0  ;;  %v6496_v38 = vmul.f32 %v11106_v50, %v11106_v50 }
 0x837   :  { %v6584_v1 = vadd.f32 %v6583_v27, %v6582_v21  ;;  %v6591_v21 = vsel %vm2863_vm13, %v6491_v61, 0.0  ;;  %v6497_v61 = vmul.f32 %v11110_v10, %v11110_v10 }
 0x839   :  { %v6586_v29 = vadd.f32 %v6585_v34, %v6584_v1  ;;  %v6593_v1 = vsel %vm2863_vm13, %v6492_v63, 0.0  ;;  %v6498_v63 = vmul.f32 %v11114_v18, %v11114_v18 }
 0x83b   :  { %v6588_v26 = vadd.f32 %v6587_v22, %v6586_v29  ;;  %v6595_v29 = vsel %vm2863_vm13, %v6493_v9, 0.0  ;;  %v6499_v9 = vmul.f32 %v11118_v7, %v11118_v7 }
 0x83d   :  { %v6590_v11 = vadd.f32 %v6589_v23, %v6588_v26  ;;  %v6597_v26 = vsel %vm2863_vm13, %v6494_v24, 0.0  ;;  %v6500_v24 = vmul.f32 %v11122_v16, %v11122_v16 }
 0x83f   :  { %v6592_v27 = vadd.f32 %v6591_v21, %v6590_v11  ;;  %v6599_v11 = vsel %vm2863_vm13, %v6495_v60, 0.0  ;;  %v6501_v60 = vmul.f32 %v11126_v4, %v11126_v4 }
 0x841   :  { %v6594_v34 = vadd.f32 %v6593_v1, %v6592_v27  ;;  %v6601_v27 = vsel %vm2863_vm13, %v6496_v38, 0.0  ;;  %v6502_v38 = vmul.f32 %v11130_v62, %v11130_v62 }
 0x843   :  { %v6596_v22 = vadd.f32 %v6595_v29, %v6594_v34  ;;  %v6603_v34 = vsel %vm2863_vm13, %v6497_v61, 0.0  ;;  %v6503_v61 = vmul.f32 %v11134_v56, %v11134_v56 }
 0x845   :  { %v6598_v23 = vadd.f32 %v6597_v26, %v6596_v22  ;;  %v6605_v22 = vsel %vm2863_vm13, %v6498_v63, 0.0  ;;  %v12479_v63 = vld [vmem:[#allocation21_spill] sm:$0xff] }
 0x847   :  { %v6600_v21 = vadd.f32 %v6599_v11, %v6598_v23  ;;  %v6607_v23 = vsel %vm2863_vm13, %v6499_v9, 0.0  ;;  %v12480_v9 = vld [vmem:[#allocation15_spill] sm:$0xff] }
 0x849   :  { %v6602_v1 = vadd.f32 %v6601_v27, %v6600_v21  ;;  %v6609_v21 = vsel %vm2863_vm13, %v6500_v24, 0.0  ;;  %v12481_v24 = vld [vmem:[#allocation20_spill] sm:$0xff] }
 0x84b   :  { %v6604_v29 = vadd.f32 %v6603_v34, %v6602_v1  ;;  %v6611_v1 = vsel %vm2863_vm13, %v6501_v60, 0.0  ;;  %v12482_v60 = vld [vmem:[#allocation23_spill] sm:$0xff] }
 0x84d   :  { %v6606_v26 = vadd.f32 %v6605_v22, %v6604_v29  ;;  %v6504_v29 = vmul.f32 %v12479_v63, %v12479_v63  ;;  %v6613_v22 = vsel %vm2863_vm13, %v6502_v38, 0.0  ;;  %v12483_v38 = vld [vmem:[#allocation25_spill] sm:$0xff] }
 0x84f   :  { %v6608_v11 = vadd.f32 %v6607_v23, %v6606_v26  ;;  %v6505_v26 = vmul.f32 %v12480_v9, %v12480_v9  ;;  %v6615_v23 = vsel %vm2863_vm13, %v6503_v61, 0.0  ;;  %v12484_v61 = vld [vmem:[#allocation22_spill] sm:$0xff] }
 0x851   :  { %v6610_v27 = vadd.f32 %v6609_v21, %v6608_v11  ;;  %v6506_v11 = vmul.f32 %v12481_v24, %v12481_v24  ;;  %v6617_v21 = vsel %vm2863_vm13, %v6504_v29, 0.0 }
 0x853   :  { %v6612_v34 = vadd.f32 %v6611_v1, %v6610_v27  ;;  %v6507_v27 = vmul.f32 %v12482_v60, %v12482_v60  ;;  %v6619_v1 = vsel %vm2863_vm13, %v6505_v26, 0.0 }
 0x855   :  { %v6614_v4 = vadd.f32 %v6613_v22, %v6612_v34  ;;  %v6508_v34 = vmul.f32 %v12483_v38, %v12483_v38  ;;  %v6621_v22 = vsel %vm2863_vm13, %v6506_v11, 0.0 }
 0x857   :  { %v6616_v62 = vadd.f32 %v6615_v23, %v6614_v4  ;;  %v6509_v4 = vmul.f32 %v12484_v61, %v12484_v61  ;;  %v6623_v23 = vsel %vm2863_vm13, %v6507_v27, 0.0  ;;  %v6625_v29 = vsel %vm2863_vm13, %v6508_v34, 0.0  ;;  %v12485_v27 = vld [vmem:[#allocation26_spill] sm:$0xff]  ;;  %v12486_v34 = vld [vmem:[#allocation8_spill] sm:$0xff] }
 0x859   :  { %v6618_v56 = vadd.f32 %v6617_v21, %v6616_v62  ;;  %v6510_v62 = vmul.f32 %v11162_v28, %v11162_v28  ;;  %v6627_v26 = vsel %vm2863_vm13, %v6509_v4, 0.0  ;;  %v12487_v4 = vld [vmem:[#allocation7_spill] sm:$0xff] }
 0x85b   :  { %v6620_v63 = vadd.f32 %v6619_v1, %v6618_v56  ;;  %v6511_v56 = vmul.f32 %v11166_v31, %v11166_v31  ;;  %v6629_v11 = vsel %vm2863_vm13, %v6510_v62, 0.0  ;;  %v12488_v62 = vld [vmem:[#allocation9_spill] sm:$0xff] }
 0x85d   :  { %v6622_v9 = vadd.f32 %v6621_v22, %v6620_v63  ;;  %v6512_v63 = vmul.f32 %v11170_v13, %v11170_v13 }
 0x85f   :  { %v6624_v24 = vadd.f32 %v6623_v23, %v6622_v9  ;;  %v6513_v9 = vmul.f32 %v12485_v27, %v12485_v27  ;;  %v6631_v23 = vsel %vm2863_vm13, %v6511_v56, 0.0  ;;  %v12489_v56 = vld [vmem:[#allocation27_spill] sm:$0xff] }
 0x861   :  { %v6626_v21 = vadd.f32 %v6625_v29, %v6624_v24  ;;  %v6514_v24 = vmul.f32 %v12486_v34, %v12486_v34  ;;  %v6633_v29 = vsel %vm2863_vm13, %v6512_v63, 0.0 }
 0x863   :  { %v6628_v1 = vadd.f32 %v6627_v26, %v6626_v21  ;;  %v6515_v21 = vmul.f32 %v12487_v4, %v12487_v4  ;;  %v6635_v26 = vsel %vm2863_vm13, %v6513_v9, 0.0 }
 0x865   :  { %v6630_v22 = vadd.f32 %v6629_v11, %v6628_v1  ;;  %v6516_v1 = vmul.f32 %v12488_v62, %v12488_v62  ;;  %v6637_v11 = vsel %vm2863_vm13, %v6514_v24, 0.0 }
 0x867   :  { %v6632_v28 = vadd.f32 %v6631_v23, %v6630_v22  ;;  %v6517_v22 = vmul.f32 %v12489_v56, %v12489_v56  ;;  %v6639_v23 = vsel %vm2863_vm13, %v6515_v21, 0.0  ;;  %v6652_v21 = vld [vmem:[%s12233_s5] sm:$0x1] }
 0x869   :  { %v6634_v31 = vadd.f32 %v6633_v29, %v6632_v28  ;;  %v6641_v28 = vsel %vm2863_vm13, %v6516_v1, 0.0  ;;  %v6643_v29 = vsel %vm2863_vm13, %v6517_v22, 0.0  ;;  %v12490_v1 = vld [vmem:[#allocation17_spill] sm:$0xff]  ;;  %v12492_v22 = vld [vmem:[#allocation12_spill] sm:$0xff] }
 0x86b   :  { %v6636_v13 = vadd.f32 %v6635_v26, %v6634_v31 }
 0x86d   :  { %v6638_v27 = vadd.f32 %v6637_v11, %v6636_v13 }
 0x86f   :  { %v6640_v34 = vadd.f32 %v6639_v23, %v6638_v27 }
 0x871   :  { %v6642_v63 = vadd.f32 %v6641_v28, %v6640_v34  ;;  %v12491_v34 = vsub.s32 0, %v12490_v1  ;;  %v12493_v28 = vld [vmem:[#allocation14_spill] sm:$0xff]  ;;  %v12499_v1 = vld [vmem:[#allocation21_spill] sm:$0xff] }
 0x873   :  { %v6644_v4 = vadd.f32 %v6643_v29, %v6642_v63  ;;  %v12495_v63 = vld [vmem:[#allocation13_spill] sm:$0xff] }
 0x875   :  { %v6645_v9 = vrot.slane %v6644_v4, 4 }
 0x877   :  { %v6646_v31 = vadd.f32 %v6645_v9, %v6644_v4 }
 0x879   :  { %v6647_v26 = vrot.slane %v6646_v31, 2 }
 0x87b   :  { %v6648_v61 = vadd.f32 %v6647_v26, %v6646_v31 }
 0x87d   :  { %v6649_v62 = vrot.slane %v6648_v61, 1 }
 0x87f   :  { %v6650_v38 = vadd.f32 %v6649_v62, %v6648_v61 }
 0x881   :  { %v6651_v24 = vmul.f32 0.001953125, %v6650_v38  ;;  %v12494_v38 = vld [vmem:[#allocation11_spill] sm:$0xff] }
 0x883   :  { %v6653_v13 = vadd.f32 1e-05, %v6651_v24 }
 0x885   :  { %7244 = vrsqrt.f32 %v6653_v13 }
 0x88f   :  { %v7245_v27 = vpop.eup %7244 }
 0x890   :  { %v6655_v11 = vmul.f32 %v7245_v27, %v6652_v21  ;;  %v12496_v21 = vld [vmem:[#allocation16_spill] sm:$0xff]  ;;  %v12497_v27 = vld [vmem:[#allocation18_spill] sm:$0xff] }
 0x892   :  { %v11389_v23 = vrot.slane %v6655_v11, %v12491_v34  ;;  %v12498_v11 = vld [vmem:[#allocation19_spill] sm:$0xff] }
 0x893   :  { %v12501_v34 = vld [vmem:[#allocation15_spill] sm:$0xff] }
 0x894   :  { %v11393_v4 = vmul.f32 %v11389_v23, %v12492_v22  ;;  %v11397_v61 = vmul.f32 %v11389_v23, %v12493_v28  ;;  %v11401_v62 = vmul.f32 %v11389_v23, %v12494_v38  ;;  %v11405_v29 = vmul.f32 %v11389_v23, %v12495_v63  ;;  %v12503_v22 = vld [vmem:[#allocation20_spill] sm:$0xff]  ;;  %v12506_v63 = vld [vmem:[#allocation25_spill] sm:$0xff] }
 0x895   :  { %v11409_v9 = vmul.f32 %v11389_v23, %v10954_v6  ;;  %v11413_v31 = vmul.f32 %v11389_v23, %v10958_v14  ;;  %v11417_v26 = vmul.f32 %v11389_v23, %v10962_v5  ;;  %v11421_v24 = vmul.f32 %v11389_v23, %v10966_v3 }
 0x896   :  { %v11425_v13 = vmul.f32 %v11389_v23, %v10970_v57  ;;  %v11429_v6 = vmul.f32 %v11389_v23, %v10974_v51  ;;  %v11433_v14 = vmul.f32 %v11389_v23, %v10978_v46  ;;  %v11437_v5 = vmul.f32 %v11389_v23, %v10982_v43 }
 0x897   :  { %v11441_v3 = vmul.f32 %v11389_v23, %v10986_v35  ;;  %v11445_v57 = vmul.f32 %v11389_v23, %v10990_v25  ;;  %v11449_v51 = vmul.f32 %v11389_v23, %v10994_v58  ;;  %v11453_v46 = vmul.f32 %v11389_v23, %v10998_v30 }
 0x898   :  { %v11457_v43 = vmul.f32 %v11389_v23, %v11002_v12  ;;  %v11461_v35 = vmul.f32 %v11389_v23, %v11006_v0  ;;  %v11465_v25 = vmul.f32 %v11389_v23, %v11010_v36  ;;  %v11469_v58 = vmul.f32 %v11389_v23, %v11014_v19 }
 0x899   :  { %v11473_v30 = vmul.f32 %v11389_v23, %v11018_v8  ;;  %v11477_v12 = vmul.f32 %v11389_v23, %v11022_v55  ;;  %v11481_v0 = vmul.f32 %v11389_v23, %v11026_v42  ;;  %v11485_v36 = vmul.f32 %v11389_v23, %v11030_v37 }
 0x89a   :  { %v11489_v19 = vmul.f32 %v11389_v23, %v11034_v41  ;;  %v11493_v8 = vmul.f32 %v11389_v23, %v11038_v53  ;;  %v11497_v55 = vmul.f32 %v11389_v23, %v11042_v20  ;;  %v11501_v42 = vmul.f32 %v11389_v23, %v11046_v39 }
 0x89b   :  { %v11505_v37 = vmul.f32 %v11389_v23, %v11050_v33  ;;  %v11509_v41 = vmul.f32 %v11389_v23, %v11054_v54  ;;  %v11513_v53 = vmul.f32 %v11389_v23, %v11058_v52  ;;  %v11517_v20 = vmul.f32 %v11389_v23, %v11062_v49 }
 0x89c   :  { %v11521_v39 = vmul.f32 %v11389_v23, %v11066_v17  ;;  %v11525_v33 = vmul.f32 %v11389_v23, %v11070_v47  ;;  %v11529_v54 = vmul.f32 %v11389_v23, %v11074_v40  ;;  %v11533_v52 = vmul.f32 %v11389_v23, %v11078_v59 }
 0x89d   :  { %v11537_v49 = vmul.f32 %v11389_v23, %v11082_v45  ;;  %v11541_v17 = vmul.f32 %v11389_v23, %v11086_v48  ;;  %v11545_v47 = vmul.f32 %v11389_v23, %v11090_v44  ;;  %v11549_v40 = vmul.f32 %v11389_v23, %v11094_v32 }
 0x89e   :  { %v11553_v59 = vmul.f32 %v11389_v23, %v11098_v15  ;;  %v11557_v45 = vmul.f32 %v11389_v23, %v11102_v2  ;;  %v11561_v48 = vmul.f32 %v11389_v23, %v11106_v50  ;;  %v11565_v44 = vmul.f32 %v11389_v23, %v11110_v10 }
 0x89f   :  { %v11569_v32 = vmul.f32 %v11389_v23, %v11114_v18  ;;  %v11573_v15 = vmul.f32 %v11389_v23, %v11118_v7  ;;  %v11577_v2 = vmul.f32 %v11389_v23, %v11122_v16  ;;  %v11581_v50 = vmul.f32 %v11389_v23, %v12496_v21 }
 0x8a0   :  { %v11585_v10 = vmul.f32 %v11389_v23, %v12497_v27  ;;  %v11589_v18 = vmul.f32 %v11389_v23, %v12498_v11  ;;  %v11593_v7 = vmul.f32 %v11389_v23, %v12499_v1  ;;  %v11597_v16 = vmul.f32 %v11389_v23, %v12501_v34  ;;  %v12508_v27 = vld [vmem:[#allocation22_spill] sm:$0xff]  ;;  %v12510_v34 = vld [vmem:[#allocation24_spill] sm:$0xff] }
 0x8a1   :  { %v11601_v28 = vmul.f32 %v11389_v23, %v12503_v22  ;;  %v11605_v38 = vmul.f32 %v11389_v23, %v12482_v60  ;;  %v11609_v21 = vmul.f32 %v11389_v23, %v12506_v63  ;;  %v11613_v11 = vmul.f32 %v11389_v23, %v12508_v27  ;;  %v11618_v1 = vld [vmem:[%s12234_s6] ss:$0 sm:$0xff] }
 0x8a2   :  { %12500 = vst [vmem:[#allocation23_spill] sm:$0xff] %v11593_v7  ;;  %12502 = vst [vmem:[#allocation27_spill] sm:$0xff] %v11597_v16  ;;  %v11622_v22 = vmul.f32 %v11389_v23, %v12510_v34  ;;  %v12516_v7 = vld [vmem:[#allocation7_spill] sm:$0xff] }
 0x8a3   :  { %12504 = vst [vmem:[#allocation17_spill] sm:$0xff] %v11601_v28  ;;  %12505 = vst [vmem:[#allocation12_spill] sm:$0xff] %v11605_v38  ;;  %v12512_v28 = vld [vmem:[#allocation6_spill] sm:$0xff]  ;;  %v11642_v34 = vmul.f32 %v11389_v23, %v12516_v7  ;;  %v11662_v7 = vadd.f32 %v11618_v1, %v11401_v62  ;;  %v11686_v62 = vadd.f32 %v11618_v1, %v11425_v13 }
 0x8a4   :  { %12507 = vst [vmem:[#allocation14_spill] sm:$0xff] %v11609_v21  ;;  %12509 = vst [vmem:[#allocation11_spill] sm:$0xff] %v11613_v11  ;;  %v11626_v60 = vmul.f32 %v11389_v23, %v12512_v28  ;;  %v12513_v38 = vld [vmem:[#allocation10_spill] sm:$0xff]  ;;  %v12515_v11 = vld [vmem:[#allocation8_spill] sm:$0xff]  ;;  %v11710_v13 = vadd.f32 %v11618_v1, %v11449_v51  ;;  %v11734_v51 = vadd.f32 %v11618_v1, %v11473_v30 }
 0x8a5   :  { %12511 = vst [vmem:[#allocation13_spill] sm:$0xff] %v11622_v22  ;;  %v11630_v63 = vmul.f32 %v11389_v23, %v12513_v38  ;;  %v12514_v21 = vld [vmem:[#allocation26_spill] sm:$0xff]  ;;  %v11638_v16 = vmul.f32 %v11389_v23, %v12515_v11  ;;  %v12517_v22 = vld [vmem:[#allocation9_spill] sm:$0xff]  ;;  %v11650_v38 = vmul.f32 %v11389_v23, %v12489_v56  ;;  %v11658_v11 = vadd.f32 %v11618_v1, %v11397_v61 }
 0x8a6   :  { %v11634_v27 = vmul.f32 %v11389_v23, %v12514_v21  ;;  %v11646_v28 = vmul.f32 %v11389_v23, %v12517_v22  ;;  %v11654_v21 = vadd.f32 %v11618_v1, %v11393_v4  ;;  %v11666_v22 = vadd.f32 %v11618_v1, %v11405_v29 }
 0x8a7   :  { %v11670_v56 = vadd.f32 %v11618_v1, %v11409_v9  ;;  %v11674_v23 = vadd.f32 %v11618_v1, %v11413_v31  ;;  %v11678_v4 = vadd.f32 %v11618_v1, %v11417_v26  ;;  %v11682_v61 = vadd.f32 %v11618_v1, %v11421_v24 }
 0x8a8   :  { %v11690_v29 = vadd.f32 %v11618_v1, %v11429_v6  ;;  %v11694_v9 = vadd.f32 %v11618_v1, %v11433_v14  ;;  %v11698_v31 = vadd.f32 %v11618_v1, %v11437_v5  ;;  %v11702_v26 = vadd.f32 %v11618_v1, %v11441_v3 }
 0x8a9   :  { %v11706_v24 = vadd.f32 %v11618_v1, %v11445_v57  ;;  %v11714_v6 = vadd.f32 %v11618_v1, %v11453_v46  ;;  %v11718_v14 = vadd.f32 %v11618_v1, %v11457_v43  ;;  %v11722_v5 = vadd.f32 %v11618_v1, %v11461_v35 }
 0x8aa   :  { %v11726_v3 = vadd.f32 %v11618_v1, %v11465_v25  ;;  %v11730_v57 = vadd.f32 %v11618_v1, %v11469_v58  ;;  %v11738_v46 = vadd.f32 %v11618_v1, %v11477_v12  ;;  %v11742_v43 = vadd.f32 %v11618_v1, %v11481_v0 }
 0x8ab   :  { %v11746_v35 = vadd.f32 %v11618_v1, %v11485_v36  ;;  %v11750_v25 = vadd.f32 %v11618_v1, %v11489_v19  ;;  %v11754_v58 = vadd.f32 %v11618_v1, %v11493_v8  ;;  %v11758_v30 = vadd.f32 %v11618_v1, %v11497_v55 }
 0x8ac   :  { %v11762_v12 = vadd.f32 %v11618_v1, %v11501_v42  ;;  %v11766_v0 = vadd.f32 %v11618_v1, %v11505_v37  ;;  %v11770_v36 = vadd.f32 %v11618_v1, %v11509_v41  ;;  %v11774_v19 = vadd.f32 %v11618_v1, %v11513_v53 }
 0x8ad   :  { %v11778_v8 = vadd.f32 %v11618_v1, %v11517_v20  ;;  %v11782_v55 = vadd.f32 %v11618_v1, %v11521_v39  ;;  %v11786_v42 = vadd.f32 %v11618_v1, %v11525_v33  ;;  %v11790_v37 = vadd.f32 %v11618_v1, %v11529_v54 }
 0x8ae   :  { %v11794_v41 = vadd.f32 %v11618_v1, %v11533_v52  ;;  %v11798_v53 = vadd.f32 %v11618_v1, %v11537_v49  ;;  %v11802_v20 = vadd.f32 %v11618_v1, %v11541_v17  ;;  %v11806_v39 = vadd.f32 %v11618_v1, %v11545_v47 }
 0x8af   :  { %v11810_v33 = vadd.f32 %v11618_v1, %v11549_v40  ;;  %v11814_v54 = vadd.f32 %v11618_v1, %v11553_v59  ;;  %v11818_v52 = vadd.f32 %v11618_v1, %v11557_v45  ;;  %v11822_v49 = vadd.f32 %v11618_v1, %v11561_v48 }
 0x8b0   :  { %v11826_v17 = vadd.f32 %v11618_v1, %v11565_v44  ;;  %v11830_v47 = vadd.f32 %v11618_v1, %v11569_v32  ;;  %v11834_v40 = vadd.f32 %v11618_v1, %v11573_v15  ;;  %v11838_v59 = vadd.f32 %v11618_v1, %v11577_v2  ;;  %v12523_v32 = vld [vmem:[#allocation23_spill] sm:$0xff] }
 0x8b1   :  { %v11842_v45 = vadd.f32 %v11618_v1, %v11581_v50  ;;  %v11846_v48 = vadd.f32 %v11618_v1, %v11585_v10  ;;  %v11850_v44 = vadd.f32 %v11618_v1, %v11589_v18  ;;  %v11854_v15 = vadd.f32 %v11618_v1, %v12523_v32 }
 0x8b2   :  { %12518 = vst [vmem:[#allocation16_spill] sm:$0xff] %v11834_v40  ;;  %12519 = vst [vmem:[#allocation18_spill] sm:$0xff] %v11838_v59  ;;  %v12525_v40 = vld [vmem:[#allocation27_spill] sm:$0xff]  ;;  %v12526_v59 = vld [vmem:[#allocation17_spill] sm:$0xff] }
 0x8b3   :  { %12520 = vst [vmem:[#allocation19_spill] sm:$0xff] %v11842_v45  ;;  %12521 = vst [vmem:[#allocation21_spill] sm:$0xff] %v11846_v48  ;;  %v11858_v2 = vadd.f32 %v11618_v1, %v12525_v40  ;;  %v11862_v50 = vadd.f32 %v11618_v1, %v12526_v59  ;;  %v12527_v45 = vld [vmem:[#allocation12_spill] sm:$0xff]  ;;  %v12528_v48 = vld [vmem:[#allocation14_spill] sm:$0xff]  ;;  %v11882_v59 = vadd.f32 %v11618_v1, %v11626_v60 }
 0x8b4   :  { %12522 = vst [vmem:[#allocation15_spill] sm:$0xff] %v11850_v44  ;;  %12524 = vst [vmem:[#allocation20_spill] sm:$0xff] %v11854_v15  ;;  %v11866_v10 = vadd.f32 %v11618_v1, %v12527_v45  ;;  %v11870_v18 = vadd.f32 %v11618_v1, %v12528_v48  ;;  %v12529_v44 = vld [vmem:[#allocation11_spill] sm:$0xff]  ;;  %v12530_v15 = vld [vmem:[#allocation13_spill] sm:$0xff]  ;;  %v11886_v45 = vadd.f32 %v11618_v1, %v11630_v63 }
 0x8b5   :  { %v11874_v32 = vadd.f32 %v11618_v1, %v12529_v44  ;;  %v11878_v40 = vadd.f32 %v11618_v1, %v12530_v15  ;;  %v11890_v48 = vadd.f32 %v11618_v1, %v11634_v27  ;;  %v11894_v44 = vadd.f32 %v11618_v1, %v11638_v16 }
 0x8b6   :  { %12531 = vst [vmem:[#allocation25_spill] sm:$0xff] %v11886_v45  ;;  %v11898_v15 = vadd.f32 %v11618_v1, %v11642_v34  ;;  %v11902_v60 = vadd.f32 %v11618_v1, %v11646_v28  ;;  %v11906_v63 = vadd.f32 %v11618_v1, %v11650_v38  ;;  %v6797_v45 = vmax.f32 %v11654_v21, 0.0 }
 0x8b7   :  { %12532 = vst [vmem:[#allocation22_spill] sm:$0xff] %v11890_v48  ;;  %12533 = vst [vmem:[#allocation24_spill] sm:$0xff] %v11894_v44  ;;  %v6798_v27 = vmax.f32 %v11658_v11, 0.0  ;;  %v6799_v48 = vmax.f32 %v11662_v7, 0.0  ;;  %v6800_v16 = vmax.f32 %v11666_v22, 0.0  ;;  %v6801_v44 = vmax.f32 %v11670_v56, 0.0 }
 0x8b8   :  { %12534 = vst [vmem:[#allocation6_spill] sm:$0xff] %v11898_v15  ;;  %12535 = vst [vmem:[#allocation10_spill] sm:$0xff] %v11902_v60  ;;  %v6802_v34 = vmax.f32 %v11674_v23, 0.0  ;;  %v6803_v15 = vmax.f32 %v11678_v4, 0.0  ;;  %v6804_v28 = vmax.f32 %v11682_v61, 0.0  ;;  %v6805_v60 = vmax.f32 %v11686_v62, 0.0 }
 0x8b9   :  { %v6806_v1 = vmax.f32 %v11690_v29, 0.0  ;;  %v6807_v38 = vmax.f32 %v11694_v9, 0.0  ;;  %v6808_v21 = vmax.f32 %v11698_v31, 0.0  ;;  %6861 = vst.msk [vmem:[%s12235_s7] sm:$0xff] %vm2863_vm13, %v6797_v45  ;;  %6862 = vst.msk [vmem:[%s12235_s7 + $0x8] sm:$0xff] %vm2863_vm13, %v6798_v27  ;;  %v6809_v11 = vmax.f32 %v11702_v26, 0.0 }
 0x8ba   :  { %6863 = vst.msk [vmem:[%s12235_s7 + $0x10] sm:$0xff] %vm2863_vm13, %v6799_v48  ;;  %6864 = vst.msk [vmem:[%s12235_s7 + $0x18] sm:$0xff] %vm2863_vm13, %v6800_v16  ;;  %v6810_v7 = vmax.f32 %v11706_v24, 0.0  ;;  %v6811_v22 = vmax.f32 %v11710_v13, 0.0  ;;  %v6812_v56 = vmax.f32 %v11714_v6, 0.0  ;;  %v6813_v23 = vmax.f32 %v11718_v14, 0.0 }
 0x8bb   :  { %6865 = vst.msk [vmem:[%s12235_s7 + $0x20] sm:$0xff] %vm2863_vm13, %v6801_v44  ;;  %6866 = vst.msk [vmem:[%s12235_s7 + $0x28] sm:$0xff] %vm2863_vm13, %v6802_v34  ;;  %v6814_v4 = vmax.f32 %v11722_v5, 0.0  ;;  %v6815_v61 = vmax.f32 %v11726_v3, 0.0  ;;  %v6816_v62 = vmax.f32 %v11730_v57, 0.0  ;;  %v6817_v29 = vmax.f32 %v11734_v51, 0.0 }
 0x8bc   :  { %6867 = vst.msk [vmem:[%s12235_s7 + $0x30] sm:$0xff] %vm2863_vm13, %v6803_v15  ;;  %6868 = vst.msk [vmem:[%s12235_s7 + $0x38] sm:$0xff] %vm2863_vm13, %v6804_v28  ;;  %v6818_v9 = vmax.f32 %v11738_v46, 0.0  ;;  %v6819_v31 = vmax.f32 %v11742_v43, 0.0  ;;  %v6820_v26 = vmax.f32 %v11746_v35, 0.0  ;;  %v6821_v24 = vmax.f32 %v11750_v25, 0.0 }
 0x8bd   :  { %6869 = vst.msk [vmem:[%s12235_s7 + $0x40] sm:$0xff] %vm2863_vm13, %v6805_v60  ;;  %6870 = vst.msk [vmem:[%s12235_s7 + $0x48] sm:$0xff] %vm2863_vm13, %v6806_v1  ;;  %v6822_v13 = vmax.f32 %v11754_v58, 0.0  ;;  %v6823_v6 = vmax.f32 %v11758_v30, 0.0  ;;  %v6824_v14 = vmax.f32 %v11762_v12, 0.0  ;;  %v6825_v5 = vmax.f32 %v11766_v0, 0.0 }
 0x8be   :  { %6871 = vst.msk [vmem:[%s12235_s7 + $0x50] sm:$0xff] %vm2863_vm13, %v6807_v38  ;;  %6872 = vst.msk [vmem:[%s12235_s7 + $0x58] sm:$0xff] %vm2863_vm13, %v6808_v21  ;;  %v6826_v3 = vmax.f32 %v11770_v36, 0.0  ;;  %v6827_v57 = vmax.f32 %v11774_v19, 0.0  ;;  %v6828_v51 = vmax.f32 %v11778_v8, 0.0  ;;  %v6829_v46 = vmax.f32 %v11782_v55, 0.0 }
 0x8bf   :  { %6873 = vst.msk [vmem:[%s12235_s7 + $0x60] sm:$0xff] %vm2863_vm13, %v6809_v11  ;;  %6874 = vst.msk [vmem:[%s12235_s7 + $0x68] sm:$0xff] %vm2863_vm13, %v6810_v7  ;;  %v6830_v43 = vmax.f32 %v11786_v42, 0.0  ;;  %v6831_v35 = vmax.f32 %v11790_v37, 0.0  ;;  %v6832_v25 = vmax.f32 %v11794_v41, 0.0  ;;  %v6833_v58 = vmax.f32 %v11798_v53, 0.0 }
 0x8c0   :  { %6875 = vst.msk [vmem:[%s12235_s7 + $0x70] sm:$0xff] %vm2863_vm13, %v6811_v22  ;;  %6876 = vst.msk [vmem:[%s12235_s7 + $0x78] sm:$0xff] %vm2863_vm13, %v6812_v56  ;;  %v6834_v30 = vmax.f32 %v11802_v20, 0.0  ;;  %v6835_v12 = vmax.f32 %v11806_v39, 0.0  ;;  %v6836_v0 = vmax.f32 %v11810_v33, 0.0  ;;  %v6837_v36 = vmax.f32 %v11814_v54, 0.0 }
 0x8c1   :  { %6877 = vst.msk [vmem:[%s12235_s7 + $0x80] sm:$0xff] %vm2863_vm13, %v6813_v23  ;;  %6878 = vst.msk [vmem:[%s12235_s7 + $0x88] sm:$0xff] %vm2863_vm13, %v6814_v4  ;;  %v6838_v19 = vmax.f32 %v11818_v52, 0.0  ;;  %v6839_v8 = vmax.f32 %v11822_v49, 0.0  ;;  %v6840_v55 = vmax.f32 %v11826_v17, 0.0  ;;  %v6841_v42 = vmax.f32 %v11830_v47, 0.0 }
 0x8c2   :  { %6879 = vst.msk [vmem:[%s12235_s7 + $0x90] sm:$0xff] %vm2863_vm13, %v6815_v61  ;;  %6880 = vst.msk [vmem:[%s12235_s7 + $0x98] sm:$0xff] %vm2863_vm13, %v6816_v62  ;;  %v12536_v37 = vld [vmem:[#allocation16_spill] sm:$0xff]  ;;  %v12537_v53 = vld [vmem:[#allocation18_spill] sm:$0xff]  ;;  %v6848_v48 = vmax.f32 %v11858_v2, 0.0  ;;  %v6849_v2 = vmax.f32 %v11862_v50, 0.0 }
 0x8c3   :  { %6881 = vst.msk [vmem:[%s12235_s7 + $0xa0] sm:$0xff] %vm2863_vm13, %v6817_v29  ;;  %6882 = vst.msk [vmem:[%s12235_s7 + $0xa8] sm:$0xff] %vm2863_vm13, %v6818_v9  ;;  %v6842_v41 = vmax.f32 %v12536_v37, 0.0  ;;  %v6843_v20 = vmax.f32 %v12537_v53, 0.0  ;;  %v12538_v39 = vld [vmem:[#allocation19_spill] sm:$0xff]  ;;  %v12539_v54 = vld [vmem:[#allocation21_spill] sm:$0xff] }
 0x8c4   :  { %6883 = vst.msk [vmem:[%s12235_s7 + $0xb0] sm:$0xff] %vm2863_vm13, %v6819_v31  ;;  %6884 = vst.msk [vmem:[%s12235_s7 + $0xb8] sm:$0xff] %vm2863_vm13, %v6820_v26  ;;  %v6844_v33 = vmax.f32 %v12538_v39, 0.0  ;;  %v6845_v52 = vmax.f32 %v12539_v54, 0.0  ;;  %v12540_v49 = vld [vmem:[#allocation15_spill] sm:$0xff]  ;;  %v12541_v47 = vld [vmem:[#allocation20_spill] sm:$0xff] }
 0x8c5   :  { %6885 = vst.msk [vmem:[%s12235_s7 + $0xc0] sm:$0xff] %vm2863_vm13, %v6821_v24  ;;  %6886 = vst.msk [vmem:[%s12235_s7 + $0xc8] sm:$0xff] %vm2863_vm13, %v6822_v13  ;;  %v6846_v17 = vmax.f32 %v12540_v49, 0.0  ;;  %v6847_v45 = vmax.f32 %v12541_v47, 0.0  ;;  %v6850_v44 = vmax.f32 %v11866_v10, 0.0  ;;  %v6851_v15 = vmax.f32 %v11870_v18, 0.0 }
 0x8c6   :  { %6887 = vst.msk [vmem:[%s12235_s7 + $0xd0] sm:$0xff] %vm2863_vm13, %v6823_v6  ;;  %6888 = vst.msk [vmem:[%s12235_s7 + $0xd8] sm:$0xff] %vm2863_vm13, %v6824_v14  ;;  %v6852_v60 = vmax.f32 %v11874_v32, 0.0  ;;  %v6853_v50 = vmax.f32 %v11878_v40, 0.0  ;;  %v6854_v10 = vmax.f32 %v11882_v59, 0.0  ;;  %v12542_v18 = vld [vmem:[#allocation25_spill] sm:$0xff] }
 0x8c7   :  { %6889 = vst.msk [vmem:[%s12235_s7 + $0xe0] sm:$0xff] %vm2863_vm13, %v6825_v5  ;;  %6890 = vst.msk [vmem:[%s12235_s7 + $0xe8] sm:$0xff] %vm2863_vm13, %v6826_v3  ;;  %v6855_v32 = vmax.f32 %v12542_v18, 0.0  ;;  %v12543_v27 = vld [vmem:[#allocation22_spill] sm:$0xff]  ;;  %v12544_v40 = vld [vmem:[#allocation24_spill] sm:$0xff]  ;;  %v6860_v21 = vmax.f32 %v11906_v63, 0.0 }
 0x8c8   :  { %6891 = vst.msk [vmem:[%s12235_s7 + $0xf0] sm:$0xff] %vm2863_vm13, %v6827_v57  ;;  %6892 = vst.msk [vmem:[%s12235_s7 + $0xf8] sm:$0xff] %vm2863_vm13, %v6828_v51  ;;  %v6856_v16 = vmax.f32 %v12543_v27, 0.0  ;;  %v6857_v59 = vmax.f32 %v12544_v40, 0.0  ;;  %v12545_v34 = vld [vmem:[#allocation6_spill] sm:$0xff] }
 0x8c9   :  { %6893 = vst.msk [vmem:[%s12235_s7 + $0x100] sm:$0xff] %vm2863_vm13, %v6829_v46  ;;  %6894 = vst.msk [vmem:[%s12235_s7 + $0x108] sm:$0xff] %vm2863_vm13, %v6830_v43  ;;  %v6858_v28 = vmax.f32 %v12545_v34, 0.0  ;;  %v12546_v1 = vld [vmem:[#allocation10_spill] sm:$0xff] }
 0x8ca   :  { %6895 = vst.msk [vmem:[%s12235_s7 + $0x110] sm:$0xff] %vm2863_vm13, %v6831_v35  ;;  %6896 = vst.msk [vmem:[%s12235_s7 + $0x118] sm:$0xff] %vm2863_vm13, %v6832_v25  ;;  %v6859_v38 = vmax.f32 %v12546_v1, 0.0 }
 0x8cb   :  { %6897 = vst.msk [vmem:[%s12235_s7 + $0x120] sm:$0xff] %vm2863_vm13, %v6833_v58  ;;  %6898 = vst.msk [vmem:[%s12235_s7 + $0x128] sm:$0xff] %vm2863_vm13, %v6834_v30 }
 0x8cc   :  { %6899 = vst.msk [vmem:[%s12235_s7 + $0x130] sm:$0xff] %vm2863_vm13, %v6835_v12  ;;  %6900 = vst.msk [vmem:[%s12235_s7 + $0x138] sm:$0xff] %vm2863_vm13, %v6836_v0 }
 0x8cd   :  { %6901 = vst.msk [vmem:[%s12235_s7 + $0x140] sm:$0xff] %vm2863_vm13, %v6837_v36  ;;  %6902 = vst.msk [vmem:[%s12235_s7 + $0x148] sm:$0xff] %vm2863_vm13, %v6838_v19 }
 0x8ce   :  { %6903 = vst.msk [vmem:[%s12235_s7 + $0x150] sm:$0xff] %vm2863_vm13, %v6839_v8  ;;  %6904 = vst.msk [vmem:[%s12235_s7 + $0x158] sm:$0xff] %vm2863_vm13, %v6840_v55 }
 0x8cf   :  { %6905 = vst.msk [vmem:[%s12235_s7 + $0x160] sm:$0xff] %vm2863_vm13, %v6841_v42  ;;  %6906 = vst.msk [vmem:[%s12235_s7 + $0x168] sm:$0xff] %vm2863_vm13, %v6842_v41 }
 0x8d0   :  { %6907 = vst.msk [vmem:[%s12235_s7 + $0x170] sm:$0xff] %vm2863_vm13, %v6843_v20  ;;  %6908 = vst.msk [vmem:[%s12235_s7 + $0x178] sm:$0xff] %vm2863_vm13, %v6844_v33 }
 0x8d1   :  { %6909 = vst.msk [vmem:[%s12235_s7 + $0x180] sm:$0xff] %vm2863_vm13, %v6845_v52  ;;  %6910 = vst.msk [vmem:[%s12235_s7 + $0x188] sm:$0xff] %vm2863_vm13, %v6846_v17 }
 0x8d2   :  { %6911 = vst.msk [vmem:[%s12235_s7 + $0x190] sm:$0xff] %vm2863_vm13, %v6847_v45  ;;  %6912 = vst.msk [vmem:[%s12235_s7 + $0x198] sm:$0xff] %vm2863_vm13, %v6848_v48 }
 0x8d3   :  { %6913 = vst.msk [vmem:[%s12235_s7 + $0x1a0] sm:$0xff] %vm2863_vm13, %v6849_v2  ;;  %6914 = vst.msk [vmem:[%s12235_s7 + $0x1a8] sm:$0xff] %vm2863_vm13, %v6850_v44 }
 0x8d4   :  { %6915 = vst.msk [vmem:[%s12235_s7 + $0x1b0] sm:$0xff] %vm2863_vm13, %v6851_v15  ;;  %6916 = vst.msk [vmem:[%s12235_s7 + $0x1b8] sm:$0xff] %vm2863_vm13, %v6852_v60 }
 0x8d5   :  { %6917 = vst.msk [vmem:[%s12235_s7 + $0x1c0] sm:$0xff] %vm2863_vm13, %v6853_v50  ;;  %6918 = vst.msk [vmem:[%s12235_s7 + $0x1c8] sm:$0xff] %vm2863_vm13, %v6854_v10 }
 0x8d6   :  { %6919 = vst.msk [vmem:[%s12235_s7 + $0x1d0] sm:$0xff] %vm2863_vm13, %v6855_v32  ;;  %6920 = vst.msk [vmem:[%s12235_s7 + $0x1d8] sm:$0xff] %vm2863_vm13, %v6856_v16 }
 0x8d7   :  { %6921 = vst.msk [vmem:[%s12235_s7 + $0x1e0] sm:$0xff] %vm2863_vm13, %v6857_v59  ;;  %6922 = vst.msk [vmem:[%s12235_s7 + $0x1e8] sm:$0xff] %vm2863_vm13, %v6858_v28 }
 0x8d8   :  { %6923 = vst.msk [vmem:[%s12235_s7 + $0x1f0] sm:$0xff] %vm2863_vm13, %v6859_v38  ;;  %6924 = vst.msk [vmem:[%s12235_s7 + $0x1f8] sm:$0xff] %vm2863_vm13, %v6860_v21 }

</bundles_post_ra>
